<compile_context>
chip_gen: v7x
topology: tpu7x:2x2x1
jax: 0.10.0
libtpu: 0.0.40
codegen_flags: <defaults>
</compile_context>

<pallas_src>
import math

import jax
import jax.numpy as jnp
from jax.experimental import pallas as pl
from jax.experimental.pallas import tpu as pltpu

FEAT_DIM = 1280   # 'b0'
META_DIM = 32
META_PAD = 128    # zero-padded lane width for the meta stream
HID1 = 512
HID2 = 128
FUSE_DIM = 256


def _round_up(x, m):
    return ((x + m - 1) // m) * m


def _swish(v):
    # Swish.forward: i * sigmoid(i)
    return v * jax.nn.sigmoid(v)


def _is_v5e():
    try:
        kind = jax.devices()[0].device_kind.lower()
        return ("v5 lite" in kind) or ("v5e" in kind) or ("v5litepod" in kind)
    except Exception:
        return False


def _make_kernel(fold_pooling, C, S):
    def kernel(
        x_img_ref,    # (TB, C*S)  bf16, lane-dense
        x_meta_ref,   # (TB, 128)  bf16 (zero-padded from 32)
        wproj_ref,    # folded: (C*S, 1280) bf16 (row c*S+s = wproj[c]/S)
                      # sum   : (C, 1280)   bf16 (pre-scaled by 1/S)
        bproj_ref,    # (1, 1280) f32
        wb1_ref, bb1_ref,                  # (1280, 512) bf16, (1, 512) f32  bottleneck[0]
        wb2_ref, bb2_ref,                  # (512, 128)  bf16, (1, 128) f32  bottleneck[2]
        wm1_ref, bm1_ref,                  # (128, 512)  bf16 (padded rows), (1, 512) f32  meta_net[0]
        wm2_ref, bm2_ref,                  # (512, 128)  bf16, (1, 128) f32  meta_net[2]
        wf_img_ref, wf_meta_ref, bf_ref,   # (128,256) bf16, (128,256) bf16, (1,256) f32  fuse
        out_ref,      # (TB, 256) f32
    ):
        # ---- synthetic backbone stand-in: global-avg-pool + projection -----
        if fold_pooling:
            # avg-pool folded into the expanded projection weight: one proper
            # K = C*S MXU contraction, f32 accumulation on the MXU.
            f_img = jnp.dot(x_img_ref[...], wproj_ref[...],
                            preferred_element_type=jnp.float32) + bproj_ref[...]
        else:
            # memory-bound form (v5e): per-channel f32 spatial sums (XLU) and
            # C rank-1 VPU updates; 1/S is already folded into wproj.
            x = x_img_ref[...]
            w = wproj_ref[...].astype(jnp.float32)            # (C, 1280)
            f_img = bproj_ref[...]                            # (1, 1280) f32
            for c in range(C):
                s_c = jnp.sum(x[:, c * S:(c + 1) * S].astype(jnp.float32),
                              axis=-1, keepdims=True)         # (TB, 1)
                f_img = f_img + s_c * w[c:c + 1, :]           # -> (TB, 1280)

        # ---- bottleneck: Linear(1280,512) -> Swish -> Linear(512,128) -> Swish
        h = _swish(jnp.dot(f_img.astype(jnp.bfloat16), wb1_ref[...],
                           preferred_element_type=jnp.float32) + bb1_ref[...])
        f_img = _swish(jnp.dot(h.astype(jnp.bfloat16), wb2_ref[...],
                               preferred_element_type=jnp.float32) + bb2_ref[...])

        # ---- meta_net: Linear(32,512) -> Swish -> Linear(512,128) -> Swish --
        hm = _swish(jnp.dot(x_meta_ref[...], wm1_ref[...],
                            preferred_element_type=jnp.float32) + bm1_ref[...])
        f_meta = _swish(jnp.dot(hm.astype(jnp.bfloat16), wm2_ref[...],
                                preferred_element_type=jnp.float32) + bm2_ref[...])

        # ---- fuse: concat([f_img, f_meta], -1) @ Wf + bf --------------------
        # split-weight form of concat + single matmul (no in-kernel concat).
        out_ref[...] = (
            jnp.dot(f_img.astype(jnp.bfloat16), wf_img_ref[...],
                    preferred_element_type=jnp.float32)
            + jnp.dot(f_meta.astype(jnp.bfloat16), wf_meta_ref[...],
                      preferred_element_type=jnp.float32)
            + bf_ref[...]
        )

    return kernel


def metasvdd_forward(x_img, x_meta, params, *, batch_tile=256, fold_pooling=None):
    """x_img: (B, C, H, W) NCHW; x_meta: (B, 32). Returns (B, 256) f32."""
    B, C, H, W = x_img.shape
    S = H * W
    K_IMG = C * S

    if fold_pooling is None:
        # Folding the pool into a K=C*S MXU contraction pays on v6e/v7x; on
        # v5e keep the memory-bound sum-then-project form.
        fold_pooling = not _is_v5e()

    # ---- batch tiling -------------------------------------------------------
    B8 = _round_up(B, 8)
    TB = min(batch_tile, B8)
    if 8 < B8 <= batch_tile:
        # Moderate batch that would fit one tile: split into two grid steps so
        # the "parallel" batch axis can feed both TensorCores (v7x megacore).
        TB = _round_up((B8 + 1) // 2, 8)
    TB = max(TB, 8)
    B_pad = _round_up(B, TB)
    grid = (B_pad // TB,)

    # ---- inputs: lane-dense bf16 streams ------------------------------------
    x_img_2d = x_img.reshape(B, K_IMG).astype(jnp.bfloat16)           # (B, C*S)
    x_meta_b = jnp.pad(x_meta.astype(jnp.bfloat16),
                       ((0, 0), (0, META_PAD - META_DIM)))             # (B, 128)
    if B_pad != B:
        x_img_2d = jnp.pad(x_img_2d, ((0, B_pad - B), (0, 0)))
        x_meta_b = jnp.pad(x_meta_b, ((0, B_pad - B), (0, 0)))

    # ---- weights: fold 1/S, expand / pad, cast to bf16 (biases stay f32) ----
    wproj_f32 = params["wproj"].astype(jnp.float32) / float(S)
    if fold_pooling:
        # row c*S + s of the expanded weight is wproj[c] / S, matching the
        # channel-major flattening of x_img.
        wproj = jnp.repeat(wproj_f32, S, axis=0).astype(jnp.bfloat16)  # (C*S, 1280)
    else:
        wproj = wproj_f32.astype(jnp.bfloat16)                         # (C, 1280)
    wm1 = jnp.pad(params["wm1"].astype(jnp.float32),
                  ((0, META_PAD - META_DIM), (0, 0))).astype(jnp.bfloat16)

    def wm(name):
        return params[name].astype(jnp.bfloat16)

    def bs(name):
        return params[name].astype(jnp.float32)

    args = (
        x_img_2d, x_meta_b,
        wproj, bs("bproj"),
        wm("wb1"), bs("bb1"), wm("wb2"), bs("bb2"),
        wm1, bs("bm1"), wm("wm2"), bs("bm2"),
        wm("wf_img"), wm("wf_meta"), bs("bf"),
    )

    kernel = _make_kernel(fold_pooling, C, S)

    # VMEM budget: double-buffered I/O tiles + resident weights + headroom.
    io_bytes = 2 * TB * (K_IMG * 2 + META_PAD * 2 + FUSE_DIM * 4)
    weight_bytes = sum(int(a.size) * a.dtype.itemsize for a in args[2:])

    def build(single_buffer_weights):
        def batch_spec(shape):
            ndim = len(shape)
            block = (TB,) + tuple(shape[1:])
            return pl.BlockSpec(block, lambda i: (i,) + (0,) * (ndim - 1))

        def resident_spec(arr):
            shp = tuple(arr.shape)
            # Constant index_map -> fetched once, stays resident across grid.
            if single_buffer_weights:
                return pl.BlockSpec(shp, lambda i: (0,) * len(shp),
                                    pipeline_mode=pl.Buffered(1))
            return pl.BlockSpec(shp, lambda i: (0,) * len(shp))

        in_specs = [batch_spec(x_img_2d.shape), batch_spec(x_meta_b.shape)]
        in_specs += [resident_spec(a) for a in args[2:]]
        # Output stays lane-dense (256-wide block), f32.
        out_specs = pl.BlockSpec((TB, FUSE_DIM), lambda i: (i, 0))

        wmult = 1 if single_buffer_weights else 2
        vmem_limit = int(min(max(io_bytes + wmult * weight_bytes + (16 << 20),
                                 32 << 20), 64 << 20))

        return pl.pallas_call(
            kernel,
            out_shape=jax.ShapeDtypeStruct((B_pad, FUSE_DIM), jnp.float32),
            grid_spec=pltpu.PrefetchScalarGridSpec(
                num_scalar_prefetch=0,
                grid=grid,
                in_specs=in_specs,
                out_specs=out_specs,
            ),
            compiler_params=pltpu.CompilerParams(
                dimension_semantics=("parallel",),
                vmem_limit_bytes=vmem_limit,
            ),
        )

    try:
        out = build(single_buffer_weights=True)(*args)
    except Exception:
        # pipeline_mode=pl.Buffered(1) unsupported on this jax/libtpu: fall
        # back to default double buffering for the resident weights.
        out = build(single_buffer_weights=False)(*args)
    return out[:B]


def _init_linear(key, fan_in, fan_out):
    # PyTorch nn.Linear default init: U(-1/sqrt(fan_in), 1/sqrt(fan_in))
    k1, k2 = jax.random.split(key)
    bound = 1.0 / math.sqrt(fan_in)
    w = jax.random.uniform(k1, (fan_in, fan_out), jnp.float32, -bound, bound)
    b = jax.random.uniform(k2, (1, fan_out), jnp.float32, -bound, bound)
    return w, b


def init_params(key, c_in=3):
    keys = jax.random.split(key, 6)
    wproj, bproj = _init_linear(keys[0], c_in, FEAT_DIM)        # backbone stand-in
    wb1, bb1 = _init_linear(keys[1], FEAT_DIM, HID1)            # bottleneck[0]
    wb2, bb2 = _init_linear(keys[2], HID1, HID2)                # bottleneck[2]
    wm1, bm1 = _init_linear(keys[3], META_DIM, HID1)            # meta_net[0]
    wm2, bm2 = _init_linear(keys[4], HID1, HID2)                # meta_net[2]
    wf, bf = _init_linear(keys[5], 2 * HID2, FUSE_DIM)          # fuse
    return {
        "wproj": wproj, "bproj": bproj,
        "wb1": wb1, "bb1": bb1,
        "wb2": wb2, "bb2": bb2,
        "wm1": wm1, "bm1": bm1,
        "wm2": wm2, "bm2": bm2,
        "wf_img": wf[:HID2, :], "wf_meta": wf[HID2:, :], "bf": bf,
    }


def _reference(x_img, x_meta, params):
    # Pure-JAX f32 reference of the same forward pass (backbone stand-in
    # included) for a tolerance check against the bf16-stream kernel.
    B, C, H, W = x_img.shape
    f = jnp.mean(x_img.reshape(B, C, H * W).astype(jnp.float32), axis=-1)
    f = f @ params["wproj"] + params["bproj"]
    f = _swish(f @ params["wb1"] + params["bb1"])
    f = _swish(f @ params["wb2"] + params["bb2"])
    m = _swish(x_meta.astype(jnp.float32) @ params["wm1"] + params["bm1"])
    m = _swish(m @ params["wm2"] + params["bm2"])
    return f @ params["wf_img"] + m @ params["wf_meta"] + params["bf"]


if __name__ == "__main__":
    key = jax.random.PRNGKey(0)
    k_img, k_meta, k_params = jax.random.split(key, 3)

    B, C, H, W = 2, 3, 16, 16
    x_img = jax.random.normal(k_img, (B, C, H, W), jnp.float32)   # NCHW
    x_meta = jax.random.normal(k_meta, (B, META_DIM), jnp.float32)
    params = init_params(k_params, c_in=C)

    out = metasvdd_forward(x_img, x_meta, params)
    out = jax.block_until_ready(out)

    assert out.shape == (B, FUSE_DIM), out.shape
    assert out.dtype == jnp.float32
    assert bool(jnp.all(jnp.isfinite(out)))

    ref = _reference(x_img, x_meta, params)
    assert bool(jnp.allclose(out, ref, rtol=1e-1, atol=1e-1)), (
        float(jnp.max(jnp.abs(out - ref))))

    print("KERNEL_OK")
</pallas_src>

<mosaic_0001>
module attributes {stable_mosaic.version = 11 : i64} {
  func.func @kernel(%arg0: i32, %arg1: memref<8x768xbf16, #tpu.memory_space<vmem>>, %arg2: memref<8x128xbf16, #tpu.memory_space<vmem>>, %arg3: memref<768x1280xbf16, #tpu.memory_space<vmem>>, %arg4: memref<1x1280xf32, #tpu.memory_space<vmem>>, %arg5: memref<1280x512xbf16, #tpu.memory_space<vmem>>, %arg6: memref<1x512xf32, #tpu.memory_space<vmem>>, %arg7: memref<512x128xbf16, #tpu.memory_space<vmem>>, %arg8: memref<1x128xf32, #tpu.memory_space<vmem>>, %arg9: memref<128x512xbf16, #tpu.memory_space<vmem>>, %arg10: memref<1x512xf32, #tpu.memory_space<vmem>>, %arg11: memref<512x128xbf16, #tpu.memory_space<vmem>>, %arg12: memref<1x128xf32, #tpu.memory_space<vmem>>, %arg13: memref<128x256xbf16, #tpu.memory_space<vmem>>, %arg14: memref<128x256xbf16, #tpu.memory_space<vmem>>, %arg15: memref<1x256xf32, #tpu.memory_space<vmem>>, %arg16: memref<8x256xf32, #tpu.memory_space<vmem>>) attributes {dimension_semantics = [#tpu.dimension_semantics<parallel>], iteration_bounds = array<i64: 1>, scalar_prefetch = 0 : i64, scratch_operands = 0 : i64, tpu.core_type = #tpu.core_type<tc>, window_params = [{transform_indices = @transform_0, window_bounds = array<i64: 8, 768>}, {transform_indices = @transform_1, window_bounds = array<i64: 8, 128>}, {pipeline_mode = #tpu.pipeline_mode<synchronous>, transform_indices = @transform_2, window_bounds = array<i64: 768, 1280>}, {pipeline_mode = #tpu.pipeline_mode<synchronous>, transform_indices = @transform_3, window_bounds = array<i64: 1, 1280>}, {pipeline_mode = #tpu.pipeline_mode<synchronous>, transform_indices = @transform_4, window_bounds = array<i64: 1280, 512>}, {pipeline_mode = #tpu.pipeline_mode<synchronous>, transform_indices = @transform_5, window_bounds = array<i64: 1, 512>}, {pipeline_mode = #tpu.pipeline_mode<synchronous>, transform_indices = @transform_6, window_bounds = array<i64: 512, 128>}, {pipeline_mode = #tpu.pipeline_mode<synchronous>, transform_indices = @transform_7, window_bounds = array<i64: 1, 128>}, {pipeline_mode = #tpu.pipeline_mode<synchronous>, transform_indices = @transform_8, window_bounds = array<i64: 128, 512>}, {pipeline_mode = #tpu.pipeline_mode<synchronous>, transform_indices = @transform_9, window_bounds = array<i64: 1, 512>}, {pipeline_mode = #tpu.pipeline_mode<synchronous>, transform_indices = @transform_10, window_bounds = array<i64: 512, 128>}, {pipeline_mode = #tpu.pipeline_mode<synchronous>, transform_indices = @transform_11, window_bounds = array<i64: 1, 128>}, {pipeline_mode = #tpu.pipeline_mode<synchronous>, transform_indices = @transform_12, window_bounds = array<i64: 128, 256>}, {pipeline_mode = #tpu.pipeline_mode<synchronous>, transform_indices = @transform_13, window_bounds = array<i64: 128, 256>}, {pipeline_mode = #tpu.pipeline_mode<synchronous>, transform_indices = @transform_14, window_bounds = array<i64: 1, 256>}, {transform_indices = @transform_15, window_bounds = array<i64: 8, 256>}]} {
    %c0 = arith.constant 0 : index
    %c0_0 = arith.constant 0 : index
    %0 = vector.load %arg1[%c0, %c0_0] : memref<8x768xbf16, #tpu.memory_space<vmem>>, vector<8x768xbf16>
    %c0_1 = arith.constant 0 : index
    %c0_2 = arith.constant 0 : index
    %1 = vector.load %arg3[%c0_1, %c0_2] : memref<768x1280xbf16, #tpu.memory_space<vmem>>, vector<768x1280xbf16>
    %cst = arith.constant dense<0.000000e+00> : vector<8x1280xf32>
    %2 = tpu.matmul %0, %1, %cst {dimension_numbers = #tpu.dot_dimension_numbers<[1], [0], [0], [1], [0, 0, 1, 1], [], []>} : vector<8x768xbf16>, vector<768x1280xbf16>, vector<8x1280xf32> -> vector<8x1280xf32>
    %c0_3 = arith.constant 0 : index
    %c0_4 = arith.constant 0 : index
    %3 = vector.load %arg4[%c0_3, %c0_4] : memref<1x1280xf32, #tpu.memory_space<vmem>>, vector<1x1280xf32>
    %4 = vector.broadcast %3 : vector<1x1280xf32> to vector<8x1280xf32>
    %5 = arith.addf %2, %4 : vector<8x1280xf32>
    %6 = arith.truncf %5 : vector<8x1280xf32> to vector<8x1280xbf16>
    %c0_5 = arith.constant 0 : index
    %c0_6 = arith.constant 0 : index
    %7 = vector.load %arg5[%c0_5, %c0_6] : memref<1280x512xbf16, #tpu.memory_space<vmem>>, vector<1280x512xbf16>
    %cst_7 = arith.constant dense<0.000000e+00> : vector<8x512xf32>
    %8 = tpu.matmul %6, %7, %cst_7 {dimension_numbers = #tpu.dot_dimension_numbers<[1], [0], [0], [1], [0, 0, 1, 1], [], []>} : vector<8x1280xbf16>, vector<1280x512xbf16>, vector<8x512xf32> -> vector<8x512xf32>
    %c0_8 = arith.constant 0 : index
    %c0_9 = arith.constant 0 : index
    %9 = vector.load %arg6[%c0_8, %c0_9] : memref<1x512xf32, #tpu.memory_space<vmem>>, vector<1x512xf32>
    %10 = vector.broadcast %9 : vector<1x512xf32> to vector<8x512xf32>
    %11 = arith.addf %8, %10 : vector<8x512xf32>
    %12 = arith.negf %11 : vector<8x512xf32>
    %13 = math.exp %12 : vector<8x512xf32>
    %cst_10 = arith.constant 1.000000e+00 : f32
    %14 = vector.broadcast %cst_10 : f32 to vector<8x512xf32>
    %15 = arith.addf %14, %13 : vector<8x512xf32>
    %16 = arith.divf %14, %15 : vector<8x512xf32>
    %17 = arith.mulf %11, %16 : vector<8x512xf32>
    %18 = arith.truncf %17 : vector<8x512xf32> to vector<8x512xbf16>
    %c0_11 = arith.constant 0 : index
    %c0_12 = arith.constant 0 : index
    %19 = vector.load %arg7[%c0_11, %c0_12] : memref<512x128xbf16, #tpu.memory_space<vmem>>, vector<512x128xbf16>
    %cst_13 = arith.constant dense<0.000000e+00> : vector<8x128xf32>
    %20 = tpu.matmul %18, %19, %cst_13 {dimension_numbers = #tpu.dot_dimension_numbers<[1], [0], [0], [1], [0, 0, 1, 1], [], []>} : vector<8x512xbf16>, vector<512x128xbf16>, vector<8x128xf32> -> vector<8x128xf32>
    %c0_14 = arith.constant 0 : index
    %c0_15 = arith.constant 0 : index
    %21 = vector.load %arg8[%c0_14, %c0_15] : memref<1x128xf32, #tpu.memory_space<vmem>>, vector<1x128xf32>
    %22 = vector.broadcast %21 : vector<1x128xf32> to vector<8x128xf32>
    %23 = arith.addf %20, %22 : vector<8x128xf32>
    %24 = arith.negf %23 : vector<8x128xf32>
    %25 = math.exp %24 : vector<8x128xf32>
    %cst_16 = arith.constant 1.000000e+00 : f32
    %26 = vector.broadcast %cst_16 : f32 to vector<8x128xf32>
    %27 = arith.addf %26, %25 : vector<8x128xf32>
    %28 = arith.divf %26, %27 : vector<8x128xf32>
    %29 = arith.mulf %23, %28 : vector<8x128xf32>
    %c0_17 = arith.constant 0 : index
    %c0_18 = arith.constant 0 : index
    %30 = vector.load %arg2[%c0_17, %c0_18] : memref<8x128xbf16, #tpu.memory_space<vmem>>, vector<8x128xbf16>
    %c0_19 = arith.constant 0 : index
    %c0_20 = arith.constant 0 : index
    %31 = vector.load %arg9[%c0_19, %c0_20] : memref<128x512xbf16, #tpu.memory_space<vmem>>, vector<128x512xbf16>
    %cst_21 = arith.constant dense<0.000000e+00> : vector<8x512xf32>
    %32 = tpu.matmul %30, %31, %cst_21 {dimension_numbers = #tpu.dot_dimension_numbers<[1], [0], [0], [1], [0, 0, 1, 1], [], []>} : vector<8x128xbf16>, vector<128x512xbf16>, vector<8x512xf32> -> vector<8x512xf32>
    %c0_22 = arith.constant 0 : index
    %c0_23 = arith.constant 0 : index
    %33 = vector.load %arg10[%c0_22, %c0_23] : memref<1x512xf32, #tpu.memory_space<vmem>>, vector<1x512xf32>
    %34 = vector.broadcast %33 : vector<1x512xf32> to vector<8x512xf32>
    %35 = arith.addf %32, %34 : vector<8x512xf32>
    %36 = arith.negf %35 : vector<8x512xf32>
    %37 = math.exp %36 : vector<8x512xf32>
    %cst_24 = arith.constant 1.000000e+00 : f32
    %38 = vector.broadcast %cst_24 : f32 to vector<8x512xf32>
    %39 = arith.addf %38, %37 : vector<8x512xf32>
    %40 = arith.divf %38, %39 : vector<8x512xf32>
    %41 = arith.mulf %35, %40 : vector<8x512xf32>
    %42 = arith.truncf %41 : vector<8x512xf32> to vector<8x512xbf16>
    %c0_25 = arith.constant 0 : index
    %c0_26 = arith.constant 0 : index
    %43 = vector.load %arg11[%c0_25, %c0_26] : memref<512x128xbf16, #tpu.memory_space<vmem>>, vector<512x128xbf16>
    %cst_27 = arith.constant dense<0.000000e+00> : vector<8x128xf32>
    %44 = tpu.matmul %42, %43, %cst_27 {dimension_numbers = #tpu.dot_dimension_numbers<[1], [0], [0], [1], [0, 0, 1, 1], [], []>} : vector<8x512xbf16>, vector<512x128xbf16>, vector<8x128xf32> -> vector<8x128xf32>
    %c0_28 = arith.constant 0 : index
    %c0_29 = arith.constant 0 : index
    %45 = vector.load %arg12[%c0_28, %c0_29] : memref<1x128xf32, #tpu.memory_space<vmem>>, vector<1x128xf32>
    %46 = vector.broadcast %45 : vector<1x128xf32> to vector<8x128xf32>
    %47 = arith.addf %44, %46 : vector<8x128xf32>
    %48 = arith.negf %47 : vector<8x128xf32>
    %49 = math.exp %48 : vector<8x128xf32>
    %cst_30 = arith.constant 1.000000e+00 : f32
    %50 = vector.broadcast %cst_30 : f32 to vector<8x128xf32>
    %51 = arith.addf %50, %49 : vector<8x128xf32>
    %52 = arith.divf %50, %51 : vector<8x128xf32>
    %53 = arith.mulf %47, %52 : vector<8x128xf32>
    %54 = arith.truncf %29 : vector<8x128xf32> to vector<8x128xbf16>
    %c0_31 = arith.constant 0 : index
    %c0_32 = arith.constant 0 : index
    %55 = vector.load %arg13[%c0_31, %c0_32] : memref<128x256xbf16, #tpu.memory_space<vmem>>, vector<128x256xbf16>
    %cst_33 = arith.constant dense<0.000000e+00> : vector<8x256xf32>
    %56 = tpu.matmul %54, %55, %cst_33 {dimension_numbers = #tpu.dot_dimension_numbers<[1], [0], [0], [1], [0, 0, 1, 1], [], []>} : vector<8x128xbf16>, vector<128x256xbf16>, vector<8x256xf32> -> vector<8x256xf32>
    %57 = arith.truncf %53 : vector<8x128xf32> to vector<8x128xbf16>
    %c0_34 = arith.constant 0 : index
    %c0_35 = arith.constant 0 : index
    %58 = vector.load %arg14[%c0_34, %c0_35] : memref<128x256xbf16, #tpu.memory_space<vmem>>, vector<128x256xbf16>
    %cst_36 = arith.constant dense<0.000000e+00> : vector<8x256xf32>
    %59 = tpu.matmul %57, %58, %cst_36 {dimension_numbers = #tpu.dot_dimension_numbers<[1], [0], [0], [1], [0, 0, 1, 1], [], []>} : vector<8x128xbf16>, vector<128x256xbf16>, vector<8x256xf32> -> vector<8x256xf32>
    %60 = arith.addf %56, %59 : vector<8x256xf32>
    %c0_37 = arith.constant 0 : index
    %c0_38 = arith.constant 0 : index
    %61 = vector.load %arg15[%c0_37, %c0_38] : memref<1x256xf32, #tpu.memory_space<vmem>>, vector<1x256xf32>
    %62 = vector.broadcast %61 : vector<1x256xf32> to vector<8x256xf32>
    %63 = arith.addf %60, %62 : vector<8x256xf32>
    %c0_39 = arith.constant 0 : index
    %c0_40 = arith.constant 0 : index
    %64 = vector.load %arg16[%c0_39, %c0_40] : memref<8x256xf32, #tpu.memory_space<vmem>>, vector<8x256xf32>
    tpu.vector_store %arg16[%c0_39, %c0_40], %63 {strides = array<i32>} : memref<8x256xf32, #tpu.memory_space<vmem>>, vector<8x256xf32>,
    return
  }
  func.func @transform_0(%arg0: i32) -> (i32, i32) {
    %c0_i32 = arith.constant 0 : i32
    %c0_i32_0 = arith.constant 0 : i32
    return %arg0, %c0_i32 : i32, i32
  }
  func.func @transform_1(%arg0: i32) -> (i32, i32) {
    %c0_i32 = arith.constant 0 : i32
    %c0_i32_0 = arith.constant 0 : i32
    return %arg0, %c0_i32 : i32, i32
  }
  func.func @transform_2(%arg0: i32) -> (i32, i32) {
    %c0_i32 = arith.constant 0 : i32
    %c0_i32_0 = arith.constant 0 : i32
    %c0_i32_1 = arith.constant 0 : i32
    return %c0_i32, %c0_i32_0 : i32, i32
  }
  func.func @transform_3(%arg0: i32) -> (i32, i32) {
    %c0_i32 = arith.constant 0 : i32
    %c0_i32_0 = arith.constant 0 : i32
    %c0_i32_1 = arith.constant 0 : i32
    return %c0_i32, %c0_i32_0 : i32, i32
  }
  func.func @transform_4(%arg0: i32) -> (i32, i32) {
    %c0_i32 = arith.constant 0 : i32
    %c0_i32_0 = arith.constant 0 : i32
    %c0_i32_1 = arith.constant 0 : i32
    return %c0_i32, %c0_i32_0 : i32, i32
  }
  func.func @transform_5(%arg0: i32) -> (i32, i32) {
    %c0_i32 = arith.constant 0 : i32
    %c0_i32_0 = arith.constant 0 : i32
    %c0_i32_1 = arith.constant 0 : i32
    return %c0_i32, %c0_i32_0 : i32, i32
  }
  func.func @transform_6(%arg0: i32) -> (i32, i32) {
    %c0_i32 = arith.constant 0 : i32
    %c0_i32_0 = arith.constant 0 : i32
    %c0_i32_1 = arith.constant 0 : i32
    return %c0_i32, %c0_i32_0 : i32, i32
  }
  func.func @transform_7(%arg0: i32) -> (i32, i32) {
    %c0_i32 = arith.constant 0 : i32
    %c0_i32_0 = arith.constant 0 : i32
    %c0_i32_1 = arith.constant 0 : i32
    return %c0_i32, %c0_i32_0 : i32, i32
  }
  func.func @transform_8(%arg0: i32) -> (i32, i32) {
    %c0_i32 = arith.constant 0 : i32
    %c0_i32_0 = arith.constant 0 : i32
    %c0_i32_1 = arith.constant 0 : i32
    return %c0_i32, %c0_i32_0 : i32, i32
  }
  func.func @transform_9(%arg0: i32) -> (i32, i32) {
    %c0_i32 = arith.constant 0 : i32
    %c0_i32_0 = arith.constant 0 : i32
    %c0_i32_1 = arith.constant 0 : i32
    return %c0_i32, %c0_i32_0 : i32, i32
  }
  func.func @transform_10(%arg0: i32) -> (i32, i32) {
    %c0_i32 = arith.constant 0 : i32
    %c0_i32_0 = arith.constant 0 : i32
    %c0_i32_1 = arith.constant 0 : i32
    return %c0_i32, %c0_i32_0 : i32, i32
  }
  func.func @transform_11(%arg0: i32) -> (i32, i32) {
    %c0_i32 = arith.constant 0 : i32
    %c0_i32_0 = arith.constant 0 : i32
    %c0_i32_1 = arith.constant 0 : i32
    return %c0_i32, %c0_i32_0 : i32, i32
  }
  func.func @transform_12(%arg0: i32) -> (i32, i32) {
    %c0_i32 = arith.constant 0 : i32
    %c0_i32_0 = arith.constant 0 : i32
    %c0_i32_1 = arith.constant 0 : i32
    return %c0_i32, %c0_i32_0 : i32, i32
  }
  func.func @transform_13(%arg0: i32) -> (i32, i32) {
    %c0_i32 = arith.constant 0 : i32
    %c0_i32_0 = arith.constant 0 : i32
    %c0_i32_1 = arith.constant 0 : i32
    return %c0_i32, %c0_i32_0 : i32, i32
  }
  func.func @transform_14(%arg0: i32) -> (i32, i32) {
    %c0_i32 = arith.constant 0 : i32
    %c0_i32_0 = arith.constant 0 : i32
    %c0_i32_1 = arith.constant 0 : i32
    return %c0_i32, %c0_i32_0 : i32, i32
  }
  func.func @transform_15(%arg0: i32) -> (i32, i32) {
    %c0_i32 = arith.constant 0 : i32
    %c0_i32_0 = arith.constant 0 : i32
    return %arg0, %c0_i32 : i32, i32
  }
}

module attributes {stable_mosaic.version = 11 : i64} {
  func.func @kernel(%arg0: i32, %arg1: memref<8x768xbf16, #tpu.memory_space<vmem>>, %arg2: memref<8x128xbf16, #tpu.memory_space<vmem>>, %arg3: memref<768x1280xbf16, #tpu.memory_space<vmem>>, %arg4: memref<1x1280xf32, #tpu.memory_space<vmem>>, %arg5: memref<1280x512xbf16, #tpu.memory_space<vmem>>, %arg6: memref<1x512xf32, #tpu.memory_space<vmem>>, %arg7: memref<512x128xbf16, #tpu.memory_space<vmem>>, %arg8: memref<1x128xf32, #tpu.memory_space<vmem>>, %arg9: memref<128x512xbf16, #tpu.memory_space<vmem>>, %arg10: memref<1x512xf32, #tpu.memory_space<vmem>>, %arg11: memref<512x128xbf16, #tpu.memory_space<vmem>>, %arg12: memref<1x128xf32, #tpu.memory_space<vmem>>, %arg13: memref<128x256xbf16, #tpu.memory_space<vmem>>, %arg14: memref<128x256xbf16, #tpu.memory_space<vmem>>, %arg15: memref<1x256xf32, #tpu.memory_space<vmem>>, %arg16: memref<8x256xf32, #tpu.memory_space<vmem>>) attributes {dimension_semantics = [#tpu.dimension_semantics<parallel>], iteration_bounds = array<i64: 1>, scalar_prefetch = 0 : i64, scratch_operands = 0 : i64, tpu.core_type = #tpu.core_type<tc>, window_params = [{transform_indices = @transform_0, window_bounds = array<i64: 8, 768>}, {transform_indices = @transform_1, window_bounds = array<i64: 8, 128>}, {pipeline_mode = #tpu.pipeline_mode<synchronous>, transform_indices = @transform_2, window_bounds = array<i64: 768, 1280>}, {pipeline_mode = #tpu.pipeline_mode<synchronous>, transform_indices = @transform_3, window_bounds = array<i64: 1, 1280>}, {pipeline_mode = #tpu.pipeline_mode<synchronous>, transform_indices = @transform_4, window_bounds = array<i64: 1280, 512>}, {pipeline_mode = #tpu.pipeline_mode<synchronous>, transform_indices = @transform_5, window_bounds = array<i64: 1, 512>}, {pipeline_mode = #tpu.pipeline_mode<synchronous>, transform_indices = @transform_6, window_bounds = array<i64: 512, 128>}, {pipeline_mode = #tpu.pipeline_mode<synchronous>, transform_indices = @transform_7, window_bounds = array<i64: 1, 128>}, {pipeline_mode = #tpu.pipeline_mode<synchronous>, transform_indices = @transform_8, window_bounds = array<i64: 128, 512>}, {pipeline_mode = #tpu.pipeline_mode<synchronous>, transform_indices = @transform_9, window_bounds = array<i64: 1, 512>}, {pipeline_mode = #tpu.pipeline_mode<synchronous>, transform_indices = @transform_10, window_bounds = array<i64: 512, 128>}, {pipeline_mode = #tpu.pipeline_mode<synchronous>, transform_indices = @transform_11, window_bounds = array<i64: 1, 128>}, {pipeline_mode = #tpu.pipeline_mode<synchronous>, transform_indices = @transform_12, window_bounds = array<i64: 128, 256>}, {pipeline_mode = #tpu.pipeline_mode<synchronous>, transform_indices = @transform_13, window_bounds = array<i64: 128, 256>}, {pipeline_mode = #tpu.pipeline_mode<synchronous>, transform_indices = @transform_14, window_bounds = array<i64: 1, 256>}, {transform_indices = @transform_15, window_bounds = array<i64: 8, 256>}]} {
    %c0 = arith.constant 0 : index
    %c0_0 = arith.constant 0 : index
    %0 = vector.load %arg1[%c0, %c0_0] : memref<8x768xbf16, #tpu.memory_space<vmem>>, vector<8x768xbf16>
    %c0_1 = arith.constant 0 : index
    %c0_2 = arith.constant 0 : index
    %1 = vector.load %arg3[%c0_1, %c0_2] : memref<768x1280xbf16, #tpu.memory_space<vmem>>, vector<768x1280xbf16>
    %cst = arith.constant dense<0.000000e+00> : vector<8x1280xf32>
    %2 = tpu.matmul %0, %1, %cst {dimension_numbers = #tpu.dot_dimension_numbers<[1], [0], [0], [1], [0, 0, 1, 1], [], []>} : vector<8x768xbf16>, vector<768x1280xbf16>, vector<8x1280xf32> -> vector<8x1280xf32>
    %c0_3 = arith.constant 0 : index
    %c0_4 = arith.constant 0 : index
    %3 = vector.load %arg4[%c0_3, %c0_4] : memref<1x1280xf32, #tpu.memory_space<vmem>>, vector<1x1280xf32>
    %4 = vector.broadcast %3 : vector<1x1280xf32> to vector<8x1280xf32>
    %5 = arith.addf %2, %4 : vector<8x1280xf32>
    %6 = arith.truncf %5 : vector<8x1280xf32> to vector<8x1280xbf16>
    %c0_5 = arith.constant 0 : index
    %c0_6 = arith.constant 0 : index
    %7 = vector.load %arg5[%c0_5, %c0_6] : memref<1280x512xbf16, #tpu.memory_space<vmem>>, vector<1280x512xbf16>
    %cst_7 = arith.constant dense<0.000000e+00> : vector<8x512xf32>
    %8 = tpu.matmul %6, %7, %cst_7 {dimension_numbers = #tpu.dot_dimension_numbers<[1], [0], [0], [1], [0, 0, 1, 1], [], []>} : vector<8x1280xbf16>, vector<1280x512xbf16>, vector<8x512xf32> -> vector<8x512xf32>
    %c0_8 = arith.constant 0 : index
    %c0_9 = arith.constant 0 : index
    %9 = vector.load %arg6[%c0_8, %c0_9] : memref<1x512xf32, #tpu.memory_space<vmem>>, vector<1x512xf32>
    %10 = vector.broadcast %9 : vector<1x512xf32> to vector<8x512xf32>
    %11 = arith.addf %8, %10 : vector<8x512xf32>
    %12 = arith.negf %11 : vector<8x512xf32>
    %13 = math.exp %12 : vector<8x512xf32>
    %cst_10 = arith.constant 1.000000e+00 : f32
    %14 = vector.broadcast %cst_10 : f32 to vector<8x512xf32>
    %15 = arith.addf %14, %13 : vector<8x512xf32>
    %16 = arith.divf %14, %15 : vector<8x512xf32>
    %17 = arith.mulf %11, %16 : vector<8x512xf32>
    %18 = arith.truncf %17 : vector<8x512xf32> to vector<8x512xbf16>
    %c0_11 = arith.constant 0 : index
    %c0_12 = arith.constant 0 : index
    %19 = vector.load %arg7[%c0_11, %c0_12] : memref<512x128xbf16, #tpu.memory_space<vmem>>, vector<512x128xbf16>
    %cst_13 = arith.constant dense<0.000000e+00> : vector<8x128xf32>
    %20 = tpu.matmul %18, %19, %cst_13 {dimension_numbers = #tpu.dot_dimension_numbers<[1], [0], [0], [1], [0, 0, 1, 1], [], []>} : vector<8x512xbf16>, vector<512x128xbf16>, vector<8x128xf32> -> vector<8x128xf32>
    %c0_14 = arith.constant 0 : index
    %c0_15 = arith.constant 0 : index
    %21 = vector.load %arg8[%c0_14, %c0_15] : memref<1x128xf32, #tpu.memory_space<vmem>>, vector<1x128xf32>
    %22 = vector.broadcast %21 : vector<1x128xf32> to vector<8x128xf32>
    %23 = arith.addf %20, %22 : vector<8x128xf32>
    %24 = arith.negf %23 : vector<8x128xf32>
    %25 = math.exp %24 : vector<8x128xf32>
    %cst_16 = arith.constant 1.000000e+00 : f32
    %26 = vector.broadcast %cst_16 : f32 to vector<8x128xf32>
    %27 = arith.addf %26, %25 : vector<8x128xf32>
    %28 = arith.divf %26, %27 : vector<8x128xf32>
    %29 = arith.mulf %23, %28 : vector<8x128xf32>
    %c0_17 = arith.constant 0 : index
    %c0_18 = arith.constant 0 : index
    %30 = vector.load %arg2[%c0_17, %c0_18] : memref<8x128xbf16, #tpu.memory_space<vmem>>, vector<8x128xbf16>
    %c0_19 = arith.constant 0 : index
    %c0_20 = arith.constant 0 : index
    %31 = vector.load %arg9[%c0_19, %c0_20] : memref<128x512xbf16, #tpu.memory_space<vmem>>, vector<128x512xbf16>
    %cst_21 = arith.constant dense<0.000000e+00> : vector<8x512xf32>
    %32 = tpu.matmul %30, %31, %cst_21 {dimension_numbers = #tpu.dot_dimension_numbers<[1], [0], [0], [1], [0, 0, 1, 1], [], []>} : vector<8x128xbf16>, vector<128x512xbf16>, vector<8x512xf32> -> vector<8x512xf32>
    %c0_22 = arith.constant 0 : index
    %c0_23 = arith.constant 0 : index
    %33 = vector.load %arg10[%c0_22, %c0_23] : memref<1x512xf32, #tpu.memory_space<vmem>>, vector<1x512xf32>
    %34 = vector.broadcast %33 : vector<1x512xf32> to vector<8x512xf32>
    %35 = arith.addf %32, %34 : vector<8x512xf32>
    %36 = arith.negf %35 : vector<8x512xf32>
    %37 = math.exp %36 : vector<8x512xf32>
    %cst_24 = arith.constant 1.000000e+00 : f32
    %38 = vector.broadcast %cst_24 : f32 to vector<8x512xf32>
    %39 = arith.addf %38, %37 : vector<8x512xf32>
    %40 = arith.divf %38, %39 : vector<8x512xf32>
    %41 = arith.mulf %35, %40 : vector<8x512xf32>
    %42 = arith.truncf %41 : vector<8x512xf32> to vector<8x512xbf16>
    %c0_25 = arith.constant 0 : index
    %c0_26 = arith.constant 0 : index
    %43 = vector.load %arg11[%c0_25, %c0_26] : memref<512x128xbf16, #tpu.memory_space<vmem>>, vector<512x128xbf16>
    %cst_27 = arith.constant dense<0.000000e+00> : vector<8x128xf32>
    %44 = tpu.matmul %42, %43, %cst_27 {dimension_numbers = #tpu.dot_dimension_numbers<[1], [0], [0], [1], [0, 0, 1, 1], [], []>} : vector<8x512xbf16>, vector<512x128xbf16>, vector<8x128xf32> -> vector<8x128xf32>
    %c0_28 = arith.constant 0 : index
    %c0_29 = arith.constant 0 : index
    %45 = vector.load %arg12[%c0_28, %c0_29] : memref<1x128xf32, #tpu.memory_space<vmem>>, vector<1x128xf32>
    %46 = vector.broadcast %45 : vector<1x128xf32> to vector<8x128xf32>
    %47 = arith.addf %44, %46 : vector<8x128xf32>
    %48 = arith.negf %47 : vector<8x128xf32>
    %49 = math.exp %48 : vector<8x128xf32>
    %cst_30 = arith.constant 1.000000e+00 : f32
    %50 = vector.broadcast %cst_30 : f32 to vector<8x128xf32>
    %51 = arith.addf %50, %49 : vector<8x128xf32>
    %52 = arith.divf %50, %51 : vector<8x128xf32>
    %53 = arith.mulf %47, %52 : vector<8x128xf32>
    %54 = arith.truncf %29 : vector<8x128xf32> to vector<8x128xbf16>
    %c0_31 = arith.constant 0 : index
    %c0_32 = arith.constant 0 : index
    %55 = vector.load %arg13[%c0_31, %c0_32] : memref<128x256xbf16, #tpu.memory_space<vmem>>, vector<128x256xbf16>
    %cst_33 = arith.constant dense<0.000000e+00> : vector<8x256xf32>
    %56 = tpu.matmul %54, %55, %cst_33 {dimension_numbers = #tpu.dot_dimension_numbers<[1], [0], [0], [1], [0, 0, 1, 1], [], []>} : vector<8x128xbf16>, vector<128x256xbf16>, vector<8x256xf32> -> vector<8x256xf32>
    %57 = arith.truncf %53 : vector<8x128xf32> to vector<8x128xbf16>
    %c0_34 = arith.constant 0 : index
    %c0_35 = arith.constant 0 : index
    %58 = vector.load %arg14[%c0_34, %c0_35] : memref<128x256xbf16, #tpu.memory_space<vmem>>, vector<128x256xbf16>
    %cst_36 = arith.constant dense<0.000000e+00> : vector<8x256xf32>
    %59 = tpu.matmul %57, %58, %cst_36 {dimension_numbers = #tpu.dot_dimension_numbers<[1], [0], [0], [1], [0, 0, 1, 1], [], []>} : vector<8x128xbf16>, vector<128x256xbf16>, vector<8x256xf32> -> vector<8x256xf32>
    %60 = arith.addf %56, %59 : vector<8x256xf32>
    %c0_37 = arith.constant 0 : index
    %c0_38 = arith.constant 0 : index
    %61 = vector.load %arg15[%c0_37, %c0_38] : memref<1x256xf32, #tpu.memory_space<vmem>>, vector<1x256xf32>
    %62 = vector.broadcast %61 : vector<1x256xf32> to vector<8x256xf32>
    %63 = arith.addf %60, %62 : vector<8x256xf32>
    %c0_39 = arith.constant 0 : index
    %c0_40 = arith.constant 0 : index
    %64 = vector.load %arg16[%c0_39, %c0_40] : memref<8x256xf32, #tpu.memory_space<vmem>>, vector<8x256xf32>
    tpu.vector_store %arg16[%c0_39, %c0_40], %63 {strides = array<i32>} : memref<8x256xf32, #tpu.memory_space<vmem>>, vector<8x256xf32>,
    return
  }
  func.func @transform_0(%arg0: i32) -> (i32, i32) {
    %c0_i32 = arith.constant 0 : i32
    %c0_i32_0 = arith.constant 0 : i32
    return %arg0, %c0_i32 : i32, i32
  }
  func.func @transform_1(%arg0: i32) -> (i32, i32) {
    %c0_i32 = arith.constant 0 : i32
    %c0_i32_0 = arith.constant 0 : i32
    return %arg0, %c0_i32 : i32, i32
  }
  func.func @transform_2(%arg0: i32) -> (i32, i32) {
    %c0_i32 = arith.constant 0 : i32
    %c0_i32_0 = arith.constant 0 : i32
    %c0_i32_1 = arith.constant 0 : i32
    return %c0_i32, %c0_i32_0 : i32, i32
  }
  func.func @transform_3(%arg0: i32) -> (i32, i32) {
    %c0_i32 = arith.constant 0 : i32
    %c0_i32_0 = arith.constant 0 : i32
    %c0_i32_1 = arith.constant 0 : i32
    return %c0_i32, %c0_i32_0 : i32, i32
  }
  func.func @transform_4(%arg0: i32) -> (i32, i32) {
    %c0_i32 = arith.constant 0 : i32
    %c0_i32_0 = arith.constant 0 : i32
    %c0_i32_1 = arith.constant 0 : i32
    return %c0_i32, %c0_i32_0 : i32, i32
  }
  func.func @transform_5(%arg0: i32) -> (i32, i32) {
    %c0_i32 = arith.constant 0 : i32
    %c0_i32_0 = arith.constant 0 : i32
    %c0_i32_1 = arith.constant 0 : i32
    return %c0_i32, %c0_i32_0 : i32, i32
  }
  func.func @transform_6(%arg0: i32) -> (i32, i32) {
    %c0_i32 = arith.constant 0 : i32
    %c0_i32_0 = arith.constant 0 : i32
    %c0_i32_1 = arith.constant 0 : i32
    return %c0_i32, %c0_i32_0 : i32, i32
  }
  func.func @transform_7(%arg0: i32) -> (i32, i32) {
    %c0_i32 = arith.constant 0 : i32
    %c0_i32_0 = arith.constant 0 : i32
    %c0_i32_1 = arith.constant 0 : i32
    return %c0_i32, %c0_i32_0 : i32, i32
  }
  func.func @transform_8(%arg0: i32) -> (i32, i32) {
    %c0_i32 = arith.constant 0 : i32
    %c0_i32_0 = arith.constant 0 : i32
    %c0_i32_1 = arith.constant 0 : i32
    return %c0_i32, %c0_i32_0 : i32, i32
  }
  func.func @transform_9(%arg0: i32) -> (i32, i32) {
    %c0_i32 = arith.constant 0 : i32
    %c0_i32_0 = arith.constant 0 : i32
    %c0_i32_1 = arith.constant 0 : i32
    return %c0_i32, %c0_i32_0 : i32, i32
  }
  func.func @transform_10(%arg0: i32) -> (i32, i32) {
    %c0_i32 = arith.constant 0 : i32
    %c0_i32_0 = arith.constant 0 : i32
    %c0_i32_1 = arith.constant 0 : i32
    return %c0_i32, %c0_i32_0 : i32, i32
  }
  func.func @transform_11(%arg0: i32) -> (i32, i32) {
    %c0_i32 = arith.constant 0 : i32
    %c0_i32_0 = arith.constant 0 : i32
    %c0_i32_1 = arith.constant 0 : i32
    return %c0_i32, %c0_i32_0 : i32, i32
  }
  func.func @transform_12(%arg0: i32) -> (i32, i32) {
    %c0_i32 = arith.constant 0 : i32
    %c0_i32_0 = arith.constant 0 : i32
    %c0_i32_1 = arith.constant 0 : i32
    return %c0_i32, %c0_i32_0 : i32, i32
  }
  func.func @transform_13(%arg0: i32) -> (i32, i32) {
    %c0_i32 = arith.constant 0 : i32
    %c0_i32_0 = arith.constant 0 : i32
    %c0_i32_1 = arith.constant 0 : i32
    return %c0_i32, %c0_i32_0 : i32, i32
  }
  func.func @transform_14(%arg0: i32) -> (i32, i32) {
    %c0_i32 = arith.constant 0 : i32
    %c0_i32_0 = arith.constant 0 : i32
    %c0_i32_1 = arith.constant 0 : i32
    return %c0_i32, %c0_i32_0 : i32, i32
  }
  func.func @transform_15(%arg0: i32) -> (i32, i32) {
    %c0_i32 = arith.constant 0 : i32
    %c0_i32_0 = arith.constant 0 : i32
    return %arg0, %c0_i32 : i32, i32
  }
}

</mosaic_0001>

<bundles_post_ra>
// kernel: tpu_custom_call.1
= control target key start
LH: loop header
LB: loop body
LE: loop exit
PB: predicated region body
PF: predicated region fallthrough
CT: control target
= control target key end

     0   :  { %20 = vsyncpa [#allocation3], 0  ;;  %s10948_s0 = inlined_call_operand.hbm [shape: bf16[8,768], index: 0, kind: input, shape index: {}]   ;;  %s10949_s1 = inlined_call_operand.hbm [shape: bf16[8,128], index: 1, kind: input, shape index: {}]   ;;  %s10950_s2 = inlined_call_operand.hbm [shape: bf16[768,1280], index: 2, kind: input, shape index: {}]   ;;  %s10951_s3 = inlined_call_operand.hbm [shape: f32[1,1280], index: 3, kind: input, shape index: {}]   ;;  %s10952_s4 = inlined_call_operand.hbm [shape: bf16[1280,512], index: 4, kind: input, shape index: {}]   ;;  %s10953_s5 = inlined_call_operand.hbm [shape: f32[1,512], index: 5, kind: input, shape index: {}]   ;;  %s10954_s6 = inlined_call_operand.hbm [shape: bf16[512,128], index: 6, kind: input, shape index: {}]   ;;  %s10955_s7 = inlined_call_operand.hbm [shape: f32[1,128], index: 7, kind: input, shape index: {}]   ;;  %s10956_s8 = inlined_call_operand.hbm [shape: bf16[128,512], index: 8, kind: input, shape index: {}]   ;;  %s10957_s9 = inlined_call_operand.hbm [shape: f32[1,512], index: 9, kind: input, shape index: {}]   ;;  %s10958_s10 = inlined_call_operand.hbm [shape: bf16[512,128], index: 10, kind: input, shape index: {}]   ;;  %s10959_s11 = inlined_call_operand.hbm [shape: f32[1,128], index: 11, kind: input, shape index: {}]   ;;  %s10960_s12 = inlined_call_operand.hbm [shape: bf16[128,256], index: 12, kind: input, shape index: {}]   ;;  %s10961_s13 = inlined_call_operand.hbm [shape: bf16[128,256], index: 13, kind: input, shape index: {}]   ;;  %s10962_s14 = inlined_call_operand.hbm [shape: f32[1,256], index: 14, kind: input, shape index: {}]   ;;  %s10963_s15 = inlined_call_operand.hbm [shape: f32[8,256], index: 15, kind: output, shape index: {}]  }
   0x1   :  { %21 = vsyncpa [#allocation6], 0 }
   0x2   :  { %22 = vsyncpa [#allocation9], 0 }
   0x3   :  { %23 = vsyncpa [#allocation12], 0 }
   0x4   :  { %24 = vsyncpa [#allocation15], 0 }
   0x5   :  { %25 = vsyncpa [#allocation18], 0 }
   0x6   :  { %26 = vsyncpa [#allocation21], 0 }
   0x7   :  { %27 = vsyncpa [#allocation24], 0 }
   0x8   :  { %28 = vsyncpa [#allocation4], 0  ;;  %s10471_s18 = smov [#allocation5]   ;;  %s10472_s20 = smov [#allocation8]  }
   0x9   :  { %s45_s19 = sshll.u32 %s10471_s18, 4  ;;  %s67_s21 = sshll.u32 %s10472_s20, 4  ;;  %s46_s19 = int_to_ptr.vmem [resolvable:$true] %s45_s19  ;;  %s68_s21 = int_to_ptr.vmem [resolvable:$true] %s67_s21 }
   0xa   :  { %s10101_s24 = scalar_lea.hbm %s10949_s1, 64 }
   0xb   :  { %p10102_p0 = scmp.ne.s32.totalorder %s10949_s1, %s10101_s24  ;;  %p10105_p1 = scmp.lt.u32.totalorder %s10101_s24, %s10949_s1 }
   0xd   :  { %p10107_p2 = pnand %p10105_p1, %p10102_p0 }
   0xf   :  { %10110 = shalt.err (!%p10107_p2)
}
  0x10   :  { %s10111_s29 = scalar_lea.vmem %s46_s19, 64  ;;  %p10116_p4 = scmp.lt.s32.totalorder %s46_s19, %s46_s19 }
  0x11   :  { %p10112_p3 = scmp.ne.s32.totalorder %s46_s19, %s10111_s29  ;;  %p10117_p5 = scmp.lt.s32.totalorder %s10111_s29, %s10111_s29 }
  0x13   :  { %p10118_p6 = por %p10117_p5, %p10116_p4 }
  0x15   :  { %p10119_p7 = pnand %p10118_p6, %p10112_p3 }
  0x17   :  { %10122 = shalt.err (!%p10119_p7)
}
  0x18   :  { %48 = dma.hbm_to_vmem [thread:$0]  %s10949_s1, 64, %s46_s19, [#allocation6]  }
  0x19   :  { %s10123_s20 = scalar_lea.hbm %s10951_s3, 160 }
  0x1a   :  { %p10124_p8 = scmp.ne.s32.totalorder %s10951_s3, %s10123_s20  ;;  %p10127_p9 = scmp.lt.u32.totalorder %s10123_s20, %s10951_s3 }
  0x1c   :  { %p10129_p10 = pnand %p10127_p9, %p10124_p8 }
  0x1e   :  { %10132 = shalt.err (!%p10129_p10)
}
  0x1f   :  { %s10133_s26 = scalar_lea.vmem %s68_s21, 160  ;;  %p10138_p12 = scmp.lt.s32.totalorder %s68_s21, %s68_s21 }
  0x20   :  { %p10134_p11 = scmp.ne.s32.totalorder %s68_s21, %s10133_s26  ;;  %p10139_p13 = scmp.lt.s32.totalorder %s10133_s26, %s10133_s26 }
  0x22   :  { %p10140_p0 = por %p10139_p13, %p10138_p12 }
  0x24   :  { %p10141_p1 = pnand %p10140_p0, %p10134_p11 }
  0x26   :  { %10144 = shalt.err (!%p10141_p1)
}
  0x27   :  { %70 = dma.hbm_to_vmem [thread:$0]  %s10951_s3, 160, %s68_s21, [#allocation9]  }
  0x28   :  { %s10473_s27 = smov [#allocation11]   ;;  %s10474_s29 = smov [#allocation14]  }
  0x29   :  { %s89_s28 = sshll.u32 %s10473_s27, 4  ;;  %s111_s30 = sshll.u32 %s10474_s29, 4  ;;  %s90_s28 = int_to_ptr.vmem [resolvable:$true] %s89_s28  ;;  %s112_s30 = int_to_ptr.vmem [resolvable:$true] %s111_s30 }
  0x2a   :  { %s10145_s18 = scalar_lea.hbm %s10953_s5, 64 }
  0x2b   :  { %p10146_p2 = scmp.ne.s32.totalorder %s10953_s5, %s10145_s18  ;;  %p10149_p3 = scmp.lt.u32.totalorder %s10145_s18, %s10953_s5 }
  0x2d   :  { %p10151_p4 = pnand %p10149_p3, %p10146_p2 }
  0x2f   :  { %10154 = shalt.err (!%p10151_p4)
}
  0x30   :  { %s10155_s3 = scalar_lea.vmem %s90_s28, 64  ;;  %p10160_p6 = scmp.lt.s32.totalorder %s90_s28, %s90_s28 }
  0x31   :  { %p10156_p5 = scmp.ne.s32.totalorder %s90_s28, %s10155_s3  ;;  %p10161_p7 = scmp.lt.s32.totalorder %s10155_s3, %s10155_s3 }
  0x33   :  { %p10162_p8 = por %p10161_p7, %p10160_p6 }
  0x35   :  { %p10163_p9 = pnand %p10162_p8, %p10156_p5 }
  0x37   :  { %10166 = shalt.err (!%p10163_p9)
}
  0x38   :  { %92 = dma.hbm_to_vmem [thread:$0]  %s10953_s5, 64, %s90_s28, [#allocation12]  }
  0x39   :  { %s10167_s19 = scalar_lea.hbm %s10955_s7, 16 }
  0x3a   :  { %p10168_p10 = scmp.ne.s32.totalorder %s10955_s7, %s10167_s19  ;;  %p10171_p11 = scmp.lt.u32.totalorder %s10167_s19, %s10955_s7 }
  0x3c   :  { %p10173_p12 = pnand %p10171_p11, %p10168_p10 }
  0x3e   :  { %10176 = shalt.err (!%p10173_p12)
}
  0x3f   :  { %s10177_s18 = scalar_lea.vmem %s112_s30, 16  ;;  %s10181_s20 = scalar_lea.vmem %s112_s30, 32 }
  0x40   :  { %p10178_p13 = scmp.ne.s32.totalorder %s112_s30, %s10177_s18  ;;  %p10182_p0 = scmp.lt.s32.totalorder %s112_s30, %s112_s30 }
  0x41   :  { %p10183_p1 = scmp.lt.s32.totalorder %s10181_s20, %s10177_s18 }
  0x43   :  { %p10184_p2 = por %p10183_p1, %p10182_p0 }
  0x45   :  { %p10185_p3 = pnand %p10184_p2, %p10178_p13 }
  0x47   :  { %10188 = shalt.err (!%p10185_p3)
}
  0x48   :  { %114 = dma.hbm_to_vmem [thread:$0]  %s10955_s7, 16, %s112_s30, [#allocation15]  }
  0x49   :  { %s10475_s22 = smov [#allocation17]   ;;  %s10476_s24 = smov [#allocation20]  }
  0x4a   :  { %s133_s23 = sshll.u32 %s10475_s22, 4  ;;  %s155_s3 = sshll.u32 %s10476_s24, 4  ;;  %s134_s23 = int_to_ptr.vmem [resolvable:$true] %s133_s23  ;;  %s156_s3 = int_to_ptr.vmem [resolvable:$true] %s155_s3 }
  0x4b   :  { %s10189_s26 = scalar_lea.hbm %s10957_s9, 64 }
  0x4c   :  { %p10190_p4 = scmp.ne.s32.totalorder %s10957_s9, %s10189_s26  ;;  %p10193_p5 = scmp.lt.u32.totalorder %s10189_s26, %s10957_s9 }
  0x4e   :  { %p10195_p6 = pnand %p10193_p5, %p10190_p4 }
  0x50   :  { %10198 = shalt.err (!%p10195_p6)
}
  0x51   :  { %s10199_s7 = scalar_lea.vmem %s134_s23, 64  ;;  %p10204_p8 = scmp.lt.s32.totalorder %s134_s23, %s134_s23 }
  0x52   :  { %p10200_p7 = scmp.ne.s32.totalorder %s134_s23, %s10199_s7  ;;  %p10205_p9 = scmp.lt.s32.totalorder %s10199_s7, %s10199_s7 }
  0x54   :  { %p10206_p10 = por %p10205_p9, %p10204_p8 }
  0x56   :  { %p10207_p11 = pnand %p10206_p10, %p10200_p7 }
  0x58   :  { %10210 = shalt.err (!%p10207_p11)
}
  0x59   :  { %136 = dma.hbm_to_vmem [thread:$0]  %s10957_s9, 64, %s134_s23, [#allocation18]  }
  0x5a   :  { %s10211_s20 = scalar_lea.hbm %s10959_s11, 16 }
  0x5b   :  { %p10212_p12 = scmp.ne.s32.totalorder %s10959_s11, %s10211_s20  ;;  %p10215_p13 = scmp.lt.u32.totalorder %s10211_s20, %s10959_s11 }
  0x5d   :  { %p10217_p0 = pnand %p10215_p13, %p10212_p12 }
  0x5f   :  { %10220 = shalt.err (!%p10217_p0)
}
  0x60   :  { %s10221_s21 = scalar_lea.vmem %s156_s3, 16  ;;  %s10225_s25 = scalar_lea.vmem %s156_s3, 32 }
  0x61   :  { %p10222_p1 = scmp.ne.s32.totalorder %s156_s3, %s10221_s21  ;;  %p10226_p2 = scmp.lt.s32.totalorder %s156_s3, %s156_s3 }
  0x62   :  { %p10227_p3 = scmp.lt.s32.totalorder %s10225_s25, %s10221_s21 }
  0x64   :  { %p10228_p4 = por %p10227_p3, %p10226_p2 }
  0x66   :  { %p10229_p5 = pnand %p10228_p4, %p10222_p1 }
  0x68   :  { %10232 = shalt.err (!%p10229_p5)
}
  0x69   :  { %158 = dma.hbm_to_vmem [thread:$0]  %s10959_s11, 16, %s156_s3, [#allocation21]  }
  0x6a   :  { %s10477_s26 = smov [#allocation23]   ;;  %s10478_s19 = smov [#allocation2]  }
  0x6b   :  { %s176_s1 = sshll.u32 %s10477_s26, 4  ;;  %s35_s27 = sshll.u32 %s10478_s19, 4  ;;  %s177_s1 = int_to_ptr.vmem [resolvable:$true] %s176_s1  ;;  %s36_s27 = int_to_ptr.vmem [resolvable:$true] %s35_s27 }
  0x6c   :  { %s10233_s30 = scalar_lea.hbm %s10961_s13, 2048 }
  0x6d   :  { %p10234_p6 = scmp.ne.s32.totalorder %s10961_s13, %s10233_s30  ;;  %p10237_p7 = scmp.lt.u32.totalorder %s10233_s30, %s10961_s13 }
  0x6f   :  { %p10239_p8 = pnand %p10237_p7, %p10234_p6 }
  0x71   :  { %10242 = shalt.err (!%p10239_p8)
}
  0x72   :  { %s10243_s11 = scalar_lea.vmem %s177_s1, 2048  ;;  %p10248_p10 = scmp.lt.s32.totalorder %s177_s1, %s177_s1 }
  0x73   :  { %p10244_p9 = scmp.ne.s32.totalorder %s177_s1, %s10243_s11  ;;  %p10249_p11 = scmp.lt.s32.totalorder %s10243_s11, %s10243_s11 }
  0x75   :  { %p10250_p12 = por %p10249_p11, %p10248_p10 }
  0x77   :  { %p10251_p13 = pnand %p10250_p12, %p10244_p9 }
  0x79   :  { %10254 = shalt.err (!%p10251_p13)
}
  0x7a   :  { %s10479_s3 = smov 128   ;;  %s10480_s5 = smov 8  }
  0x7b   :  { %182 = dma.hbm_to_vmem [thread:$0]  %s10961_s13, 2048, %s177_s1, [#allocation24], %s10479_s3, %s10479_s3, %s10480_s5  }
  0x7c   :  { %s10255_s25 = scalar_lea.hbm %s10948_s0, 384 }
  0x7d   :  { %p10256_p0 = scmp.ne.s32.totalorder %s10948_s0, %s10255_s25  ;;  %p10259_p1 = scmp.lt.u32.totalorder %s10255_s25, %s10948_s0 }
  0x7f   :  { %p10261_p2 = pnand %p10259_p1, %p10256_p0 }
  0x81   :  { %10264 = shalt.err (!%p10261_p2)
}
  0x82   :  { %s10265_s29 = scalar_lea.vmem %s36_s27, 384  ;;  %p10270_p4 = scmp.lt.s32.totalorder %s36_s27, %s36_s27 }
  0x83   :  { %p10266_p3 = scmp.ne.s32.totalorder %s36_s27, %s10265_s29  ;;  %p10271_p5 = scmp.lt.s32.totalorder %s10265_s29, %s10265_s29 }
  0x85   :  { %p10272_p6 = por %p10271_p5, %p10270_p4 }
  0x87   :  { %p10273_p7 = pnand %p10272_p6, %p10266_p3 }
  0x89   :  { %10276 = shalt.err (!%p10273_p7)
}
  0x8a   :  { %38 = dma.hbm_to_vmem [thread:$0]  %s10948_s0, 384, %s36_s27, [#allocation3]  }
  0x8b   :  { %s10481_s7 = smov [#allocation7]   ;;  %s10277_s18 = scalar_lea.hbm %s10950_s2, 61440 }
  0x8c   :  { %s54_s30 = sshll.u32 %s10481_s7, 4  ;;  %p10278_p8 = scmp.ne.s32.totalorder %s10950_s2, %s10277_s18  ;;  %s55_s30 = int_to_ptr.vmem [resolvable:$true] %s54_s30 }
  0x8d   :  { %p10281_p9 = scmp.lt.u32.totalorder %s10277_s18, %s10950_s2 }
  0x8f   :  { %p10283_p10 = pnand %p10281_p9, %p10278_p8 }
  0x91   :  { %10286 = shalt.err (!%p10283_p10)
}
  0x92   :  { %s10287_s24 = scalar_lea.vmem %s55_s30, 61440  ;;  %p10292_p12 = scmp.lt.s32.totalorder %s55_s30, %s55_s30 }
  0x93   :  { %p10288_p11 = scmp.ne.s32.totalorder %s55_s30, %s10287_s24  ;;  %p10293_p13 = scmp.lt.s32.totalorder %s10287_s24, %s10287_s24 }
  0x95   :  { %p10294_p0 = por %p10293_p13, %p10292_p12 }
  0x97   :  { %p10295_p1 = pnand %p10294_p0, %p10288_p11 }
  0x99   :  { %10298 = shalt.err (!%p10295_p1)
}
  0x9a   :  { %s10482_s0 = smov 640   ;;  %s10483_s27 = smov 40  }
  0x9b   :  { %60 = dma.hbm_to_vmem [thread:$0]  %s10950_s2, 61440, %s55_s30, [#allocation6], %s10482_s0, %s10482_s0, %s10483_s27  }
  0x9c   :  { %s10484_s9 = smov [#allocation10]   ;;  %s10299_s29 = scalar_lea.hbm %s10952_s4, 40960 }
  0x9d   :  { %s76_s23 = sshll.u32 %s10484_s9, 4  ;;  %p10300_p2 = scmp.ne.s32.totalorder %s10952_s4, %s10299_s29  ;;  %s77_s23 = int_to_ptr.vmem [resolvable:$true] %s76_s23 }
  0x9e   :  { %p10303_p3 = scmp.lt.u32.totalorder %s10299_s29, %s10952_s4 }
  0xa0   :  { %p10305_p4 = pnand %p10303_p3, %p10300_p2 }
  0xa2   :  { %10308 = shalt.err (!%p10305_p4)
}
  0xa3   :  { %s10309_s17 = scalar_lea.vmem %s77_s23, 40960  ;;  %p10314_p6 = scmp.lt.s32.totalorder %s77_s23, %s77_s23 }
  0xa4   :  { %p10310_p5 = scmp.ne.s32.totalorder %s77_s23, %s10309_s17  ;;  %p10315_p7 = scmp.lt.s32.totalorder %s10309_s17, %s10309_s17 }
  0xa6   :  { %p10316_p8 = por %p10315_p7, %p10314_p6 }
  0xa8   :  { %p10317_p9 = pnand %p10316_p8, %p10310_p5 }
  0xaa   :  { %10320 = shalt.err (!%p10317_p9)
}
  0xab   :  { %s10485_s2 = smov 256   ;;  %s10486_s30 = smov 16  }
  0xac   :  { %82 = dma.hbm_to_vmem [thread:$0]  %s10952_s4, 40960, %s77_s23, [#allocation9], %s10485_s2, %s10485_s2, %s10486_s30  }
  0xad   :  { %s10487_s11 = smov [#allocation13]   ;;  %s10321_s0 = scalar_lea.hbm %s10954_s6, 4096 }
  0xae   :  { %s98_s28 = sshll.u32 %s10487_s11, 4  ;;  %p10322_p10 = scmp.ne.s32.totalorder %s10954_s6, %s10321_s0  ;;  %s99_s28 = int_to_ptr.vmem [resolvable:$true] %s98_s28 }
  0xaf   :  { %p10325_p11 = scmp.lt.u32.totalorder %s10321_s0, %s10954_s6 }
  0xb1   :  { %p10327_p12 = pnand %p10325_p11, %p10322_p10 }
  0xb3   :  { %10330 = shalt.err (!%p10327_p12)
}
  0xb4   :  { %s10331_s26 = scalar_lea.vmem %s99_s28, 4096  ;;  %p10336_p0 = scmp.lt.s32.totalorder %s99_s28, %s99_s28 }
  0xb5   :  { %p10332_p13 = scmp.ne.s32.totalorder %s99_s28, %s10331_s26  ;;  %p10337_p1 = scmp.lt.s32.totalorder %s10331_s26, %s10331_s26 }
  0xb7   :  { %p10338_p2 = por %p10337_p1, %p10336_p0 }
  0xb9   :  { %p10339_p3 = pnand %p10338_p2, %p10332_p13 }
  0xbb   :  { %10342 = shalt.err (!%p10339_p3)
}
  0xbc   :  { %s10488_s4 = smov 64   ;;  %s10489_s23 = smov 4  }
  0xbd   :  { %104 = dma.hbm_to_vmem [thread:$0]  %s10954_s6, 4096, %s99_s28, [#allocation12], %s10488_s4, %s10488_s4, %s10489_s23  }
  0xbe   :  { %s10490_s13 = smov [#allocation16]   ;;  %s10491_s7 = smov [#allocation19]  }
  0xbf   :  { %s120_s1 = sshll.u32 %s10490_s13, 4  ;;  %s142_s16 = sshll.u32 %s10491_s7, 4  ;;  %s121_s1 = int_to_ptr.vmem [resolvable:$true] %s120_s1  ;;  %s143_s16 = int_to_ptr.vmem [resolvable:$true] %s142_s16 }
  0xc0   :  { %s10343_s20 = scalar_lea.hbm %s10956_s8, 4096 }
  0xc1   :  { %p10344_p4 = scmp.ne.s32.totalorder %s10956_s8, %s10343_s20  ;;  %p10347_p5 = scmp.lt.u32.totalorder %s10343_s20, %s10956_s8 }
  0xc3   :  { %p10349_p6 = pnand %p10347_p5, %p10344_p4 }
  0xc5   :  { %10352 = shalt.err (!%p10349_p6)
}
  0xc6   :  { %s10353_s6 = scalar_lea.vmem %s121_s1, 4096  ;;  %p10358_p8 = scmp.lt.s32.totalorder %s121_s1, %s121_s1 }
  0xc7   :  { %p10354_p7 = scmp.ne.s32.totalorder %s121_s1, %s10353_s6  ;;  %p10359_p9 = scmp.lt.s32.totalorder %s10353_s6, %s10353_s6 }
  0xc9   :  { %p10360_p10 = por %p10359_p9, %p10358_p8 }
  0xcb   :  { %p10361_p11 = pnand %p10360_p10, %p10354_p7 }
  0xcd   :  { %10364 = shalt.err (!%p10361_p11)
}
  0xce   :  { %126 = dma.hbm_to_vmem [thread:$0]  %s10956_s8, 4096, %s121_s1, [#allocation15], %s10485_s2, %s10485_s2, %s10486_s30  }
  0xcf   :  { %s10365_s9 = scalar_lea.hbm %s10958_s10, 4096 }
  0xd0   :  { %p10366_p12 = scmp.ne.s32.totalorder %s10958_s10, %s10365_s9  ;;  %p10369_p13 = scmp.lt.u32.totalorder %s10365_s9, %s10958_s10 }
  0xd2   :  { %p10371_p0 = pnand %p10369_p13, %p10366_p12 }
  0xd4   :  { %10374 = shalt.err (!%p10371_p0)
}
  0xd5   :  { %s10375_s7 = scalar_lea.vmem %s143_s16, 4096  ;;  %p10380_p2 = scmp.lt.s32.totalorder %s143_s16, %s143_s16 }
  0xd6   :  { %p10376_p1 = scmp.ne.s32.totalorder %s143_s16, %s10375_s7  ;;  %p10381_p3 = scmp.lt.s32.totalorder %s10375_s7, %s10375_s7 }
  0xd8   :  { %p10382_p4 = por %p10381_p3, %p10380_p2 }
  0xda   :  { %p10383_p5 = pnand %p10382_p4, %p10376_p1 }
  0xdc   :  { %10386 = shalt.err (!%p10383_p5)
}
  0xdd   :  { %148 = dma.hbm_to_vmem [thread:$0]  %s10958_s10, 4096, %s143_s16, [#allocation18], %s10488_s4, %s10488_s4, %s10489_s23  }
  0xde   :  { %s10492_s30 = smov [#allocation22]   ;;  %s10493_s17 = smov [#allocation25]  }
  0xdf   :  { %s164_s1 = sshll.u32 %s10492_s30, 4  ;;  %s189_s18 = sshll.u32 %s10493_s17, 4  ;;  %s165_s1 = int_to_ptr.vmem [resolvable:$true] %s164_s1  ;;  %s190_s18 = int_to_ptr.vmem [resolvable:$true] %s189_s18 }
  0xe0   :  { %s10387_s22 = scalar_lea.hbm %s10960_s12, 2048 }
  0xe1   :  { %p10388_p6 = scmp.ne.s32.totalorder %s10960_s12, %s10387_s22  ;;  %p10391_p7 = scmp.lt.u32.totalorder %s10387_s22, %s10960_s12 }
  0xe3   :  { %p10393_p8 = pnand %p10391_p7, %p10388_p6 }
  0xe5   :  { %10396 = shalt.err (!%p10393_p8)
}
  0xe6   :  { %s10397_s10 = scalar_lea.vmem %s165_s1, 2048  ;;  %p10402_p10 = scmp.lt.s32.totalorder %s165_s1, %s165_s1 }
  0xe7   :  { %p10398_p9 = scmp.ne.s32.totalorder %s165_s1, %s10397_s10  ;;  %p10403_p11 = scmp.lt.s32.totalorder %s10397_s10, %s10397_s10 }
  0xe9   :  { %p10404_p12 = por %p10403_p11, %p10402_p10 }
  0xeb   :  { %p10405_p13 = pnand %p10404_p12, %p10398_p9 }
  0xed   :  { %10408 = shalt.err (!%p10405_p13)
}
  0xee   :  { %170 = dma.hbm_to_vmem [thread:$0]  %s10960_s12, 2048, %s165_s1, [#allocation21], %s10479_s3, %s10479_s3, %s10480_s5  }
  0xef   :  { %s10409_s21 = scalar_lea.hbm %s10962_s14, 32 }
  0xf0   :  { %p10410_p0 = scmp.ne.s32.totalorder %s10962_s14, %s10409_s21  ;;  %p10413_p1 = scmp.lt.u32.totalorder %s10409_s21, %s10962_s14 }
  0xf2   :  { %p10415_p2 = pnand %p10413_p1, %p10410_p0 }
  0xf4   :  { %10418 = shalt.err (!%p10415_p2)
}
  0xf5   :  { %s10419_s29 = scalar_lea.vmem %s190_s18, 32  ;;  %p10424_p4 = scmp.lt.s32.totalorder %s190_s18, %s190_s18 }
  0xf6   :  { %p10420_p3 = scmp.ne.s32.totalorder %s190_s18, %s10419_s29  ;;  %p10425_p5 = scmp.lt.s32.totalorder %s10419_s29, %s10419_s29 }
  0xf8   :  { %p10426_p6 = por %p10425_p5, %p10424_p4 }
  0xfa   :  { %p10427_p7 = pnand %p10426_p6, %p10420_p3 }
  0xfc   :  { %10430 = shalt.err (!%p10427_p7)
}
  0xfd   :  { %192 = dma.hbm_to_vmem [thread:$0]  %s10962_s14, 32, %s190_s18, [#allocation24]  }
  0xfe   :  { %10453 = dma.done.wait [#allocation3], 384  }
  0xff   :  { %10454 = vsyncadd [#allocation3], 4294966912 }
 0x100   :  { %10455 = dma.done.wait [#allocation6], 61504  }
 0x101   :  { %10456 = vsyncadd [#allocation6], 4294905792 }
 0x102   :  { %10457 = dma.done.wait [#allocation9], 41120  }
 0x103   :  { %10458 = vsyncadd [#allocation9], 4294926176 }
 0x104   :  { %10459 = dma.done.wait [#allocation12], 4160  }
 0x105   :  { %10460 = vsyncadd [#allocation12], 4294963136 }
 0x106   :  { %10461 = dma.done.wait [#allocation15], 4112  }
 0x107   :  { %10462 = vsyncadd [#allocation15], 4294963184 }
 0x108   :  { %10463 = dma.done.wait [#allocation18], 4160  }
 0x109   :  { %10464 = vsyncadd [#allocation18], 4294963136 }
 0x10a   :  { %10465 = dma.done.wait [#allocation21], 2064  }
 0x10b   :  { %10466 = vsyncadd [#allocation21], 4294965232 }
 0x10c   :  { %10467 = dma.done.wait [#allocation24], 2080  }
 0x10d   :  { %10468 = vsyncadd [#allocation24], 4294965216  ;;  %v8694_v0 = vld [vmem:[#allocation7 + $0x4] ss:$40 sps:$4 sm:$0xff]   ;;  %v8698_v2 = vld [vmem:[#allocation7] ss:$40 sps:$4 sm:$0xff]  }
 0x10e   :  { %v8696_v1 = vld [vmem:[#allocation7 + $0xc] ss:$40 sps:$4 sm:$0xff]   ;;  %3197 = vmatprep.subr.bf16.mxu0 %v8694_v0  ;;  %v8699_v3 = vld [vmem:[#allocation7 + $0x8] ss:$40 sps:$4 sm:$0xff]   ;;  %v8702_v5 = vld [vmem:[#allocation7 + $0x5c] ss:$40 sps:$4 sm:$0xff]  }
 0x10f   :  { %3320 = vmatprep.subr.bf16.mxu1 %v8696_v1  ;;  %v8700_v4 = vld [vmem:[#allocation7 + $0x54] ss:$40 sps:$4 sm:$0xff]   ;;  %3198 = vmatpush1.bf16.msra.mxu0 %v8698_v2  ;;  %v8704_v6 = vld [vmem:[#allocation7 + $0x50] ss:$40 sps:$4 sm:$0xff]   ;;  %v8706_v8 = vld [vmem:[#allocation7 + $0xa4] ss:$40 sps:$4 sm:$0xff]  }
 0x110   :  { %3321 = vmatpush1.bf16.msra.mxu1 %v8699_v3  ;;  %3199 = vmatprep.subr.bf16.mxu0 %v8700_v4  ;;  %v8705_v7 = vld [vmem:[#allocation7 + $0x58] ss:$40 sps:$4 sm:$0xff]   ;;  %v8708_v9 = vld [vmem:[#allocation7 + $0xac] ss:$40 sps:$4 sm:$0xff]   ;;  %v8711_v11 = vld [vmem:[#allocation7 + $0xa8] ss:$40 sps:$4 sm:$0xff]  }
 0x111   :  { %3322 = vmatprep.subr.bf16.mxu1 %v8702_v5  ;;  %v8710_v10 = vld [vmem:[#allocation7 + $0xa0] ss:$40 sps:$4 sm:$0xff]   ;;  %v8712_v12 = vld [vmem:[#allocation7 + $0xf4] ss:$40 sps:$4 sm:$0xff]   ;;  %v8716_v14 = vld [vmem:[#allocation7 + $0xf0] ss:$40 sps:$4 sm:$0xff]  }
 0x112   :  { %v8714_v13 = vld [vmem:[#allocation7 + $0xfc] ss:$40 sps:$4 sm:$0xff]   ;;  %v8717_v15 = vld [vmem:[#allocation7 + $0xf8] ss:$40 sps:$4 sm:$0xff]   ;;  %v8720_v17 = vld [vmem:[#allocation7 + $0x14c] ss:$40 sps:$4 sm:$0xff]  }
 0x113   :  { %3200 = vmatpush1.bf16.msra.mxu0 %v8704_v6  ;;  %v8718_v16 = vld [vmem:[#allocation7 + $0x144] ss:$40 sps:$4 sm:$0xff]   ;;  %v8722_v18 = vld [vmem:[#allocation7 + $0x140] ss:$40 sps:$4 sm:$0xff]   ;;  %v8724_v20 = vld [vmem:[#allocation7 + $0x194] ss:$40 sps:$4 sm:$0xff]  }
 0x114   :  { %3323 = vmatpush1.bf16.msra.mxu1 %v8705_v7  ;;  %3201 = vmatprep.subr.bf16.mxu0 %v8706_v8  ;;  %v8723_v19 = vld [vmem:[#allocation7 + $0x148] ss:$40 sps:$4 sm:$0xff]   ;;  %v8726_v21 = vld [vmem:[#allocation7 + $0x19c] ss:$40 sps:$4 sm:$0xff]   ;;  %v8729_v23 = vld [vmem:[#allocation7 + $0x198] ss:$40 sps:$4 sm:$0xff]  }
 0x115   :  { %3324 = vmatprep.subr.bf16.mxu1 %v8708_v9  ;;  %v8728_v22 = vld [vmem:[#allocation7 + $0x190] ss:$40 sps:$4 sm:$0xff]   ;;  %v8730_v24 = vld [vmem:[#allocation7 + $0x1e4] ss:$40 sps:$4 sm:$0xff]   ;;  %v8734_v26 = vld [vmem:[#allocation7 + $0x1e0] ss:$40 sps:$4 sm:$0xff]  }
 0x116   :  { %v8732_v25 = vld [vmem:[#allocation7 + $0x1ec] ss:$40 sps:$4 sm:$0xff]   ;;  %v8735_v27 = vld [vmem:[#allocation7 + $0x1e8] ss:$40 sps:$4 sm:$0xff]   ;;  %v8738_v29 = vld [vmem:[#allocation7 + $0x23c] ss:$40 sps:$4 sm:$0xff]  }
 0x117   :  { %3202 = vmatpush1.bf16.msra.mxu0 %v8710_v10  ;;  %v8736_v28 = vld [vmem:[#allocation7 + $0x234] ss:$40 sps:$4 sm:$0xff]   ;;  %v8740_v30 = vld [vmem:[#allocation7 + $0x230] ss:$40 sps:$4 sm:$0xff]   ;;  %v8742_v32 = vld [vmem:[#allocation7 + $0x284] ss:$40 sps:$4 sm:$0xff]  }
 0x118   :  { %3325 = vmatpush1.bf16.msra.mxu1 %v8711_v11  ;;  %3203 = vmatprep.subr.bf16.mxu0 %v8712_v12  ;;  %v8741_v31 = vld [vmem:[#allocation7 + $0x238] ss:$40 sps:$4 sm:$0xff]   ;;  %v8744_v33 = vld [vmem:[#allocation7 + $0x28c] ss:$40 sps:$4 sm:$0xff]   ;;  %v8747_v35 = vld [vmem:[#allocation7 + $0x288] ss:$40 sps:$4 sm:$0xff]  }
 0x119   :  { %3326 = vmatprep.subr.bf16.mxu1 %v8714_v13  ;;  %v8746_v34 = vld [vmem:[#allocation7 + $0x280] ss:$40 sps:$4 sm:$0xff]   ;;  %v8748_v36 = vld [vmem:[#allocation7 + $0x2d4] ss:$40 sps:$4 sm:$0xff]   ;;  %v8752_v38 = vld [vmem:[#allocation7 + $0x2d0] ss:$40 sps:$4 sm:$0xff]  }
 0x11a   :  { %v8750_v37 = vld [vmem:[#allocation7 + $0x2dc] ss:$40 sps:$4 sm:$0xff]   ;;  %v8753_v39 = vld [vmem:[#allocation7 + $0x2d8] ss:$40 sps:$4 sm:$0xff]   ;;  %v8756_v41 = vld [vmem:[#allocation7 + $0x32c] ss:$40 sps:$4 sm:$0xff]  }
 0x11b   :  { %3204 = vmatpush1.bf16.msra.mxu0 %v8716_v14  ;;  %v8754_v40 = vld [vmem:[#allocation7 + $0x324] ss:$40 sps:$4 sm:$0xff]   ;;  %v8758_v42 = vld [vmem:[#allocation7 + $0x320] ss:$40 sps:$4 sm:$0xff]   ;;  %v8760_v44 = vld [vmem:[#allocation7 + $0x374] ss:$40 sps:$4 sm:$0xff]  }
 0x11c   :  { %3327 = vmatpush1.bf16.msra.mxu1 %v8717_v15  ;;  %3205 = vmatprep.subr.bf16.mxu0 %v8718_v16  ;;  %v8759_v43 = vld [vmem:[#allocation7 + $0x328] ss:$40 sps:$4 sm:$0xff]   ;;  %v8762_v45 = vld [vmem:[#allocation7 + $0x37c] ss:$40 sps:$4 sm:$0xff]   ;;  %v8765_v49 = vld [vmem:[#allocation7 + $0x378] ss:$40 sps:$4 sm:$0xff]  }
 0x11d   :  { %3328 = vmatprep.subr.bf16.mxu1 %v8720_v17  ;;  %v239_v46 = vld [vmem:[#allocation2] sm:$0xff]  ;;  %v8764_v47 = vld [vmem:[#allocation7 + $0x370] ss:$40 sps:$4 sm:$0xff]   ;;  %v8768_v51 = vld [vmem:[#allocation7 + $0x3cc] ss:$40 sps:$4 sm:$0xff]   ;;  %s10495_s14 = smov [#allocation26]  }
 0x11e   :  { %v10774_v48 = vcombine.high %v239_v46, %v239_v46  ;;  %v8766_v50 = vld [vmem:[#allocation7 + $0x3c4] ss:$40 sps:$4 sm:$0xff]   ;;  %v8770_v52 = vld [vmem:[#allocation7 + $0x3c0] ss:$40 sps:$4 sm:$0xff]   ;;  %v8772_v54 = vld [vmem:[#allocation7 + $0x414] ss:$40 sps:$4 sm:$0xff]   ;;  %v10778_v5 = vcombine.low %v239_v46, %v239_v46 }
 0x11f   :  { %3206 = vmatpush1.bf16.msra.mxu0 %v8722_v18  ;;  %v8771_v53 = vld [vmem:[#allocation7 + $0x3c8] ss:$40 sps:$4 sm:$0xff]   ;;  %v8774_v55 = vld [vmem:[#allocation7 + $0x41c] ss:$40 sps:$4 sm:$0xff]   ;;  %v8777_v57 = vld [vmem:[#allocation7 + $0x418] ss:$40 sps:$4 sm:$0xff]  }
 0x120   :  { %3329 = vmatpush1.bf16.msra.mxu1 %v8723_v19  ;;  %3207 = vmatprep.subr.bf16.mxu0 %v8724_v20  ;;  %v8776_v56 = vld [vmem:[#allocation7 + $0x410] ss:$40 sps:$4 sm:$0xff]   ;;  %v8778_v58 = vld [vmem:[#allocation7 + $0x464] ss:$40 sps:$4 sm:$0xff]   ;;  %v8782_v60 = vld [vmem:[#allocation7 + $0x460] ss:$40 sps:$4 sm:$0xff]  }
 0x121   :  { %3330 = vmatprep.subr.bf16.mxu1 %v8726_v21  ;;  %3229 = vmatprep.mubr.bf16.mxu0 %v10774_v48  ;;  %v8780_v59 = vld [vmem:[#allocation7 + $0x46c] ss:$40 sps:$4 sm:$0xff]   ;;  %v8783_v61 = vld [vmem:[#allocation7 + $0x468] ss:$40 sps:$4 sm:$0xff]   ;;  %v8786_v63 = vld [vmem:[#allocation7 + $0x4bc] ss:$40 sps:$4 sm:$0xff]  }
 0x122   :  { %3352 = vmatprep.mubr.bf16.mxu1 %v10774_v48  ;;  %v8784_v62 = vld [vmem:[#allocation7 + $0x4b4] ss:$40 sps:$4 sm:$0xff]   ;;  %v8788_v0 = vld [vmem:[#allocation7 + $0x4b0] ss:$40 sps:$4 sm:$0xff]   ;;  %v8793_v2 = vld [vmem:[#allocation7 + $0x504] ss:$40 sps:$4 sm:$0xff]  }
 0x123   :  { %3208 = vmatpush1.bf16.msra.mxu0 %v8728_v22  ;;  %v8789_v1 = vld [vmem:[#allocation7 + $0x4b8] ss:$40 sps:$4 sm:$0xff]   ;;  %v8796_v3 = vld [vmem:[#allocation7 + $0x50c] ss:$40 sps:$4 sm:$0xff]   ;;  %v8794_v6 = vld [vmem:[#allocation7 + $0x508] ss:$40 sps:$4 sm:$0xff]  }
 0x124   :  { %3331 = vmatpush1.bf16.msra.mxu1 %v8729_v23  ;;  %3209 = vmatprep.subr.bf16.mxu0 %v8730_v24  ;;  %v8791_v4 = vld [vmem:[#allocation7 + $0x500] ss:$40 sps:$4 sm:$0xff]   ;;  %v8800_v7 = vld [vmem:[#allocation7 + $0x554] ss:$40 sps:$4 sm:$0xff]   ;;  %v8798_v9 = vld [vmem:[#allocation7 + $0x550] ss:$40 sps:$4 sm:$0xff]  }
 0x125   :  { %3332 = vmatprep.subr.bf16.mxu1 %v8732_v25  ;;  %v8803_v8 = vld [vmem:[#allocation7 + $0x55c] ss:$40 sps:$4 sm:$0xff]   ;;  %v8801_v10 = vld [vmem:[#allocation7 + $0x558] ss:$40 sps:$4 sm:$0xff]   ;;  %v8809_v12 = vld [vmem:[#allocation7 + $0x5ac] ss:$40 sps:$4 sm:$0xff]  }
 0x126   :  { %v8806_v11 = vld [vmem:[#allocation7 + $0x5a4] ss:$40 sps:$4 sm:$0xff]   ;;  %v8804_v13 = vld [vmem:[#allocation7 + $0x5a0] ss:$40 sps:$4 sm:$0xff]   ;;  %v8812_v15 = vld [vmem:[#allocation7 + $0x5f4] ss:$40 sps:$4 sm:$0xff]  }
 0x127   :  { %3210 = vmatpush1.bf16.msra.mxu0 %v8734_v26  ;;  %v8807_v14 = vld [vmem:[#allocation7 + $0x5a8] ss:$40 sps:$4 sm:$0xff]   ;;  %v8815_v16 = vld [vmem:[#allocation7 + $0x5fc] ss:$40 sps:$4 sm:$0xff]   ;;  %v8813_v18 = vld [vmem:[#allocation7 + $0x5f8] ss:$40 sps:$4 sm:$0xff]  }
 0x128   :  { %3333 = vmatpush1.bf16.msra.mxu1 %v8735_v27  ;;  %3211 = vmatprep.subr.bf16.mxu0 %v8736_v28  ;;  %v8810_v17 = vld [vmem:[#allocation7 + $0x5f0] ss:$40 sps:$4 sm:$0xff]   ;;  %v8818_v19 = vld [vmem:[#allocation7 + $0x644] ss:$40 sps:$4 sm:$0xff]   ;;  %v8816_v21 = vld [vmem:[#allocation7 + $0x640] ss:$40 sps:$4 sm:$0xff]  }
 0x129   :  { %3334 = vmatprep.subr.bf16.mxu1 %v8738_v29  ;;  %v8821_v20 = vld [vmem:[#allocation7 + $0x64c] ss:$40 sps:$4 sm:$0xff]   ;;  %v8819_v22 = vld [vmem:[#allocation7 + $0x648] ss:$40 sps:$4 sm:$0xff]   ;;  %v8827_v24 = vld [vmem:[#allocation7 + $0x69c] ss:$40 sps:$4 sm:$0xff]  }
 0x12a   :  { %v8824_v23 = vld [vmem:[#allocation7 + $0x694] ss:$40 sps:$4 sm:$0xff]   ;;  %v8822_v25 = vld [vmem:[#allocation7 + $0x690] ss:$40 sps:$4 sm:$0xff]   ;;  %v8830_v27 = vld [vmem:[#allocation7 + $0x6e4] ss:$40 sps:$4 sm:$0xff]  }
 0x12b   :  { %3212 = vmatpush1.bf16.msra.mxu0 %v8740_v30  ;;  %v8825_v26 = vld [vmem:[#allocation7 + $0x698] ss:$40 sps:$4 sm:$0xff]   ;;  %v8833_v28 = vld [vmem:[#allocation7 + $0x6ec] ss:$40 sps:$4 sm:$0xff]   ;;  %s7533_s5 = sshll.u32 %s10495_s14, 4  ;;  %s7534_s5 = int_to_ptr.vmem [resolvable:$true] %s7533_s5 }
 0x12c   :  { %3335 = vmatpush1.bf16.msra.mxu1 %v8741_v31  ;;  %3213 = vmatprep.subr.bf16.mxu0 %v8742_v32  ;;  %v10782_v29 = vld [vmem:[#allocation2 + $0x8] sm:$0xff]  ;;  %v8828_v31 = vld [vmem:[#allocation7 + $0x6e0] ss:$40 sps:$4 sm:$0xff]   ;;  %s10431_s13 = scalar_lea.vmem %s7534_s5, 256  ;;  %p10436_p9 = scmp.lt.s32.totalorder %s7534_s5, %s7534_s5 }
 0x12d   :  { %3336 = vmatprep.subr.bf16.mxu1 %v8744_v33  ;;  %v10786_v30 = vcombine.high %v10782_v29, %v10782_v29  ;;  %v8831_v32 = vld [vmem:[#allocation7 + $0x6e8] ss:$40 sps:$4 sm:$0xff]   ;;  %v8836_v33 = vld [vmem:[#allocation7 + $0x734] ss:$40 sps:$4 sm:$0xff]   ;;  %p10432_p8 = scmp.ne.s32.totalorder %s7534_s5, %s10431_s13  ;;  %p10437_p10 = scmp.lt.s32.totalorder %s10431_s13, %s10431_s13 }
 0x12e   :  { %v8857_v46 = vld [vmem:[#allocation7 + $0x82c] ss:$40 sps:$4 sm:$0xff]  }
 0x12f   :  { %3214 = vmatpush1.bf16.msra.mxu0 %v8746_v34  ;;  %v8839_v34 = vld [vmem:[#allocation7 + $0x73c] ss:$40 sps:$4 sm:$0xff]   ;;  %p10438_p11 = por %p10437_p10, %p10436_p9 }
 0x130   :  { %3337 = vmatpush1.bf16.msra.mxu1 %v8747_v35  ;;  %3215 = vmatprep.subr.bf16.mxu0 %v8748_v36  ;;  %v8834_v35 = vld [vmem:[#allocation7 + $0x730] ss:$40 sps:$4 sm:$0xff]  }
 0x131   :  { %3338 = vmatprep.subr.bf16.mxu1 %v8750_v37  ;;  %v8837_v36 = vld [vmem:[#allocation7 + $0x738] ss:$40 sps:$4 sm:$0xff]   ;;  %v8842_v37 = vld [vmem:[#allocation7 + $0x784] ss:$40 sps:$4 sm:$0xff]   ;;  %p10439_p12 = pnand %p10438_p11, %p10432_p8 }
 0x133   :  { %3216 = vmatpush1.bf16.msra.mxu0 %v8752_v38  ;;  %v8845_v38 = vld [vmem:[#allocation7 + $0x78c] ss:$40 sps:$4 sm:$0xff]  }
 0x134   :  { %3339 = vmatpush1.bf16.msra.mxu1 %v8753_v39  ;;  %3217 = vmatprep.subr.bf16.mxu0 %v8754_v40  ;;  %v8840_v39 = vld [vmem:[#allocation7 + $0x780] ss:$40 sps:$4 sm:$0xff]  }
 0x135   :  { %3340 = vmatprep.subr.bf16.mxu1 %v8756_v41  ;;  %v8843_v40 = vld [vmem:[#allocation7 + $0x788] ss:$40 sps:$4 sm:$0xff]   ;;  %v8848_v41 = vld [vmem:[#allocation7 + $0x7d4] ss:$40 sps:$4 sm:$0xff]  }
 0x137   :  { %3218 = vmatpush1.bf16.msra.mxu0 %v8758_v42  ;;  %v8851_v42 = vld [vmem:[#allocation7 + $0x7dc] ss:$40 sps:$4 sm:$0xff]  }
 0x138   :  { %3341 = vmatpush1.bf16.msra.mxu1 %v8759_v43  ;;  %3219 = vmatprep.subr.bf16.mxu0 %v8760_v44  ;;  %v8846_v43 = vld [vmem:[#allocation7 + $0x7d0] ss:$40 sps:$4 sm:$0xff]  }
 0x139   :  { %3342 = vmatprep.subr.bf16.mxu1 %v8762_v45  ;;  %v8849_v44 = vld [vmem:[#allocation7 + $0x7d8] ss:$40 sps:$4 sm:$0xff]   ;;  %v8854_v45 = vld [vmem:[#allocation7 + $0x824] ss:$40 sps:$4 sm:$0xff]  }
 0x13b   :  { %3220 = vmatpush1.bf16.msra.mxu0 %v8764_v47  ;;  %v8852_v47 = vld [vmem:[#allocation7 + $0x820] ss:$40 sps:$4 sm:$0xff]  }
 0x13c   :  { %3343 = vmatpush1.bf16.msra.mxu1 %v8765_v49  ;;  %3221 = vmatprep.subr.bf16.mxu0 %v8766_v50  ;;  %v8855_v49 = vld [vmem:[#allocation7 + $0x828] ss:$40 sps:$4 sm:$0xff]   ;;  %v8860_v50 = vld [vmem:[#allocation7 + $0x874] ss:$40 sps:$4 sm:$0xff]  }
 0x13d   :  { %3344 = vmatprep.subr.bf16.mxu1 %v8768_v51  ;;  %v8863_v51 = vld [vmem:[#allocation7 + $0x87c] ss:$40 sps:$4 sm:$0xff]  }
 0x13f   :  { %3222 = vmatpush1.bf16.msra.mxu0 %v8770_v52  ;;  %v8858_v52 = vld [vmem:[#allocation7 + $0x870] ss:$40 sps:$4 sm:$0xff]  }
 0x140   :  { %3345 = vmatpush1.bf16.msra.mxu1 %v8771_v53  ;;  %3223 = vmatprep.subr.bf16.mxu0 %v8772_v54  ;;  %v8861_v53 = vld [vmem:[#allocation7 + $0x878] ss:$40 sps:$4 sm:$0xff]   ;;  %v8866_v54 = vld [vmem:[#allocation7 + $0x8c4] ss:$40 sps:$4 sm:$0xff]  }
 0x141   :  { %3346 = vmatprep.subr.bf16.mxu1 %v8774_v55  ;;  %v8869_v55 = vld [vmem:[#allocation7 + $0x8cc] ss:$40 sps:$4 sm:$0xff]  }
 0x143   :  { %3224 = vmatpush1.bf16.msra.mxu0 %v8776_v56  ;;  %v8864_v56 = vld [vmem:[#allocation7 + $0x8c0] ss:$40 sps:$4 sm:$0xff]  }
 0x144   :  { %3347 = vmatpush1.bf16.msra.mxu1 %v8777_v57  ;;  %3225 = vmatprep.subr.bf16.mxu0 %v8778_v58  ;;  %v8867_v57 = vld [vmem:[#allocation7 + $0x8c8] ss:$40 sps:$4 sm:$0xff]   ;;  %v8872_v58 = vld [vmem:[#allocation7 + $0x914] ss:$40 sps:$4 sm:$0xff]  }
 0x145   :  { %3348 = vmatprep.subr.bf16.mxu1 %v8780_v59  ;;  %v8875_v59 = vld [vmem:[#allocation7 + $0x91c] ss:$40 sps:$4 sm:$0xff]  }
 0x147   :  { %3226 = vmatpush1.bf16.msra.mxu0 %v8782_v60  ;;  %v8870_v60 = vld [vmem:[#allocation7 + $0x910] ss:$40 sps:$4 sm:$0xff]  }
 0x148   :  { %3349 = vmatpush1.bf16.msra.mxu1 %v8783_v61  ;;  %3227 = vmatprep.subr.bf16.mxu0 %v8784_v62  ;;  %v8873_v61 = vld [vmem:[#allocation7 + $0x918] ss:$40 sps:$4 sm:$0xff]   ;;  %v8878_v62 = vld [vmem:[#allocation7 + $0x964] ss:$40 sps:$4 sm:$0xff]  }
 0x149   :  { %3350 = vmatprep.subr.bf16.mxu1 %v8786_v63  ;;  %v8881_v63 = vld [vmem:[#allocation7 + $0x96c] ss:$40 sps:$4 sm:$0xff]  }
 0x14b   :  { %3228 = vmatpush1.bf16.msra.mxu0 %v8788_v0  ;;  %v8876_v0 = vld [vmem:[#allocation7 + $0x960] ss:$40 sps:$4 sm:$0xff]  }
 0x14c   :  { %3351 = vmatpush1.bf16.msra.mxu1 %v8789_v1  ;;  %3238 = vmatprep.subr.bf16.mxu0 %v8793_v2  ;;  %v8879_v1 = vld [vmem:[#allocation7 + $0x968] ss:$40 sps:$4 sm:$0xff]   ;;  %v8884_v2 = vld [vmem:[#allocation7 + $0x9b4] ss:$40 sps:$4 sm:$0xff]  }
 0x14d   :  { %3361 = vmatprep.subr.bf16.mxu1 %v8796_v3  ;;  %v8887_v3 = vld [vmem:[#allocation7 + $0x9bc] ss:$40 sps:$4 sm:$0xff]  }
 0x14e   :  { %3230 = vmatmul.mubr.bf16.vlgmr.msra.gmra.mrb[0].mxu0 %v10778_v5 }
 0x14f   :  { %3353 = vmatmul.mubr.bf16.vlgmr.msra.gmra.mrb[0].mxu1 %v10778_v5  ;;  %3239 = vmatpush1.bf16.msra.mxu0 %v8791_v4  ;;  %v8882_v4 = vld [vmem:[#allocation7 + $0x9b0] ss:$40 sps:$4 sm:$0xff]  }
 0x150   :  { %3362 = vmatpush1.bf16.msra.mxu1 %v8794_v6  ;;  %3240 = vmatprep.subr.bf16.mxu0 %v8800_v7  ;;  %v8885_v6 = vld [vmem:[#allocation7 + $0x9b8] ss:$40 sps:$4 sm:$0xff]   ;;  %v8891_v7 = vld [vmem:[#allocation7 + $0xa04] ss:$40 sps:$4 sm:$0xff]  }
 0x151   :  { %3363 = vmatprep.subr.bf16.mxu1 %v8803_v8  ;;  %3270 = vmatprep.mubr.bf16.mxu0 %v10786_v30  ;;  %v8894_v8 = vld [vmem:[#allocation7 + $0xa0c] ss:$40 sps:$4 sm:$0xff]  }
 0x152   :  { %3393 = vmatprep.mubr.bf16.mxu1 %v10786_v30 }
 0x153   :  { %3241 = vmatpush1.bf16.msra.mxu0 %v8798_v9  ;;  %v8889_v9 = vld [vmem:[#allocation7 + $0xa00] ss:$40 sps:$4 sm:$0xff]  }
 0x154   :  { %3364 = vmatpush1.bf16.msra.mxu1 %v8801_v10  ;;  %3242 = vmatprep.subr.bf16.mxu0 %v8806_v11  ;;  %v10792_v10 = vcombine.low %v10782_v29, %v10782_v29  ;;  %v8892_v11 = vld [vmem:[#allocation7 + $0xa08] ss:$40 sps:$4 sm:$0xff]  }
 0x155   :  { %3365 = vmatprep.subr.bf16.mxu1 %v8809_v12  ;;  %v8898_v12 = vld [vmem:[#allocation7 + $0xa54] ss:$40 sps:$4 sm:$0xff]   ;;  %v8917_v29 = vld [vmem:[#allocation7 + $0xb48] ss:$40 sps:$4 sm:$0xff]  }
 0x157   :  { %3243 = vmatpush1.bf16.msra.mxu0 %v8804_v13  ;;  %v10794_v13 = vld [vmem:[#allocation2 + $0x10] sm:$0xff] }
 0x158   :  { %3366 = vmatpush1.bf16.msra.mxu1 %v8807_v14  ;;  %3244 = vmatprep.subr.bf16.mxu0 %v8812_v15  ;;  %v8901_v14 = vld [vmem:[#allocation7 + $0xa5c] ss:$40 sps:$4 sm:$0xff]   ;;  %v10798_v15 = vcombine.high %v10794_v13, %v10794_v13 }
 0x159   :  { %3367 = vmatprep.subr.bf16.mxu1 %v8815_v16  ;;  %v8896_v16 = vld [vmem:[#allocation7 + $0xa50] ss:$40 sps:$4 sm:$0xff]  }
 0x15b   :  { %3245 = vmatpush1.bf16.msra.mxu0 %v8810_v17  ;;  %v8899_v17 = vld [vmem:[#allocation7 + $0xa58] ss:$40 sps:$4 sm:$0xff]  }
 0x15c   :  { %3368 = vmatpush1.bf16.msra.mxu1 %v8813_v18  ;;  %3246 = vmatprep.subr.bf16.mxu0 %v8818_v19  ;;  %v8904_v18 = vld [vmem:[#allocation7 + $0xaa4] ss:$40 sps:$4 sm:$0xff]  }
 0x15d   :  { %3369 = vmatprep.subr.bf16.mxu1 %v8821_v20  ;;  %v8907_v19 = vld [vmem:[#allocation7 + $0xaac] ss:$40 sps:$4 sm:$0xff]   ;;  %v8902_v20 = vld [vmem:[#allocation7 + $0xaa0] ss:$40 sps:$4 sm:$0xff]  }
 0x15f   :  { %3247 = vmatpush1.bf16.msra.mxu0 %v8816_v21  ;;  %v8905_v21 = vld [vmem:[#allocation7 + $0xaa8] ss:$40 sps:$4 sm:$0xff]  }
 0x160   :  { %3370 = vmatpush1.bf16.msra.mxu1 %v8819_v22  ;;  %3248 = vmatprep.subr.bf16.mxu0 %v8824_v23  ;;  %v8910_v22 = vld [vmem:[#allocation7 + $0xaf4] ss:$40 sps:$4 sm:$0xff]  }
 0x161   :  { %3371 = vmatprep.subr.bf16.mxu1 %v8827_v24  ;;  %v8913_v23 = vld [vmem:[#allocation7 + $0xafc] ss:$40 sps:$4 sm:$0xff]   ;;  %v8908_v24 = vld [vmem:[#allocation7 + $0xaf0] ss:$40 sps:$4 sm:$0xff]  }
 0x163   :  { %3249 = vmatpush1.bf16.msra.mxu0 %v8822_v25  ;;  %v8911_v25 = vld [vmem:[#allocation7 + $0xaf8] ss:$40 sps:$4 sm:$0xff]  }
 0x164   :  { %3372 = vmatpush1.bf16.msra.mxu1 %v8825_v26  ;;  %3250 = vmatprep.subr.bf16.mxu0 %v8830_v27  ;;  %v8916_v26 = vld [vmem:[#allocation7 + $0xb44] ss:$40 sps:$4 sm:$0xff]  }
 0x165   :  { %3373 = vmatprep.subr.bf16.mxu1 %v8833_v28  ;;  %v8919_v27 = vld [vmem:[#allocation7 + $0xb4c] ss:$40 sps:$4 sm:$0xff]   ;;  %v8914_v28 = vld [vmem:[#allocation7 + $0xb40] ss:$40 sps:$4 sm:$0xff]  }
 0x167   :  { %3251 = vmatpush1.bf16.msra.mxu0 %v8828_v31  ;;  %v8922_v31 = vld [vmem:[#allocation7 + $0xb94] ss:$40 sps:$4 sm:$0xff]  }
 0x168   :  { %3374 = vmatpush1.bf16.msra.mxu1 %v8831_v32  ;;  %3252 = vmatprep.subr.bf16.mxu0 %v8836_v33  ;;  %v8925_v32 = vld [vmem:[#allocation7 + $0xb9c] ss:$40 sps:$4 sm:$0xff]   ;;  %v8920_v33 = vld [vmem:[#allocation7 + $0xb90] ss:$40 sps:$4 sm:$0xff]  }
 0x169   :  { %3375 = vmatprep.subr.bf16.mxu1 %v8839_v34  ;;  %v8923_v34 = vld [vmem:[#allocation7 + $0xb98] ss:$40 sps:$4 sm:$0xff]  }
 0x16b   :  { %3253 = vmatpush1.bf16.msra.mxu0 %v8834_v35  ;;  %v8928_v35 = vld [vmem:[#allocation7 + $0xbe4] ss:$40 sps:$4 sm:$0xff]  }
 0x16c   :  { %3376 = vmatpush1.bf16.msra.mxu1 %v8837_v36  ;;  %3254 = vmatprep.subr.bf16.mxu0 %v8842_v37  ;;  %v8931_v36 = vld [vmem:[#allocation7 + $0xbec] ss:$40 sps:$4 sm:$0xff]   ;;  %v8926_v37 = vld [vmem:[#allocation7 + $0xbe0] ss:$40 sps:$4 sm:$0xff]  }
 0x16d   :  { %3377 = vmatprep.subr.bf16.mxu1 %v8845_v38  ;;  %v8929_v38 = vld [vmem:[#allocation7 + $0xbe8] ss:$40 sps:$4 sm:$0xff]  }
 0x16f   :  { %3255 = vmatpush1.bf16.msra.mxu0 %v8840_v39  ;;  %v8934_v39 = vld [vmem:[#allocation7 + $0xc34] ss:$40 sps:$4 sm:$0xff]  }
 0x170   :  { %3378 = vmatpush1.bf16.msra.mxu1 %v8843_v40  ;;  %3256 = vmatprep.subr.bf16.mxu0 %v8848_v41  ;;  %v8937_v40 = vld [vmem:[#allocation7 + $0xc3c] ss:$40 sps:$4 sm:$0xff]   ;;  %v8932_v41 = vld [vmem:[#allocation7 + $0xc30] ss:$40 sps:$4 sm:$0xff]  }
 0x171   :  { %3379 = vmatprep.subr.bf16.mxu1 %v8851_v42  ;;  %v8935_v42 = vld [vmem:[#allocation7 + $0xc38] ss:$40 sps:$4 sm:$0xff]  }
 0x173   :  { %3257 = vmatpush1.bf16.msra.mxu0 %v8846_v43  ;;  %v8940_v43 = vld [vmem:[#allocation7 + $0xc84] ss:$40 sps:$4 sm:$0xff]  }
 0x174   :  { %3380 = vmatpush1.bf16.msra.mxu1 %v8849_v44  ;;  %3258 = vmatprep.subr.bf16.mxu0 %v8854_v45  ;;  %v8943_v44 = vld [vmem:[#allocation7 + $0xc8c] ss:$40 sps:$4 sm:$0xff]   ;;  %v8938_v45 = vld [vmem:[#allocation7 + $0xc80] ss:$40 sps:$4 sm:$0xff]  }
 0x175   :  { %3381 = vmatprep.subr.bf16.mxu1 %v8857_v46  ;;  %v8941_v46 = vld [vmem:[#allocation7 + $0xc88] ss:$40 sps:$4 sm:$0xff]  }
 0x177   :  { %3259 = vmatpush1.bf16.msra.mxu0 %v8852_v47  ;;  %v8946_v47 = vld [vmem:[#allocation7 + $0xcd4] ss:$40 sps:$4 sm:$0xff]  }
 0x178   :  { %3382 = vmatpush1.bf16.msra.mxu1 %v8855_v49  ;;  %3260 = vmatprep.subr.bf16.mxu0 %v8860_v50  ;;  %v8949_v49 = vld [vmem:[#allocation7 + $0xcdc] ss:$40 sps:$4 sm:$0xff]   ;;  %v8944_v50 = vld [vmem:[#allocation7 + $0xcd0] ss:$40 sps:$4 sm:$0xff]  }
 0x179   :  { %3383 = vmatprep.subr.bf16.mxu1 %v8863_v51  ;;  %v8947_v51 = vld [vmem:[#allocation7 + $0xcd8] ss:$40 sps:$4 sm:$0xff]  }
 0x17b   :  { %3261 = vmatpush1.bf16.msra.mxu0 %v8858_v52  ;;  %v8952_v52 = vld [vmem:[#allocation7 + $0xd24] ss:$40 sps:$4 sm:$0xff]  }
 0x17c   :  { %3384 = vmatpush1.bf16.msra.mxu1 %v8861_v53  ;;  %3262 = vmatprep.subr.bf16.mxu0 %v8866_v54  ;;  %v8955_v53 = vld [vmem:[#allocation7 + $0xd2c] ss:$40 sps:$4 sm:$0xff]   ;;  %v8950_v54 = vld [vmem:[#allocation7 + $0xd20] ss:$40 sps:$4 sm:$0xff]  }
 0x17d   :  { %3385 = vmatprep.subr.bf16.mxu1 %v8869_v55  ;;  %v8953_v55 = vld [vmem:[#allocation7 + $0xd28] ss:$40 sps:$4 sm:$0xff]  }
 0x17f   :  { %3263 = vmatpush1.bf16.msra.mxu0 %v8864_v56  ;;  %v8958_v56 = vld [vmem:[#allocation7 + $0xd74] ss:$40 sps:$4 sm:$0xff]  }
 0x180   :  { %3386 = vmatpush1.bf16.msra.mxu1 %v8867_v57  ;;  %3264 = vmatprep.subr.bf16.mxu0 %v8872_v58  ;;  %v8961_v57 = vld [vmem:[#allocation7 + $0xd7c] ss:$40 sps:$4 sm:$0xff]   ;;  %v8956_v58 = vld [vmem:[#allocation7 + $0xd70] ss:$40 sps:$4 sm:$0xff]  }
 0x181   :  { %3387 = vmatprep.subr.bf16.mxu1 %v8875_v59  ;;  %v8959_v59 = vld [vmem:[#allocation7 + $0xd78] ss:$40 sps:$4 sm:$0xff]  }
 0x183   :  { %3265 = vmatpush1.bf16.msra.mxu0 %v8870_v60  ;;  %v8964_v60 = vld [vmem:[#allocation7 + $0xdc4] ss:$40 sps:$4 sm:$0xff]  }
 0x184   :  { %3388 = vmatpush1.bf16.msra.mxu1 %v8873_v61  ;;  %3266 = vmatprep.subr.bf16.mxu0 %v8878_v62  ;;  %v8967_v61 = vld [vmem:[#allocation7 + $0xdcc] ss:$40 sps:$4 sm:$0xff]   ;;  %v8962_v62 = vld [vmem:[#allocation7 + $0xdc0] ss:$40 sps:$4 sm:$0xff]  }
 0x185   :  { %3389 = vmatprep.subr.bf16.mxu1 %v8881_v63  ;;  %v8965_v63 = vld [vmem:[#allocation7 + $0xdc8] ss:$40 sps:$4 sm:$0xff]  }
 0x187   :  { %3267 = vmatpush1.bf16.msra.mxu0 %v8876_v0  ;;  %v8970_v0 = vld [vmem:[#allocation7 + $0xe14] ss:$40 sps:$4 sm:$0xff]  }
 0x188   :  { %3390 = vmatpush1.bf16.msra.mxu1 %v8879_v1  ;;  %3268 = vmatprep.subr.bf16.mxu0 %v8884_v2  ;;  %v8973_v1 = vld [vmem:[#allocation7 + $0xe1c] ss:$40 sps:$4 sm:$0xff]   ;;  %v8968_v2 = vld [vmem:[#allocation7 + $0xe10] ss:$40 sps:$4 sm:$0xff]  }
 0x189   :  { %3391 = vmatprep.subr.bf16.mxu1 %v8887_v3  ;;  %v8971_v3 = vld [vmem:[#allocation7 + $0xe18] ss:$40 sps:$4 sm:$0xff]  }
 0x18b   :  { %3269 = vmatpush1.bf16.msra.mxu0 %v8882_v4  ;;  %v8976_v4 = vld [vmem:[#allocation7 + $0xe64] ss:$40 sps:$4 sm:$0xff]  }
 0x18c   :  { %3392 = vmatpush1.bf16.msra.mxu1 %v8885_v6  ;;  %3279 = vmatprep.subr.bf16.mxu0 %v8891_v7  ;;  %v8979_v6 = vld [vmem:[#allocation7 + $0xe6c] ss:$40 sps:$4 sm:$0xff]   ;;  %v8974_v7 = vld [vmem:[#allocation7 + $0xe60] ss:$40 sps:$4 sm:$0xff]  }
 0x18d   :  { %3402 = vmatprep.subr.bf16.mxu1 %v8894_v8  ;;  %v8977_v8 = vld [vmem:[#allocation7 + $0xe68] ss:$40 sps:$4 sm:$0xff]  }
 0x18e   :  { %3271 = vmatmul.mubr.bf16.vlgmr.msra.gmra.mrb[0].mxu0 %v10792_v10 }
 0x18f   :  { %3394 = vmatmul.mubr.bf16.vlgmr.msra.gmra.mrb[0].mxu1 %v10792_v10  ;;  %3280 = vmatpush1.bf16.msra.mxu0 %v8889_v9  ;;  %v8982_v9 = vld [vmem:[#allocation7 + $0xeb4] ss:$40 sps:$4 sm:$0xff]  }
 0x190   :  { %3403 = vmatpush1.bf16.msra.mxu1 %v8892_v11  ;;  %3281 = vmatprep.subr.bf16.mxu0 %v8898_v12  ;;  %v8985_v11 = vld [vmem:[#allocation7 + $0xebc] ss:$40 sps:$4 sm:$0xff]   ;;  %v8980_v12 = vld [vmem:[#allocation7 + $0xeb0] ss:$40 sps:$4 sm:$0xff]  }
 0x191   :  { %3404 = vmatprep.subr.bf16.mxu1 %v8901_v14  ;;  %3311 = vmatprep.mubr.bf16.mxu0 %v10798_v15  ;;  %v8983_v14 = vld [vmem:[#allocation7 + $0xeb8] ss:$40 sps:$4 sm:$0xff]  }
 0x192   :  { %3434 = vmatprep.mubr.bf16.mxu1 %v10798_v15 }
 0x193   :  { %3282 = vmatpush1.bf16.msra.mxu0 %v8896_v16  ;;  %v8990_v16 = vld [vmem:[#allocation7 + $0x14] ss:$40 sps:$4 sm:$0xff]  }
 0x194   :  { %3405 = vmatpush1.bf16.msra.mxu1 %v8899_v17  ;;  %3283 = vmatprep.subr.bf16.mxu0 %v8904_v18  ;;  %v8993_v17 = vld [vmem:[#allocation7 + $0x1c] ss:$40 sps:$4 sm:$0xff]   ;;  %v10806_v18 = vcombine.low %v10794_v13, %v10794_v13 }
 0x195   :  { %3406 = vmatprep.subr.bf16.mxu1 %v8907_v19  ;;  %v8988_v19 = vld [vmem:[#allocation7 + $0x10] ss:$40 sps:$4 sm:$0xff]   ;;  %v9005_v13 = vld [vmem:[#allocation7 + $0xbc] ss:$40 sps:$4 sm:$0xff]  }
 0x197   :  { %3284 = vmatpush1.bf16.msra.mxu0 %v8902_v20  ;;  %v8991_v20 = vld [vmem:[#allocation7 + $0x18] ss:$40 sps:$4 sm:$0xff]  }
 0x198   :  { %3407 = vmatpush1.bf16.msra.mxu1 %v8905_v21  ;;  %3285 = vmatprep.subr.bf16.mxu0 %v8910_v22  ;;  %v8996_v21 = vld [vmem:[#allocation7 + $0x64] ss:$40 sps:$4 sm:$0xff]  }
 0x199   :  { %3408 = vmatprep.subr.bf16.mxu1 %v8913_v23  ;;  %v8999_v22 = vld [vmem:[#allocation7 + $0x6c] ss:$40 sps:$4 sm:$0xff]   ;;  %v8994_v23 = vld [vmem:[#allocation7 + $0x60] ss:$40 sps:$4 sm:$0xff]  }
 0x19b   :  { %3286 = vmatpush1.bf16.msra.mxu0 %v8908_v24  ;;  %v8997_v24 = vld [vmem:[#allocation7 + $0x68] ss:$40 sps:$4 sm:$0xff]  }
 0x19c   :  { %3409 = vmatpush1.bf16.msra.mxu1 %v8911_v25  ;;  %3287 = vmatprep.subr.bf16.mxu0 %v8916_v26  ;;  %v9002_v25 = vld [vmem:[#allocation7 + $0xb4] ss:$40 sps:$4 sm:$0xff]   ;;  %v9000_v26 = vld [vmem:[#allocation7 + $0xb0] ss:$40 sps:$4 sm:$0xff]  }
 0x19d   :  { %3410 = vmatprep.subr.bf16.mxu1 %v8919_v27  ;;  %v9003_v27 = vld [vmem:[#allocation7 + $0xb8] ss:$40 sps:$4 sm:$0xff]  }
 0x19f   :  { %3288 = vmatpush1.bf16.msra.mxu0 %v8914_v28  ;;  %v9008_v28 = vld [vmem:[#allocation7 + $0x104] ss:$40 sps:$4 sm:$0xff]  }
 0x1a0   :  { %3411 = vmatpush1.bf16.msra.mxu1 %v8917_v29  ;;  %3289 = vmatprep.subr.bf16.mxu0 %v8922_v31  ;;  %v9011_v29 = vld [vmem:[#allocation7 + $0x10c] ss:$40 sps:$4 sm:$0xff]   ;;  %v9006_v31 = vld [vmem:[#allocation7 + $0x100] ss:$40 sps:$4 sm:$0xff]  }
 0x1a1   :  { %3412 = vmatprep.subr.bf16.mxu1 %v8925_v32  ;;  %v9009_v32 = vld [vmem:[#allocation7 + $0x108] ss:$40 sps:$4 sm:$0xff]  }
 0x1a3   :  { %3290 = vmatpush1.bf16.msra.mxu0 %v8920_v33  ;;  %v9014_v33 = vld [vmem:[#allocation7 + $0x154] ss:$40 sps:$4 sm:$0xff]  }
 0x1a4   :  { %3413 = vmatpush1.bf16.msra.mxu1 %v8923_v34  ;;  %3291 = vmatprep.subr.bf16.mxu0 %v8928_v35  ;;  %v9017_v34 = vld [vmem:[#allocation7 + $0x15c] ss:$40 sps:$4 sm:$0xff]   ;;  %v9012_v35 = vld [vmem:[#allocation7 + $0x150] ss:$40 sps:$4 sm:$0xff]  }
 0x1a5   :  { %3414 = vmatprep.subr.bf16.mxu1 %v8931_v36  ;;  %v9015_v36 = vld [vmem:[#allocation7 + $0x158] ss:$40 sps:$4 sm:$0xff]  }
 0x1a7   :  { %3292 = vmatpush1.bf16.msra.mxu0 %v8926_v37  ;;  %v9020_v37 = vld [vmem:[#allocation7 + $0x1a4] ss:$40 sps:$4 sm:$0xff]  }
 0x1a8   :  { %3415 = vmatpush1.bf16.msra.mxu1 %v8929_v38  ;;  %3293 = vmatprep.subr.bf16.mxu0 %v8934_v39  ;;  %v9023_v38 = vld [vmem:[#allocation7 + $0x1ac] ss:$40 sps:$4 sm:$0xff]   ;;  %v9018_v39 = vld [vmem:[#allocation7 + $0x1a0] ss:$40 sps:$4 sm:$0xff]  }
 0x1a9   :  { %3416 = vmatprep.subr.bf16.mxu1 %v8937_v40  ;;  %v9021_v40 = vld [vmem:[#allocation7 + $0x1a8] ss:$40 sps:$4 sm:$0xff]  }
 0x1ab   :  { %3294 = vmatpush1.bf16.msra.mxu0 %v8932_v41  ;;  %v9026_v41 = vld [vmem:[#allocation7 + $0x1f4] ss:$40 sps:$4 sm:$0xff]  }
 0x1ac   :  { %3417 = vmatpush1.bf16.msra.mxu1 %v8935_v42  ;;  %3295 = vmatprep.subr.bf16.mxu0 %v8940_v43  ;;  %v9029_v42 = vld [vmem:[#allocation7 + $0x1fc] ss:$40 sps:$4 sm:$0xff]   ;;  %v9024_v43 = vld [vmem:[#allocation7 + $0x1f0] ss:$40 sps:$4 sm:$0xff]  }
 0x1ad   :  { %3418 = vmatprep.subr.bf16.mxu1 %v8943_v44  ;;  %v9027_v44 = vld [vmem:[#allocation7 + $0x1f8] ss:$40 sps:$4 sm:$0xff]  }
 0x1af   :  { %3296 = vmatpush1.bf16.msra.mxu0 %v8938_v45  ;;  %v9032_v45 = vld [vmem:[#allocation7 + $0x244] ss:$40 sps:$4 sm:$0xff]  }
 0x1b0   :  { %3419 = vmatpush1.bf16.msra.mxu1 %v8941_v46  ;;  %3297 = vmatprep.subr.bf16.mxu0 %v8946_v47  ;;  %v9035_v46 = vld [vmem:[#allocation7 + $0x24c] ss:$40 sps:$4 sm:$0xff]   ;;  %v9030_v47 = vld [vmem:[#allocation7 + $0x240] ss:$40 sps:$4 sm:$0xff]  }
 0x1b1   :  { %3420 = vmatprep.subr.bf16.mxu1 %v8949_v49  ;;  %v9033_v49 = vld [vmem:[#allocation7 + $0x248] ss:$40 sps:$4 sm:$0xff]  }
 0x1b3   :  { %3298 = vmatpush1.bf16.msra.mxu0 %v8944_v50  ;;  %v9038_v50 = vld [vmem:[#allocation7 + $0x294] ss:$40 sps:$4 sm:$0xff]  }
 0x1b4   :  { %3421 = vmatpush1.bf16.msra.mxu1 %v8947_v51  ;;  %3299 = vmatprep.subr.bf16.mxu0 %v8952_v52  ;;  %v9041_v51 = vld [vmem:[#allocation7 + $0x29c] ss:$40 sps:$4 sm:$0xff]   ;;  %v9036_v52 = vld [vmem:[#allocation7 + $0x290] ss:$40 sps:$4 sm:$0xff]  }
 0x1b5   :  { %3422 = vmatprep.subr.bf16.mxu1 %v8955_v53  ;;  %v9039_v53 = vld [vmem:[#allocation7 + $0x298] ss:$40 sps:$4 sm:$0xff]  }
 0x1b7   :  { %3300 = vmatpush1.bf16.msra.mxu0 %v8950_v54  ;;  %v9044_v54 = vld [vmem:[#allocation7 + $0x2e4] ss:$40 sps:$4 sm:$0xff]  }
 0x1b8   :  { %3423 = vmatpush1.bf16.msra.mxu1 %v8953_v55  ;;  %3301 = vmatprep.subr.bf16.mxu0 %v8958_v56  ;;  %v9047_v55 = vld [vmem:[#allocation7 + $0x2ec] ss:$40 sps:$4 sm:$0xff]   ;;  %v9042_v56 = vld [vmem:[#allocation7 + $0x2e0] ss:$40 sps:$4 sm:$0xff]  }
 0x1b9   :  { %3424 = vmatprep.subr.bf16.mxu1 %v8961_v57  ;;  %v9045_v57 = vld [vmem:[#allocation7 + $0x2e8] ss:$40 sps:$4 sm:$0xff]  }
 0x1bb   :  { %3302 = vmatpush1.bf16.msra.mxu0 %v8956_v58  ;;  %v9050_v58 = vld [vmem:[#allocation7 + $0x334] ss:$40 sps:$4 sm:$0xff]  }
 0x1bc   :  { %3425 = vmatpush1.bf16.msra.mxu1 %v8959_v59  ;;  %3303 = vmatprep.subr.bf16.mxu0 %v8964_v60  ;;  %v9053_v59 = vld [vmem:[#allocation7 + $0x33c] ss:$40 sps:$4 sm:$0xff]   ;;  %v9048_v60 = vld [vmem:[#allocation7 + $0x330] ss:$40 sps:$4 sm:$0xff]  }
 0x1bd   :  { %3426 = vmatprep.subr.bf16.mxu1 %v8967_v61  ;;  %v9051_v61 = vld [vmem:[#allocation7 + $0x338] ss:$40 sps:$4 sm:$0xff]  }
 0x1bf   :  { %3304 = vmatpush1.bf16.msra.mxu0 %v8962_v62  ;;  %v9056_v62 = vld [vmem:[#allocation7 + $0x384] ss:$40 sps:$4 sm:$0xff]  }
 0x1c0   :  { %3427 = vmatpush1.bf16.msra.mxu1 %v8965_v63  ;;  %3305 = vmatprep.subr.bf16.mxu0 %v8970_v0  ;;  %v9059_v63 = vld [vmem:[#allocation7 + $0x38c] ss:$40 sps:$4 sm:$0xff]   ;;  %v9054_v0 = vld [vmem:[#allocation7 + $0x380] ss:$40 sps:$4 sm:$0xff]  }
 0x1c1   :  { %3428 = vmatprep.subr.bf16.mxu1 %v8973_v1  ;;  %v9057_v1 = vld [vmem:[#allocation7 + $0x388] ss:$40 sps:$4 sm:$0xff]  }
 0x1c3   :  { %3306 = vmatpush1.bf16.msra.mxu0 %v8968_v2  ;;  %v9062_v2 = vld [vmem:[#allocation7 + $0x3d4] ss:$40 sps:$4 sm:$0xff]  }
 0x1c4   :  { %3429 = vmatpush1.bf16.msra.mxu1 %v8971_v3  ;;  %3307 = vmatprep.subr.bf16.mxu0 %v8976_v4  ;;  %v9065_v3 = vld [vmem:[#allocation7 + $0x3dc] ss:$40 sps:$4 sm:$0xff]   ;;  %v9060_v4 = vld [vmem:[#allocation7 + $0x3d0] ss:$40 sps:$4 sm:$0xff]  }
 0x1c5   :  { %3430 = vmatprep.subr.bf16.mxu1 %v8979_v6  ;;  %v9063_v6 = vld [vmem:[#allocation7 + $0x3d8] ss:$40 sps:$4 sm:$0xff]  }
 0x1c7   :  { %3308 = vmatpush1.bf16.msra.mxu0 %v8974_v7  ;;  %v9068_v7 = vld [vmem:[#allocation7 + $0x424] ss:$40 sps:$4 sm:$0xff]  }
 0x1c8   :  { %3431 = vmatpush1.bf16.msra.mxu1 %v8977_v8  ;;  %3309 = vmatprep.subr.bf16.mxu0 %v8982_v9  ;;  %v9071_v8 = vld [vmem:[#allocation7 + $0x42c] ss:$40 sps:$4 sm:$0xff]   ;;  %v9066_v9 = vld [vmem:[#allocation7 + $0x420] ss:$40 sps:$4 sm:$0xff]  }
 0x1c9   :  { %3432 = vmatprep.subr.bf16.mxu1 %v8985_v11  ;;  %v9069_v11 = vld [vmem:[#allocation7 + $0x428] ss:$40 sps:$4 sm:$0xff]  }
 0x1cb   :  { %3310 = vmatpush1.bf16.msra.mxu0 %v8980_v12  ;;  %v9074_v12 = vld [vmem:[#allocation7 + $0x474] ss:$40 sps:$4 sm:$0xff]  }
 0x1cc   :  { %3433 = vmatpush1.bf16.msra.mxu1 %v8983_v14  ;;  %3443 = vmatprep.subr.bf16.mxu0 %v8990_v16  ;;  %v9077_v14 = vld [vmem:[#allocation7 + $0x47c] ss:$40 sps:$4 sm:$0xff]   ;;  %v9072_v16 = vld [vmem:[#allocation7 + $0x470] ss:$40 sps:$4 sm:$0xff]  }
 0x1cd   :  { %3566 = vmatprep.subr.bf16.mxu1 %v8993_v17  ;;  %v9075_v17 = vld [vmem:[#allocation7 + $0x478] ss:$40 sps:$4 sm:$0xff]  }
 0x1ce   :  { %3312 = vmatmul.mubr.bf16.vlgmr.msra.gmra.mrb[0].mxu0 %v10806_v18 }
 0x1cf   :  { %3435 = vmatmul.mubr.bf16.vlgmr.msra.gmra.mrb[0].mxu1 %v10806_v18  ;;  %3444 = vmatpush1.bf16.msra.mxu0 %v8988_v19  ;;  %v9080_v19 = vld [vmem:[#allocation7 + $0x4c4] ss:$40 sps:$4 sm:$0xff]  }
 0x1d0   :  { %3567 = vmatpush1.bf16.msra.mxu1 %v8991_v20  ;;  %3445 = vmatprep.subr.bf16.mxu0 %v8996_v21  ;;  %v9083_v20 = vld [vmem:[#allocation7 + $0x4cc] ss:$40 sps:$4 sm:$0xff]   ;;  %v9078_v21 = vld [vmem:[#allocation7 + $0x4c0] ss:$40 sps:$4 sm:$0xff]  }
 0x1d1   :  { %3568 = vmatprep.subr.bf16.mxu1 %v8999_v22  ;;  %3475 = vmatprep.mubr.bf16.mxu0 %v10774_v48  ;;  %v9081_v22 = vld [vmem:[#allocation7 + $0x4c8] ss:$40 sps:$4 sm:$0xff]  }
 0x1d2   :  { %3598 = vmatprep.mubr.bf16.mxu1 %v10774_v48 }
 0x1d3   :  { %3446 = vmatpush1.bf16.msra.mxu0 %v8994_v23  ;;  %v9086_v23 = vld [vmem:[#allocation7 + $0x514] ss:$40 sps:$4 sm:$0xff]  }
 0x1d4   :  { %3569 = vmatpush1.bf16.msra.mxu1 %v8997_v24  ;;  %3447 = vmatprep.subr.bf16.mxu0 %v9002_v25  ;;  %v9089_v24 = vld [vmem:[#allocation7 + $0x51c] ss:$40 sps:$4 sm:$0xff]   ;;  %v9084_v25 = vld [vmem:[#allocation7 + $0x510] ss:$40 sps:$4 sm:$0xff]  }
 0x1d5   :  { %3570 = vmatprep.subr.bf16.mxu1 %v9005_v13  ;;  %v9087_v13 = vld [vmem:[#allocation7 + $0x518] ss:$40 sps:$4 sm:$0xff]  }
 0x1d7   :  { %3448 = vmatpush1.bf16.msra.mxu0 %v9000_v26  ;;  %v9092_v26 = vld [vmem:[#allocation7 + $0x564] ss:$40 sps:$4 sm:$0xff]  }
 0x1d8   :  { %3571 = vmatpush1.bf16.msra.mxu1 %v9003_v27  ;;  %3449 = vmatprep.subr.bf16.mxu0 %v9008_v28  ;;  %v9095_v27 = vld [vmem:[#allocation7 + $0x56c] ss:$40 sps:$4 sm:$0xff]   ;;  %v9090_v28 = vld [vmem:[#allocation7 + $0x560] ss:$40 sps:$4 sm:$0xff]  }
 0x1d9   :  { %3572 = vmatprep.subr.bf16.mxu1 %v9011_v29  ;;  %v9093_v29 = vld [vmem:[#allocation7 + $0x568] ss:$40 sps:$4 sm:$0xff]  }
 0x1db   :  { %3450 = vmatpush1.bf16.msra.mxu0 %v9006_v31  ;;  %v9098_v31 = vld [vmem:[#allocation7 + $0x5b4] ss:$40 sps:$4 sm:$0xff]  }
 0x1dc   :  { %3573 = vmatpush1.bf16.msra.mxu1 %v9009_v32  ;;  %3451 = vmatprep.subr.bf16.mxu0 %v9014_v33  ;;  %v9101_v32 = vld [vmem:[#allocation7 + $0x5bc] ss:$40 sps:$4 sm:$0xff]   ;;  %v9096_v33 = vld [vmem:[#allocation7 + $0x5b0] ss:$40 sps:$4 sm:$0xff]  }
 0x1dd   :  { %3574 = vmatprep.subr.bf16.mxu1 %v9017_v34  ;;  %v9099_v34 = vld [vmem:[#allocation7 + $0x5b8] ss:$40 sps:$4 sm:$0xff]  }
 0x1df   :  { %3452 = vmatpush1.bf16.msra.mxu0 %v9012_v35  ;;  %v9104_v35 = vld [vmem:[#allocation7 + $0x604] ss:$40 sps:$4 sm:$0xff]  }
 0x1e0   :  { %3575 = vmatpush1.bf16.msra.mxu1 %v9015_v36  ;;  %3453 = vmatprep.subr.bf16.mxu0 %v9020_v37  ;;  %v9107_v36 = vld [vmem:[#allocation7 + $0x60c] ss:$40 sps:$4 sm:$0xff]   ;;  %v9102_v37 = vld [vmem:[#allocation7 + $0x600] ss:$40 sps:$4 sm:$0xff]  }
 0x1e1   :  { %3576 = vmatprep.subr.bf16.mxu1 %v9023_v38  ;;  %v9105_v38 = vld [vmem:[#allocation7 + $0x608] ss:$40 sps:$4 sm:$0xff]  }
 0x1e3   :  { %3454 = vmatpush1.bf16.msra.mxu0 %v9018_v39  ;;  %v9110_v39 = vld [vmem:[#allocation7 + $0x654] ss:$40 sps:$4 sm:$0xff]  }
 0x1e4   :  { %3577 = vmatpush1.bf16.msra.mxu1 %v9021_v40  ;;  %3455 = vmatprep.subr.bf16.mxu0 %v9026_v41  ;;  %v9113_v40 = vld [vmem:[#allocation7 + $0x65c] ss:$40 sps:$4 sm:$0xff]   ;;  %v9108_v41 = vld [vmem:[#allocation7 + $0x650] ss:$40 sps:$4 sm:$0xff]  }
 0x1e5   :  { %3578 = vmatprep.subr.bf16.mxu1 %v9029_v42  ;;  %v9111_v42 = vld [vmem:[#allocation7 + $0x658] ss:$40 sps:$4 sm:$0xff]  }
 0x1e7   :  { %3456 = vmatpush1.bf16.msra.mxu0 %v9024_v43  ;;  %v9116_v43 = vld [vmem:[#allocation7 + $0x6a4] ss:$40 sps:$4 sm:$0xff]  }
 0x1e8   :  { %3579 = vmatpush1.bf16.msra.mxu1 %v9027_v44  ;;  %3457 = vmatprep.subr.bf16.mxu0 %v9032_v45  ;;  %v9119_v44 = vld [vmem:[#allocation7 + $0x6ac] ss:$40 sps:$4 sm:$0xff]   ;;  %v9114_v45 = vld [vmem:[#allocation7 + $0x6a0] ss:$40 sps:$4 sm:$0xff]  }
 0x1e9   :  { %3580 = vmatprep.subr.bf16.mxu1 %v9035_v46  ;;  %v9117_v46 = vld [vmem:[#allocation7 + $0x6a8] ss:$40 sps:$4 sm:$0xff]  }
 0x1eb   :  { %3458 = vmatpush1.bf16.msra.mxu0 %v9030_v47  ;;  %v9122_v47 = vld [vmem:[#allocation7 + $0x6f4] ss:$40 sps:$4 sm:$0xff]  }
 0x1ec   :  { %3581 = vmatpush1.bf16.msra.mxu1 %v9033_v49  ;;  %3459 = vmatprep.subr.bf16.mxu0 %v9038_v50  ;;  %v9125_v49 = vld [vmem:[#allocation7 + $0x6fc] ss:$40 sps:$4 sm:$0xff]   ;;  %v9120_v50 = vld [vmem:[#allocation7 + $0x6f0] ss:$40 sps:$4 sm:$0xff]  }
 0x1ed   :  { %3582 = vmatprep.subr.bf16.mxu1 %v9041_v51  ;;  %v9123_v51 = vld [vmem:[#allocation7 + $0x6f8] ss:$40 sps:$4 sm:$0xff]  }
 0x1ef   :  { %3460 = vmatpush1.bf16.msra.mxu0 %v9036_v52  ;;  %v9128_v52 = vld [vmem:[#allocation7 + $0x744] ss:$40 sps:$4 sm:$0xff]  }
 0x1f0   :  { %3583 = vmatpush1.bf16.msra.mxu1 %v9039_v53  ;;  %3461 = vmatprep.subr.bf16.mxu0 %v9044_v54  ;;  %v9131_v53 = vld [vmem:[#allocation7 + $0x74c] ss:$40 sps:$4 sm:$0xff]   ;;  %v9126_v54 = vld [vmem:[#allocation7 + $0x740] ss:$40 sps:$4 sm:$0xff]  }
 0x1f1   :  { %3584 = vmatprep.subr.bf16.mxu1 %v9047_v55  ;;  %v9129_v55 = vld [vmem:[#allocation7 + $0x748] ss:$40 sps:$4 sm:$0xff]  }
 0x1f3   :  { %3462 = vmatpush1.bf16.msra.mxu0 %v9042_v56  ;;  %v9134_v56 = vld [vmem:[#allocation7 + $0x794] ss:$40 sps:$4 sm:$0xff]  }
 0x1f4   :  { %3585 = vmatpush1.bf16.msra.mxu1 %v9045_v57  ;;  %3463 = vmatprep.subr.bf16.mxu0 %v9050_v58  ;;  %v9137_v57 = vld [vmem:[#allocation7 + $0x79c] ss:$40 sps:$4 sm:$0xff]   ;;  %v9132_v58 = vld [vmem:[#allocation7 + $0x790] ss:$40 sps:$4 sm:$0xff]  }
 0x1f5   :  { %3586 = vmatprep.subr.bf16.mxu1 %v9053_v59  ;;  %v9135_v59 = vld [vmem:[#allocation7 + $0x798] ss:$40 sps:$4 sm:$0xff]  }
 0x1f7   :  { %3464 = vmatpush1.bf16.msra.mxu0 %v9048_v60  ;;  %v9140_v60 = vld [vmem:[#allocation7 + $0x7e4] ss:$40 sps:$4 sm:$0xff]  }
 0x1f8   :  { %3587 = vmatpush1.bf16.msra.mxu1 %v9051_v61  ;;  %3465 = vmatprep.subr.bf16.mxu0 %v9056_v62  ;;  %v9143_v61 = vld [vmem:[#allocation7 + $0x7ec] ss:$40 sps:$4 sm:$0xff]   ;;  %v9138_v62 = vld [vmem:[#allocation7 + $0x7e0] ss:$40 sps:$4 sm:$0xff]  }
 0x1f9   :  { %3588 = vmatprep.subr.bf16.mxu1 %v9059_v63  ;;  %v9141_v63 = vld [vmem:[#allocation7 + $0x7e8] ss:$40 sps:$4 sm:$0xff]  }
 0x1fb   :  { %3466 = vmatpush1.bf16.msra.mxu0 %v9054_v0  ;;  %v9146_v0 = vld [vmem:[#allocation7 + $0x834] ss:$40 sps:$4 sm:$0xff]  }
 0x1fc   :  { %3589 = vmatpush1.bf16.msra.mxu1 %v9057_v1  ;;  %3467 = vmatprep.subr.bf16.mxu0 %v9062_v2  ;;  %v9149_v1 = vld [vmem:[#allocation7 + $0x83c] ss:$40 sps:$4 sm:$0xff]   ;;  %v9144_v2 = vld [vmem:[#allocation7 + $0x830] ss:$40 sps:$4 sm:$0xff]  }
 0x1fd   :  { %3590 = vmatprep.subr.bf16.mxu1 %v9065_v3  ;;  %v9147_v3 = vld [vmem:[#allocation7 + $0x838] ss:$40 sps:$4 sm:$0xff]  }
 0x1ff   :  { %3468 = vmatpush1.bf16.msra.mxu0 %v9060_v4  ;;  %v9152_v4 = vld [vmem:[#allocation7 + $0x884] ss:$40 sps:$4 sm:$0xff]  }
 0x200   :  { %3591 = vmatpush1.bf16.msra.mxu1 %v9063_v6  ;;  %3469 = vmatprep.subr.bf16.mxu0 %v9068_v7  ;;  %v9155_v6 = vld [vmem:[#allocation7 + $0x88c] ss:$40 sps:$4 sm:$0xff]   ;;  %v9150_v7 = vld [vmem:[#allocation7 + $0x880] ss:$40 sps:$4 sm:$0xff]  }
 0x201   :  { %3592 = vmatprep.subr.bf16.mxu1 %v9071_v8  ;;  %v9153_v8 = vld [vmem:[#allocation7 + $0x888] ss:$40 sps:$4 sm:$0xff]  }
 0x203   :  { %3470 = vmatpush1.bf16.msra.mxu0 %v9066_v9  ;;  %v9158_v9 = vld [vmem:[#allocation7 + $0x8d4] ss:$40 sps:$4 sm:$0xff]  }
 0x204   :  { %3593 = vmatpush1.bf16.msra.mxu1 %v9069_v11  ;;  %3471 = vmatprep.subr.bf16.mxu0 %v9074_v12  ;;  %v9161_v11 = vld [vmem:[#allocation7 + $0x8dc] ss:$40 sps:$4 sm:$0xff]   ;;  %v9156_v12 = vld [vmem:[#allocation7 + $0x8d0] ss:$40 sps:$4 sm:$0xff]  }
 0x205   :  { %3594 = vmatprep.subr.bf16.mxu1 %v9077_v14  ;;  %v9159_v14 = vld [vmem:[#allocation7 + $0x8d8] ss:$40 sps:$4 sm:$0xff]  }
 0x207   :  { %3472 = vmatpush1.bf16.msra.mxu0 %v9072_v16  ;;  %v9164_v16 = vld [vmem:[#allocation7 + $0x924] ss:$40 sps:$4 sm:$0xff]  }
 0x208   :  { %3595 = vmatpush1.bf16.msra.mxu1 %v9075_v17  ;;  %3473 = vmatprep.subr.bf16.mxu0 %v9080_v19  ;;  %v9167_v17 = vld [vmem:[#allocation7 + $0x92c] ss:$40 sps:$4 sm:$0xff]   ;;  %v9162_v19 = vld [vmem:[#allocation7 + $0x920] ss:$40 sps:$4 sm:$0xff]  }
 0x209   :  { %3596 = vmatprep.subr.bf16.mxu1 %v9083_v20  ;;  %v9165_v20 = vld [vmem:[#allocation7 + $0x928] ss:$40 sps:$4 sm:$0xff]  }
 0x20b   :  { %3474 = vmatpush1.bf16.msra.mxu0 %v9078_v21  ;;  %v9170_v21 = vld [vmem:[#allocation7 + $0x974] ss:$40 sps:$4 sm:$0xff]  }
 0x20c   :  { %3597 = vmatpush1.bf16.msra.mxu1 %v9081_v22  ;;  %3484 = vmatprep.subr.bf16.mxu0 %v9086_v23  ;;  %v9173_v22 = vld [vmem:[#allocation7 + $0x97c] ss:$40 sps:$4 sm:$0xff]   ;;  %v9168_v23 = vld [vmem:[#allocation7 + $0x970] ss:$40 sps:$4 sm:$0xff]  }
 0x20d   :  { %3607 = vmatprep.subr.bf16.mxu1 %v9089_v24  ;;  %v9171_v24 = vld [vmem:[#allocation7 + $0x978] ss:$40 sps:$4 sm:$0xff]  }
 0x20e   :  { %3476 = vmatmul.mubr.bf16.vlgmr.msra.gmra.mrb[4].mxu0 %v10778_v5 }
 0x20f   :  { %3599 = vmatmul.mubr.bf16.vlgmr.msra.gmra.mrb[4].mxu1 %v10778_v5  ;;  %3485 = vmatpush1.bf16.msra.mxu0 %v9084_v25  ;;  %v9176_v25 = vld [vmem:[#allocation7 + $0x9c4] ss:$40 sps:$4 sm:$0xff]  }
 0x210   :  { %3608 = vmatpush1.bf16.msra.mxu1 %v9087_v13  ;;  %3486 = vmatprep.subr.bf16.mxu0 %v9092_v26  ;;  %v9179_v13 = vld [vmem:[#allocation7 + $0x9cc] ss:$40 sps:$4 sm:$0xff]   ;;  %v9174_v26 = vld [vmem:[#allocation7 + $0x9c0] ss:$40 sps:$4 sm:$0xff]  }
 0x211   :  { %3609 = vmatprep.subr.bf16.mxu1 %v9095_v27  ;;  %3516 = vmatprep.mubr.bf16.mxu0 %v10786_v30  ;;  %v9177_v27 = vld [vmem:[#allocation7 + $0x9c8] ss:$40 sps:$4 sm:$0xff]  }
 0x212   :  { %3639 = vmatprep.mubr.bf16.mxu1 %v10786_v30 }
 0x213   :  { %3487 = vmatpush1.bf16.msra.mxu0 %v9090_v28  ;;  %v9182_v28 = vld [vmem:[#allocation7 + $0xa14] ss:$40 sps:$4 sm:$0xff]  }
 0x214   :  { %3610 = vmatpush1.bf16.msra.mxu1 %v9093_v29  ;;  %3488 = vmatprep.subr.bf16.mxu0 %v9098_v31  ;;  %v9185_v29 = vld [vmem:[#allocation7 + $0xa1c] ss:$40 sps:$4 sm:$0xff]   ;;  %v9180_v31 = vld [vmem:[#allocation7 + $0xa10] ss:$40 sps:$4 sm:$0xff]  }
 0x215   :  { %3611 = vmatprep.subr.bf16.mxu1 %v9101_v32  ;;  %v9183_v32 = vld [vmem:[#allocation7 + $0xa18] ss:$40 sps:$4 sm:$0xff]  }
 0x217   :  { %3489 = vmatpush1.bf16.msra.mxu0 %v9096_v33  ;;  %v9188_v33 = vld [vmem:[#allocation7 + $0xa64] ss:$40 sps:$4 sm:$0xff]  }
 0x218   :  { %3612 = vmatpush1.bf16.msra.mxu1 %v9099_v34  ;;  %3490 = vmatprep.subr.bf16.mxu0 %v9104_v35  ;;  %v9191_v34 = vld [vmem:[#allocation7 + $0xa6c] ss:$40 sps:$4 sm:$0xff]   ;;  %v9186_v35 = vld [vmem:[#allocation7 + $0xa60] ss:$40 sps:$4 sm:$0xff]  }
 0x219   :  { %3613 = vmatprep.subr.bf16.mxu1 %v9107_v36  ;;  %v9189_v36 = vld [vmem:[#allocation7 + $0xa68] ss:$40 sps:$4 sm:$0xff]  }
 0x21b   :  { %3491 = vmatpush1.bf16.msra.mxu0 %v9102_v37  ;;  %v9194_v37 = vld [vmem:[#allocation7 + $0xab4] ss:$40 sps:$4 sm:$0xff]  }
 0x21c   :  { %3614 = vmatpush1.bf16.msra.mxu1 %v9105_v38  ;;  %3492 = vmatprep.subr.bf16.mxu0 %v9110_v39  ;;  %v9197_v38 = vld [vmem:[#allocation7 + $0xabc] ss:$40 sps:$4 sm:$0xff]   ;;  %v9192_v39 = vld [vmem:[#allocation7 + $0xab0] ss:$40 sps:$4 sm:$0xff]  }
 0x21d   :  { %3615 = vmatprep.subr.bf16.mxu1 %v9113_v40  ;;  %v9195_v40 = vld [vmem:[#allocation7 + $0xab8] ss:$40 sps:$4 sm:$0xff]  }
 0x21f   :  { %3493 = vmatpush1.bf16.msra.mxu0 %v9108_v41  ;;  %v9200_v41 = vld [vmem:[#allocation7 + $0xb04] ss:$40 sps:$4 sm:$0xff]  }
 0x220   :  { %3616 = vmatpush1.bf16.msra.mxu1 %v9111_v42  ;;  %3494 = vmatprep.subr.bf16.mxu0 %v9116_v43  ;;  %v9203_v42 = vld [vmem:[#allocation7 + $0xb0c] ss:$40 sps:$4 sm:$0xff]   ;;  %v9198_v43 = vld [vmem:[#allocation7 + $0xb00] ss:$40 sps:$4 sm:$0xff]  }
 0x221   :  { %3617 = vmatprep.subr.bf16.mxu1 %v9119_v44  ;;  %v9201_v44 = vld [vmem:[#allocation7 + $0xb08] ss:$40 sps:$4 sm:$0xff]  }
 0x223   :  { %3495 = vmatpush1.bf16.msra.mxu0 %v9114_v45  ;;  %v9206_v45 = vld [vmem:[#allocation7 + $0xb54] ss:$40 sps:$4 sm:$0xff]  }
 0x224   :  { %3618 = vmatpush1.bf16.msra.mxu1 %v9117_v46  ;;  %3496 = vmatprep.subr.bf16.mxu0 %v9122_v47  ;;  %v9209_v46 = vld [vmem:[#allocation7 + $0xb5c] ss:$40 sps:$4 sm:$0xff]   ;;  %v9204_v47 = vld [vmem:[#allocation7 + $0xb50] ss:$40 sps:$4 sm:$0xff]  }
 0x225   :  { %3619 = vmatprep.subr.bf16.mxu1 %v9125_v49  ;;  %v9207_v49 = vld [vmem:[#allocation7 + $0xb58] ss:$40 sps:$4 sm:$0xff]  }
 0x227   :  { %3497 = vmatpush1.bf16.msra.mxu0 %v9120_v50  ;;  %v9212_v50 = vld [vmem:[#allocation7 + $0xba4] ss:$40 sps:$4 sm:$0xff]  }
 0x228   :  { %3620 = vmatpush1.bf16.msra.mxu1 %v9123_v51  ;;  %3498 = vmatprep.subr.bf16.mxu0 %v9128_v52  ;;  %v9215_v51 = vld [vmem:[#allocation7 + $0xbac] ss:$40 sps:$4 sm:$0xff]   ;;  %v9210_v52 = vld [vmem:[#allocation7 + $0xba0] ss:$40 sps:$4 sm:$0xff]  }
 0x229   :  { %3621 = vmatprep.subr.bf16.mxu1 %v9131_v53  ;;  %v9213_v53 = vld [vmem:[#allocation7 + $0xba8] ss:$40 sps:$4 sm:$0xff]  }
 0x22b   :  { %3499 = vmatpush1.bf16.msra.mxu0 %v9126_v54  ;;  %v9218_v54 = vld [vmem:[#allocation7 + $0xbf4] ss:$40 sps:$4 sm:$0xff]  }
 0x22c   :  { %3622 = vmatpush1.bf16.msra.mxu1 %v9129_v55  ;;  %3500 = vmatprep.subr.bf16.mxu0 %v9134_v56  ;;  %v9221_v55 = vld [vmem:[#allocation7 + $0xbfc] ss:$40 sps:$4 sm:$0xff]   ;;  %v9216_v56 = vld [vmem:[#allocation7 + $0xbf0] ss:$40 sps:$4 sm:$0xff]  }
 0x22d   :  { %3623 = vmatprep.subr.bf16.mxu1 %v9137_v57  ;;  %v9219_v57 = vld [vmem:[#allocation7 + $0xbf8] ss:$40 sps:$4 sm:$0xff]  }
 0x22f   :  { %3501 = vmatpush1.bf16.msra.mxu0 %v9132_v58  ;;  %v9224_v58 = vld [vmem:[#allocation7 + $0xc44] ss:$40 sps:$4 sm:$0xff]  }
 0x230   :  { %3624 = vmatpush1.bf16.msra.mxu1 %v9135_v59  ;;  %3502 = vmatprep.subr.bf16.mxu0 %v9140_v60  ;;  %v9227_v59 = vld [vmem:[#allocation7 + $0xc4c] ss:$40 sps:$4 sm:$0xff]   ;;  %v9222_v60 = vld [vmem:[#allocation7 + $0xc40] ss:$40 sps:$4 sm:$0xff]  }
 0x231   :  { %3625 = vmatprep.subr.bf16.mxu1 %v9143_v61  ;;  %v9225_v61 = vld [vmem:[#allocation7 + $0xc48] ss:$40 sps:$4 sm:$0xff]  }
 0x233   :  { %3503 = vmatpush1.bf16.msra.mxu0 %v9138_v62  ;;  %v9230_v62 = vld [vmem:[#allocation7 + $0xc94] ss:$40 sps:$4 sm:$0xff]  }
 0x234   :  { %3626 = vmatpush1.bf16.msra.mxu1 %v9141_v63  ;;  %3504 = vmatprep.subr.bf16.mxu0 %v9146_v0  ;;  %v9233_v63 = vld [vmem:[#allocation7 + $0xc9c] ss:$40 sps:$4 sm:$0xff]   ;;  %v9228_v0 = vld [vmem:[#allocation7 + $0xc90] ss:$40 sps:$4 sm:$0xff]  }
 0x235   :  { %3627 = vmatprep.subr.bf16.mxu1 %v9149_v1  ;;  %v9231_v1 = vld [vmem:[#allocation7 + $0xc98] ss:$40 sps:$4 sm:$0xff]  }
 0x237   :  { %3505 = vmatpush1.bf16.msra.mxu0 %v9144_v2  ;;  %v9236_v2 = vld [vmem:[#allocation7 + $0xce4] ss:$40 sps:$4 sm:$0xff]  }
 0x238   :  { %3628 = vmatpush1.bf16.msra.mxu1 %v9147_v3  ;;  %3506 = vmatprep.subr.bf16.mxu0 %v9152_v4  ;;  %v9239_v3 = vld [vmem:[#allocation7 + $0xcec] ss:$40 sps:$4 sm:$0xff]   ;;  %v9234_v4 = vld [vmem:[#allocation7 + $0xce0] ss:$40 sps:$4 sm:$0xff]  }
 0x239   :  { %3629 = vmatprep.subr.bf16.mxu1 %v9155_v6  ;;  %v9237_v6 = vld [vmem:[#allocation7 + $0xce8] ss:$40 sps:$4 sm:$0xff]  }
 0x23b   :  { %3507 = vmatpush1.bf16.msra.mxu0 %v9150_v7  ;;  %v9242_v7 = vld [vmem:[#allocation7 + $0xd34] ss:$40 sps:$4 sm:$0xff]  }
 0x23c   :  { %3630 = vmatpush1.bf16.msra.mxu1 %v9153_v8  ;;  %3508 = vmatprep.subr.bf16.mxu0 %v9158_v9  ;;  %v9245_v8 = vld [vmem:[#allocation7 + $0xd3c] ss:$40 sps:$4 sm:$0xff]   ;;  %v9240_v9 = vld [vmem:[#allocation7 + $0xd30] ss:$40 sps:$4 sm:$0xff]  }
 0x23d   :  { %3631 = vmatprep.subr.bf16.mxu1 %v9161_v11  ;;  %v9243_v11 = vld [vmem:[#allocation7 + $0xd38] ss:$40 sps:$4 sm:$0xff]  }
 0x23f   :  { %3509 = vmatpush1.bf16.msra.mxu0 %v9156_v12  ;;  %v9248_v12 = vld [vmem:[#allocation7 + $0xd84] ss:$40 sps:$4 sm:$0xff]  }
 0x240   :  { %3632 = vmatpush1.bf16.msra.mxu1 %v9159_v14  ;;  %3510 = vmatprep.subr.bf16.mxu0 %v9164_v16  ;;  %v9251_v14 = vld [vmem:[#allocation7 + $0xd8c] ss:$40 sps:$4 sm:$0xff]   ;;  %v9246_v16 = vld [vmem:[#allocation7 + $0xd80] ss:$40 sps:$4 sm:$0xff]  }
 0x241   :  { %3633 = vmatprep.subr.bf16.mxu1 %v9167_v17  ;;  %v9249_v17 = vld [vmem:[#allocation7 + $0xd88] ss:$40 sps:$4 sm:$0xff]  }
 0x243   :  { %3511 = vmatpush1.bf16.msra.mxu0 %v9162_v19  ;;  %v9254_v19 = vld [vmem:[#allocation7 + $0xdd4] ss:$40 sps:$4 sm:$0xff]  }
 0x244   :  { %3634 = vmatpush1.bf16.msra.mxu1 %v9165_v20  ;;  %3512 = vmatprep.subr.bf16.mxu0 %v9170_v21  ;;  %v9257_v20 = vld [vmem:[#allocation7 + $0xddc] ss:$40 sps:$4 sm:$0xff]   ;;  %v9252_v21 = vld [vmem:[#allocation7 + $0xdd0] ss:$40 sps:$4 sm:$0xff]  }
 0x245   :  { %3635 = vmatprep.subr.bf16.mxu1 %v9173_v22  ;;  %v9255_v22 = vld [vmem:[#allocation7 + $0xdd8] ss:$40 sps:$4 sm:$0xff]  }
 0x247   :  { %3513 = vmatpush1.bf16.msra.mxu0 %v9168_v23  ;;  %v9260_v23 = vld [vmem:[#allocation7 + $0xe24] ss:$40 sps:$4 sm:$0xff]  }
 0x248   :  { %3636 = vmatpush1.bf16.msra.mxu1 %v9171_v24  ;;  %3514 = vmatprep.subr.bf16.mxu0 %v9176_v25  ;;  %v9263_v24 = vld [vmem:[#allocation7 + $0xe2c] ss:$40 sps:$4 sm:$0xff]   ;;  %v9258_v25 = vld [vmem:[#allocation7 + $0xe20] ss:$40 sps:$4 sm:$0xff]  }
 0x249   :  { %3637 = vmatprep.subr.bf16.mxu1 %v9179_v13  ;;  %v9261_v13 = vld [vmem:[#allocation7 + $0xe28] ss:$40 sps:$4 sm:$0xff]  }
 0x24b   :  { %3515 = vmatpush1.bf16.msra.mxu0 %v9174_v26  ;;  %v9266_v26 = vld [vmem:[#allocation7 + $0xe74] ss:$40 sps:$4 sm:$0xff]  }
 0x24c   :  { %3638 = vmatpush1.bf16.msra.mxu1 %v9177_v27  ;;  %3525 = vmatprep.subr.bf16.mxu0 %v9182_v28  ;;  %v9269_v27 = vld [vmem:[#allocation7 + $0xe7c] ss:$40 sps:$4 sm:$0xff]   ;;  %v9264_v28 = vld [vmem:[#allocation7 + $0xe70] ss:$40 sps:$4 sm:$0xff]  }
 0x24d   :  { %3648 = vmatprep.subr.bf16.mxu1 %v9185_v29  ;;  %v9267_v29 = vld [vmem:[#allocation7 + $0xe78] ss:$40 sps:$4 sm:$0xff]  }
 0x24e   :  { %3517 = vmatmul.mubr.bf16.vlgmr.msra.gmra.mrb[4].mxu0 %v10792_v10 }
 0x24f   :  { %3640 = vmatmul.mubr.bf16.vlgmr.msra.gmra.mrb[4].mxu1 %v10792_v10  ;;  %3526 = vmatpush1.bf16.msra.mxu0 %v9180_v31  ;;  %v9272_v31 = vld [vmem:[#allocation7 + $0xec4] ss:$40 sps:$4 sm:$0xff]  }
 0x250   :  { %3649 = vmatpush1.bf16.msra.mxu1 %v9183_v32  ;;  %3527 = vmatprep.subr.bf16.mxu0 %v9188_v33  ;;  %v9275_v32 = vld [vmem:[#allocation7 + $0xecc] ss:$40 sps:$4 sm:$0xff]   ;;  %v9270_v33 = vld [vmem:[#allocation7 + $0xec0] ss:$40 sps:$4 sm:$0xff]  }
 0x251   :  { %3650 = vmatprep.subr.bf16.mxu1 %v9191_v34  ;;  %3557 = vmatprep.mubr.bf16.mxu0 %v10798_v15  ;;  %v9273_v34 = vld [vmem:[#allocation7 + $0xec8] ss:$40 sps:$4 sm:$0xff]  }
 0x252   :  { %3680 = vmatprep.mubr.bf16.mxu1 %v10798_v15 }
 0x253   :  { %3528 = vmatpush1.bf16.msra.mxu0 %v9186_v35  ;;  %v9278_v35 = vld [vmem:[#allocation7 + $0x24] ss:$40 sps:$4 sm:$0xff]  }
 0x254   :  { %3651 = vmatpush1.bf16.msra.mxu1 %v9189_v36  ;;  %3529 = vmatprep.subr.bf16.mxu0 %v9194_v37  ;;  %v9281_v36 = vld [vmem:[#allocation10 + $0x4] ss:$16 sps:$4 sm:$0xff]  }
 0x255   :  { %3652 = vmatprep.subr.bf16.mxu1 %v9197_v38  ;;  %v9276_v37 = vld [vmem:[#allocation7 + $0x20] ss:$40 sps:$4 sm:$0xff]  }
 0x256   :  { %v9279_v38 = vld [vmem:[#allocation10] ss:$16 sps:$4 sm:$0xff]  }
 0x257   :  { %3530 = vmatpush1.bf16.msra.mxu0 %v9192_v39  ;;  %v9284_v39 = vld [vmem:[#allocation7 + $0x74] ss:$40 sps:$4 sm:$0xff]  }
 0x258   :  { %3653 = vmatpush1.bf16.msra.mxu1 %v9195_v40  ;;  %3531 = vmatprep.subr.bf16.mxu0 %v9200_v41  ;;  %v9287_v40 = vld [vmem:[#allocation10 + $0x24] ss:$16 sps:$4 sm:$0xff]  }
 0x259   :  { %3654 = vmatprep.subr.bf16.mxu1 %v9203_v42  ;;  %v9282_v41 = vld [vmem:[#allocation7 + $0x70] ss:$40 sps:$4 sm:$0xff]  }
 0x25a   :  { %v9285_v42 = vld [vmem:[#allocation10 + $0x20] ss:$16 sps:$4 sm:$0xff]  }
 0x25b   :  { %3532 = vmatpush1.bf16.msra.mxu0 %v9198_v43  ;;  %v9290_v43 = vld [vmem:[#allocation7 + $0xc4] ss:$40 sps:$4 sm:$0xff]  }
 0x25c   :  { %3655 = vmatpush1.bf16.msra.mxu1 %v9201_v44  ;;  %3533 = vmatprep.subr.bf16.mxu0 %v9206_v45  ;;  %v9293_v44 = vld [vmem:[#allocation10 + $0x44] ss:$16 sps:$4 sm:$0xff]  }
 0x25d   :  { %3656 = vmatprep.subr.bf16.mxu1 %v9209_v46  ;;  %v9288_v45 = vld [vmem:[#allocation7 + $0xc0] ss:$40 sps:$4 sm:$0xff]  }
 0x25e   :  { %v9291_v46 = vld [vmem:[#allocation10 + $0x40] ss:$16 sps:$4 sm:$0xff]  }
 0x25f   :  { %3534 = vmatpush1.bf16.msra.mxu0 %v9204_v47  ;;  %v9296_v47 = vld [vmem:[#allocation7 + $0x114] ss:$40 sps:$4 sm:$0xff]  }
 0x260   :  { %3657 = vmatpush1.bf16.msra.mxu1 %v9207_v49  ;;  %3535 = vmatprep.subr.bf16.mxu0 %v9212_v50  ;;  %v9299_v49 = vld [vmem:[#allocation10 + $0x64] ss:$16 sps:$4 sm:$0xff]   ;;  %v726_v50 = vlaneseq }
 0x261   :  { %3658 = vmatprep.subr.bf16.mxu1 %v9215_v51  ;;  %v9294_v51 = vld [vmem:[#allocation7 + $0x110] ss:$40 sps:$4 sm:$0xff]  }
 0x263   :  { %3536 = vmatpush1.bf16.msra.mxu0 %v9210_v52  ;;  %v9297_v52 = vld [vmem:[#allocation10 + $0x60] ss:$16 sps:$4 sm:$0xff]  }
 0x264   :  { %3659 = vmatpush1.bf16.msra.mxu1 %v9213_v53  ;;  %3537 = vmatprep.subr.bf16.mxu0 %v9218_v54  ;;  %v9302_v53 = vld [vmem:[#allocation7 + $0x164] ss:$40 sps:$4 sm:$0xff]  }
 0x265   :  { %3660 = vmatprep.subr.bf16.mxu1 %v9221_v55  ;;  %v9305_v54 = vld [vmem:[#allocation10 + $0x84] ss:$16 sps:$4 sm:$0xff]   ;;  %v10823_v55 = vshrl.u32 %v726_v50, 7 }
 0x267   :  { %3538 = vmatpush1.bf16.msra.mxu0 %v9216_v56  ;;  %v9300_v56 = vld [vmem:[#allocation7 + $0x160] ss:$40 sps:$4 sm:$0xff]   ;;  %v10842_v50 = vsub.s32 0, %v10823_v55 }
 0x268   :  { %3661 = vmatpush1.bf16.msra.mxu1 %v9219_v57  ;;  %3539 = vmatprep.subr.bf16.mxu0 %v9224_v58  ;;  %v9303_v57 = vld [vmem:[#allocation10 + $0x80] ss:$16 sps:$4 sm:$0xff]   ;;  %v10828_v58 = vsub.s32 1, %v10823_v55 }
 0x269   :  { %3662 = vmatprep.subr.bf16.mxu1 %v9227_v59  ;;  %v9308_v59 = vld [vmem:[#allocation7 + $0x1b4] ss:$40 sps:$4 sm:$0xff]  }
 0x26b   :  { %3540 = vmatpush1.bf16.msra.mxu0 %v9222_v60  ;;  %v9311_v60 = vld [vmem:[#allocation10 + $0xa4] ss:$16 sps:$4 sm:$0xff]  }
 0x26c   :  { %3663 = vmatpush1.bf16.msra.mxu1 %v9225_v61  ;;  %3541 = vmatprep.subr.bf16.mxu0 %v9230_v62  ;;  %v9306_v61 = vld [vmem:[#allocation7 + $0x1b0] ss:$40 sps:$4 sm:$0xff]  }
 0x26d   :  { %3664 = vmatprep.subr.bf16.mxu1 %v9233_v63  ;;  %v9309_v62 = vld [vmem:[#allocation10 + $0xa0] ss:$16 sps:$4 sm:$0xff]  }
 0x26f   :  { %3542 = vmatpush1.bf16.msra.mxu0 %v9228_v0  ;;  %v9314_v0 = vld [vmem:[#allocation7 + $0x204] ss:$40 sps:$4 sm:$0xff]  }
 0x270   :  { %3665 = vmatpush1.bf16.msra.mxu1 %v9231_v1  ;;  %3543 = vmatprep.subr.bf16.mxu0 %v9236_v2  ;;  %v9317_v1 = vld [vmem:[#allocation10 + $0xc4] ss:$16 sps:$4 sm:$0xff]  }
 0x271   :  { %3666 = vmatprep.subr.bf16.mxu1 %v9239_v3  ;;  %v9312_v3 = vld [vmem:[#allocation7 + $0x200] ss:$40 sps:$4 sm:$0xff]  }
 0x273   :  { %3544 = vmatpush1.bf16.msra.mxu0 %v9234_v4  ;;  %v9315_v4 = vld [vmem:[#allocation10 + $0xc0] ss:$16 sps:$4 sm:$0xff]  }
 0x274   :  { %3667 = vmatpush1.bf16.msra.mxu1 %v9237_v6  ;;  %3545 = vmatprep.subr.bf16.mxu0 %v9242_v7 }
 0x275   :  { %3668 = vmatprep.subr.bf16.mxu1 %v9245_v8 }
 0x277   :  { %3546 = vmatpush1.bf16.msra.mxu0 %v9240_v9 }
 0x278   :  { %3669 = vmatpush1.bf16.msra.mxu1 %v9243_v11  ;;  %3547 = vmatprep.subr.bf16.mxu0 %v9248_v12  ;;  %v9320_v12 = vld [vmem:[#allocation7 + $0x254] ss:$40 sps:$4 sm:$0xff]  }
 0x279   :  { %3670 = vmatprep.subr.bf16.mxu1 %v9251_v14  ;;  %v9323_v14 = vld [vmem:[#allocation10 + $0xe4] ss:$16 sps:$4 sm:$0xff]  }
 0x27b   :  { %3548 = vmatpush1.bf16.msra.mxu0 %v9246_v16 }
 0x27c   :  { %3671 = vmatpush1.bf16.msra.mxu1 %v9249_v17  ;;  %3549 = vmatprep.subr.bf16.mxu0 %v9254_v19 }
 0x27d   :  { %3672 = vmatprep.subr.bf16.mxu1 %v9257_v20 }
 0x27f   :  { %3550 = vmatpush1.bf16.msra.mxu0 %v9252_v21  ;;  %v9318_v21 = vld [vmem:[#allocation7 + $0x250] ss:$40 sps:$4 sm:$0xff]  }
 0x280   :  { %3673 = vmatpush1.bf16.msra.mxu1 %v9255_v22  ;;  %3551 = vmatprep.subr.bf16.mxu0 %v9260_v23  ;;  %v9321_v22 = vld [vmem:[#allocation10 + $0xe0] ss:$16 sps:$4 sm:$0xff]  }
 0x281   :  { %3674 = vmatprep.subr.bf16.mxu1 %v9263_v24  ;;  %v9326_v23 = vld [vmem:[#allocation7 + $0x2a4] ss:$40 sps:$4 sm:$0xff]  }
 0x282   :  { %v9329_v24 = vld [vmem:[#allocation10 + $0x104] ss:$16 sps:$4 sm:$0xff]  }
 0x283   :  { %3552 = vmatpush1.bf16.msra.mxu0 %v9258_v25  ;;  %v9324_v25 = vld [vmem:[#allocation7 + $0x2a0] ss:$40 sps:$4 sm:$0xff]  }
 0x284   :  { %3675 = vmatpush1.bf16.msra.mxu1 %v9261_v13  ;;  %3553 = vmatprep.subr.bf16.mxu0 %v9266_v26  ;;  %v9327_v13 = vld [vmem:[#allocation10 + $0x100] ss:$16 sps:$4 sm:$0xff]  }
 0x285   :  { %3676 = vmatprep.subr.bf16.mxu1 %v9269_v27  ;;  %v9332_v26 = vld [vmem:[#allocation7 + $0x2f4] ss:$40 sps:$4 sm:$0xff]  }
 0x286   :  { %v9335_v27 = vld [vmem:[#allocation10 + $0x124] ss:$16 sps:$4 sm:$0xff]  }
 0x287   :  { %3554 = vmatpush1.bf16.msra.mxu0 %v9264_v28  ;;  %v9330_v28 = vld [vmem:[#allocation7 + $0x2f0] ss:$40 sps:$4 sm:$0xff]  }
 0x288   :  { %3677 = vmatpush1.bf16.msra.mxu1 %v9267_v29  ;;  %3555 = vmatprep.subr.bf16.mxu0 %v9272_v31  ;;  %v9333_v29 = vld [vmem:[#allocation10 + $0x120] ss:$16 sps:$4 sm:$0xff]  }
 0x289   :  { %3678 = vmatprep.subr.bf16.mxu1 %v9275_v32  ;;  %v9338_v31 = vld [vmem:[#allocation7 + $0x344] ss:$40 sps:$4 sm:$0xff]  }
 0x28a   :  { %v9341_v32 = vld [vmem:[#allocation10 + $0x144] ss:$16 sps:$4 sm:$0xff]  }
 0x28b   :  { %3556 = vmatpush1.bf16.msra.mxu0 %v9270_v33  ;;  %v9336_v33 = vld [vmem:[#allocation7 + $0x340] ss:$40 sps:$4 sm:$0xff]  }
 0x28c   :  { %3679 = vmatpush1.bf16.msra.mxu1 %v9273_v34  ;;  %3689 = vmatprep.subr.bf16.mxu0 %v9278_v35  ;;  %v9339_v34 = vld [vmem:[#allocation10 + $0x140] ss:$16 sps:$4 sm:$0xff]  }
 0x28d   :  { %5764 = vmatprep.subr.bf16.mxu1 %v9281_v36  ;;  %v9344_v35 = vld [vmem:[#allocation7 + $0x394] ss:$40 sps:$4 sm:$0xff]  }
 0x28e   :  { %3558 = vmatmul.mubr.bf16.vlgmr.msra.gmra.mrb[4].mxu0 %v10806_v18  ;;  %v9347_v36 = vld [vmem:[#allocation10 + $0x164] ss:$16 sps:$4 sm:$0xff]  }
 0x28f   :  { %3681 = vmatmul.mubr.bf16.vlgmr.msra.gmra.mrb[4].mxu1 %v10806_v18  ;;  %3690 = vmatpush1.bf16.msra.mxu0 %v9276_v37  ;;  %v9342_v37 = vld [vmem:[#allocation7 + $0x390] ss:$40 sps:$4 sm:$0xff]  }
 0x290   :  { %5765 = vmatpush1.bf16.msra.mxu1 %v9279_v38  ;;  %3691 = vmatprep.subr.bf16.mxu0 %v9284_v39  ;;  %v9345_v38 = vld [vmem:[#allocation10 + $0x160] ss:$16 sps:$4 sm:$0xff]  }
 0x291   :  { %5766 = vmatprep.subr.bf16.mxu1 %v9287_v40  ;;  %3721 = vmatprep.mubr.bf16.mxu0 %v10774_v48  ;;  %v10825_v48 = vld [vmem:[#allocation8] sm:$0xff] }
 0x292   :  { %v733_v63 = vrot.slane %v10825_v48, %v10828_v58  ;;  %v9350_v39 = vld [vmem:[#allocation7 + $0x3e4] ss:$40 sps:$4 sm:$0xff]  }
 0x293   :  { %3692 = vmatpush1.bf16.msra.mxu0 %v9282_v41  ;;  %v9353_v40 = vld [vmem:[#allocation10 + $0x184] ss:$16 sps:$4 sm:$0xff]  }
 0x294   :  { %5767 = vmatpush1.bf16.msra.mxu1 %v9285_v42  ;;  %3693 = vmatprep.subr.bf16.mxu0 %v9290_v43  ;;  %v9348_v41 = vld [vmem:[#allocation7 + $0x3e0] ss:$40 sps:$4 sm:$0xff]   ;;  %v9356_v43 = vld [vmem:[#allocation7 + $0x434] ss:$40 sps:$4 sm:$0xff]  }
 0x295   :  { %5768 = vmatprep.subr.bf16.mxu1 %v9293_v44  ;;  %v9351_v42 = vld [vmem:[#allocation10 + $0x180] ss:$16 sps:$4 sm:$0xff]   ;;  %v9359_v44 = vld [vmem:[#allocation10 + $0x1a4] ss:$16 sps:$4 sm:$0xff]  }
 0x297   :  { %3694 = vmatpush1.bf16.msra.mxu0 %v9288_v45  ;;  %v9354_v45 = vld [vmem:[#allocation7 + $0x430] ss:$40 sps:$4 sm:$0xff]  }
 0x298   :  { %5769 = vmatpush1.bf16.msra.mxu1 %v9291_v46  ;;  %3695 = vmatprep.subr.bf16.mxu0 %v9296_v47  ;;  %v9357_v46 = vld [vmem:[#allocation10 + $0x1a0] ss:$16 sps:$4 sm:$0xff]  }
 0x299   :  { %5770 = vmatprep.subr.bf16.mxu1 %v9299_v49  ;;  %v9362_v47 = vld [vmem:[#allocation7 + $0x484] ss:$40 sps:$4 sm:$0xff]  }
 0x29a   :  { %v9365_v49 = vld [vmem:[#allocation10 + $0x1c4] ss:$16 sps:$4 sm:$0xff]  }
 0x29b   :  { %3696 = vmatpush1.bf16.msra.mxu0 %v9294_v51  ;;  %v10845_v51 = vsub.s32 3, %v10823_v55 }
 0x29c   :  { %5771 = vmatpush1.bf16.msra.mxu1 %v9297_v52  ;;  %3697 = vmatprep.subr.bf16.mxu0 %v9302_v53  ;;  %v9360_v52 = vld [vmem:[#allocation7 + $0x480] ss:$40 sps:$4 sm:$0xff]  }
 0x29d   :  { %5772 = vmatprep.subr.bf16.mxu1 %v9305_v54  ;;  %v9363_v53 = vld [vmem:[#allocation10 + $0x1c0] ss:$16 sps:$4 sm:$0xff]  }
 0x29e   :  { %v9368_v54 = vld [vmem:[#allocation7 + $0x4d4] ss:$40 sps:$4 sm:$0xff]  }
 0x29f   :  { %3698 = vmatpush1.bf16.msra.mxu0 %v9300_v56  ;;  %v9371_v56 = vld [vmem:[#allocation10 + $0x1e4] ss:$16 sps:$4 sm:$0xff]  }
 0x2a0   :  { %5773 = vmatpush1.bf16.msra.mxu1 %v9303_v57  ;;  %3699 = vmatprep.subr.bf16.mxu0 %v9308_v59  ;;  %v729_v57 = vrot.slane %v10825_v48, %v10842_v50  ;;  %v741_v59 = vrot.slane %v10825_v48, %v10845_v51 }
 0x2a1   :  { %5774 = vmatprep.subr.bf16.mxu1 %v9311_v60  ;;  %v10832_v2 = vpop.f32.mrb[0].mxu0  ;;  %v9366_v60 = vld [vmem:[#allocation7 + $0x4d0] ss:$40 sps:$4 sm:$0xff]  }
 0x2a2   :  { %v10834_v6 = vpop.f32.mrb[0].mxu1  ;;  %v3315_v7 = vpop.f32.mrb[1].mxu0 }
 0x2a3   :  { %v10836_v8 = vpop.f32.mrb[1].mxu1  ;;  %v8584_v9 = vadd.f32 %v3315_v7, %v733_v63  ;;  %v3317_v11 = vpop.f32.mrb[2].mxu0  ;;  %3700 = vmatpush1.bf16.msra.mxu0 %v9306_v61  ;;  %v9369_v61 = vld [vmem:[#allocation10 + $0x1e0] ss:$16 sps:$4 sm:$0xff]   ;;  %v9377_v63 = vld [vmem:[#allocation10 + $0x204] ss:$16 sps:$4 sm:$0xff]  }
 0x2a4   :  { %5775 = vmatpush1.bf16.msra.mxu1 %v9309_v62  ;;  %v3440_v16 = vpop.f32.mrb[2].mxu1  ;;  %v3318_v17 = vpop.f32.mrb[3].mxu0  ;;  %3701 = vmatprep.subr.bf16.mxu0 %v9314_v0  ;;  %v9374_v62 = vld [vmem:[#allocation7 + $0x524] ss:$40 sps:$4 sm:$0xff]   ;;  %v8583_v0 = vadd.f32 %v10832_v2, %v729_v57  ;;  %v9380_v7 = vld [vmem:[#allocation7 + $0x574] ss:$40 sps:$4 sm:$0xff]  }
 0x2a5   :  { %5776 = vmatprep.subr.bf16.mxu1 %v9317_v1  ;;  %v3441_v19 = vpop.f32.mrb[3].mxu1  ;;  %v10838_v20 = vpack.c.bf16 %v8584_v9, %v8584_v9  ;;  %v9372_v1 = vld [vmem:[#allocation7 + $0x520] ss:$40 sps:$4 sm:$0xff]   ;;  %v9378_v2 = vld [vmem:[#allocation7 + $0x570] ss:$40 sps:$4 sm:$0xff]  }
 0x2a6   :  { %v10853_v9 = vpack.c.bf16 %v8583_v0, %v8583_v0  ;;  %v9383_v11 = vld [vmem:[#allocation10 + $0x224] ss:$16 sps:$4 sm:$0xff]   ;;  %v9387_v19 = vld [vmem:[#allocation10 + $0x240] ss:$16 sps:$4 sm:$0xff]  }
 0x2a7   :  { %3702 = vmatpush1.bf16.msra.mxu0 %v9312_v3  ;;  %5796 = vmatprep.mubr.bf16.mxu1 %v10838_v20  ;;  %v8586_v3 = vadd.f32 %v10836_v8, %v741_v59  ;;  %v9386_v8 = vld [vmem:[#allocation7 + $0x5c4] ss:$40 sps:$4 sm:$0xff]   ;;  %v9384_v17 = vld [vmem:[#allocation7 + $0x5c0] ss:$40 sps:$4 sm:$0xff]   ;;  %v9438_v57 = vld [vmem:[#allocation7 + $0x890] ss:$40 sps:$4 sm:$0xff]  }
 0x2a8   :  { %5777 = vmatpush1.bf16.msra.mxu1 %v9315_v4  ;;  %3703 = vmatprep.subr.bf16.mxu0 %v9320_v12  ;;  %v9375_v4 = vld [vmem:[#allocation10 + $0x200] ss:$16 sps:$4 sm:$0xff]   ;;  %v9389_v16 = vld [vmem:[#allocation10 + $0x244] ss:$16 sps:$4 sm:$0xff]  }
 0x2a9   :  { %5778 = vmatprep.subr.bf16.mxu1 %v9323_v14  ;;  %v10855_v12 = vpack.c.bf16 %v8586_v3, %v8586_v3  ;;  %v9381_v14 = vld [vmem:[#allocation10 + $0x220] ss:$16 sps:$4 sm:$0xff]  }
 0x2aa   :  { %v9441_v59 = vld [vmem:[#allocation10 + $0x360] ss:$16 sps:$4 sm:$0xff]  }
 0x2ab   :  { %3704 = vmatpush1.bf16.msra.mxu0 %v9318_v21  ;;  %v9392_v21 = vld [vmem:[#allocation7 + $0x614] ss:$40 sps:$4 sm:$0xff]   ;;  %v9450_v3 = vld [vmem:[#allocation7 + $0x930] ss:$40 sps:$4 sm:$0xff]  }
 0x2ac   :  { %5779 = vmatpush1.bf16.msra.mxu1 %v9321_v22  ;;  %3705 = vmatprep.subr.bf16.mxu0 %v9326_v23  ;;  %v9390_v22 = vld [vmem:[#allocation7 + $0x610] ss:$40 sps:$4 sm:$0xff]   ;;  %v9452_v0 = vld [vmem:[#allocation7 + $0x934] ss:$40 sps:$4 sm:$0xff]  }
 0x2ad   :  { %5780 = vmatprep.subr.bf16.mxu1 %v9329_v24  ;;  %v9393_v23 = vld [vmem:[#allocation10 + $0x260] ss:$16 sps:$4 sm:$0xff]  }
 0x2ae   :  { %v9398_v24 = vld [vmem:[#allocation7 + $0x664] ss:$40 sps:$4 sm:$0xff]  }
 0x2af   :  { %3706 = vmatpush1.bf16.msra.mxu0 %v9324_v25  ;;  %v9401_v25 = vld [vmem:[#allocation10 + $0x284] ss:$16 sps:$4 sm:$0xff]  }
 0x2b0   :  { %5781 = vmatpush1.bf16.msra.mxu1 %v9327_v13  ;;  %3707 = vmatprep.subr.bf16.mxu0 %v9332_v26  ;;  %v9396_v13 = vld [vmem:[#allocation7 + $0x660] ss:$40 sps:$4 sm:$0xff]   ;;  %v9404_v26 = vld [vmem:[#allocation7 + $0x6b4] ss:$40 sps:$4 sm:$0xff]  }
 0x2b1   :  { %5782 = vmatprep.subr.bf16.mxu1 %v9335_v27  ;;  %v9407_v27 = vld [vmem:[#allocation10 + $0x2a4] ss:$16 sps:$4 sm:$0xff]  }
 0x2b3   :  { %3708 = vmatpush1.bf16.msra.mxu0 %v9330_v28  ;;  %v9402_v28 = vld [vmem:[#allocation7 + $0x6b0] ss:$40 sps:$4 sm:$0xff]  }
 0x2b4   :  { %5783 = vmatpush1.bf16.msra.mxu1 %v9333_v29  ;;  %3709 = vmatprep.subr.bf16.mxu0 %v9338_v31  ;;  %v9405_v29 = vld [vmem:[#allocation10 + $0x2a0] ss:$16 sps:$4 sm:$0xff]  }
 0x2b5   :  { %5784 = vmatprep.subr.bf16.mxu1 %v9341_v32  ;;  %v9410_v31 = vld [vmem:[#allocation7 + $0x704] ss:$40 sps:$4 sm:$0xff]  }
 0x2b6   :  { %v9413_v32 = vld [vmem:[#allocation10 + $0x2c4] ss:$16 sps:$4 sm:$0xff]  }
 0x2b7   :  { %3710 = vmatpush1.bf16.msra.mxu0 %v9336_v33  ;;  %v9408_v33 = vld [vmem:[#allocation7 + $0x700] ss:$40 sps:$4 sm:$0xff]  }
 0x2b8   :  { %5785 = vmatpush1.bf16.msra.mxu1 %v9339_v34  ;;  %3711 = vmatprep.subr.bf16.mxu0 %v9344_v35  ;;  %v9411_v34 = vld [vmem:[#allocation10 + $0x2c0] ss:$16 sps:$4 sm:$0xff]  }
 0x2b9   :  { %5786 = vmatprep.subr.bf16.mxu1 %v9347_v36  ;;  %v9416_v35 = vld [vmem:[#allocation7 + $0x754] ss:$40 sps:$4 sm:$0xff]  }
 0x2ba   :  { %v9419_v36 = vld [vmem:[#allocation10 + $0x2e4] ss:$16 sps:$4 sm:$0xff]  }
 0x2bb   :  { %3712 = vmatpush1.bf16.msra.mxu0 %v9342_v37  ;;  %v9414_v37 = vld [vmem:[#allocation7 + $0x750] ss:$40 sps:$4 sm:$0xff]  }
 0x2bc   :  { %5787 = vmatpush1.bf16.msra.mxu1 %v9345_v38  ;;  %3713 = vmatprep.subr.bf16.mxu0 %v9350_v39  ;;  %v9417_v38 = vld [vmem:[#allocation10 + $0x2e0] ss:$16 sps:$4 sm:$0xff]  }
 0x2bd   :  { %5788 = vmatprep.subr.bf16.mxu1 %v9353_v40  ;;  %v9422_v39 = vld [vmem:[#allocation7 + $0x7a4] ss:$40 sps:$4 sm:$0xff]  }
 0x2be   :  { %v9425_v40 = vld [vmem:[#allocation10 + $0x304] ss:$16 sps:$4 sm:$0xff]  }
 0x2bf   :  { %3714 = vmatpush1.bf16.msra.mxu0 %v9348_v41  ;;  %v9420_v41 = vld [vmem:[#allocation7 + $0x7a0] ss:$40 sps:$4 sm:$0xff]  }
 0x2c0   :  { %5789 = vmatpush1.bf16.msra.mxu1 %v9351_v42  ;;  %3715 = vmatprep.subr.bf16.mxu0 %v9356_v43  ;;  %v9423_v42 = vld [vmem:[#allocation10 + $0x300] ss:$16 sps:$4 sm:$0xff]  }
 0x2c1   :  { %5790 = vmatprep.subr.bf16.mxu1 %v9359_v44  ;;  %v9428_v43 = vld [vmem:[#allocation7 + $0x7f4] ss:$40 sps:$4 sm:$0xff]  }
 0x2c2   :  { %v9431_v44 = vld [vmem:[#allocation10 + $0x324] ss:$16 sps:$4 sm:$0xff]  }
 0x2c3   :  { %3716 = vmatpush1.bf16.msra.mxu0 %v9354_v45  ;;  %v9426_v45 = vld [vmem:[#allocation7 + $0x7f0] ss:$40 sps:$4 sm:$0xff]  }
 0x2c4   :  { %5791 = vmatpush1.bf16.msra.mxu1 %v9357_v46  ;;  %3717 = vmatprep.subr.bf16.mxu0 %v9362_v47  ;;  %v9429_v46 = vld [vmem:[#allocation10 + $0x320] ss:$16 sps:$4 sm:$0xff]  }
 0x2c5   :  { %5792 = vmatprep.subr.bf16.mxu1 %v9365_v49  ;;  %v9434_v47 = vld [vmem:[#allocation7 + $0x844] ss:$40 sps:$4 sm:$0xff]  }
 0x2c6   :  { %v9437_v49 = vld [vmem:[#allocation10 + $0x344] ss:$16 sps:$4 sm:$0xff]  }
 0x2c7   :  { %3718 = vmatpush1.bf16.msra.mxu0 %v9360_v52  ;;  %v9432_v52 = vld [vmem:[#allocation7 + $0x840] ss:$40 sps:$4 sm:$0xff]  }
 0x2c8   :  { %5793 = vmatpush1.bf16.msra.mxu1 %v9363_v53  ;;  %3719 = vmatprep.subr.bf16.mxu0 %v9368_v54  ;;  %v9435_v53 = vld [vmem:[#allocation10 + $0x340] ss:$16 sps:$4 sm:$0xff]  }
 0x2c9   :  { %5794 = vmatprep.subr.bf16.mxu1 %v9371_v56  ;;  %v9440_v54 = vld [vmem:[#allocation7 + $0x894] ss:$40 sps:$4 sm:$0xff]  }
 0x2ca   :  { %v9443_v56 = vld [vmem:[#allocation10 + $0x364] ss:$16 sps:$4 sm:$0xff]  }
 0x2cb   :  { %3720 = vmatpush1.bf16.msra.mxu0 %v9366_v60  ;;  %v9446_v60 = vld [vmem:[#allocation7 + $0x8e4] ss:$40 sps:$4 sm:$0xff]  }
 0x2cc   :  { %5795 = vmatpush1.bf16.msra.mxu1 %v9369_v61  ;;  %3730 = vmatprep.subr.bf16.mxu0 %v9374_v62  ;;  %v9449_v61 = vld [vmem:[#allocation10 + $0x384] ss:$16 sps:$4 sm:$0xff]  }
 0x2cd   :  { %5805 = vmatprep.subr.bf16.mxu1 %v9377_v63  ;;  %v9444_v62 = vld [vmem:[#allocation7 + $0x8e0] ss:$40 sps:$4 sm:$0xff]  }
 0x2ce   :  { %3722 = vmatmul.mubr.bf16.vlgmr.msra.gmra.mrb[8].mxu0 %v10778_v5  ;;  %v9395_v5 = vld [vmem:[#allocation10 + $0x264] ss:$16 sps:$4 sm:$0xff]   ;;  %v9447_v63 = vld [vmem:[#allocation10 + $0x380] ss:$16 sps:$4 sm:$0xff]  }
 0x2cf   :  { %5797 = vmatmul.mubr.bf16.vlgmr.msra.gmra.mrb[8].mxu1 %v10853_v9  ;;  %3731 = vmatpush1.bf16.msra.mxu0 %v9372_v1  ;;  %v9455_v1 = vld [vmem:[#allocation10 + $0x3a4] ss:$16 sps:$4 sm:$0xff]  }
 0x2d0   :  { %5806 = vmatpush1.bf16.msra.mxu1 %v9375_v4  ;;  %5837 = vmatprep.mubr.bf16.mxu1 %v10855_v12  ;;  %v9453_v4 = vld [vmem:[#allocation10 + $0x3a0] ss:$16 sps:$4 sm:$0xff]  }
 0x2d1   :  { %3732 = vmatprep.subr.bf16.mxu0 %v9380_v7  ;;  %5807 = vmatprep.subr.bf16.mxu1 %v9383_v11  ;;  %v9458_v7 = vld [vmem:[#allocation7 + $0x984] ss:$40 sps:$4 sm:$0xff]  }
 0x2d2   :  { %3762 = vmatprep.mubr.bf16.mxu0 %v10786_v30  ;;  %v9399_v30 = vld [vmem:[#allocation10 + $0x280] ss:$16 sps:$4 sm:$0xff]   ;;  %v9461_v11 = vld [vmem:[#allocation10 + $0x3c4] ss:$16 sps:$4 sm:$0xff]  }
 0x2d3   :  { %3733 = vmatpush1.bf16.msra.mxu0 %v9378_v2  ;;  %v10862_v2 = vsub.s32 2, %v10823_v55 }
 0x2d4   :  { %5808 = vmatpush1.bf16.msra.mxu1 %v9381_v14  ;;  %3734 = vmatprep.subr.bf16.mxu0 %v9386_v8  ;;  %v9456_v14 = vld [vmem:[#allocation7 + $0x980] ss:$40 sps:$4 sm:$0xff]  }
 0x2d5   :  { %5809 = vmatprep.subr.bf16.mxu1 %v9389_v16  ;;  %v9459_v8 = vld [vmem:[#allocation10 + $0x3c0] ss:$16 sps:$4 sm:$0xff]  }
 0x2d6   :  { %v9464_v16 = vld [vmem:[#allocation7 + $0x9d4] ss:$40 sps:$4 sm:$0xff]  }
 0x2d7   :  { %3735 = vmatpush1.bf16.msra.mxu0 %v9384_v17  ;;  %v9467_v17 = vld [vmem:[#allocation10 + $0x3e4] ss:$16 sps:$4 sm:$0xff]  }
 0x2d8   :  { %5810 = vmatpush1.bf16.msra.mxu1 %v9387_v19  ;;  %3736 = vmatprep.subr.bf16.mxu0 %v9392_v21  ;;  %v737_v19 = vrot.slane %v10825_v48, %v10862_v2  ;;  %v9462_v21 = vld [vmem:[#allocation7 + $0x9d0] ss:$40 sps:$4 sm:$0xff]  }
 0x2d9   :  { %5811 = vmatprep.subr.bf16.mxu1 %v9395_v5  ;;  %v9465_v5 = vld [vmem:[#allocation10 + $0x3e0] ss:$16 sps:$4 sm:$0xff]  }
 0x2da   :  { %v9471_v48 = vld [vmem:[#allocation7 + $0xa70] ss:$40 sps:$4 sm:$0xff]  }
 0x2db   :  { %3737 = vmatpush1.bf16.msra.mxu0 %v9390_v22  ;;  %v9470_v22 = vld [vmem:[#allocation7 + $0xa24] ss:$40 sps:$4 sm:$0xff]  }
 0x2dc   :  { %5812 = vmatpush1.bf16.msra.mxu1 %v9393_v23  ;;  %3738 = vmatprep.subr.bf16.mxu0 %v9398_v24  ;;  %v9491_v23 = vld [vmem:[#allocation10 + $0x404] ss:$16 sps:$4 sm:$0xff]   ;;  %v8585_v24 = vadd.f32 %v10834_v6, %v737_v19 }
 0x2dd   :  { %5813 = vmatprep.subr.bf16.mxu1 %v9401_v25  ;;  %v9468_v25 = vld [vmem:[#allocation7 + $0xa20] ss:$40 sps:$4 sm:$0xff]  }
 0x2de   :  { %v9503_v6 = vld [vmem:[#allocation10 + $0x444] ss:$16 sps:$4 sm:$0xff]  }
 0x2df   :  { %3739 = vmatpush1.bf16.msra.mxu0 %v9396_v13  ;;  %v9489_v13 = vld [vmem:[#allocation10 + $0x400] ss:$16 sps:$4 sm:$0xff]  }
 0x2e0   :  { %5814 = vmatpush1.bf16.msra.mxu1 %v9399_v30  ;;  %3740 = vmatprep.subr.bf16.mxu0 %v9404_v26  ;;  %v9473_v30 = vld [vmem:[#allocation7 + $0xa74] ss:$40 sps:$4 sm:$0xff]   ;;  %v9522_v19 = vld [vmem:[#allocation7 + $0xde0] ss:$40 sps:$4 sm:$0xff]  }
 0x2e1   :  { %5815 = vmatprep.subr.bf16.mxu1 %v9407_v27  ;;  %v9497_v26 = vld [vmem:[#allocation10 + $0x424] ss:$16 sps:$4 sm:$0xff]   ;;  %v10867_v27 = vpack.c.bf16 %v8585_v24, %v8585_v24  ;;  %v9567_v24 = vld [vmem:[#allocation10 + $0x5a0] ss:$16 sps:$4 sm:$0xff]  }
 0x2e3   :  { %3741 = vmatpush1.bf16.msra.mxu0 %v9402_v28  ;;  %v9476_v28 = vld [vmem:[#allocation7 + $0xac4] ss:$40 sps:$4 sm:$0xff]  }
 0x2e4   :  { %5816 = vmatpush1.bf16.msra.mxu1 %v9405_v29  ;;  %3742 = vmatprep.subr.bf16.mxu0 %v9410_v31  ;;  %v9495_v29 = vld [vmem:[#allocation10 + $0x420] ss:$16 sps:$4 sm:$0xff]  }
 0x2e5   :  { %5817 = vmatprep.subr.bf16.mxu1 %v9413_v32  ;;  %v9474_v31 = vld [vmem:[#allocation7 + $0xac0] ss:$40 sps:$4 sm:$0xff]  }
 0x2e6   :  { %v9501_v32 = vld [vmem:[#allocation10 + $0x440] ss:$16 sps:$4 sm:$0xff]  }
 0x2e7   :  { %3743 = vmatpush1.bf16.msra.mxu0 %v9408_v33  ;;  %v9479_v33 = vld [vmem:[#allocation7 + $0xb14] ss:$40 sps:$4 sm:$0xff]  }
 0x2e8   :  { %5818 = vmatpush1.bf16.msra.mxu1 %v9411_v34  ;;  %3744 = vmatprep.subr.bf16.mxu0 %v9416_v35  ;;  %v9509_v34 = vld [vmem:[#allocation10 + $0x464] ss:$16 sps:$4 sm:$0xff]  }
 0x2e9   :  { %5819 = vmatprep.subr.bf16.mxu1 %v9419_v36  ;;  %v9477_v35 = vld [vmem:[#allocation7 + $0xb10] ss:$40 sps:$4 sm:$0xff]  }
 0x2ea   :  { %v9507_v36 = vld [vmem:[#allocation10 + $0x460] ss:$16 sps:$4 sm:$0xff]  }
 0x2eb   :  { %3745 = vmatpush1.bf16.msra.mxu0 %v9414_v37  ;;  %v9515_v37 = vld [vmem:[#allocation10 + $0x484] ss:$16 sps:$4 sm:$0xff]  }
 0x2ec   :  { %5820 = vmatpush1.bf16.msra.mxu1 %v9417_v38  ;;  %3746 = vmatprep.subr.bf16.mxu0 %v9422_v39  ;;  %v9480_v38 = vld [vmem:[#allocation7 + $0xb60] ss:$40 sps:$4 sm:$0xff]  }
 0x2ed   :  { %5821 = vmatprep.subr.bf16.mxu1 %v9425_v40  ;;  %v9513_v39 = vld [vmem:[#allocation10 + $0x480] ss:$16 sps:$4 sm:$0xff]  }
 0x2ee   :  { %v9485_v40 = vld [vmem:[#allocation7 + $0xbb4] ss:$40 sps:$4 sm:$0xff]  }
 0x2ef   :  { %3747 = vmatpush1.bf16.msra.mxu0 %v9420_v41  ;;  %v9521_v41 = vld [vmem:[#allocation10 + $0x4a4] ss:$16 sps:$4 sm:$0xff]  }
 0x2f0   :  { %5822 = vmatpush1.bf16.msra.mxu1 %v9423_v42  ;;  %3748 = vmatprep.subr.bf16.mxu0 %v9428_v43  ;;  %v9519_v42 = vld [vmem:[#allocation10 + $0x4a0] ss:$16 sps:$4 sm:$0xff]  }
 0x2f1   :  { %5823 = vmatprep.subr.bf16.mxu1 %v9431_v44  ;;  %v9488_v43 = vld [vmem:[#allocation7 + $0xc04] ss:$40 sps:$4 sm:$0xff]  }
 0x2f2   :  { %v9527_v44 = vld [vmem:[#allocation10 + $0x4c4] ss:$16 sps:$4 sm:$0xff]  }
 0x2f3   :  { %3749 = vmatpush1.bf16.msra.mxu0 %v9426_v45  ;;  %v9486_v45 = vld [vmem:[#allocation7 + $0xc00] ss:$40 sps:$4 sm:$0xff]  }
 0x2f4   :  { %5824 = vmatpush1.bf16.msra.mxu1 %v9429_v46  ;;  %3750 = vmatprep.subr.bf16.mxu0 %v9434_v47  ;;  %v9525_v46 = vld [vmem:[#allocation10 + $0x4c0] ss:$16 sps:$4 sm:$0xff]  }
 0x2f5   :  { %5825 = vmatprep.subr.bf16.mxu1 %v9437_v49  ;;  %v9494_v47 = vld [vmem:[#allocation7 + $0xc54] ss:$40 sps:$4 sm:$0xff]  }
 0x2f6   :  { %v9533_v49 = vld [vmem:[#allocation10 + $0x4e4] ss:$16 sps:$4 sm:$0xff]  }
 0x2f7   :  { %3751 = vmatpush1.bf16.msra.mxu0 %v9432_v52  ;;  %v9492_v52 = vld [vmem:[#allocation7 + $0xc50] ss:$40 sps:$4 sm:$0xff]  }
 0x2f8   :  { %5826 = vmatpush1.bf16.msra.mxu1 %v9435_v53  ;;  %3752 = vmatprep.subr.bf16.mxu0 %v9440_v54  ;;  %v9531_v53 = vld [vmem:[#allocation10 + $0x4e0] ss:$16 sps:$4 sm:$0xff]  }
 0x2f9   :  { %5827 = vmatprep.subr.bf16.mxu1 %v9443_v56  ;;  %v9500_v54 = vld [vmem:[#allocation7 + $0xca4] ss:$40 sps:$4 sm:$0xff]  }
 0x2fa   :  { %v9539_v56 = vld [vmem:[#allocation10 + $0x504] ss:$16 sps:$4 sm:$0xff]  }
 0x2fb   :  { %3753 = vmatpush1.bf16.msra.mxu0 %v9438_v57  ;;  %v9498_v57 = vld [vmem:[#allocation7 + $0xca0] ss:$40 sps:$4 sm:$0xff]  }
 0x2fc   :  { %5828 = vmatpush1.bf16.msra.mxu1 %v9441_v59  ;;  %3754 = vmatprep.subr.bf16.mxu0 %v9446_v60  ;;  %v9506_v59 = vld [vmem:[#allocation7 + $0xcf4] ss:$40 sps:$4 sm:$0xff]  }
 0x2fd   :  { %5829 = vmatprep.subr.bf16.mxu1 %v9449_v61  ;;  %v9537_v60 = vld [vmem:[#allocation10 + $0x500] ss:$16 sps:$4 sm:$0xff]   ;;  %v9545_v61 = vld [vmem:[#allocation10 + $0x524] ss:$16 sps:$4 sm:$0xff]  }
 0x2ff   :  { %3755 = vmatpush1.bf16.msra.mxu0 %v9444_v62  ;;  %v9504_v62 = vld [vmem:[#allocation7 + $0xcf0] ss:$40 sps:$4 sm:$0xff]  }
 0x300   :  { %5830 = vmatpush1.bf16.msra.mxu1 %v9447_v63  ;;  %3756 = vmatprep.subr.bf16.mxu0 %v9452_v0  ;;  %v9512_v63 = vld [vmem:[#allocation7 + $0xd44] ss:$40 sps:$4 sm:$0xff]  }
 0x301   :  { %5831 = vmatprep.subr.bf16.mxu1 %v9455_v1  ;;  %v9543_v0 = vld [vmem:[#allocation10 + $0x520] ss:$16 sps:$4 sm:$0xff]   ;;  %v9551_v1 = vld [vmem:[#allocation10 + $0x544] ss:$16 sps:$4 sm:$0xff]  }
 0x303   :  { %3757 = vmatpush1.bf16.msra.mxu0 %v9450_v3  ;;  %v9510_v3 = vld [vmem:[#allocation7 + $0xd40] ss:$40 sps:$4 sm:$0xff]  }
 0x304   :  { %5832 = vmatpush1.bf16.msra.mxu1 %v9453_v4  ;;  %3758 = vmatprep.subr.bf16.mxu0 %v9458_v7  ;;  %v9549_v4 = vld [vmem:[#allocation10 + $0x540] ss:$16 sps:$4 sm:$0xff]  }
 0x305   :  { %5833 = vmatprep.subr.bf16.mxu1 %v9461_v11  ;;  %v9518_v7 = vld [vmem:[#allocation7 + $0xd94] ss:$40 sps:$4 sm:$0xff]  }
 0x306   :  { %v9557_v11 = vld [vmem:[#allocation10 + $0x564] ss:$16 sps:$4 sm:$0xff]  }
 0x307   :  { %3759 = vmatpush1.bf16.msra.mxu0 %v9456_v14  ;;  %v9516_v14 = vld [vmem:[#allocation7 + $0xd90] ss:$40 sps:$4 sm:$0xff]  }
 0x308   :  { %5834 = vmatpush1.bf16.msra.mxu1 %v9459_v8  ;;  %3760 = vmatprep.subr.bf16.mxu0 %v9464_v16  ;;  %v9555_v8 = vld [vmem:[#allocation10 + $0x560] ss:$16 sps:$4 sm:$0xff]  }
 0x309   :  { %5835 = vmatprep.subr.bf16.mxu1 %v9467_v17  ;;  %v9524_v16 = vld [vmem:[#allocation7 + $0xde4] ss:$40 sps:$4 sm:$0xff]  }
 0x30a   :  { %v9563_v17 = vld [vmem:[#allocation10 + $0x584] ss:$16 sps:$4 sm:$0xff]  }
 0x30b   :  { %3761 = vmatpush1.bf16.msra.mxu0 %v9462_v21  ;;  %v9561_v21 = vld [vmem:[#allocation10 + $0x580] ss:$16 sps:$4 sm:$0xff]  }
 0x30c   :  { %5836 = vmatpush1.bf16.msra.mxu1 %v9465_v5  ;;  %3771 = vmatprep.subr.bf16.mxu0 %v9470_v22  ;;  %v9530_v5 = vld [vmem:[#allocation7 + $0xe34] ss:$40 sps:$4 sm:$0xff]  }
 0x30d   :  { %5846 = vmatprep.subr.bf16.mxu1 %v9491_v23  ;;  %v9569_v22 = vld [vmem:[#allocation10 + $0x5a4] ss:$16 sps:$4 sm:$0xff]  }
 0x30e   :  { %3763 = vmatmul.mubr.bf16.vlgmr.msra.gmra.mrb[8].mxu0 %v10792_v10  ;;  %v9482_v10 = vld [vmem:[#allocation7 + $0xb64] ss:$40 sps:$4 sm:$0xff]   ;;  %v9528_v23 = vld [vmem:[#allocation7 + $0xe30] ss:$40 sps:$4 sm:$0xff]  }
 0x30f   :  { %5838 = vmatmul.mubr.bf16.vlgmr.msra.gmra.mrb[8].mxu1 %v10867_v27  ;;  %3772 = vmatpush1.bf16.msra.mxu0 %v9468_v25  ;;  %v9536_v25 = vld [vmem:[#allocation7 + $0xe84] ss:$40 sps:$4 sm:$0xff]  }
 0x310   :  { %5847 = vmatpush1.bf16.msra.mxu1 %v9489_v13  ;;  %3773 = vmatprep.subr.bf16.mxu0 %v9473_v30  ;;  %v9575_v13 = vld [vmem:[#allocation10 + $0x5c4] ss:$16 sps:$4 sm:$0xff]  }
 0x311   :  { %5848 = vmatprep.subr.bf16.mxu1 %v9497_v26  ;;  %3803 = vmatprep.mubr.bf16.mxu0 %v10798_v15  ;;  %v9483_v15 = vld [vmem:[#allocation7 + $0xbb0] ss:$40 sps:$4 sm:$0xff]   ;;  %v9534_v30 = vld [vmem:[#allocation7 + $0xe80] ss:$40 sps:$4 sm:$0xff]  }
 0x312   :  { %v9573_v26 = vld [vmem:[#allocation10 + $0x5c0] ss:$16 sps:$4 sm:$0xff]  }
 0x313   :  { %3774 = vmatpush1.bf16.msra.mxu0 %v9471_v48  ;;  %v9542_v48 = vld [vmem:[#allocation7 + $0xed4] ss:$40 sps:$4 sm:$0xff]  }
 0x314   :  { %5849 = vmatpush1.bf16.msra.mxu1 %v9495_v29  ;;  %3775 = vmatprep.subr.bf16.mxu0 %v9476_v28  ;;  %v9581_v28 = vld [vmem:[#allocation10 + $0x5e4] ss:$16 sps:$4 sm:$0xff]  }
 0x315   :  { %5850 = vmatprep.subr.bf16.mxu1 %v9503_v6  ;;  %v9540_v29 = vld [vmem:[#allocation7 + $0xed0] ss:$40 sps:$4 sm:$0xff]  }
 0x316   :  { %v9579_v6 = vld [vmem:[#allocation10 + $0x5e0] ss:$16 sps:$4 sm:$0xff]  }
 0x317   :  { %3776 = vmatpush1.bf16.msra.mxu0 %v9474_v31  ;;  %v9548_v31 = vld [vmem:[#allocation10 + $0xc] ss:$16 sps:$4 sm:$0xff]  }
 0x318   :  { %5851 = vmatpush1.bf16.msra.mxu1 %v9501_v32  ;;  %3777 = vmatprep.subr.bf16.mxu0 %v9479_v33  ;;  %v9587_v32 = vld [vmem:[#allocation10 + $0x604] ss:$16 sps:$4 sm:$0xff]   ;;  %v9546_v33 = vld [vmem:[#allocation10 + $0x8] ss:$16 sps:$4 sm:$0xff]  }
 0x319   :  { %5852 = vmatprep.subr.bf16.mxu1 %v9509_v34  ;;  %v9554_v34 = vld [vmem:[#allocation10 + $0x2c] ss:$16 sps:$4 sm:$0xff]  }
 0x31b   :  { %3778 = vmatpush1.bf16.msra.mxu0 %v9477_v35  ;;  %v9552_v35 = vld [vmem:[#allocation10 + $0x28] ss:$16 sps:$4 sm:$0xff]  }
 0x31c   :  { %5853 = vmatpush1.bf16.msra.mxu1 %v9507_v36  ;;  %3779 = vmatprep.subr.bf16.mxu0 %v9482_v10  ;;  %v9560_v36 = vld [vmem:[#allocation10 + $0x4c] ss:$16 sps:$4 sm:$0xff]   ;;  %v9558_v10 = vld [vmem:[#allocation10 + $0x48] ss:$16 sps:$4 sm:$0xff]  }
 0x31d   :  { %5854 = vmatprep.subr.bf16.mxu1 %v9515_v37  ;;  %v9566_v37 = vld [vmem:[#allocation10 + $0x6c] ss:$16 sps:$4 sm:$0xff]  }
 0x31f   :  { %3780 = vmatpush1.bf16.msra.mxu0 %v9480_v38  ;;  %v9564_v38 = vld [vmem:[#allocation10 + $0x68] ss:$16 sps:$4 sm:$0xff]  }
 0x320   :  { %5855 = vmatpush1.bf16.msra.mxu1 %v9513_v39  ;;  %3781 = vmatprep.subr.bf16.mxu0 %v9485_v40  ;;  %v9572_v39 = vld [vmem:[#allocation10 + $0x8c] ss:$16 sps:$4 sm:$0xff]   ;;  %v744_v40 = vsub.s32 4, %v10823_v55 }
 0x321   :  { %5856 = vmatprep.subr.bf16.mxu1 %v9521_v41  ;;  %v9570_v41 = vld [vmem:[#allocation10 + $0x88] ss:$16 sps:$4 sm:$0xff]  }
 0x323   :  { %3782 = vmatpush1.bf16.msra.mxu0 %v9483_v15  ;;  %v756_v15 = vsub.s32 7, %v10823_v55 }
 0x324   :  { %5857 = vmatpush1.bf16.msra.mxu1 %v9519_v42  ;;  %3783 = vmatprep.subr.bf16.mxu0 %v9488_v43  ;;  %v10877_v42 = vld [vmem:[#allocation8] sm:$0xff] }
 0x325   :  { %5858 = vmatprep.subr.bf16.mxu1 %v9527_v44  ;;  %v745_v43 = vrot.slane %v10877_v42, %v744_v40  ;;  %v9635_v40 = vld [vmem:[#allocation10 + $0x704] ss:$16 sps:$4 sm:$0xff]  }
 0x327   :  { %3784 = vmatpush1.bf16.msra.mxu0 %v9486_v45  ;;  %v9576_v45 = vld [vmem:[#allocation10 + $0xa8] ss:$16 sps:$4 sm:$0xff]  }
 0x328   :  { %5859 = vmatpush1.bf16.msra.mxu1 %v9525_v46  ;;  %3785 = vmatprep.subr.bf16.mxu0 %v9494_v47  ;;  %v757_v46 = vrot.slane %v10877_v42, %v756_v15  ;;  %v9584_v47 = vld [vmem:[#allocation10 + $0xcc] ss:$16 sps:$4 sm:$0xff]   ;;  %v9633_v15 = vld [vmem:[#allocation10 + $0x700] ss:$16 sps:$4 sm:$0xff]  }
 0x329   :  { %5860 = vmatprep.subr.bf16.mxu1 %v9533_v49 }
 0x32b   :  { %3786 = vmatpush1.bf16.msra.mxu0 %v9492_v52 }
 0x32c   :  { %5861 = vmatpush1.bf16.msra.mxu1 %v9531_v53  ;;  %3787 = vmatprep.subr.bf16.mxu0 %v9500_v54 }
 0x32d   :  { %5862 = vmatprep.subr.bf16.mxu1 %v9539_v56 }
 0x32f   :  { %3788 = vmatpush1.bf16.msra.mxu0 %v9498_v57 }
 0x330   :  { %5863 = vmatpush1.bf16.msra.mxu1 %v9537_v60  ;;  %3789 = vmatprep.subr.bf16.mxu0 %v9506_v59  ;;  %v9582_v60 = vld [vmem:[#allocation10 + $0xc8] ss:$16 sps:$4 sm:$0xff]  }
 0x331   :  { %5864 = vmatprep.subr.bf16.mxu1 %v9545_v61 }
 0x333   :  { %3790 = vmatpush1.bf16.msra.mxu0 %v9504_v62 }
 0x334   :  { %5865 = vmatpush1.bf16.msra.mxu1 %v9543_v0  ;;  %3791 = vmatprep.subr.bf16.mxu0 %v9512_v63  ;;  %v9590_v0 = vld [vmem:[#allocation10 + $0xec] ss:$16 sps:$4 sm:$0xff]  }
 0x335   :  { %5866 = vmatprep.subr.bf16.mxu1 %v9551_v1 }
 0x337   :  { %3792 = vmatpush1.bf16.msra.mxu0 %v9510_v3 }
 0x338   :  { %5867 = vmatpush1.bf16.msra.mxu1 %v9549_v4  ;;  %3793 = vmatprep.subr.bf16.mxu0 %v9518_v7  ;;  %v9585_v4 = vld [vmem:[#allocation10 + $0x600] ss:$16 sps:$4 sm:$0xff]  }
 0x339   :  { %5868 = vmatprep.subr.bf16.mxu1 %v9557_v11 }
 0x33b   :  { %3794 = vmatpush1.bf16.msra.mxu0 %v9516_v14  ;;  %v9593_v14 = vld [vmem:[#allocation10 + $0x624] ss:$16 sps:$4 sm:$0xff]  }
 0x33c   :  { %5869 = vmatpush1.bf16.msra.mxu1 %v9555_v8  ;;  %3795 = vmatprep.subr.bf16.mxu0 %v9524_v16  ;;  %v9588_v8 = vld [vmem:[#allocation10 + $0xe8] ss:$16 sps:$4 sm:$0xff]   ;;  %v9596_v16 = vld [vmem:[#allocation10 + $0x10c] ss:$16 sps:$4 sm:$0xff]  }
 0x33d   :  { %5870 = vmatprep.subr.bf16.mxu1 %v9563_v17  ;;  %v9591_v17 = vld [vmem:[#allocation10 + $0x620] ss:$16 sps:$4 sm:$0xff]  }
 0x33f   :  { %3796 = vmatpush1.bf16.msra.mxu0 %v9522_v19  ;;  %v9599_v19 = vld [vmem:[#allocation10 + $0x644] ss:$16 sps:$4 sm:$0xff]  }
 0x340   :  { %5871 = vmatpush1.bf16.msra.mxu1 %v9561_v21  ;;  %3797 = vmatprep.subr.bf16.mxu0 %v9530_v5  ;;  %v9594_v21 = vld [vmem:[#allocation10 + $0x108] ss:$16 sps:$4 sm:$0xff]   ;;  %v9602_v5 = vld [vmem:[#allocation10 + $0x12c] ss:$16 sps:$4 sm:$0xff]  }
 0x341   :  { %5872 = vmatprep.subr.bf16.mxu1 %v9569_v22  ;;  %v9597_v22 = vld [vmem:[#allocation10 + $0x640] ss:$16 sps:$4 sm:$0xff]  }
 0x343   :  { %3798 = vmatpush1.bf16.msra.mxu0 %v9528_v23  ;;  %v9605_v23 = vld [vmem:[#allocation10 + $0x664] ss:$16 sps:$4 sm:$0xff]  }
 0x344   :  { %5873 = vmatpush1.bf16.msra.mxu1 %v9567_v24  ;;  %3799 = vmatprep.subr.bf16.mxu0 %v9536_v25  ;;  %v9600_v24 = vld [vmem:[#allocation10 + $0x128] ss:$16 sps:$4 sm:$0xff]   ;;  %v9608_v25 = vld [vmem:[#allocation10 + $0x14c] ss:$16 sps:$4 sm:$0xff]  }
 0x345   :  { %5874 = vmatprep.subr.bf16.mxu1 %v9575_v13  ;;  %v9603_v13 = vld [vmem:[#allocation10 + $0x660] ss:$16 sps:$4 sm:$0xff]  }
 0x347   :  { %3800 = vmatpush1.bf16.msra.mxu0 %v9534_v30  ;;  %v9611_v30 = vld [vmem:[#allocation10 + $0x684] ss:$16 sps:$4 sm:$0xff]  }
 0x348   :  { %5875 = vmatpush1.bf16.msra.mxu1 %v9573_v26  ;;  %3801 = vmatprep.subr.bf16.mxu0 %v9542_v48  ;;  %v9606_v26 = vld [vmem:[#allocation10 + $0x148] ss:$16 sps:$4 sm:$0xff]   ;;  %v9614_v48 = vld [vmem:[#allocation10 + $0x16c] ss:$16 sps:$4 sm:$0xff]  }
 0x349   :  { %5876 = vmatprep.subr.bf16.mxu1 %v9581_v28  ;;  %v9609_v28 = vld [vmem:[#allocation10 + $0x680] ss:$16 sps:$4 sm:$0xff]  }
 0x34b   :  { %3802 = vmatpush1.bf16.msra.mxu0 %v9540_v29  ;;  %v9617_v29 = vld [vmem:[#allocation10 + $0x6a4] ss:$16 sps:$4 sm:$0xff]  }
 0x34c   :  { %5877 = vmatpush1.bf16.msra.mxu1 %v9579_v6  ;;  %5969 = vmatprep.subr.bf16.mxu0 %v9548_v31  ;;  %v9612_v6 = vld [vmem:[#allocation10 + $0x168] ss:$16 sps:$4 sm:$0xff]   ;;  %v9620_v31 = vld [vmem:[#allocation10 + $0x18c] ss:$16 sps:$4 sm:$0xff]  }
 0x34d   :  { %5887 = vmatprep.subr.bf16.mxu1 %v9587_v32  ;;  %v9615_v32 = vld [vmem:[#allocation10 + $0x6a0] ss:$16 sps:$4 sm:$0xff]  }
 0x34e   :  { %3804 = vmatmul.mubr.bf16.vlgmr.msra.gmra.mrb[8].mxu0 %v10806_v18  ;;  %v748_v18 = vsub.s32 5, %v10823_v55 }
 0x34f   :  { %5970 = vmatpush1.bf16.msra.mxu0 %v9546_v33  ;;  %6001 = vmatprep.mubr.bf16.mxu0 %v10838_v20  ;;  %v9578_v20 = vld [vmem:[#allocation10 + $0xac] ss:$16 sps:$4 sm:$0xff]   ;;  %v9623_v33 = vld [vmem:[#allocation10 + $0x6c4] ss:$16 sps:$4 sm:$0xff]  }
 0x350   :  { %5971 = vmatprep.subr.bf16.mxu0 %v9554_v34  ;;  %v749_v44 = vrot.slane %v10877_v42, %v748_v18  ;;  %v9618_v34 = vld [vmem:[#allocation10 + $0x188] ss:$16 sps:$4 sm:$0xff]   ;;  %v9638_v18 = vld [vmem:[#allocation10 + $0x1ec] ss:$16 sps:$4 sm:$0xff]  }
 0x353   :  { %5972 = vmatpush1.bf16.msra.mxu0 %v9552_v35  ;;  %v9626_v35 = vld [vmem:[#allocation10 + $0x1ac] ss:$16 sps:$4 sm:$0xff]  }
 0x354   :  { %5973 = vmatprep.subr.bf16.mxu0 %v9560_v36  ;;  %v9621_v36 = vld [vmem:[#allocation10 + $0x6c0] ss:$16 sps:$4 sm:$0xff]  }
 0x357   :  { %5974 = vmatpush1.bf16.msra.mxu0 %v9558_v10  ;;  %v9629_v10 = vld [vmem:[#allocation10 + $0x6e4] ss:$16 sps:$4 sm:$0xff]  }
 0x358   :  { %5975 = vmatprep.subr.bf16.mxu0 %v9566_v37  ;;  %v9624_v37 = vld [vmem:[#allocation10 + $0x1a8] ss:$16 sps:$4 sm:$0xff]  }
 0x35b   :  { %5976 = vmatpush1.bf16.msra.mxu0 %v9564_v38  ;;  %v9632_v38 = vld [vmem:[#allocation10 + $0x1cc] ss:$16 sps:$4 sm:$0xff]  }
 0x35c   :  { %5977 = vmatprep.subr.bf16.mxu0 %v9572_v39  ;;  %v9627_v39 = vld [vmem:[#allocation10 + $0x6e0] ss:$16 sps:$4 sm:$0xff]  }
 0x35f   :  { %5978 = vmatpush1.bf16.msra.mxu0 %v9570_v41  ;;  %v9630_v41 = vld [vmem:[#allocation10 + $0x1c8] ss:$16 sps:$4 sm:$0xff]  }
 0x360   :  { %5979 = vmatprep.subr.bf16.mxu0 %v9578_v20  ;;  %v9641_v20 = vld [vmem:[#allocation10 + $0x724] ss:$16 sps:$4 sm:$0xff]  }
 0x361   :  { %v3559_v49 = vpop.f32.mrb[4].mxu0 }
 0x362   :  { %v10882_v52 = vpop.f32.mrb[4].mxu1  ;;  %v8587_v53 = vadd.f32 %v3559_v49, %v745_v43  ;;  %v3561_v54 = vpop.f32.mrb[5].mxu0  ;;  %v9636_v43 = vld [vmem:[#allocation10 + $0x1e8] ss:$16 sps:$4 sm:$0xff]   ;;  %v9650_v49 = vld [vmem:[#allocation10 + $0x22c] ss:$16 sps:$4 sm:$0xff]  }
 0x363   :  { %v3684_v56 = vpop.f32.mrb[5].mxu1  ;;  %v8588_v57 = vadd.f32 %v3561_v54, %v749_v44  ;;  %v3563_v59 = vpop.f32.mrb[6].mxu0  ;;  %5980 = vmatpush1.bf16.msra.mxu0 %v9576_v45  ;;  %v9644_v44 = vld [vmem:[#allocation10 + $0x20c] ss:$16 sps:$4 sm:$0xff]   ;;  %v9639_v45 = vld [vmem:[#allocation10 + $0x720] ss:$16 sps:$4 sm:$0xff]  }
 0x364   :  { %v8590_v61 = vadd.f32 %v3684_v56, %v757_v46  ;;  %v3686_v62 = vpop.f32.mrb[6].mxu1  ;;  %v3564_v63 = vpop.f32.mrb[7].mxu0  ;;  %5981 = vmatprep.subr.bf16.mxu0 %v9584_v47  ;;  %v10888_v11 = vpack.c.bf16 %v8587_v53, %v8587_v53  ;;  %v9647_v46 = vld [vmem:[#allocation10 + $0x744] ss:$16 sps:$4 sm:$0xff]   ;;  %v9642_v47 = vld [vmem:[#allocation10 + $0x208] ss:$16 sps:$4 sm:$0xff]  }
 0x365   :  { %v3687_v1 = vpop.f32.mrb[7].mxu1  ;;  %v10884_v3 = vpack.c.bf16 %v8588_v57, %v8588_v57  ;;  %v9645_v53 = vld [vmem:[#allocation10 + $0x740] ss:$16 sps:$4 sm:$0xff]   ;;  %v9653_v54 = vld [vmem:[#allocation10 + $0x764] ss:$16 sps:$4 sm:$0xff]  }
 0x366   :  { %v10886_v7 = vpack.c.bf16 %v8590_v61, %v8590_v61  ;;  %v9648_v56 = vld [vmem:[#allocation10 + $0x228] ss:$16 sps:$4 sm:$0xff]   ;;  %v9656_v57 = vld [vmem:[#allocation10 + $0x24c] ss:$16 sps:$4 sm:$0xff]   ;;  %v9651_v59 = vld [vmem:[#allocation10 + $0x760] ss:$16 sps:$4 sm:$0xff]  }
 0x367   :  { %5878 = vmatprep.mubr.bf16.mxu1 %v10884_v3  ;;  %5982 = vmatpush1.bf16.msra.mxu0 %v9582_v60  ;;  %v9659_v60 = vld [vmem:[#allocation10 + $0x784] ss:$16 sps:$4 sm:$0xff]   ;;  %v9654_v61 = vld [vmem:[#allocation10 + $0x248] ss:$16 sps:$4 sm:$0xff]   ;;  %v9662_v62 = vld [vmem:[#allocation10 + $0x26c] ss:$16 sps:$4 sm:$0xff]  }
 0x368   :  { %5879 = vmatmul.mubr.bf16.vlgmr.msra.gmra.mrb[8].mxu1 %v10888_v11  ;;  %5983 = vmatprep.subr.bf16.mxu0 %v9590_v0  ;;  %v9657_v63 = vld [vmem:[#allocation10 + $0x780] ss:$16 sps:$4 sm:$0xff]   ;;  %v9660_v0 = vld [vmem:[#allocation10 + $0x268] ss:$16 sps:$4 sm:$0xff]   ;;  %v9668_v1 = vld [vmem:[#allocation10 + $0x28c] ss:$16 sps:$4 sm:$0xff]  }
 0x369   :  { %5888 = vmatpush1.bf16.msra.mxu1 %v9585_v4  ;;  %5919 = vmatprep.mubr.bf16.mxu1 %v10886_v7  ;;  %v752_v4 = vsub.s32 6, %v10823_v55 }
 0x36a   :  { %5889 = vmatprep.subr.bf16.mxu1 %v9593_v14  ;;  %v9671_v14 = vld [vmem:[#allocation10 + $0x7c4] ss:$16 sps:$4 sm:$0xff]  }
 0x36b   :  { %5984 = vmatpush1.bf16.msra.mxu0 %v9588_v8  ;;  %v9666_v8 = vld [vmem:[#allocation10 + $0x288] ss:$16 sps:$4 sm:$0xff]  }
 0x36c   :  { %5985 = vmatprep.subr.bf16.mxu0 %v9596_v16  ;;  %v9674_v16 = vld [vmem:[#allocation10 + $0x2ac] ss:$16 sps:$4 sm:$0xff]  }
 0x36d   :  { %5890 = vmatpush1.bf16.msra.mxu1 %v9591_v17  ;;  %v9669_v17 = vld [vmem:[#allocation10 + $0x7c0] ss:$16 sps:$4 sm:$0xff]  }
 0x36e   :  { %5891 = vmatprep.subr.bf16.mxu1 %v9599_v19  ;;  %v753_v19 = vrot.slane %v10877_v42, %v752_v4  ;;  %v9737_v42 = vld [vmem:[#allocation10 + $0x824] ss:$16 sps:$4 sm:$0xff]  }
 0x36f   :  { %5986 = vmatpush1.bf16.msra.mxu0 %v9594_v21  ;;  %v9677_v21 = vld [vmem:[#allocation10 + $0x7e4] ss:$16 sps:$4 sm:$0xff]  }
 0x370   :  { %5987 = vmatprep.subr.bf16.mxu0 %v9602_v5  ;;  %v9672_v5 = vld [vmem:[#allocation10 + $0x2a8] ss:$16 sps:$4 sm:$0xff]   ;;  %v8589_v55 = vadd.f32 %v10882_v52, %v753_v19  ;;  %v9735_v52 = vld [vmem:[#allocation10 + $0x820] ss:$16 sps:$4 sm:$0xff]   ;;  %v9797_v4 = vld [vmem:[#allocation10 + $0x964] ss:$16 sps:$4 sm:$0xff]  }
 0x371   :  { %5892 = vmatpush1.bf16.msra.mxu1 %v9597_v22  ;;  %v9680_v22 = vld [vmem:[#allocation10 + $0x2cc] ss:$16 sps:$4 sm:$0xff]   ;;  %v9714_v19 = vld [vmem:[#allocation10 + $0x448] ss:$16 sps:$4 sm:$0xff]  }
 0x372   :  { %5893 = vmatprep.subr.bf16.mxu1 %v9605_v23  ;;  %v9675_v23 = vld [vmem:[#allocation10 + $0x7e0] ss:$16 sps:$4 sm:$0xff]  }
 0x373   :  { %5988 = vmatpush1.bf16.msra.mxu0 %v9600_v24  ;;  %v9731_v24 = vld [vmem:[#allocation10 + $0x804] ss:$16 sps:$4 sm:$0xff]  }
 0x374   :  { %5989 = vmatprep.subr.bf16.mxu0 %v9608_v25  ;;  %v9678_v25 = vld [vmem:[#allocation10 + $0x2c8] ss:$16 sps:$4 sm:$0xff]  }
 0x375   :  { %5894 = vmatpush1.bf16.msra.mxu1 %v9603_v13  ;;  %v9683_v13 = vld [vmem:[#allocation10 + $0x2ec] ss:$16 sps:$4 sm:$0xff]  }
 0x376   :  { %5895 = vmatprep.subr.bf16.mxu1 %v9611_v30  ;;  %v9729_v30 = vld [vmem:[#allocation10 + $0x800] ss:$16 sps:$4 sm:$0xff]  }
 0x377   :  { %5990 = vmatpush1.bf16.msra.mxu0 %v9606_v26  ;;  %v10898_v26 = vpack.c.bf16 %v8589_v55, %v8589_v55  ;;  %v9815_v55 = vld [vmem:[#allocation10 + $0x9c4] ss:$16 sps:$4 sm:$0xff]  }
 0x378   :  { %5991 = vmatprep.subr.bf16.mxu0 %v9614_v48  ;;  %v9681_v48 = vld [vmem:[#allocation10 + $0x2e8] ss:$16 sps:$4 sm:$0xff]  }
 0x379   :  { %5896 = vmatpush1.bf16.msra.mxu1 %v9609_v28  ;;  %v9686_v28 = vld [vmem:[#allocation10 + $0x30c] ss:$16 sps:$4 sm:$0xff]  }
 0x37a   :  { %5897 = vmatprep.subr.bf16.mxu1 %v9617_v29  ;;  %v9743_v29 = vld [vmem:[#allocation10 + $0x844] ss:$16 sps:$4 sm:$0xff]  }
 0x37b   :  { %5992 = vmatpush1.bf16.msra.mxu0 %v9612_v6  ;;  %v9684_v6 = vld [vmem:[#allocation10 + $0x308] ss:$16 sps:$4 sm:$0xff]  }
 0x37c   :  { %5993 = vmatprep.subr.bf16.mxu0 %v9620_v31  ;;  %v9689_v31 = vld [vmem:[#allocation10 + $0x32c] ss:$16 sps:$4 sm:$0xff]  }
 0x37d   :  { %5898 = vmatpush1.bf16.msra.mxu1 %v9615_v32  ;;  %v9741_v32 = vld [vmem:[#allocation10 + $0x840] ss:$16 sps:$4 sm:$0xff]  }
 0x37e   :  { %5899 = vmatprep.subr.bf16.mxu1 %v9623_v33  ;;  %v9749_v33 = vld [vmem:[#allocation10 + $0x864] ss:$16 sps:$4 sm:$0xff]  }
 0x37f   :  { %5994 = vmatpush1.bf16.msra.mxu0 %v9618_v34  ;;  %v9687_v34 = vld [vmem:[#allocation10 + $0x328] ss:$16 sps:$4 sm:$0xff]  }
 0x380   :  { %5995 = vmatprep.subr.bf16.mxu0 %v9626_v35  ;;  %v9692_v35 = vld [vmem:[#allocation10 + $0x34c] ss:$16 sps:$4 sm:$0xff]  }
 0x381   :  { %5900 = vmatpush1.bf16.msra.mxu1 %v9621_v36  ;;  %v9747_v36 = vld [vmem:[#allocation10 + $0x860] ss:$16 sps:$4 sm:$0xff]  }
 0x382   :  { %5901 = vmatprep.subr.bf16.mxu1 %v9629_v10  ;;  %v9755_v10 = vld [vmem:[#allocation10 + $0x884] ss:$16 sps:$4 sm:$0xff]  }
 0x383   :  { %5996 = vmatpush1.bf16.msra.mxu0 %v9624_v37  ;;  %v9690_v37 = vld [vmem:[#allocation10 + $0x348] ss:$16 sps:$4 sm:$0xff]  }
 0x384   :  { %5997 = vmatprep.subr.bf16.mxu0 %v9632_v38  ;;  %v9695_v38 = vld [vmem:[#allocation10 + $0x36c] ss:$16 sps:$4 sm:$0xff]  }
 0x385   :  { %5902 = vmatpush1.bf16.msra.mxu1 %v9627_v39  ;;  %v9753_v39 = vld [vmem:[#allocation10 + $0x880] ss:$16 sps:$4 sm:$0xff]  }
 0x386   :  { %5903 = vmatprep.subr.bf16.mxu1 %v9635_v40  ;;  %v9761_v40 = vld [vmem:[#allocation10 + $0x8a4] ss:$16 sps:$4 sm:$0xff]  }
 0x387   :  { %5998 = vmatpush1.bf16.msra.mxu0 %v9630_v41  ;;  %v9693_v41 = vld [vmem:[#allocation10 + $0x368] ss:$16 sps:$4 sm:$0xff]  }
 0x388   :  { %5999 = vmatprep.subr.bf16.mxu0 %v9638_v18  ;;  %v9698_v18 = vld [vmem:[#allocation10 + $0x38c] ss:$16 sps:$4 sm:$0xff]  }
 0x389   :  { %5904 = vmatpush1.bf16.msra.mxu1 %v9633_v15  ;;  %v9759_v15 = vld [vmem:[#allocation10 + $0x8a0] ss:$16 sps:$4 sm:$0xff]  }
 0x38a   :  { %5905 = vmatprep.subr.bf16.mxu1 %v9641_v20  ;;  %v9767_v20 = vld [vmem:[#allocation10 + $0x8c4] ss:$16 sps:$4 sm:$0xff]  }
 0x38b   :  { %6000 = vmatpush1.bf16.msra.mxu0 %v9636_v43  ;;  %v9696_v43 = vld [vmem:[#allocation10 + $0x388] ss:$16 sps:$4 sm:$0xff]  }
 0x38c   :  { %6010 = vmatprep.subr.bf16.mxu0 %v9644_v44  ;;  %v9701_v44 = vld [vmem:[#allocation10 + $0x3ac] ss:$16 sps:$4 sm:$0xff]  }
 0x38d   :  { %5906 = vmatpush1.bf16.msra.mxu1 %v9639_v45  ;;  %v9765_v45 = vld [vmem:[#allocation10 + $0x8c0] ss:$16 sps:$4 sm:$0xff]  }
 0x38e   :  { %6002 = vmatmul.mubr.bf16.vlgmr.msra.gmra.mrb[12].mxu0 %v10853_v9  ;;  %5907 = vmatprep.subr.bf16.mxu1 %v9647_v46  ;;  %v9665_v9 = vld [vmem:[#allocation10 + $0x7a4] ss:$16 sps:$4 sm:$0xff]  }
 0x38f   :  { %6011 = vmatpush1.bf16.msra.mxu0 %v9642_v47  ;;  %6042 = vmatprep.mubr.bf16.mxu0 %v10855_v12  ;;  %v9663_v12 = vld [vmem:[#allocation10 + $0x7a0] ss:$16 sps:$4 sm:$0xff]   ;;  %v9773_v46 = vld [vmem:[#allocation10 + $0x8e4] ss:$16 sps:$4 sm:$0xff]   ;;  %v9699_v47 = vld [vmem:[#allocation10 + $0x3a8] ss:$16 sps:$4 sm:$0xff]  }
 0x390   :  { %6012 = vmatprep.subr.bf16.mxu0 %v9650_v49  ;;  %v9704_v49 = vld [vmem:[#allocation10 + $0x3cc] ss:$16 sps:$4 sm:$0xff]  }
 0x391   :  { %5908 = vmatpush1.bf16.msra.mxu1 %v9645_v53  ;;  %v9771_v53 = vld [vmem:[#allocation10 + $0x8e0] ss:$16 sps:$4 sm:$0xff]  }
 0x392   :  { %5909 = vmatprep.subr.bf16.mxu1 %v9653_v54  ;;  %v9779_v54 = vld [vmem:[#allocation10 + $0x904] ss:$16 sps:$4 sm:$0xff]  }
 0x393   :  { %6013 = vmatpush1.bf16.msra.mxu0 %v9648_v56  ;;  %v9702_v56 = vld [vmem:[#allocation10 + $0x3c8] ss:$16 sps:$4 sm:$0xff]  }
 0x394   :  { %6014 = vmatprep.subr.bf16.mxu0 %v9656_v57  ;;  %v9707_v57 = vld [vmem:[#allocation10 + $0x3ec] ss:$16 sps:$4 sm:$0xff]  }
 0x395   :  { %5910 = vmatpush1.bf16.msra.mxu1 %v9651_v59  ;;  %v9777_v59 = vld [vmem:[#allocation10 + $0x900] ss:$16 sps:$4 sm:$0xff]  }
 0x396   :  { %5911 = vmatprep.subr.bf16.mxu1 %v9659_v60  ;;  %v9785_v60 = vld [vmem:[#allocation10 + $0x924] ss:$16 sps:$4 sm:$0xff]  }
 0x397   :  { %6015 = vmatpush1.bf16.msra.mxu0 %v9654_v61  ;;  %v9705_v61 = vld [vmem:[#allocation10 + $0x3e8] ss:$16 sps:$4 sm:$0xff]  }
 0x398   :  { %6016 = vmatprep.subr.bf16.mxu0 %v9662_v62  ;;  %v9710_v62 = vld [vmem:[#allocation10 + $0x40c] ss:$16 sps:$4 sm:$0xff]  }
 0x399   :  { %5912 = vmatpush1.bf16.msra.mxu1 %v9657_v63  ;;  %v9783_v63 = vld [vmem:[#allocation10 + $0x920] ss:$16 sps:$4 sm:$0xff]  }
 0x39a   :  { %5913 = vmatprep.subr.bf16.mxu1 %v9665_v9  ;;  %v9791_v9 = vld [vmem:[#allocation10 + $0x944] ss:$16 sps:$4 sm:$0xff]  }
 0x39b   :  { %6017 = vmatpush1.bf16.msra.mxu0 %v9660_v0  ;;  %v9708_v0 = vld [vmem:[#allocation10 + $0x408] ss:$16 sps:$4 sm:$0xff]  }
 0x39c   :  { %6018 = vmatprep.subr.bf16.mxu0 %v9668_v1  ;;  %v9713_v1 = vld [vmem:[#allocation10 + $0x42c] ss:$16 sps:$4 sm:$0xff]  }
 0x39d   :  { %5914 = vmatpush1.bf16.msra.mxu1 %v9663_v12  ;;  %v9789_v12 = vld [vmem:[#allocation10 + $0x940] ss:$16 sps:$4 sm:$0xff]  }
 0x39e   :  { %5915 = vmatprep.subr.bf16.mxu1 %v9671_v14  ;;  %v9711_v14 = vld [vmem:[#allocation10 + $0x428] ss:$16 sps:$4 sm:$0xff]  }
 0x39f   :  { %6019 = vmatpush1.bf16.msra.mxu0 %v9666_v8  ;;  %v9716_v8 = vld [vmem:[#allocation10 + $0x44c] ss:$16 sps:$4 sm:$0xff]  }
 0x3a0   :  { %6020 = vmatprep.subr.bf16.mxu0 %v9674_v16  ;;  %v9795_v16 = vld [vmem:[#allocation10 + $0x960] ss:$16 sps:$4 sm:$0xff]  }
 0x3a1   :  { %5916 = vmatpush1.bf16.msra.mxu1 %v9669_v17  ;;  %v9803_v17 = vld [vmem:[#allocation10 + $0x984] ss:$16 sps:$4 sm:$0xff]  }
 0x3a2   :  { %5917 = vmatprep.subr.bf16.mxu1 %v9677_v21  ;;  %v9719_v21 = vld [vmem:[#allocation10 + $0x46c] ss:$16 sps:$4 sm:$0xff]  }
 0x3a3   :  { %6021 = vmatpush1.bf16.msra.mxu0 %v9672_v5  ;;  %v9801_v5 = vld [vmem:[#allocation10 + $0x980] ss:$16 sps:$4 sm:$0xff]  }
 0x3a4   :  { %6022 = vmatprep.subr.bf16.mxu0 %v9680_v22  ;;  %v9717_v22 = vld [vmem:[#allocation10 + $0x468] ss:$16 sps:$4 sm:$0xff]  }
 0x3a5   :  { %5918 = vmatpush1.bf16.msra.mxu1 %v9675_v23  ;;  %v9722_v23 = vld [vmem:[#allocation10 + $0x48c] ss:$16 sps:$4 sm:$0xff]  }
 0x3a6   :  { %5928 = vmatprep.subr.bf16.mxu1 %v9731_v24  ;;  %v9720_v24 = vld [vmem:[#allocation10 + $0x488] ss:$16 sps:$4 sm:$0xff]  }
 0x3a7   :  { %6023 = vmatpush1.bf16.msra.mxu0 %v9678_v25  ;;  %v9725_v25 = vld [vmem:[#allocation10 + $0x4ac] ss:$16 sps:$4 sm:$0xff]  }
 0x3a8   :  { %5920 = vmatmul.mubr.bf16.vlgmr.msra.gmra.mrb[8].mxu1 %v10898_v26  ;;  %6024 = vmatprep.subr.bf16.mxu0 %v9683_v13  ;;  %v9813_v13 = vld [vmem:[#allocation10 + $0x9c0] ss:$16 sps:$4 sm:$0xff]  }
 0x3a9   :  { %5929 = vmatpush1.bf16.msra.mxu1 %v9729_v30  ;;  %v9821_v30 = vld [vmem:[#allocation10 + $0x9e4] ss:$16 sps:$4 sm:$0xff]  }
 0x3aa   :  { %5930 = vmatprep.subr.bf16.mxu1 %v9737_v42  ;;  %v9723_v42 = vld [vmem:[#allocation10 + $0x4a8] ss:$16 sps:$4 sm:$0xff]  }
 0x3ab   :  { %6025 = vmatpush1.bf16.msra.mxu0 %v9681_v48  ;;  %v9728_v48 = vld [vmem:[#allocation10 + $0x4cc] ss:$16 sps:$4 sm:$0xff]  }
 0x3ac   :  { %6026 = vmatprep.subr.bf16.mxu0 %v9686_v28  ;;  %v9819_v28 = vld [vmem:[#allocation10 + $0x9e0] ss:$16 sps:$4 sm:$0xff]  }
 0x3ad   :  { %5931 = vmatpush1.bf16.msra.mxu1 %v9735_v52  ;;  %v9726_v52 = vld [vmem:[#allocation10 + $0x4c8] ss:$16 sps:$4 sm:$0xff]  }
 0x3ae   :  { %5932 = vmatprep.subr.bf16.mxu1 %v9743_v29  ;;  %v9734_v29 = vld [vmem:[#allocation10 + $0x4ec] ss:$16 sps:$4 sm:$0xff]  }
 0x3af   :  { %6027 = vmatpush1.bf16.msra.mxu0 %v9684_v6  ;;  %v9732_v6 = vld [vmem:[#allocation10 + $0x4e8] ss:$16 sps:$4 sm:$0xff]  }
 0x3b0   :  { %6028 = vmatprep.subr.bf16.mxu0 %v9689_v31  ;;  %v9740_v31 = vld [vmem:[#allocation10 + $0x50c] ss:$16 sps:$4 sm:$0xff]  }
 0x3b1   :  { %5933 = vmatpush1.bf16.msra.mxu1 %v9741_v32  ;;  %v9738_v32 = vld [vmem:[#allocation10 + $0x508] ss:$16 sps:$4 sm:$0xff]  }
 0x3b2   :  { %5934 = vmatprep.subr.bf16.mxu1 %v9749_v33  ;;  %v9746_v33 = vld [vmem:[#allocation10 + $0x52c] ss:$16 sps:$4 sm:$0xff]  }
 0x3b3   :  { %6029 = vmatpush1.bf16.msra.mxu0 %v9687_v34  ;;  %v9744_v34 = vld [vmem:[#allocation10 + $0x528] ss:$16 sps:$4 sm:$0xff]  }
 0x3b4   :  { %6030 = vmatprep.subr.bf16.mxu0 %v9692_v35  ;;  %v9752_v35 = vld [vmem:[#allocation10 + $0x54c] ss:$16 sps:$4 sm:$0xff]  }
 0x3b5   :  { %5935 = vmatpush1.bf16.msra.mxu1 %v9747_v36  ;;  %v9750_v36 = vld [vmem:[#allocation10 + $0x548] ss:$16 sps:$4 sm:$0xff]  }
 0x3b6   :  { %5936 = vmatprep.subr.bf16.mxu1 %v9755_v10  ;;  %v9758_v10 = vld [vmem:[#allocation10 + $0x56c] ss:$16 sps:$4 sm:$0xff]  }
 0x3b7   :  { %6031 = vmatpush1.bf16.msra.mxu0 %v9690_v37  ;;  %v9756_v37 = vld [vmem:[#allocation10 + $0x568] ss:$16 sps:$4 sm:$0xff]  }
 0x3b8   :  { %6032 = vmatprep.subr.bf16.mxu0 %v9695_v38  ;;  %v9764_v38 = vld [vmem:[#allocation10 + $0x58c] ss:$16 sps:$4 sm:$0xff]  }
 0x3b9   :  { %5937 = vmatpush1.bf16.msra.mxu1 %v9753_v39  ;;  %v9762_v39 = vld [vmem:[#allocation10 + $0x588] ss:$16 sps:$4 sm:$0xff]  }
 0x3ba   :  { %5938 = vmatprep.subr.bf16.mxu1 %v9761_v40  ;;  %v9770_v40 = vld [vmem:[#allocation10 + $0x5ac] ss:$16 sps:$4 sm:$0xff]  }
 0x3bb   :  { %6033 = vmatpush1.bf16.msra.mxu0 %v9693_v41  ;;  %v9768_v41 = vld [vmem:[#allocation10 + $0x5a8] ss:$16 sps:$4 sm:$0xff]  }
 0x3bc   :  { %6034 = vmatprep.subr.bf16.mxu0 %v9698_v18  ;;  %v9776_v18 = vld [vmem:[#allocation10 + $0x5cc] ss:$16 sps:$4 sm:$0xff]  }
 0x3bd   :  { %5939 = vmatpush1.bf16.msra.mxu1 %v9759_v15  ;;  %v9774_v15 = vld [vmem:[#allocation10 + $0x5c8] ss:$16 sps:$4 sm:$0xff]  }
 0x3be   :  { %5940 = vmatprep.subr.bf16.mxu1 %v9767_v20  ;;  %v9782_v20 = vld [vmem:[#allocation10 + $0x5ec] ss:$16 sps:$4 sm:$0xff]  }
 0x3bf   :  { %6035 = vmatpush1.bf16.msra.mxu0 %v9696_v43  ;;  %v9780_v43 = vld [vmem:[#allocation10 + $0x5e8] ss:$16 sps:$4 sm:$0xff]  }
 0x3c0   :  { %6036 = vmatprep.subr.bf16.mxu0 %v9701_v44  ;;  %v9788_v44 = vld [vmem:[#allocation10 + $0x60c] ss:$16 sps:$4 sm:$0xff]  }
 0x3c1   :  { %5941 = vmatpush1.bf16.msra.mxu1 %v9765_v45  ;;  %v9786_v45 = vld [vmem:[#allocation10 + $0x608] ss:$16 sps:$4 sm:$0xff]  }
 0x3c2   :  { %5942 = vmatprep.subr.bf16.mxu1 %v9773_v46  ;;  %v9794_v46 = vld [vmem:[#allocation10 + $0x62c] ss:$16 sps:$4 sm:$0xff]  }
 0x3c3   :  { %6037 = vmatpush1.bf16.msra.mxu0 %v9699_v47  ;;  %v9792_v47 = vld [vmem:[#allocation10 + $0x628] ss:$16 sps:$4 sm:$0xff]  }
 0x3c4   :  { %6038 = vmatprep.subr.bf16.mxu0 %v9704_v49  ;;  %v9800_v49 = vld [vmem:[#allocation10 + $0x64c] ss:$16 sps:$4 sm:$0xff]  }
 0x3c5   :  { %5943 = vmatpush1.bf16.msra.mxu1 %v9771_v53  ;;  %v9798_v53 = vld [vmem:[#allocation10 + $0x648] ss:$16 sps:$4 sm:$0xff]  }
 0x3c6   :  { %5944 = vmatprep.subr.bf16.mxu1 %v9779_v54  ;;  %v9806_v54 = vld [vmem:[#allocation10 + $0x66c] ss:$16 sps:$4 sm:$0xff]  }
 0x3c7   :  { %6039 = vmatpush1.bf16.msra.mxu0 %v9702_v56  ;;  %v9804_v56 = vld [vmem:[#allocation10 + $0x668] ss:$16 sps:$4 sm:$0xff]  }
 0x3c8   :  { %6040 = vmatprep.subr.bf16.mxu0 %v9707_v57  ;;  %v9812_v57 = vld [vmem:[#allocation10 + $0x68c] ss:$16 sps:$4 sm:$0xff]  }
 0x3c9   :  { %5945 = vmatpush1.bf16.msra.mxu1 %v9777_v59  ;;  %v9810_v59 = vld [vmem:[#allocation10 + $0x688] ss:$16 sps:$4 sm:$0xff]  }
 0x3ca   :  { %5946 = vmatprep.subr.bf16.mxu1 %v9785_v60  ;;  %v723_v60 = vld [vmem:[#allocation8 + $0x8] sm:$0x3] }
 0x3cb   :  { %6041 = vmatpush1.bf16.msra.mxu0 %v9705_v61  ;;  %v9818_v61 = vld [vmem:[#allocation10 + $0x6ac] ss:$16 sps:$4 sm:$0xff]  }
 0x3cc   :  { %6051 = vmatprep.subr.bf16.mxu0 %v9710_v62  ;;  %v9816_v62 = vld [vmem:[#allocation10 + $0x6a8] ss:$16 sps:$4 sm:$0xff]  }
 0x3cd   :  { %5947 = vmatpush1.bf16.msra.mxu1 %v9783_v63  ;;  %v9824_v63 = vld [vmem:[#allocation10 + $0x6cc] ss:$16 sps:$4 sm:$0xff]  }
 0x3ce   :  { %6043 = vmatmul.mubr.bf16.vlgmr.msra.gmra.mrb[12].mxu0 %v10867_v27  ;;  %5948 = vmatprep.subr.bf16.mxu1 %v9791_v9  ;;  %v9809_v27 = vld [vmem:[#allocation10 + $0x9a4] ss:$16 sps:$4 sm:$0xff]  }
 0x3cf   :  { %6052 = vmatpush1.bf16.msra.mxu0 %v9708_v0  ;;  %6083 = vmatprep.mubr.bf16.mxu0 %v10884_v3  ;;  %v9807_v3 = vld [vmem:[#allocation10 + $0x9a0] ss:$16 sps:$4 sm:$0xff]  }
 0x3d0   :  { %6053 = vmatprep.subr.bf16.mxu0 %v9713_v1 }
 0x3d1   :  { %5949 = vmatpush1.bf16.msra.mxu1 %v9789_v12 }
 0x3d2   :  { %5950 = vmatprep.subr.bf16.mxu1 %v9797_v4 }
 0x3d3   :  { %6054 = vmatpush1.bf16.msra.mxu0 %v9711_v14  ;;  %v9822_v14 = vld [vmem:[#allocation10 + $0x6c8] ss:$16 sps:$4 sm:$0xff]  }
 0x3d4   :  { %6055 = vmatprep.subr.bf16.mxu0 %v9716_v8 }
 0x3d5   :  { %5951 = vmatpush1.bf16.msra.mxu1 %v9795_v16  ;;  %v9827_v16 = vld [vmem:[#allocation10 + $0x6ec] ss:$16 sps:$4 sm:$0xff]  }
 0x3d6   :  { %5952 = vmatprep.subr.bf16.mxu1 %v9803_v17 }
 0x3d7   :  { %6056 = vmatpush1.bf16.msra.mxu0 %v9714_v19 }
 0x3d8   :  { %6057 = vmatprep.subr.bf16.mxu0 %v9719_v21  ;;  %v9825_v21 = vld [vmem:[#allocation10 + $0x6e8] ss:$16 sps:$4 sm:$0xff]  }
 0x3d9   :  { %5953 = vmatpush1.bf16.msra.mxu1 %v9801_v5  ;;  %v9830_v5 = vld [vmem:[#allocation10 + $0x70c] ss:$16 sps:$4 sm:$0xff]  }
 0x3da   :  { %5954 = vmatprep.subr.bf16.mxu1 %v9809_v27  ;;  %v9828_v27 = vld [vmem:[#allocation10 + $0x708] ss:$16 sps:$4 sm:$0xff]  }
 0x3db   :  { %6058 = vmatpush1.bf16.msra.mxu0 %v9717_v22  ;;  %v9833_v22 = vld [vmem:[#allocation10 + $0x72c] ss:$16 sps:$4 sm:$0xff]  }
 0x3dc   :  { %6059 = vmatprep.subr.bf16.mxu0 %v9722_v23  ;;  %v9831_v23 = vld [vmem:[#allocation10 + $0x728] ss:$16 sps:$4 sm:$0xff]  }
 0x3dd   :  { %5955 = vmatpush1.bf16.msra.mxu1 %v9807_v3  ;;  %v9836_v3 = vld [vmem:[#allocation10 + $0x74c] ss:$16 sps:$4 sm:$0xff]  }
 0x3de   :  { %5956 = vmatprep.subr.bf16.mxu1 %v9815_v55  ;;  %v9834_v55 = vld [vmem:[#allocation10 + $0x748] ss:$16 sps:$4 sm:$0xff]  }
 0x3df   :  { %6060 = vmatpush1.bf16.msra.mxu0 %v9720_v24  ;;  %v9839_v24 = vld [vmem:[#allocation10 + $0x76c] ss:$16 sps:$4 sm:$0xff]  }
 0x3e0   :  { %6061 = vmatprep.subr.bf16.mxu0 %v9725_v25  ;;  %v9837_v25 = vld [vmem:[#allocation10 + $0x768] ss:$16 sps:$4 sm:$0xff]  }
 0x3e1   :  { %5957 = vmatpush1.bf16.msra.mxu1 %v9813_v13  ;;  %v9842_v13 = vld [vmem:[#allocation10 + $0x78c] ss:$16 sps:$4 sm:$0xff]  }
 0x3e2   :  { %5958 = vmatprep.subr.bf16.mxu1 %v9821_v30  ;;  %v9840_v30 = vld [vmem:[#allocation10 + $0x788] ss:$16 sps:$4 sm:$0xff]  }
 0x3e3   :  { %6062 = vmatpush1.bf16.msra.mxu0 %v9723_v42  ;;  %v9845_v42 = vld [vmem:[#allocation10 + $0x7ac] ss:$16 sps:$4 sm:$0xff]  }
 0x3e4   :  { %6063 = vmatprep.subr.bf16.mxu0 %v9728_v48  ;;  %v9843_v48 = vld [vmem:[#allocation10 + $0x7a8] ss:$16 sps:$4 sm:$0xff]  }
 0x3e5   :  { %5959 = vmatpush1.bf16.msra.mxu1 %v9819_v28  ;;  %v9848_v28 = vld [vmem:[#allocation10 + $0x7cc] ss:$16 sps:$4 sm:$0xff]  }
 0x3e7   :  { %6064 = vmatpush1.bf16.msra.mxu0 %v9726_v52  ;;  %v9846_v52 = vld [vmem:[#allocation10 + $0x7c8] ss:$16 sps:$4 sm:$0xff]  }
 0x3e8   :  { %6065 = vmatprep.subr.bf16.mxu0 %v9734_v29  ;;  %v9851_v29 = vld [vmem:[#allocation10 + $0x7ec] ss:$16 sps:$4 sm:$0xff]  }
 0x3eb   :  { %6066 = vmatpush1.bf16.msra.mxu0 %v9732_v6  ;;  %v9849_v6 = vld [vmem:[#allocation10 + $0x7e8] ss:$16 sps:$4 sm:$0xff]  }
 0x3ec   :  { %6067 = vmatprep.subr.bf16.mxu0 %v9740_v31  ;;  %v9854_v31 = vld [vmem:[#allocation10 + $0x80c] ss:$16 sps:$4 sm:$0xff]  }
 0x3ef   :  { %6068 = vmatpush1.bf16.msra.mxu0 %v9738_v32  ;;  %v9852_v32 = vld [vmem:[#allocation10 + $0x808] ss:$16 sps:$4 sm:$0xff]  }
 0x3f0   :  { %6069 = vmatprep.subr.bf16.mxu0 %v9746_v33  ;;  %v9857_v33 = vld [vmem:[#allocation10 + $0x82c] ss:$16 sps:$4 sm:$0xff]  }
 0x3f3   :  { %6070 = vmatpush1.bf16.msra.mxu0 %v9744_v34  ;;  %v9855_v34 = vld [vmem:[#allocation10 + $0x828] ss:$16 sps:$4 sm:$0xff]  }
 0x3f4   :  { %6071 = vmatprep.subr.bf16.mxu0 %v9752_v35  ;;  %v9860_v35 = vld [vmem:[#allocation10 + $0x84c] ss:$16 sps:$4 sm:$0xff]  }
 0x3f7   :  { %6072 = vmatpush1.bf16.msra.mxu0 %v9750_v36  ;;  %v9858_v36 = vld [vmem:[#allocation10 + $0x848] ss:$16 sps:$4 sm:$0xff]  }
 0x3f8   :  { %6073 = vmatprep.subr.bf16.mxu0 %v9758_v10  ;;  %v9863_v10 = vld [vmem:[#allocation10 + $0x86c] ss:$16 sps:$4 sm:$0xff]  }
 0x3fb   :  { %6074 = vmatpush1.bf16.msra.mxu0 %v9756_v37  ;;  %v9861_v37 = vld [vmem:[#allocation10 + $0x868] ss:$16 sps:$4 sm:$0xff]  }
 0x3fc   :  { %6075 = vmatprep.subr.bf16.mxu0 %v9764_v38  ;;  %v9866_v38 = vld [vmem:[#allocation10 + $0x88c] ss:$16 sps:$4 sm:$0xff]  }
 0x3ff   :  { %6076 = vmatpush1.bf16.msra.mxu0 %v9762_v39  ;;  %v9864_v39 = vld [vmem:[#allocation10 + $0x888] ss:$16 sps:$4 sm:$0xff]  }
 0x400   :  { %6077 = vmatprep.subr.bf16.mxu0 %v9770_v40  ;;  %v9869_v40 = vld [vmem:[#allocation10 + $0x8ac] ss:$16 sps:$4 sm:$0xff]  }
 0x403   :  { %6078 = vmatpush1.bf16.msra.mxu0 %v9768_v41  ;;  %v9867_v41 = vld [vmem:[#allocation10 + $0x8a8] ss:$16 sps:$4 sm:$0xff]  }
 0x404   :  { %6079 = vmatprep.subr.bf16.mxu0 %v9776_v18  ;;  %v9870_v18 = vld [vmem:[#allocation10 + $0x8c8] ss:$16 sps:$4 sm:$0xff]  }
 0x407   :  { %6080 = vmatpush1.bf16.msra.mxu0 %v9774_v15  ;;  %v9875_v15 = vld [vmem:[#allocation10 + $0x8ec] ss:$16 sps:$4 sm:$0xff]  }
 0x408   :  { %6081 = vmatprep.subr.bf16.mxu0 %v9782_v20  ;;  %v9873_v20 = vld [vmem:[#allocation10 + $0x8e8] ss:$16 sps:$4 sm:$0xff]  }
 0x40b   :  { %6082 = vmatpush1.bf16.msra.mxu0 %v9780_v43  ;;  %v9878_v43 = vld [vmem:[#allocation10 + $0x90c] ss:$16 sps:$4 sm:$0xff]  }
 0x40c   :  { %6092 = vmatprep.subr.bf16.mxu0 %v9788_v44  ;;  %v9876_v44 = vld [vmem:[#allocation10 + $0x908] ss:$16 sps:$4 sm:$0xff]  }
 0x40e   :  { %6084 = vmatmul.mubr.bf16.vlgmr.msra.gmra.mrb[12].mxu0 %v10888_v11  ;;  %v761_v11 = vrot.slane %v723_v60, %v10842_v50 }
 0x40f   :  { %6093 = vmatpush1.bf16.msra.mxu0 %v9786_v45  ;;  %6124 = vmatprep.mubr.bf16.mxu0 %v10886_v7  ;;  %v765_v7 = vrot.slane %v723_v60, %v10828_v58  ;;  %v9881_v45 = vld [vmem:[#allocation10 + $0x92c] ss:$16 sps:$4 sm:$0xff]   ;;  %v9900_v60 = vld [vmem:[#allocation13 + $0x40] sm:$0xff]  }
 0x410   :  { %6094 = vmatprep.subr.bf16.mxu0 %v9794_v46  ;;  %v9879_v46 = vld [vmem:[#allocation10 + $0x928] ss:$16 sps:$4 sm:$0xff]   ;;  %8495 = vmatprep.subr.bf16.mxu1 %v9900_v60 }
 0x413   :  { %6095 = vmatpush1.bf16.msra.mxu0 %v9792_v47  ;;  %v9884_v47 = vld [vmem:[#allocation10 + $0x94c] ss:$16 sps:$4 sm:$0xff]  }
 0x414   :  { %6096 = vmatprep.subr.bf16.mxu0 %v9800_v49  ;;  %v9882_v49 = vld [vmem:[#allocation10 + $0x948] ss:$16 sps:$4 sm:$0xff]  }
 0x417   :  { %6097 = vmatpush1.bf16.msra.mxu0 %v9798_v53  ;;  %v9887_v53 = vld [vmem:[#allocation10 + $0x96c] ss:$16 sps:$4 sm:$0xff]  }
 0x418   :  { %6098 = vmatprep.subr.bf16.mxu0 %v9806_v54  ;;  %v9885_v54 = vld [vmem:[#allocation10 + $0x968] ss:$16 sps:$4 sm:$0xff]  }
 0x41b   :  { %6099 = vmatpush1.bf16.msra.mxu0 %v9804_v56  ;;  %v9890_v56 = vld [vmem:[#allocation10 + $0x98c] ss:$16 sps:$4 sm:$0xff]  }
 0x41c   :  { %6100 = vmatprep.subr.bf16.mxu0 %v9812_v57  ;;  %v9888_v57 = vld [vmem:[#allocation10 + $0x988] ss:$16 sps:$4 sm:$0xff]  }
 0x41f   :  { %6101 = vmatpush1.bf16.msra.mxu0 %v9810_v59  ;;  %v9893_v59 = vld [vmem:[#allocation10 + $0x9ac] ss:$16 sps:$4 sm:$0xff]  }
 0x420   :  { %6102 = vmatprep.subr.bf16.mxu0 %v9818_v61  ;;  %v9901_v61 = vld [vmem:[#allocation13] sm:$0xff]  }
 0x421   :  { %v3805_v9 = vpop.f32.mrb[8].mxu0 }
 0x422   :  { %v8591_v0 = vadd.f32 %v3805_v9, %v761_v11  ;;  %v3807_v1 = vpop.f32.mrb[9].mxu0  ;;  %v9891_v11 = vld [vmem:[#allocation10 + $0x9a8] ss:$16 sps:$4 sm:$0xff]  }
 0x423   :  { %v8592_v12 = vadd.f32 %v3807_v1, %v765_v7  ;;  %v3809_v4 = vpop.f32.mrb[10].mxu0  ;;  %6103 = vmatpush1.bf16.msra.mxu0 %v9816_v62  ;;  %v9896_v7 = vld [vmem:[#allocation10 + $0x9cc] ss:$16 sps:$4 sm:$0xff]   ;;  %v9894_v9 = vld [vmem:[#allocation10 + $0x9c8] ss:$16 sps:$4 sm:$0xff]  }
 0x424   :  { %v3810_v8 = vpop.f32.mrb[11].mxu0  ;;  %6104 = vmatprep.subr.bf16.mxu0 %v9824_v63  ;;  %v10907_v19 = vpack.c.bf16 %v8591_v0, %v8591_v0  ;;  %v9902_v62 = vld [vmem:[#allocation13 + $0x48] sm:$0xff]   ;;  %v9904_v1 = vld [vmem:[#allocation13 + $0x50] sm:$0xff]  }
 0x425   :  { %v3821_v17 = vpack.c.bf16 %v8592_v12, %v8592_v12  ;;  %v9903_v63 = vld [vmem:[#allocation13 + $0x8] sm:$0xff]   ;;  %v9905_v12 = vld [vmem:[#allocation13 + $0x10] sm:$0xff]   ;;  %v9907_v8 = vld [vmem:[#allocation13 + $0x18] sm:$0xff]  }
 0x426   :  { %v9899_v0 = vld [vmem:[#allocation10 + $0x9ec] ss:$16 sps:$4 sm:$0xff]   ;;  %v9897_v4 = vld [vmem:[#allocation10 + $0x9e8] ss:$16 sps:$4 sm:$0xff]  }
 0x427   :  { %5960 = vmatprep.mubr.bf16.mxu1 %v3821_v17  ;;  %6105 = vmatpush1.bf16.msra.mxu0 %v9822_v14  ;;  %v9906_v14 = vld [vmem:[#allocation13 + $0x58] sm:$0xff]  }
 0x428   :  { %5961 = vmatmul.mubr.bf16.vlgmr.msra.gmra.mrb[8].mxu1 %v10907_v19  ;;  %6106 = vmatprep.subr.bf16.mxu0 %v9827_v16  ;;  %v9908_v16 = vld [vmem:[#allocation13 + $0x60] sm:$0xff]  }
 0x429   :  { %8496 = vmatpush3.bf16.msra.mxu1 %v9901_v61 }
 0x42a   :  { %8497 = vmatprep.subr.bf16.mxu1 %v9902_v62 }
 0x42b   :  { %6107 = vmatpush1.bf16.msra.mxu0 %v9825_v21  ;;  %v9910_v21 = vld [vmem:[#allocation13 + $0x68] sm:$0xff]  }
 0x42c   :  { %6108 = vmatprep.subr.bf16.mxu0 %v9830_v5  ;;  %v9911_v5 = vld [vmem:[#allocation13 + $0x28] sm:$0xff]  }
 0x42d   :  { %8498 = vmatpush3.bf16.msra.mxu1 %v9903_v63 }
 0x42e   :  { %8499 = vmatprep.subr.bf16.mxu1 %v9904_v1 }
 0x42f   :  { %6109 = vmatpush1.bf16.msra.mxu0 %v9828_v27  ;;  %v9912_v27 = vld [vmem:[#allocation13 + $0x70] sm:$0xff]  }
 0x430   :  { %6110 = vmatprep.subr.bf16.mxu0 %v9833_v22  ;;  %v9913_v22 = vld [vmem:[#allocation13 + $0x30] sm:$0xff]  }
 0x431   :  { %8500 = vmatpush3.bf16.msra.mxu1 %v9905_v12 }
 0x432   :  { %8501 = vmatprep.subr.bf16.mxu1 %v9906_v14 }
 0x433   :  { %6111 = vmatpush1.bf16.msra.mxu0 %v9831_v23  ;;  %v9914_v23 = vld [vmem:[#allocation13 + $0x78] sm:$0xff]  }
 0x434   :  { %6112 = vmatprep.subr.bf16.mxu0 %v9836_v3  ;;  %v9915_v3 = vld [vmem:[#allocation13 + $0x38] sm:$0xff]  }
 0x435   :  { %8502 = vmatpush3.bf16.msra.mxu1 %v9907_v8 }
 0x436   :  { %8503 = vmatprep.subr.bf16.mxu1 %v9908_v16 }
 0x437   :  { %6113 = vmatpush1.bf16.msra.mxu0 %v9834_v55  ;;  %v9916_v55 = vld [vmem:[#allocation13 + $0xc0] sm:$0xff]  }
 0x438   :  { %6114 = vmatprep.subr.bf16.mxu0 %v9839_v24  ;;  %v10912_v24 = vld [vmem:[#allocation11] sm:$0xf] }
 0x439   :  { %v4155_v60 = vrot.slane %v10912_v24, %v10862_v2  ;;  %v4159_v61 = vrot.slane %v10912_v24, %v10845_v51 }
 0x43b   :  { %6115 = vmatpush1.bf16.msra.mxu0 %v9837_v25  ;;  %v4151_v25 = vrot.slane %v10912_v24, %v10828_v58 }
 0x43c   :  { %6116 = vmatprep.subr.bf16.mxu0 %v9842_v13 }
 0x43f   :  { %6117 = vmatpush1.bf16.msra.mxu0 %v9840_v30 }
 0x440   :  { %6118 = vmatprep.subr.bf16.mxu0 %v9845_v42 }
 0x443   :  { %6119 = vmatpush1.bf16.msra.mxu0 %v9843_v48 }
 0x444   :  { %6120 = vmatprep.subr.bf16.mxu0 %v9848_v28 }
 0x447   :  { %6121 = vmatpush1.bf16.msra.mxu0 %v9846_v52 }
 0x448   :  { %6122 = vmatprep.subr.bf16.mxu0 %v9851_v29 }
 0x44b   :  { %6123 = vmatpush1.bf16.msra.mxu0 %v9849_v6 }
 0x44c   :  { %6133 = vmatprep.subr.bf16.mxu0 %v9854_v31 }
 0x44e   :  { %6125 = vmatmul.mubr.bf16.vlgmr.msra.gmra.mrb[12].mxu0 %v10898_v26  ;;  %v9872_v26 = vld [vmem:[#allocation10 + $0x8cc] ss:$16 sps:$4 sm:$0xff]  }
 0x44f   :  { %6134 = vmatpush1.bf16.msra.mxu0 %v9852_v32  ;;  %6165 = vmatprep.mubr.bf16.mxu0 %v3821_v17  ;;  %v9909_v17 = vld [vmem:[#allocation13 + $0x20] sm:$0xff]  }
 0x450   :  { %6135 = vmatprep.subr.bf16.mxu0 %v9857_v33  ;;  %8504 = vmatpush3.bf16.msra.mxu1 %v9909_v17 }
 0x451   :  { %8505 = vmatprep.subr.bf16.mxu1 %v9910_v21 }
 0x453   :  { %6136 = vmatpush1.bf16.msra.mxu0 %v9855_v34 }
 0x454   :  { %6137 = vmatprep.subr.bf16.mxu0 %v9860_v35  ;;  %8506 = vmatpush3.bf16.msra.mxu1 %v9911_v5 }
 0x455   :  { %8507 = vmatprep.subr.bf16.mxu1 %v9912_v27 }
 0x457   :  { %6138 = vmatpush1.bf16.msra.mxu0 %v9858_v36 }
 0x458   :  { %6139 = vmatprep.subr.bf16.mxu0 %v9863_v10  ;;  %8508 = vmatpush3.bf16.msra.mxu1 %v9913_v22 }
 0x459   :  { %8509 = vmatprep.subr.bf16.mxu1 %v9914_v23  ;;  %v9932_v23 = vld [vmem:[#allocation16] ss:$16 sps:$4 sm:$0xff]  }
 0x45b   :  { %6140 = vmatpush1.bf16.msra.mxu0 %v9861_v37 }
 0x45c   :  { %6141 = vmatprep.subr.bf16.mxu0 %v9866_v38  ;;  %8510 = vmatpush3.bf16.msra.mxu1 %v9915_v3 }
 0x45d   :  { %8517 = vmatprep.subr.bf16.mxu1 %v9916_v55  ;;  %v9937_v55 = vld [vmem:[#allocation16 + $0x24] ss:$16 sps:$4 sm:$0xff]  }
 0x45f   :  { %6142 = vmatpush1.bf16.msra.mxu0 %v9864_v39  ;;  %v9917_v39 = vld [vmem:[#allocation13 + $0x80] sm:$0xff]  }
 0x460   :  { %6143 = vmatprep.subr.bf16.mxu0 %v9869_v40 }
 0x463   :  { %6144 = vmatpush1.bf16.msra.mxu0 %v9867_v41  ;;  %v9918_v41 = vld [vmem:[#allocation13 + $0xc8] sm:$0xff]  }
 0x464   :  { %6145 = vmatprep.subr.bf16.mxu0 %v9872_v26  ;;  %v9919_v26 = vld [vmem:[#allocation13 + $0x88] sm:$0xff]  }
 0x467   :  { %6146 = vmatpush1.bf16.msra.mxu0 %v9870_v18  ;;  %v9920_v18 = vld [vmem:[#allocation13 + $0xd0] sm:$0xff]  }
 0x468   :  { %6147 = vmatprep.subr.bf16.mxu0 %v9875_v15  ;;  %v10494_v15 = vmov 0  }
 0x46b   :  { %6148 = vmatpush1.bf16.msra.mxu0 %v9873_v20  ;;  %v9921_v20 = vld [vmem:[#allocation13 + $0x90] sm:$0xff]  }
 0x46c   :  { %6149 = vmatprep.subr.bf16.mxu0 %v9878_v43  ;;  %v9922_v43 = vld [vmem:[#allocation13 + $0xd8] sm:$0xff]  }
 0x46f   :  { %6150 = vmatpush1.bf16.msra.mxu0 %v9876_v44  ;;  %v9923_v44 = vld [vmem:[#allocation13 + $0x98] sm:$0xff]  }
 0x470   :  { %6151 = vmatprep.subr.bf16.mxu0 %v9881_v45  ;;  %v9924_v45 = vld [vmem:[#allocation13 + $0xe0] sm:$0xff]  }
 0x473   :  { %6152 = vmatpush1.bf16.msra.mxu0 %v9879_v46  ;;  %v9925_v46 = vld [vmem:[#allocation13 + $0xa0] sm:$0xff]  }
 0x474   :  { %6153 = vmatprep.subr.bf16.mxu0 %v9884_v47  ;;  %v9926_v47 = vld [vmem:[#allocation13 + $0xe8] sm:$0xff]  }
 0x477   :  { %6154 = vmatpush1.bf16.msra.mxu0 %v9882_v49  ;;  %v9927_v49 = vld [vmem:[#allocation13 + $0xa8] sm:$0xff]  }
 0x478   :  { %6155 = vmatprep.subr.bf16.mxu0 %v9887_v53  ;;  %v9928_v53 = vld [vmem:[#allocation13 + $0xf0] sm:$0xff]  }
 0x47b   :  { %6156 = vmatpush1.bf16.msra.mxu0 %v9885_v54  ;;  %v9929_v54 = vld [vmem:[#allocation13 + $0xb0] sm:$0xff]  }
 0x47c   :  { %6157 = vmatprep.subr.bf16.mxu0 %v9890_v56  ;;  %v9930_v56 = vld [vmem:[#allocation13 + $0xf8] sm:$0xff]  }
 0x47f   :  { %6158 = vmatpush1.bf16.msra.mxu0 %v9888_v57  ;;  %v9931_v57 = vld [vmem:[#allocation13 + $0xb8] sm:$0xff]  }
 0x480   :  { %6159 = vmatprep.subr.bf16.mxu0 %v9893_v59  ;;  %v9934_v59 = vld [vmem:[#allocation16 + $0x4] ss:$16 sps:$4 sm:$0xff]  }
 0x483   :  { %6160 = vmatpush1.bf16.msra.mxu0 %v9891_v11 }
 0x484   :  { %6161 = vmatprep.subr.bf16.mxu0 %v9896_v7 }
 0x487   :  { %6162 = vmatpush1.bf16.msra.mxu0 %v9894_v9 }
 0x488   :  { %6163 = vmatprep.subr.bf16.mxu0 %v9899_v0 }
 0x48b   :  { %6164 = vmatpush1.bf16.msra.mxu0 %v9897_v4 }
 0x48e   :  { %6166 = vmatmul.mubr.bf16.vlgmr.msra.gmra.mrb[12].mxu0 %v10907_v19  ;;  %v4147_v19 = vrot.slane %v10912_v24, %v10842_v50  ;;  %v9935_v24 = vld [vmem:[#allocation16 + $0x20] ss:$16 sps:$4 sm:$0xff]  }
 0x48f   :  { %7381 = vmatprep.mubr.bf16.mxu0 %v10494_v15 }
 0x4fb   :  { %v5962_v13 = vpop.f32.mrb[8].mxu1 }
 0x4fc   :  { %v8593_v30 = vadd.f32 %v5962_v13, %v4147_v19  ;;  %v5964_v42 = vpop.f32.mrb[9].mxu1  ;;  %v9940_v19 = vld [vmem:[#allocation16 + $0x44] ss:$16 sps:$4 sm:$0xff]  }
 0x4fd   :  { %v8594_v48 = vadd.f32 %v5964_v42, %v4151_v25  ;;  %v5966_v28 = vpop.f32.mrb[10].mxu1  ;;  %v9938_v25 = vld [vmem:[#allocation16 + $0x40] ss:$16 sps:$4 sm:$0xff]   ;;  %v9943_v13 = vld [vmem:[#allocation16 + $0x64] ss:$16 sps:$4 sm:$0xff]  }
 0x4fe   :  { %v8355_v52 = vmul.f32 -1.442695, %v8593_v30  ;;  %v5967_v29 = vpop.f32.mrb[11].mxu1  ;;  %v9946_v42 = vld [vmem:[#allocation16 + $0x84] ss:$16 sps:$4 sm:$0xff]  }
 0x4ff   :  { %v8356_v6 = vmul.f32 -1.442695, %v8594_v48  ;;  %v9949_v28 = vld [vmem:[#allocation16 + $0xa4] ss:$16 sps:$4 sm:$0xff]  }
 0x500   :  { %10060 = vpow2.f32 %v8355_v52  ;;  %v9947_v52 = vld [vmem:[#allocation16 + $0xa0] ss:$16 sps:$4 sm:$0xff]   ;;  %v9952_v29 = vld [vmem:[#allocation16 + $0xc4] ss:$16 sps:$4 sm:$0xff]  }
 0x501   :  { %10062 = vpow2.f32 %v8356_v6  ;;  %v9950_v6 = vld [vmem:[#allocation16 + $0xc0] ss:$16 sps:$4 sm:$0xff]  }
 0x50a   :  { %v10061_v31 = vpop.eup %10060 }
 0x50b   :  { %v10063_v32 = vpop.eup %10062  ;;  %v6186_v33 = vadd.f32 1.0, %v10061_v31  ;;  %v9955_v31 = vld [vmem:[#allocation16 + $0xe4] ss:$16 sps:$4 sm:$0xff]  }
 0x50c   :  { %v6187_v34 = vadd.f32 1.0, %v10063_v32  ;;  %v9953_v32 = vld [vmem:[#allocation16 + $0xe0] ss:$16 sps:$4 sm:$0xff]  }
 0x50d   :  { %10064 = vrcp.f32 %v6186_v33  ;;  %v9958_v33 = vld [vmem:[#allocation16 + $0xc] ss:$16 sps:$4 sm:$0xff]  }
 0x50e   :  { %10066 = vrcp.f32 %v6187_v34  ;;  %v6556_v34 = vld [vmem:[#allocation5] sm:$0xf] }
 0x517   :  { %v10065_v35 = vpop.eup %10064 }
 0x518   :  { %v10067_v36 = vpop.eup %10066  ;;  %v6198_v10 = vmul.f32 %v10065_v35, %v8593_v30  ;;  %v9941_v30 = vld [vmem:[#allocation16 + $0x60] ss:$16 sps:$4 sm:$0xff]   ;;  %v9956_v35 = vld [vmem:[#allocation16 + $0x8] ss:$16 sps:$4 sm:$0xff]  }
 0x519   :  { %v6199_v37 = vmul.f32 %v10067_v36, %v8594_v48  ;;  %v9944_v48 = vld [vmem:[#allocation16 + $0x80] ss:$16 sps:$4 sm:$0xff]   ;;  %v9961_v36 = vld [vmem:[#allocation16 + $0x2c] ss:$16 sps:$4 sm:$0xff]  }
 0x51a   :  { %v6202_v40 = vpack.c.bf16 %v6198_v10, %v6198_v10  ;;  %v9959_v10 = vld [vmem:[#allocation16 + $0x28] ss:$16 sps:$4 sm:$0xff]  }
 0x51b   :  { %v6203_v38 = vpack.c.bf16 %v6199_v37, %v6199_v37  ;;  %v9964_v37 = vld [vmem:[#allocation16 + $0x4c] ss:$16 sps:$4 sm:$0xff]  }
 0x51d   :  { %6501 = vmatprep.mubr.bf16.mxu1 %v6203_v38  ;;  %v9962_v38 = vld [vmem:[#allocation16 + $0x48] ss:$16 sps:$4 sm:$0xff]  }
 0x51e   :  { %6502 = vmatmul.mubr.bf16.vlgmr.msra.gmra.mrb[12].mxu1 %v6202_v40  ;;  %v9965_v40 = vld [vmem:[#allocation16 + $0x68] ss:$16 sps:$4 sm:$0xff]  }
 0x51f   :  { %8518 = vmatpush3.bf16.msra.mxu1 %v9917_v39  ;;  %v9967_v39 = vld [vmem:[#allocation16 + $0x6c] ss:$16 sps:$4 sm:$0xff]  }
 0x520   :  { %8519 = vmatprep.subr.bf16.mxu1 %v9918_v41  ;;  %v9970_v41 = vld [vmem:[#allocation16 + $0x8c] ss:$16 sps:$4 sm:$0xff]  }
 0x523   :  { %8520 = vmatpush3.bf16.msra.mxu1 %v9919_v26  ;;  %v9968_v26 = vld [vmem:[#allocation16 + $0x88] ss:$16 sps:$4 sm:$0xff]  }
 0x524   :  { %8521 = vmatprep.subr.bf16.mxu1 %v9920_v18  ;;  %v9973_v18 = vld [vmem:[#allocation16 + $0xac] ss:$16 sps:$4 sm:$0xff]  }
 0x527   :  { %8522 = vmatpush3.bf16.msra.mxu1 %v9921_v20  ;;  %v9971_v20 = vld [vmem:[#allocation16 + $0xa8] ss:$16 sps:$4 sm:$0xff]  }
 0x528   :  { %8523 = vmatprep.subr.bf16.mxu1 %v9922_v43  ;;  %v9976_v43 = vld [vmem:[#allocation16 + $0xcc] ss:$16 sps:$4 sm:$0xff]  }
 0x52b   :  { %8524 = vmatpush3.bf16.msra.mxu1 %v9923_v44  ;;  %v9974_v44 = vld [vmem:[#allocation16 + $0xc8] ss:$16 sps:$4 sm:$0xff]  }
 0x52c   :  { %8525 = vmatprep.subr.bf16.mxu1 %v9924_v45  ;;  %v9979_v45 = vld [vmem:[#allocation16 + $0xec] ss:$16 sps:$4 sm:$0xff]  }
 0x52f   :  { %8526 = vmatpush3.bf16.msra.mxu1 %v9925_v46  ;;  %v9977_v46 = vld [vmem:[#allocation16 + $0xe8] ss:$16 sps:$4 sm:$0xff]  }
 0x530   :  { %8527 = vmatprep.subr.bf16.mxu1 %v9926_v47 }
 0x533   :  { %8528 = vmatpush3.bf16.msra.mxu1 %v9927_v49 }
 0x534   :  { %8529 = vmatprep.subr.bf16.mxu1 %v9928_v53 }
 0x537   :  { %8530 = vmatpush3.bf16.msra.mxu1 %v9929_v54 }
 0x538   :  { %8531 = vmatprep.subr.bf16.mxu1 %v9930_v56 }
 0x53b   :  { %8532 = vmatpush3.bf16.msra.mxu1 %v9931_v57  ;;  %v9980_v57 = vld [vmem:[#allocation19 + $0x40] sm:$0xff]  }
 0x53c   :  { %6771 = vmatprep.subr.bf16.mxu1 %v9934_v59  ;;  %v9981_v59 = vld [vmem:[#allocation19] sm:$0xff]  }
 0x561   :  { %v6167_v11 = vpop.f32.mrb[12].mxu0 }
 0x562   :  { %v8595_v7 = vadd.f32 %v6167_v11, %v4155_v60  ;;  %v6169_v62 = vpop.f32.mrb[13].mxu0  ;;  %v9982_v60 = vld [vmem:[#allocation19 + $0x48] sm:$0xff]   ;;  %v9984_v11 = vld [vmem:[#allocation19 + $0x50] sm:$0xff]  }
 0x563   :  { %v8596_v63 = vadd.f32 %v6169_v62, %v4159_v61  ;;  %v6171_v9 = vpop.f32.mrb[14].mxu0  ;;  %v9983_v61 = vld [vmem:[#allocation19 + $0x8] sm:$0xff]   ;;  %v9986_v62 = vld [vmem:[#allocation19 + $0x58] sm:$0xff]  }
 0x564   :  { %v8357_v0 = vmul.f32 -1.442695, %v8595_v7  ;;  %v6172_v1 = vpop.f32.mrb[15].mxu0  ;;  %v9988_v9 = vld [vmem:[#allocation19 + $0x60] sm:$0xff]  }
 0x565   :  { %v8358_v12 = vmul.f32 -1.442695, %v8596_v63  ;;  %v9990_v1 = vld [vmem:[#allocation19 + $0x68] sm:$0xff]  }
 0x566   :  { %10068 = vpow2.f32 %v8357_v0  ;;  %v9989_v0 = vld [vmem:[#allocation19 + $0x20] sm:$0xff]  }
 0x567   :  { %10070 = vpow2.f32 %v8358_v12  ;;  %v9991_v12 = vld [vmem:[#allocation19 + $0x28] sm:$0xff]  }
 0x570   :  { %v10069_v4 = vpop.eup %10068 }
 0x571   :  { %v10071_v14 = vpop.eup %10070  ;;  %v6188_v8 = vadd.f32 1.0, %v10069_v4  ;;  %v9992_v4 = vld [vmem:[#allocation19 + $0x70] sm:$0xff]  }
 0x572   :  { %v6189_v16 = vadd.f32 1.0, %v10071_v14  ;;  %v9993_v14 = vld [vmem:[#allocation19 + $0x30] sm:$0xff]  }
 0x573   :  { %10072 = vrcp.f32 %v6188_v8  ;;  %v9994_v8 = vld [vmem:[#allocation19 + $0x78] sm:$0xff]  }
 0x574   :  { %10074 = vrcp.f32 %v6189_v16  ;;  %v9995_v16 = vld [vmem:[#allocation19 + $0x38] sm:$0xff]  }
 0x57d   :  { %v10073_v17 = vpop.eup %10072 }
 0x57e   :  { %v10075_v21 = vpop.eup %10074  ;;  %v6200_v5 = vmul.f32 %v10073_v17, %v8595_v7  ;;  %v9985_v7 = vld [vmem:[#allocation19 + $0x10] sm:$0xff]   ;;  %v9996_v17 = vld [vmem:[#allocation19 + $0xc0] sm:$0xff]  }
 0x57f   :  { %v6201_v27 = vmul.f32 %v10075_v21, %v8596_v63  ;;  %v9987_v63 = vld [vmem:[#allocation19 + $0x18] sm:$0xff]  }
 0x580   :  { %v6204_v3 = vpack.c.bf16 %v6200_v5, %v6200_v5  ;;  %v8359_v21 = vld [vmem:[#allocation14] ss:$0 sm:$0xff] }
 0x581   :  { %v6205_v22 = vpack.c.bf16 %v6201_v27, %v6201_v27 }
 0x583   :  { %6541 = vmatprep.mubr.bf16.mxu1 %v6205_v22 }
 0x584   :  { %6542 = vmatmul.mubr.bf16.vlgmr.msra.gmra.mrb[16].mxu1 %v6204_v3 }
 0x585   :  { %6772 = vmatpush1.bf16.msra.mxu1 %v9932_v23  ;;  %6803 = vmatprep.mubr.bf16.mxu1 %v10494_v15 }
 0x586   :  { %6773 = vmatprep.subr.bf16.mxu1 %v9937_v55 }
 0x589   :  { %6774 = vmatpush1.bf16.msra.mxu1 %v9935_v24 }
 0x58a   :  { %6775 = vmatprep.subr.bf16.mxu1 %v9940_v19  ;;  %v6589_v19 = vld [vmem:[#allocation17] sm:$0xf] }
 0x58d   :  { %6776 = vmatpush1.bf16.msra.mxu1 %v9938_v25  ;;  %v6594_v25 = vrot.slane %v6589_v19, %v10842_v50 }
 0x58e   :  { %6777 = vmatprep.subr.bf16.mxu1 %v9943_v13  ;;  %v6598_v13 = vrot.slane %v6589_v19, %v10828_v58 }
 0x591   :  { %6778 = vmatpush1.bf16.msra.mxu1 %v9941_v30 }
 0x592   :  { %6779 = vmatprep.subr.bf16.mxu1 %v9946_v42 }
 0x595   :  { %6780 = vmatpush1.bf16.msra.mxu1 %v9944_v48 }
 0x596   :  { %6781 = vmatprep.subr.bf16.mxu1 %v9949_v28 }
 0x599   :  { %6782 = vmatpush1.bf16.msra.mxu1 %v9947_v52 }
 0x59a   :  { %6783 = vmatprep.subr.bf16.mxu1 %v9952_v29 }
 0x59d   :  { %6784 = vmatpush1.bf16.msra.mxu1 %v9950_v6 }
 0x59e   :  { %6785 = vmatprep.subr.bf16.mxu1 %v9955_v31 }
 0x5a1   :  { %6786 = vmatpush1.bf16.msra.mxu1 %v9953_v32 }
 0x5a2   :  { %6812 = vmatprep.subr.bf16.mxu1 %v9958_v33 }
 0x5a4   :  { %6804 = vmatmul.mubr.bf16.vlgmr.msra.gmra.mrb[20].mxu1 %v6556_v34 }
 0x5a5   :  { %6813 = vmatpush1.bf16.msra.mxu1 %v9956_v35  ;;  %6844 = vmatprep.mubr.bf16.mxu1 %v10494_v15 }
 0x5a6   :  { %6814 = vmatprep.subr.bf16.mxu1 %v9961_v36 }
 0x5a9   :  { %6815 = vmatpush1.bf16.msra.mxu1 %v9959_v10 }
 0x5aa   :  { %6816 = vmatprep.subr.bf16.mxu1 %v9964_v37 }
 0x5ad   :  { %6817 = vmatpush1.bf16.msra.mxu1 %v9962_v38  ;;  %v6602_v38 = vrot.slane %v6589_v19, %v10862_v2  ;;  %v10000_v2 = vld [vmem:[#allocation19 + $0xd0] sm:$0xff]  }
 0x5ae   :  { %6818 = vmatprep.subr.bf16.mxu1 %v9967_v39 }
 0x5b1   :  { %6819 = vmatpush1.bf16.msra.mxu1 %v9965_v40  ;;  %v6606_v40 = vrot.slane %v6589_v19, %v10845_v51  ;;  %v10001_v51 = vld [vmem:[#allocation19 + $0x90] sm:$0xff]  }
 0x5b2   :  { %6820 = vmatprep.subr.bf16.mxu1 %v9970_v41  ;;  %v10015_v19 = vld [vmem:[#allocation22 + $0x10] ss:$8 sps:$4 sm:$0xff]  }
 0x5b5   :  { %6821 = vmatpush1.bf16.msra.mxu1 %v9968_v26 }
 0x5b6   :  { %6822 = vmatprep.subr.bf16.mxu1 %v9973_v18  ;;  %v9997_v18 = vld [vmem:[#allocation19 + $0x80] sm:$0xff]  }
 0x5b9   :  { %6823 = vmatpush1.bf16.msra.mxu1 %v9971_v20 }
 0x5ba   :  { %6824 = vmatprep.subr.bf16.mxu1 %v9976_v43 }
 0x5bd   :  { %6825 = vmatpush1.bf16.msra.mxu1 %v9974_v44 }
 0x5be   :  { %6826 = vmatprep.subr.bf16.mxu1 %v9979_v45  ;;  %v9998_v45 = vld [vmem:[#allocation19 + $0xc8] sm:$0xff]  }
 0x5c1   :  { %6827 = vmatpush1.bf16.msra.mxu1 %v9977_v46 }
 0x5c2   :  { %8539 = vmatprep.subr.bf16.mxu1 %v9980_v57  ;;  %v10002_v57 = vld [vmem:[#allocation19 + $0xd8] sm:$0xff]  }
 0x5c4   :  { %6845 = vmatmul.mubr.bf16.vlgmr.msra.gmra.mrb[24].mxu1 %v6556_v34 }
 0x5c5   :  { %8540 = vmatpush3.bf16.msra.mxu1 %v9981_v59  ;;  %v10003_v59 = vld [vmem:[#allocation19 + $0x98] sm:$0xff]  }
 0x5c6   :  { %8541 = vmatprep.subr.bf16.mxu1 %v9982_v60  ;;  %v10004_v60 = vld [vmem:[#allocation19 + $0xe0] sm:$0xff]  }
 0x5c9   :  { %8542 = vmatpush3.bf16.msra.mxu1 %v9983_v61 }
 0x5ca   :  { %8543 = vmatprep.subr.bf16.mxu1 %v9984_v11 }
 0x5cd   :  { %8544 = vmatpush3.bf16.msra.mxu1 %v9985_v7 }
 0x5ce   :  { %8545 = vmatprep.subr.bf16.mxu1 %v9986_v62  ;;  %v10005_v62 = vld [vmem:[#allocation19 + $0xa0] sm:$0xff]  }
 0x5d1   :  { %8546 = vmatpush3.bf16.msra.mxu1 %v9987_v63 }
 0x5d2   :  { %8547 = vmatprep.subr.bf16.mxu1 %v9988_v9  ;;  %v10006_v9 = vld [vmem:[#allocation19 + $0xe8] sm:$0xff]  }
 0x5d5   :  { %8548 = vmatpush3.bf16.msra.mxu1 %v9989_v0  ;;  %v10007_v0 = vld [vmem:[#allocation19 + $0xa8] sm:$0xff]  }
 0x5d6   :  { %8549 = vmatprep.subr.bf16.mxu1 %v9990_v1  ;;  %v10008_v1 = vld [vmem:[#allocation19 + $0xf0] sm:$0xff]  }
 0x5d9   :  { %8550 = vmatpush3.bf16.msra.mxu1 %v9991_v12  ;;  %v10009_v12 = vld [vmem:[#allocation19 + $0xb0] sm:$0xff]  }
 0x5da   :  { %8551 = vmatprep.subr.bf16.mxu1 %v9992_v4  ;;  %v10010_v4 = vld [vmem:[#allocation19 + $0xf8] sm:$0xff]  }
 0x5dd   :  { %8552 = vmatpush3.bf16.msra.mxu1 %v9993_v14 }
 0x5de   :  { %8553 = vmatprep.subr.bf16.mxu1 %v9994_v8 }
 0x5e1   :  { %8554 = vmatpush3.bf16.msra.mxu1 %v9995_v16  ;;  %v10011_v16 = vld [vmem:[#allocation19 + $0xb8] sm:$0xff]  }
 0x5e2   :  { %8561 = vmatprep.subr.bf16.mxu1 %v9996_v17 }
 0x5f1   :  { %v8511_v47 = vpop.f32.mrb[12].mxu1 }
 0x5f2   :  { %v8512_v49 = vpop.f32.mrb[13].mxu1 }
 0x5f3   :  { %v8513_v53 = vadd.f32 %v8512_v49, %v8511_v47  ;;  %v8514_v54 = vpop.f32.mrb[14].mxu1 }
 0x5f4   :  { %v8515_v56 = vpop.f32.mrb[15].mxu1 }
 0x5f5   :  { %v6504_v22 = vadd.f32 %v8513_v53, %v8359_v21  ;;  %v9999_v56 = vld [vmem:[#allocation19 + $0x88] sm:$0xff]  }
 0x657   :  { %v8533_v5 = vpop.f32.mrb[16].mxu1 }
 0x658   :  { %v8534_v27 = vpop.f32.mrb[17].mxu1 }
 0x659   :  { %v8535_v23 = vadd.f32 %v8534_v27, %v8533_v5  ;;  %v8536_v3 = vpop.f32.mrb[18].mxu1  ;;  %v10014_v5 = vld [vmem:[#allocation22 + $0x4] ss:$8 sps:$4 sm:$0xff]  }
 0x65a   :  { %v8537_v55 = vpop.f32.mrb[19].mxu1 }
 0x65b   :  { %v10925_v24 = vadd.f32 %v8535_v23, %v6504_v22  ;;  %v10012_v23 = vld [vmem:[#allocation22] ss:$8 sps:$4 sm:$0xff]   ;;  %v10017_v55 = vld [vmem:[#allocation22 + $0x14] ss:$8 sps:$4 sm:$0xff]  }
 0x65d   :  { %v8392_v14 = vmul.f32 -1.442695, %v10925_v24 }
 0x677   :  { %v6805_v30 = vpop.f32.mrb[20].mxu1 }
 0x678   :  { %v6806_v42 = vadd.f32 %v6805_v30, %v6594_v25  ;;  %v6807_v48 = vpop.f32.mrb[21].mxu1  ;;  %v10020_v25 = vld [vmem:[#allocation22 + $0x24] ss:$8 sps:$4 sm:$0xff]  }
 0x679   :  { %v6808_v28 = vadd.f32 %v6807_v48, %v6598_v13  ;;  %v6809_v52 = vpop.f32.mrb[22].mxu1  ;;  %v10018_v13 = vld [vmem:[#allocation22 + $0x20] ss:$8 sps:$4 sm:$0xff]  }
 0x67a   :  { %v8425_v29 = vmul.f32 -1.442695, %v6806_v42  ;;  %v6810_v6 = vpop.f32.mrb[23].mxu1  ;;  %v10026_v52 = vld [vmem:[#allocation22 + $0x44] ss:$8 sps:$4 sm:$0xff]  }
 0x67b   :  { %v8426_v31 = vmul.f32 -1.442695, %v6808_v28  ;;  %v10029_v6 = vld [vmem:[#allocation22 + $0x54] ss:$8 sps:$4 sm:$0xff]  }
 0x67c   :  { %10076 = vpow2.f32 %v8425_v29  ;;  %v10024_v29 = vld [vmem:[#allocation22 + $0x40] ss:$8 sps:$4 sm:$0xff]  }
 0x67d   :  { %10078 = vpow2.f32 %v8426_v31  ;;  %v10027_v31 = vld [vmem:[#allocation22 + $0x50] ss:$8 sps:$4 sm:$0xff]  }
 0x686   :  { %v10077_v32 = vpop.eup %10076 }
 0x687   :  { %v10079_v33 = vpop.eup %10078  ;;  %v6865_v34 = vadd.f32 1.0, %v10077_v32  ;;  %v10030_v32 = vld [vmem:[#allocation22 + $0x60] ss:$8 sps:$4 sm:$0xff]  }
 0x688   :  { %v6866_v35 = vadd.f32 1.0, %v10079_v33  ;;  %v10035_v33 = vld [vmem:[#allocation22 + $0x74] ss:$8 sps:$4 sm:$0xff]  }
 0x689   :  { %10080 = vrcp.f32 %v6865_v34 }
 0x68a   :  { %10082 = vrcp.f32 %v6866_v35  ;;  %v10033_v35 = vld [vmem:[#allocation22 + $0x70] ss:$8 sps:$4 sm:$0xff]  }
 0x693   :  { %v10081_v36 = vpop.eup %10080 }
 0x694   :  { %v10083_v10 = vpop.eup %10082  ;;  %v6877_v37 = vmul.f32 %v10081_v36, %v6806_v42  ;;  %v10023_v42 = vld [vmem:[#allocation22 + $0x34] ss:$8 sps:$4 sm:$0xff]  }
 0x695   :  { %v6878_v39 = vmul.f32 %v10083_v10, %v6808_v28  ;;  %v10021_v28 = vld [vmem:[#allocation22 + $0x30] ss:$8 sps:$4 sm:$0xff]  }
 0x696   :  { %v6881_v20 = vpack.c.bf16 %v6877_v37, %v6877_v37  ;;  %v10038_v37 = vld [vmem:[#allocation23 + $0x4] ss:$8 sps:$4 sm:$0xff]  }
 0x697   :  { %v6882_v41 = vpack.c.bf16 %v6878_v39, %v6878_v39  ;;  %v6846_v26 = vpop.f32.mrb[24].mxu1  ;;  %7349 = vmatprep.subr.bf16.mxu0 %v10038_v37  ;;  %v10041_v39 = vld [vmem:[#allocation23 + $0x14] ss:$8 sps:$4 sm:$0xff]  }
 0x698   :  { %v6847_v43 = vadd.f32 %v6846_v26, %v6602_v38  ;;  %v6848_v44 = vpop.f32.mrb[25].mxu1  ;;  %v10036_v38 = vld [vmem:[#allocation23] ss:$8 sps:$4 sm:$0xff]  }
 0x699   :  { %v6849_v46 = vadd.f32 %v6848_v44, %v6606_v40  ;;  %v6850_v47 = vpop.f32.mrb[26].mxu1  ;;  %7180 = vmatprep.mubr.bf16.mxu1 %v6882_v41  ;;  %7350 = vmatpush1.bf16.msra.mxu0 %v10036_v38  ;;  %v10039_v40 = vld [vmem:[#allocation23 + $0x10] ss:$8 sps:$4 sm:$0xff]   ;;  %v10044_v41 = vld [vmem:[#allocation23 + $0x24] ss:$8 sps:$4 sm:$0xff]  }
 0x69a   :  { %v8427_v49 = vmul.f32 -1.442695, %v6847_v43  ;;  %v6851_v53 = vpop.f32.mrb[27].mxu1  ;;  %7181 = vmatmul.mubr.bf16.vlgmr.msra.gmra.mrb[28].mxu1 %v6881_v20  ;;  %7351 = vmatprep.subr.bf16.mxu0 %v10041_v39  ;;  %v10042_v26 = vld [vmem:[#allocation23 + $0x20] ss:$8 sps:$4 sm:$0xff]  }
 0x69b   :  { %v8428_v54 = vmul.f32 -1.442695, %v6849_v46  ;;  %8562 = vmatpush3.bf16.msra.mxu1 %v9997_v18  ;;  %v10047_v18 = vld [vmem:[#allocation23 + $0x34] ss:$8 sps:$4 sm:$0xff]   ;;  %v10045_v20 = vld [vmem:[#allocation23 + $0x30] ss:$8 sps:$4 sm:$0xff]  }
 0x69c   :  { %10084 = vpow2.f32 %v8427_v49  ;;  %8563 = vmatprep.subr.bf16.mxu1 %v9998_v45  ;;  %v10053_v44 = vld [vmem:[#allocation23 + $0x54] ss:$8 sps:$4 sm:$0xff]   ;;  %v10051_v45 = vld [vmem:[#allocation23 + $0x50] ss:$8 sps:$4 sm:$0xff]   ;;  %v10054_v47 = vld [vmem:[#allocation23 + $0x60] ss:$8 sps:$4 sm:$0xff]  }
 0x69d   :  { %10086 = vpow2.f32 %v8428_v54  ;;  %7352 = vmatpush1.bf16.msra.mxu0 %v10039_v40  ;;  %v10059_v49 = vld [vmem:[#allocation23 + $0x74] ss:$8 sps:$4 sm:$0xff]   ;;  %v10057_v53 = vld [vmem:[#allocation23 + $0x70] ss:$8 sps:$4 sm:$0xff]  }
 0x69e   :  { %7353 = vmatprep.subr.bf16.mxu0 %v10044_v41 }
 0x69f   :  { %8564 = vmatpush3.bf16.msra.mxu1 %v9999_v56 }
 0x6a0   :  { %8565 = vmatprep.subr.bf16.mxu1 %v10000_v2 }
 0x6a1   :  { %7354 = vmatpush1.bf16.msra.mxu0 %v10042_v26 }
 0x6a2   :  { %7355 = vmatprep.subr.bf16.mxu0 %v10047_v18 }
 0x6a3   :  { %8566 = vmatpush3.bf16.msra.mxu1 %v10001_v51 }
 0x6a4   :  { %8567 = vmatprep.subr.bf16.mxu1 %v10002_v57 }
 0x6a5   :  { %7356 = vmatpush1.bf16.msra.mxu0 %v10045_v20 }
 0x6a6   :  { %v10085_v61 = vpop.eup %10084 }
 0x6a7   :  { %v10087_v11 = vpop.eup %10086  ;;  %v6867_v7 = vadd.f32 1.0, %v10085_v61  ;;  %8568 = vmatpush3.bf16.msra.mxu1 %v10003_v59  ;;  %v8429_v59 = vld [vmem:[#allocation20] ss:$0 sm:$0xff] }
 0x6a8   :  { %v6868_v63 = vadd.f32 1.0, %v10087_v11  ;;  %8569 = vmatprep.subr.bf16.mxu1 %v10004_v60 }
 0x6a9   :  { %10088 = vrcp.f32 %v6867_v7 }
 0x6aa   :  { %10090 = vrcp.f32 %v6868_v63 }
 0x6ab   :  { %8570 = vmatpush3.bf16.msra.mxu1 %v10005_v62  ;;  %10092 = vpow2.f32 %v8392_v14 }
 0x6ac   :  { %8571 = vmatprep.subr.bf16.mxu1 %v10006_v9 }
 0x6af   :  { %8572 = vmatpush3.bf16.msra.mxu1 %v10007_v0 }
 0x6b0   :  { %8573 = vmatprep.subr.bf16.mxu1 %v10008_v1 }
 0x6b3   :  { %v10089_v8 = vpop.eup %10088  ;;  %8574 = vmatpush3.bf16.msra.mxu1 %v10009_v12 }
 0x6b4   :  { %v10091_v17 = vpop.eup %10090  ;;  %v6879_v21 = vmul.f32 %v10089_v8, %v6847_v43  ;;  %8575 = vmatprep.subr.bf16.mxu1 %v10010_v4  ;;  %v10048_v43 = vld [vmem:[#allocation23 + $0x40] ss:$8 sps:$4 sm:$0xff]  }
 0x6b5   :  { %v6880_v27 = vmul.f32 %v10091_v17, %v6849_v46  ;;  %v10093_v30 = vpop.eup %10092  ;;  %v10056_v46 = vld [vmem:[#allocation23 + $0x64] ss:$8 sps:$4 sm:$0xff]  }
 0x6b6   :  { %v6883_v3 = vpack.c.bf16 %v6879_v21, %v6879_v21  ;;  %v6552_v48 = vadd.f32 1.0, %v10093_v30 }
 0x6b7   :  { %v6884_v22 = vpack.c.bf16 %v6880_v27, %v6880_v27  ;;  %8576 = vmatpush3.bf16.msra.mxu1 %v10011_v16  ;;  %v7511_v27 = vld [vmem:[#allocation25] sm:$0x3] }
 0x6b8   :  { %7470 = vmatprep.subr.bf16.mxu1 %v10014_v5  ;;  %10094 = vrcp.f32 %v6552_v48 }
 0x6b9   :  { %7220 = vmatprep.mubr.bf16.mxu1 %v6884_v22  ;;  %v7516_v22 = vrot.slane %v7511_v27, %v10842_v50 }
 0x6ba   :  { %7221 = vmatmul.mubr.bf16.vlgmr.msra.gmra.mrb[32].mxu1 %v6883_v3  ;;  %v7520_v3 = vrot.slane %v7511_v27, %v10828_v58 }
 0x6bb   :  { %7471 = vmatpush1.bf16.msra.mxu1 %v10012_v23  ;;  %7502 = vmatprep.mubr.bf16.mxu1 %v10494_v15  ;;  %v10032_v15 = vld [vmem:[#allocation22 + $0x64] ss:$8 sps:$4 sm:$0xff]  }
 0x6bc   :  { %7472 = vmatprep.subr.bf16.mxu1 %v10017_v55 }
 0x6bf   :  { %7473 = vmatpush1.bf16.msra.mxu1 %v10015_v19 }
 0x6c0   :  { %7474 = vmatprep.subr.bf16.mxu1 %v10020_v25 }
 0x6c2   :  { %v10095_v34 = vpop.eup %10094 }
 0x6c3   :  { %7475 = vmatpush1.bf16.msra.mxu1 %v10018_v13  ;;  %v6555_v36 = vmul.f32 %v10095_v34, %v10925_v24  ;;  %v10050_v24 = vld [vmem:[#allocation23 + $0x44] ss:$8 sps:$4 sm:$0xff]  }
 0x6c4   :  { %7476 = vmatprep.subr.bf16.mxu1 %v10023_v42  ;;  %7357 = vmatprep.subr.bf16.mxu0 %v10050_v24 }
 0x6c5   :  { %v7235_v10 = vpack.c.bf16 %v6555_v36, %v6555_v36  ;;  %7358 = vmatpush1.bf16.msra.mxu0 %v10048_v43 }
 0x6c6   :  { %7359 = vmatprep.subr.bf16.mxu0 %v10053_v44 }
 0x6c7   :  { %7477 = vmatpush1.bf16.msra.mxu1 %v10021_v28 }
 0x6c8   :  { %7478 = vmatprep.subr.bf16.mxu1 %v10026_v52 }
 0x6c9   :  { %7360 = vmatpush1.bf16.msra.mxu0 %v10051_v45 }
 0x6ca   :  { %7361 = vmatprep.subr.bf16.mxu0 %v10056_v46 }
 0x6cb   :  { %7479 = vmatpush1.bf16.msra.mxu1 %v10024_v29 }
 0x6cc   :  { %7480 = vmatprep.subr.bf16.mxu1 %v10029_v6 }
 0x6cd   :  { %7362 = vmatpush1.bf16.msra.mxu0 %v10054_v47 }
 0x6ce   :  { %7363 = vmatprep.subr.bf16.mxu0 %v10059_v49 }
 0x6cf   :  { %7481 = vmatpush1.bf16.msra.mxu1 %v10027_v31 }
 0x6d0   :  { %7482 = vmatprep.subr.bf16.mxu1 %v10032_v15 }
 0x6d1   :  { %7364 = vmatpush1.bf16.msra.mxu0 %v10057_v53 }
 0x6d3   :  { %7483 = vmatpush1.bf16.msra.mxu1 %v10030_v32 }
 0x6d4   :  { %7484 = vmatprep.subr.bf16.mxu1 %v10035_v33 }
 0x6d7   :  { %7485 = vmatpush1.bf16.msra.mxu1 %v10033_v35 }
 0x6da   :  { %7503 = vmatmul.mubr.bf16.vlgmr.msra.gmra.mrb[36].mxu1 %v7235_v10 }
 0x76d   :  { %v8555_v54 = vpop.f32.mrb[28].mxu1 }
 0x76e   :  { %v8556_v56 = vpop.f32.mrb[29].mxu1 }
 0x76f   :  { %v8557_v2 = vadd.f32 %v8556_v56, %v8555_v54  ;;  %v8558_v51 = vpop.f32.mrb[30].mxu1 }
 0x770   :  { %v8559_v57 = vpop.f32.mrb[31].mxu1 }
 0x771   :  { %v7183_v11 = vadd.f32 %v8557_v2, %v8429_v59 }
 0x78d   :  { %v8577_v60 = vpop.f32.mrb[32].mxu1 }
 0x78e   :  { %v8578_v61 = vpop.f32.mrb[33].mxu1 }
 0x78f   :  { %v8579_v7 = vadd.f32 %v8578_v61, %v8577_v60  ;;  %v8580_v62 = vpop.f32.mrb[34].mxu1 }
 0x790   :  { %v8581_v63 = vpop.f32.mrb[35].mxu1 }
 0x791   :  { %v7223_v9 = vadd.f32 %v8579_v7, %v7183_v11 }
 0x793   :  { %v8462_v0 = vmul.f32 -1.442695, %v7223_v9 }
 0x795   :  { %10096 = vpow2.f32 %v8462_v0 }
 0x79f   :  { %v10097_v1 = vpop.eup %10096 }
 0x7a0   :  { %v7231_v12 = vadd.f32 1.0, %v10097_v1 }
 0x7a2   :  { %10098 = vrcp.f32 %v7231_v12 }
 0x7ac   :  { %v10099_v4 = vpop.eup %10098 }
 0x7ad   :  { %v7234_v14 = vmul.f32 %v10099_v4, %v7223_v9  ;;  %v7504_v8 = vpop.f32.mrb[36].mxu1 }
 0x7ae   :  { %v7506_v16 = vpop.f32.mrb[37].mxu1 }
 0x7af   :  { %v7252_v17 = vpack.c.bf16 %v7234_v14, %v7234_v14  ;;  %v7508_v21 = vpop.f32.mrb[38].mxu1 }
 0x7b0   :  { %v7509_v5 = vpop.f32.mrb[39].mxu1 }
 0x7b1   :  { %7382 = vmatmul.mubr.bf16.vlgmr.msra.gmra.mrb[16].mxu0 %v7252_v17 }
 0x884   :  { %v7383_v23 = vpop.f32.mrb[16].mxu0 }
 0x885   :  { %v7505_v55 = vadd.f32 %v7504_v8, %v7383_v23  ;;  %v7385_v19 = vpop.f32.mrb[17].mxu0 }
 0x886   :  { %v7507_v25 = vadd.f32 %v7506_v16, %v7385_v19  ;;  %v7387_v13 = vpop.f32.mrb[18].mxu0 }
 0x887   :  { %v7523_v30 = vadd.f32 %v7516_v22, %v7505_v55  ;;  %v7388_v42 = vpop.f32.mrb[19].mxu0 }
 0x888   :  { %v7524_v48 = vadd.f32 %v7520_v3, %v7507_v25 }
 0x889   :  { %7525 = vst [vmem:[#allocation26] sm:$0xff] %v7523_v30 }
 0x88a   :  { %7526 = vst [vmem:[#allocation26 + $0x8] sm:$0xff] %v7524_v48 }
 0x88b   :  { %10442 = shalt.err (!%p10439_p12)
}
 0x88c   :  { %s10443_s2 = scalar_lea.hbm %s10963_s15, 256 }
 0x88d   :  { %p10444_p13 = scmp.ne.s32.totalorder %s10963_s15, %s10443_s2  ;;  %p10447_p0 = scmp.lt.u32.totalorder %s10443_s2, %s10963_s15 }
 0x88f   :  { %p10449_p1 = pnand %p10447_p0, %p10444_p13 }
 0x891   :  { %10452 = shalt.err (!%p10449_p1)
}
 0x892   :  { %7536 = dma.vmem_to_hbm [thread:$0]  %s7534_s5, 256, %s10963_s15, [#allocation4]  }
 0x893   :  { %10469 = dma.done.wait [#allocation4], 256  }
 0x894   :  { %10470 = vsyncadd [#allocation4], 4294967040 }
 0x895   :  { %7540 = vsyncpa [#allocation3], 1 }
 0x896   :  { %7541 = vsyncpa [#allocation6], 1 }
 0x897   :  { %7542 = vsyncpa [#allocation9], 1 }
 0x898   :  { %7543 = vsyncpa [#allocation12], 1 }
 0x899   :  { %7544 = vsyncpa [#allocation15], 1 }
 0x89a   :  { %7545 = vsyncpa [#allocation18], 1 }
 0x89b   :  { %7546 = vsyncpa [#allocation21], 1 }
 0x89c   :  { %7547 = vsyncpa [#allocation24], 1 }
 0x89d   :  { %7548 = vsyncpa [#allocation4], 1 }

// kernel: tpu_custom_call.1
= control target key start
LH: loop header
LB: loop body
LE: loop exit
PB: predicated region body
PF: predicated region fallthrough
CT: control target
= control target key end

     0   :  { %20 = vsyncpa [#allocation3], 0  ;;  %s10948_s0 = inlined_call_operand.hbm [shape: bf16[8,768], index: 0, kind: input, shape index: {}]   ;;  %s10949_s1 = inlined_call_operand.hbm [shape: bf16[8,128], index: 1, kind: input, shape index: {}]   ;;  %s10950_s2 = inlined_call_operand.hbm [shape: bf16[768,1280], index: 2, kind: input, shape index: {}]   ;;  %s10951_s3 = inlined_call_operand.hbm [shape: f32[1,1280], index: 3, kind: input, shape index: {}]   ;;  %s10952_s4 = inlined_call_operand.hbm [shape: bf16[1280,512], index: 4, kind: input, shape index: {}]   ;;  %s10953_s5 = inlined_call_operand.hbm [shape: f32[1,512], index: 5, kind: input, shape index: {}]   ;;  %s10954_s6 = inlined_call_operand.hbm [shape: bf16[512,128], index: 6, kind: input, shape index: {}]   ;;  %s10955_s7 = inlined_call_operand.hbm [shape: f32[1,128], index: 7, kind: input, shape index: {}]   ;;  %s10956_s8 = inlined_call_operand.hbm [shape: bf16[128,512], index: 8, kind: input, shape index: {}]   ;;  %s10957_s9 = inlined_call_operand.hbm [shape: f32[1,512], index: 9, kind: input, shape index: {}]   ;;  %s10958_s10 = inlined_call_operand.hbm [shape: bf16[512,128], index: 10, kind: input, shape index: {}]   ;;  %s10959_s11 = inlined_call_operand.hbm [shape: f32[1,128], index: 11, kind: input, shape index: {}]   ;;  %s10960_s12 = inlined_call_operand.hbm [shape: bf16[128,256], index: 12, kind: input, shape index: {}]   ;;  %s10961_s13 = inlined_call_operand.hbm [shape: bf16[128,256], index: 13, kind: input, shape index: {}]   ;;  %s10962_s14 = inlined_call_operand.hbm [shape: f32[1,256], index: 14, kind: input, shape index: {}]   ;;  %s10963_s15 = inlined_call_operand.hbm [shape: f32[8,256], index: 15, kind: output, shape index: {}]  }
   0x1   :  { %21 = vsyncpa [#allocation6], 0 }
   0x2   :  { %22 = vsyncpa [#allocation9], 0 }
   0x3   :  { %23 = vsyncpa [#allocation12], 0 }
   0x4   :  { %24 = vsyncpa [#allocation15], 0 }
   0x5   :  { %25 = vsyncpa [#allocation18], 0 }
   0x6   :  { %26 = vsyncpa [#allocation21], 0 }
   0x7   :  { %27 = vsyncpa [#allocation24], 0 }
   0x8   :  { %28 = vsyncpa [#allocation4], 0  ;;  %s10471_s18 = smov [#allocation5]   ;;  %s10472_s20 = smov [#allocation8]  }
   0x9   :  { %s45_s19 = sshll.u32 %s10471_s18, 4  ;;  %s67_s21 = sshll.u32 %s10472_s20, 4  ;;  %s46_s19 = int_to_ptr.vmem [resolvable:$true] %s45_s19  ;;  %s68_s21 = int_to_ptr.vmem [resolvable:$true] %s67_s21 }
   0xa   :  { %s10101_s24 = scalar_lea.hbm %s10949_s1, 64 }
   0xb   :  { %p10102_p0 = scmp.ne.s32.totalorder %s10949_s1, %s10101_s24  ;;  %p10105_p1 = scmp.lt.u32.totalorder %s10101_s24, %s10949_s1 }
   0xd   :  { %p10107_p2 = pnand %p10105_p1, %p10102_p0 }
   0xf   :  { %10110 = shalt.err (!%p10107_p2)
}
  0x10   :  { %s10111_s29 = scalar_lea.vmem %s46_s19, 64  ;;  %p10116_p4 = scmp.lt.s32.totalorder %s46_s19, %s46_s19 }
  0x11   :  { %p10112_p3 = scmp.ne.s32.totalorder %s46_s19, %s10111_s29  ;;  %p10117_p5 = scmp.lt.s32.totalorder %s10111_s29, %s10111_s29 }
  0x13   :  { %p10118_p6 = por %p10117_p5, %p10116_p4 }
  0x15   :  { %p10119_p7 = pnand %p10118_p6, %p10112_p3 }
  0x17   :  { %10122 = shalt.err (!%p10119_p7)
}
  0x18   :  { %48 = dma.hbm_to_vmem [thread:$0]  %s10949_s1, 64, %s46_s19, [#allocation6]  }
  0x19   :  { %s10123_s20 = scalar_lea.hbm %s10951_s3, 160 }
  0x1a   :  { %p10124_p8 = scmp.ne.s32.totalorder %s10951_s3, %s10123_s20  ;;  %p10127_p9 = scmp.lt.u32.totalorder %s10123_s20, %s10951_s3 }
  0x1c   :  { %p10129_p10 = pnand %p10127_p9, %p10124_p8 }
  0x1e   :  { %10132 = shalt.err (!%p10129_p10)
}
  0x1f   :  { %s10133_s26 = scalar_lea.vmem %s68_s21, 160  ;;  %p10138_p12 = scmp.lt.s32.totalorder %s68_s21, %s68_s21 }
  0x20   :  { %p10134_p11 = scmp.ne.s32.totalorder %s68_s21, %s10133_s26  ;;  %p10139_p13 = scmp.lt.s32.totalorder %s10133_s26, %s10133_s26 }
  0x22   :  { %p10140_p0 = por %p10139_p13, %p10138_p12 }
  0x24   :  { %p10141_p1 = pnand %p10140_p0, %p10134_p11 }
  0x26   :  { %10144 = shalt.err (!%p10141_p1)
}
  0x27   :  { %70 = dma.hbm_to_vmem [thread:$0]  %s10951_s3, 160, %s68_s21, [#allocation9]  }
  0x28   :  { %s10473_s27 = smov [#allocation11]   ;;  %s10474_s29 = smov [#allocation14]  }
  0x29   :  { %s89_s28 = sshll.u32 %s10473_s27, 4  ;;  %s111_s30 = sshll.u32 %s10474_s29, 4  ;;  %s90_s28 = int_to_ptr.vmem [resolvable:$true] %s89_s28  ;;  %s112_s30 = int_to_ptr.vmem [resolvable:$true] %s111_s30 }
  0x2a   :  { %s10145_s18 = scalar_lea.hbm %s10953_s5, 64 }
  0x2b   :  { %p10146_p2 = scmp.ne.s32.totalorder %s10953_s5, %s10145_s18  ;;  %p10149_p3 = scmp.lt.u32.totalorder %s10145_s18, %s10953_s5 }
  0x2d   :  { %p10151_p4 = pnand %p10149_p3, %p10146_p2 }
  0x2f   :  { %10154 = shalt.err (!%p10151_p4)
}
  0x30   :  { %s10155_s3 = scalar_lea.vmem %s90_s28, 64  ;;  %p10160_p6 = scmp.lt.s32.totalorder %s90_s28, %s90_s28 }
  0x31   :  { %p10156_p5 = scmp.ne.s32.totalorder %s90_s28, %s10155_s3  ;;  %p10161_p7 = scmp.lt.s32.totalorder %s10155_s3, %s10155_s3 }
  0x33   :  { %p10162_p8 = por %p10161_p7, %p10160_p6 }
  0x35   :  { %p10163_p9 = pnand %p10162_p8, %p10156_p5 }
  0x37   :  { %10166 = shalt.err (!%p10163_p9)
}
  0x38   :  { %92 = dma.hbm_to_vmem [thread:$0]  %s10953_s5, 64, %s90_s28, [#allocation12]  }
  0x39   :  { %s10167_s19 = scalar_lea.hbm %s10955_s7, 16 }
  0x3a   :  { %p10168_p10 = scmp.ne.s32.totalorder %s10955_s7, %s10167_s19  ;;  %p10171_p11 = scmp.lt.u32.totalorder %s10167_s19, %s10955_s7 }
  0x3c   :  { %p10173_p12 = pnand %p10171_p11, %p10168_p10 }
  0x3e   :  { %10176 = shalt.err (!%p10173_p12)
}
  0x3f   :  { %s10177_s18 = scalar_lea.vmem %s112_s30, 16  ;;  %s10181_s20 = scalar_lea.vmem %s112_s30, 32 }
  0x40   :  { %p10178_p13 = scmp.ne.s32.totalorder %s112_s30, %s10177_s18  ;;  %p10182_p0 = scmp.lt.s32.totalorder %s112_s30, %s112_s30 }
  0x41   :  { %p10183_p1 = scmp.lt.s32.totalorder %s10181_s20, %s10177_s18 }
  0x43   :  { %p10184_p2 = por %p10183_p1, %p10182_p0 }
  0x45   :  { %p10185_p3 = pnand %p10184_p2, %p10178_p13 }
  0x47   :  { %10188 = shalt.err (!%p10185_p3)
}
  0x48   :  { %114 = dma.hbm_to_vmem [thread:$0]  %s10955_s7, 16, %s112_s30, [#allocation15]  }
  0x49   :  { %s10475_s22 = smov [#allocation17]   ;;  %s10476_s24 = smov [#allocation20]  }
  0x4a   :  { %s133_s23 = sshll.u32 %s10475_s22, 4  ;;  %s155_s3 = sshll.u32 %s10476_s24, 4  ;;  %s134_s23 = int_to_ptr.vmem [resolvable:$true] %s133_s23  ;;  %s156_s3 = int_to_ptr.vmem [resolvable:$true] %s155_s3 }
  0x4b   :  { %s10189_s26 = scalar_lea.hbm %s10957_s9, 64 }
  0x4c   :  { %p10190_p4 = scmp.ne.s32.totalorder %s10957_s9, %s10189_s26  ;;  %p10193_p5 = scmp.lt.u32.totalorder %s10189_s26, %s10957_s9 }
  0x4e   :  { %p10195_p6 = pnand %p10193_p5, %p10190_p4 }
  0x50   :  { %10198 = shalt.err (!%p10195_p6)
}
  0x51   :  { %s10199_s7 = scalar_lea.vmem %s134_s23, 64  ;;  %p10204_p8 = scmp.lt.s32.totalorder %s134_s23, %s134_s23 }
  0x52   :  { %p10200_p7 = scmp.ne.s32.totalorder %s134_s23, %s10199_s7  ;;  %p10205_p9 = scmp.lt.s32.totalorder %s10199_s7, %s10199_s7 }
  0x54   :  { %p10206_p10 = por %p10205_p9, %p10204_p8 }
  0x56   :  { %p10207_p11 = pnand %p10206_p10, %p10200_p7 }
  0x58   :  { %10210 = shalt.err (!%p10207_p11)
}
  0x59   :  { %136 = dma.hbm_to_vmem [thread:$0]  %s10957_s9, 64, %s134_s23, [#allocation18]  }
  0x5a   :  { %s10211_s20 = scalar_lea.hbm %s10959_s11, 16 }
  0x5b   :  { %p10212_p12 = scmp.ne.s32.totalorder %s10959_s11, %s10211_s20  ;;  %p10215_p13 = scmp.lt.u32.totalorder %s10211_s20, %s10959_s11 }
  0x5d   :  { %p10217_p0 = pnand %p10215_p13, %p10212_p12 }
  0x5f   :  { %10220 = shalt.err (!%p10217_p0)
}
  0x60   :  { %s10221_s21 = scalar_lea.vmem %s156_s3, 16  ;;  %s10225_s25 = scalar_lea.vmem %s156_s3, 32 }
  0x61   :  { %p10222_p1 = scmp.ne.s32.totalorder %s156_s3, %s10221_s21  ;;  %p10226_p2 = scmp.lt.s32.totalorder %s156_s3, %s156_s3 }
  0x62   :  { %p10227_p3 = scmp.lt.s32.totalorder %s10225_s25, %s10221_s21 }
  0x64   :  { %p10228_p4 = por %p10227_p3, %p10226_p2 }
  0x66   :  { %p10229_p5 = pnand %p10228_p4, %p10222_p1 }
  0x68   :  { %10232 = shalt.err (!%p10229_p5)
}
  0x69   :  { %158 = dma.hbm_to_vmem [thread:$0]  %s10959_s11, 16, %s156_s3, [#allocation21]  }
  0x6a   :  { %s10477_s26 = smov [#allocation23]   ;;  %s10478_s19 = smov [#allocation2]  }
  0x6b   :  { %s176_s1 = sshll.u32 %s10477_s26, 4  ;;  %s35_s27 = sshll.u32 %s10478_s19, 4  ;;  %s177_s1 = int_to_ptr.vmem [resolvable:$true] %s176_s1  ;;  %s36_s27 = int_to_ptr.vmem [resolvable:$true] %s35_s27 }
  0x6c   :  { %s10233_s30 = scalar_lea.hbm %s10961_s13, 2048 }
  0x6d   :  { %p10234_p6 = scmp.ne.s32.totalorder %s10961_s13, %s10233_s30  ;;  %p10237_p7 = scmp.lt.u32.totalorder %s10233_s30, %s10961_s13 }
  0x6f   :  { %p10239_p8 = pnand %p10237_p7, %p10234_p6 }
  0x71   :  { %10242 = shalt.err (!%p10239_p8)
}
  0x72   :  { %s10243_s11 = scalar_lea.vmem %s177_s1, 2048  ;;  %p10248_p10 = scmp.lt.s32.totalorder %s177_s1, %s177_s1 }
  0x73   :  { %p10244_p9 = scmp.ne.s32.totalorder %s177_s1, %s10243_s11  ;;  %p10249_p11 = scmp.lt.s32.totalorder %s10243_s11, %s10243_s11 }
  0x75   :  { %p10250_p12 = por %p10249_p11, %p10248_p10 }
  0x77   :  { %p10251_p13 = pnand %p10250_p12, %p10244_p9 }
  0x79   :  { %10254 = shalt.err (!%p10251_p13)
}
  0x7a   :  { %s10479_s3 = smov 128   ;;  %s10480_s5 = smov 8  }
  0x7b   :  { %182 = dma.hbm_to_vmem [thread:$0]  %s10961_s13, 2048, %s177_s1, [#allocation24], %s10479_s3, %s10479_s3, %s10480_s5  }
  0x7c   :  { %s10255_s25 = scalar_lea.hbm %s10948_s0, 384 }
  0x7d   :  { %p10256_p0 = scmp.ne.s32.totalorder %s10948_s0, %s10255_s25  ;;  %p10259_p1 = scmp.lt.u32.totalorder %s10255_s25, %s10948_s0 }
  0x7f   :  { %p10261_p2 = pnand %p10259_p1, %p10256_p0 }
  0x81   :  { %10264 = shalt.err (!%p10261_p2)
}
  0x82   :  { %s10265_s29 = scalar_lea.vmem %s36_s27, 384  ;;  %p10270_p4 = scmp.lt.s32.totalorder %s36_s27, %s36_s27 }
  0x83   :  { %p10266_p3 = scmp.ne.s32.totalorder %s36_s27, %s10265_s29  ;;  %p10271_p5 = scmp.lt.s32.totalorder %s10265_s29, %s10265_s29 }
  0x85   :  { %p10272_p6 = por %p10271_p5, %p10270_p4 }
  0x87   :  { %p10273_p7 = pnand %p10272_p6, %p10266_p3 }
  0x89   :  { %10276 = shalt.err (!%p10273_p7)
}
  0x8a   :  { %38 = dma.hbm_to_vmem [thread:$0]  %s10948_s0, 384, %s36_s27, [#allocation3]  }
  0x8b   :  { %s10481_s7 = smov [#allocation7]   ;;  %s10277_s18 = scalar_lea.hbm %s10950_s2, 61440 }
  0x8c   :  { %s54_s30 = sshll.u32 %s10481_s7, 4  ;;  %p10278_p8 = scmp.ne.s32.totalorder %s10950_s2, %s10277_s18  ;;  %s55_s30 = int_to_ptr.vmem [resolvable:$true] %s54_s30 }
  0x8d   :  { %p10281_p9 = scmp.lt.u32.totalorder %s10277_s18, %s10950_s2 }
  0x8f   :  { %p10283_p10 = pnand %p10281_p9, %p10278_p8 }
  0x91   :  { %10286 = shalt.err (!%p10283_p10)
}
  0x92   :  { %s10287_s24 = scalar_lea.vmem %s55_s30, 61440  ;;  %p10292_p12 = scmp.lt.s32.totalorder %s55_s30, %s55_s30 }
  0x93   :  { %p10288_p11 = scmp.ne.s32.totalorder %s55_s30, %s10287_s24  ;;  %p10293_p13 = scmp.lt.s32.totalorder %s10287_s24, %s10287_s24 }
  0x95   :  { %p10294_p0 = por %p10293_p13, %p10292_p12 }
  0x97   :  { %p10295_p1 = pnand %p10294_p0, %p10288_p11 }
  0x99   :  { %10298 = shalt.err (!%p10295_p1)
}
  0x9a   :  { %s10482_s0 = smov 640   ;;  %s10483_s27 = smov 40  }
  0x9b   :  { %60 = dma.hbm_to_vmem [thread:$0]  %s10950_s2, 61440, %s55_s30, [#allocation6], %s10482_s0, %s10482_s0, %s10483_s27  }
  0x9c   :  { %s10484_s9 = smov [#allocation10]   ;;  %s10299_s29 = scalar_lea.hbm %s10952_s4, 40960 }
  0x9d   :  { %s76_s23 = sshll.u32 %s10484_s9, 4  ;;  %p10300_p2 = scmp.ne.s32.totalorder %s10952_s4, %s10299_s29  ;;  %s77_s23 = int_to_ptr.vmem [resolvable:$true] %s76_s23 }
  0x9e   :  { %p10303_p3 = scmp.lt.u32.totalorder %s10299_s29, %s10952_s4 }
  0xa0   :  { %p10305_p4 = pnand %p10303_p3, %p10300_p2 }
  0xa2   :  { %10308 = shalt.err (!%p10305_p4)
}
  0xa3   :  { %s10309_s17 = scalar_lea.vmem %s77_s23, 40960  ;;  %p10314_p6 = scmp.lt.s32.totalorder %s77_s23, %s77_s23 }
  0xa4   :  { %p10310_p5 = scmp.ne.s32.totalorder %s77_s23, %s10309_s17  ;;  %p10315_p7 = scmp.lt.s32.totalorder %s10309_s17, %s10309_s17 }
  0xa6   :  { %p10316_p8 = por %p10315_p7, %p10314_p6 }
  0xa8   :  { %p10317_p9 = pnand %p10316_p8, %p10310_p5 }
  0xaa   :  { %10320 = shalt.err (!%p10317_p9)
}
  0xab   :  { %s10485_s2 = smov 256   ;;  %s10486_s30 = smov 16  }
  0xac   :  { %82 = dma.hbm_to_vmem [thread:$0]  %s10952_s4, 40960, %s77_s23, [#allocation9], %s10485_s2, %s10485_s2, %s10486_s30  }
  0xad   :  { %s10487_s11 = smov [#allocation13]   ;;  %s10321_s0 = scalar_lea.hbm %s10954_s6, 4096 }
  0xae   :  { %s98_s28 = sshll.u32 %s10487_s11, 4  ;;  %p10322_p10 = scmp.ne.s32.totalorder %s10954_s6, %s10321_s0  ;;  %s99_s28 = int_to_ptr.vmem [resolvable:$true] %s98_s28 }
  0xaf   :  { %p10325_p11 = scmp.lt.u32.totalorder %s10321_s0, %s10954_s6 }
  0xb1   :  { %p10327_p12 = pnand %p10325_p11, %p10322_p10 }
  0xb3   :  { %10330 = shalt.err (!%p10327_p12)
}
  0xb4   :  { %s10331_s26 = scalar_lea.vmem %s99_s28, 4096  ;;  %p10336_p0 = scmp.lt.s32.totalorder %s99_s28, %s99_s28 }
  0xb5   :  { %p10332_p13 = scmp.ne.s32.totalorder %s99_s28, %s10331_s26  ;;  %p10337_p1 = scmp.lt.s32.totalorder %s10331_s26, %s10331_s26 }
  0xb7   :  { %p10338_p2 = por %p10337_p1, %p10336_p0 }
  0xb9   :  { %p10339_p3 = pnand %p10338_p2, %p10332_p13 }
  0xbb   :  { %10342 = shalt.err (!%p10339_p3)
}
  0xbc   :  { %s10488_s4 = smov 64   ;;  %s10489_s23 = smov 4  }
  0xbd   :  { %104 = dma.hbm_to_vmem [thread:$0]  %s10954_s6, 4096, %s99_s28, [#allocation12], %s10488_s4, %s10488_s4, %s10489_s23  }
  0xbe   :  { %s10490_s13 = smov [#allocation16]   ;;  %s10491_s7 = smov [#allocation19]  }
  0xbf   :  { %s120_s1 = sshll.u32 %s10490_s13, 4  ;;  %s142_s16 = sshll.u32 %s10491_s7, 4  ;;  %s121_s1 = int_to_ptr.vmem [resolvable:$true] %s120_s1  ;;  %s143_s16 = int_to_ptr.vmem [resolvable:$true] %s142_s16 }
  0xc0   :  { %s10343_s20 = scalar_lea.hbm %s10956_s8, 4096 }
  0xc1   :  { %p10344_p4 = scmp.ne.s32.totalorder %s10956_s8, %s10343_s20  ;;  %p10347_p5 = scmp.lt.u32.totalorder %s10343_s20, %s10956_s8 }
  0xc3   :  { %p10349_p6 = pnand %p10347_p5, %p10344_p4 }
  0xc5   :  { %10352 = shalt.err (!%p10349_p6)
}
  0xc6   :  { %s10353_s6 = scalar_lea.vmem %s121_s1, 4096  ;;  %p10358_p8 = scmp.lt.s32.totalorder %s121_s1, %s121_s1 }
  0xc7   :  { %p10354_p7 = scmp.ne.s32.totalorder %s121_s1, %s10353_s6  ;;  %p10359_p9 = scmp.lt.s32.totalorder %s10353_s6, %s10353_s6 }
  0xc9   :  { %p10360_p10 = por %p10359_p9, %p10358_p8 }
  0xcb   :  { %p10361_p11 = pnand %p10360_p10, %p10354_p7 }
  0xcd   :  { %10364 = shalt.err (!%p10361_p11)
}
  0xce   :  { %126 = dma.hbm_to_vmem [thread:$0]  %s10956_s8, 4096, %s121_s1, [#allocation15], %s10485_s2, %s10485_s2, %s10486_s30  }
  0xcf   :  { %s10365_s9 = scalar_lea.hbm %s10958_s10, 4096 }
  0xd0   :  { %p10366_p12 = scmp.ne.s32.totalorder %s10958_s10, %s10365_s9  ;;  %p10369_p13 = scmp.lt.u32.totalorder %s10365_s9, %s10958_s10 }
  0xd2   :  { %p10371_p0 = pnand %p10369_p13, %p10366_p12 }
  0xd4   :  { %10374 = shalt.err (!%p10371_p0)
}
  0xd5   :  { %s10375_s7 = scalar_lea.vmem %s143_s16, 4096  ;;  %p10380_p2 = scmp.lt.s32.totalorder %s143_s16, %s143_s16 }
  0xd6   :  { %p10376_p1 = scmp.ne.s32.totalorder %s143_s16, %s10375_s7  ;;  %p10381_p3 = scmp.lt.s32.totalorder %s10375_s7, %s10375_s7 }
  0xd8   :  { %p10382_p4 = por %p10381_p3, %p10380_p2 }
  0xda   :  { %p10383_p5 = pnand %p10382_p4, %p10376_p1 }
  0xdc   :  { %10386 = shalt.err (!%p10383_p5)
}
  0xdd   :  { %148 = dma.hbm_to_vmem [thread:$0]  %s10958_s10, 4096, %s143_s16, [#allocation18], %s10488_s4, %s10488_s4, %s10489_s23  }
  0xde   :  { %s10492_s30 = smov [#allocation22]   ;;  %s10493_s17 = smov [#allocation25]  }
  0xdf   :  { %s164_s1 = sshll.u32 %s10492_s30, 4  ;;  %s189_s18 = sshll.u32 %s10493_s17, 4  ;;  %s165_s1 = int_to_ptr.vmem [resolvable:$true] %s164_s1  ;;  %s190_s18 = int_to_ptr.vmem [resolvable:$true] %s189_s18 }
  0xe0   :  { %s10387_s22 = scalar_lea.hbm %s10960_s12, 2048 }
  0xe1   :  { %p10388_p6 = scmp.ne.s32.totalorder %s10960_s12, %s10387_s22  ;;  %p10391_p7 = scmp.lt.u32.totalorder %s10387_s22, %s10960_s12 }
  0xe3   :  { %p10393_p8 = pnand %p10391_p7, %p10388_p6 }
  0xe5   :  { %10396 = shalt.err (!%p10393_p8)
}
  0xe6   :  { %s10397_s10 = scalar_lea.vmem %s165_s1, 2048  ;;  %p10402_p10 = scmp.lt.s32.totalorder %s165_s1, %s165_s1 }
  0xe7   :  { %p10398_p9 = scmp.ne.s32.totalorder %s165_s1, %s10397_s10  ;;  %p10403_p11 = scmp.lt.s32.totalorder %s10397_s10, %s10397_s10 }
  0xe9   :  { %p10404_p12 = por %p10403_p11, %p10402_p10 }
  0xeb   :  { %p10405_p13 = pnand %p10404_p12, %p10398_p9 }
  0xed   :  { %10408 = shalt.err (!%p10405_p13)
}
  0xee   :  { %170 = dma.hbm_to_vmem [thread:$0]  %s10960_s12, 2048, %s165_s1, [#allocation21], %s10479_s3, %s10479_s3, %s10480_s5  }
  0xef   :  { %s10409_s21 = scalar_lea.hbm %s10962_s14, 32 }
  0xf0   :  { %p10410_p0 = scmp.ne.s32.totalorder %s10962_s14, %s10409_s21  ;;  %p10413_p1 = scmp.lt.u32.totalorder %s10409_s21, %s10962_s14 }
  0xf2   :  { %p10415_p2 = pnand %p10413_p1, %p10410_p0 }
  0xf4   :  { %10418 = shalt.err (!%p10415_p2)
}
  0xf5   :  { %s10419_s29 = scalar_lea.vmem %s190_s18, 32  ;;  %p10424_p4 = scmp.lt.s32.totalorder %s190_s18, %s190_s18 }
  0xf6   :  { %p10420_p3 = scmp.ne.s32.totalorder %s190_s18, %s10419_s29  ;;  %p10425_p5 = scmp.lt.s32.totalorder %s10419_s29, %s10419_s29 }
  0xf8   :  { %p10426_p6 = por %p10425_p5, %p10424_p4 }
  0xfa   :  { %p10427_p7 = pnand %p10426_p6, %p10420_p3 }
  0xfc   :  { %10430 = shalt.err (!%p10427_p7)
}
  0xfd   :  { %192 = dma.hbm_to_vmem [thread:$0]  %s10962_s14, 32, %s190_s18, [#allocation24]  }
  0xfe   :  { %10453 = dma.done.wait [#allocation3], 384  }
  0xff   :  { %10454 = vsyncadd [#allocation3], 4294966912 }
 0x100   :  { %10455 = dma.done.wait [#allocation6], 61504  }
 0x101   :  { %10456 = vsyncadd [#allocation6], 4294905792 }
 0x102   :  { %10457 = dma.done.wait [#allocation9], 41120  }
 0x103   :  { %10458 = vsyncadd [#allocation9], 4294926176 }
 0x104   :  { %10459 = dma.done.wait [#allocation12], 4160  }
 0x105   :  { %10460 = vsyncadd [#allocation12], 4294963136 }
 0x106   :  { %10461 = dma.done.wait [#allocation15], 4112  }
 0x107   :  { %10462 = vsyncadd [#allocation15], 4294963184 }
 0x108   :  { %10463 = dma.done.wait [#allocation18], 4160  }
 0x109   :  { %10464 = vsyncadd [#allocation18], 4294963136 }
 0x10a   :  { %10465 = dma.done.wait [#allocation21], 2064  }
 0x10b   :  { %10466 = vsyncadd [#allocation21], 4294965232 }
 0x10c   :  { %10467 = dma.done.wait [#allocation24], 2080  }
 0x10d   :  { %10468 = vsyncadd [#allocation24], 4294965216  ;;  %v8694_v0 = vld [vmem:[#allocation7 + $0x4] ss:$40 sps:$4 sm:$0xff]   ;;  %v8698_v2 = vld [vmem:[#allocation7] ss:$40 sps:$4 sm:$0xff]  }
 0x10e   :  { %v8696_v1 = vld [vmem:[#allocation7 + $0xc] ss:$40 sps:$4 sm:$0xff]   ;;  %3197 = vmatprep.subr.bf16.mxu0 %v8694_v0  ;;  %v8699_v3 = vld [vmem:[#allocation7 + $0x8] ss:$40 sps:$4 sm:$0xff]   ;;  %v8702_v5 = vld [vmem:[#allocation7 + $0x5c] ss:$40 sps:$4 sm:$0xff]  }
 0x10f   :  { %3320 = vmatprep.subr.bf16.mxu1 %v8696_v1  ;;  %v8700_v4 = vld [vmem:[#allocation7 + $0x54] ss:$40 sps:$4 sm:$0xff]   ;;  %3198 = vmatpush1.bf16.msra.mxu0 %v8698_v2  ;;  %v8704_v6 = vld [vmem:[#allocation7 + $0x50] ss:$40 sps:$4 sm:$0xff]   ;;  %v8706_v8 = vld [vmem:[#allocation7 + $0xa4] ss:$40 sps:$4 sm:$0xff]  }
 0x110   :  { %3321 = vmatpush1.bf16.msra.mxu1 %v8699_v3  ;;  %3199 = vmatprep.subr.bf16.mxu0 %v8700_v4  ;;  %v8705_v7 = vld [vmem:[#allocation7 + $0x58] ss:$40 sps:$4 sm:$0xff]   ;;  %v8708_v9 = vld [vmem:[#allocation7 + $0xac] ss:$40 sps:$4 sm:$0xff]   ;;  %v8711_v11 = vld [vmem:[#allocation7 + $0xa8] ss:$40 sps:$4 sm:$0xff]  }
 0x111   :  { %3322 = vmatprep.subr.bf16.mxu1 %v8702_v5  ;;  %v8710_v10 = vld [vmem:[#allocation7 + $0xa0] ss:$40 sps:$4 sm:$0xff]   ;;  %v8712_v12 = vld [vmem:[#allocation7 + $0xf4] ss:$40 sps:$4 sm:$0xff]   ;;  %v8716_v14 = vld [vmem:[#allocation7 + $0xf0] ss:$40 sps:$4 sm:$0xff]  }
 0x112   :  { %v8714_v13 = vld [vmem:[#allocation7 + $0xfc] ss:$40 sps:$4 sm:$0xff]   ;;  %v8717_v15 = vld [vmem:[#allocation7 + $0xf8] ss:$40 sps:$4 sm:$0xff]   ;;  %v8720_v17 = vld [vmem:[#allocation7 + $0x14c] ss:$40 sps:$4 sm:$0xff]  }
 0x113   :  { %3200 = vmatpush1.bf16.msra.mxu0 %v8704_v6  ;;  %v8718_v16 = vld [vmem:[#allocation7 + $0x144] ss:$40 sps:$4 sm:$0xff]   ;;  %v8722_v18 = vld [vmem:[#allocation7 + $0x140] ss:$40 sps:$4 sm:$0xff]   ;;  %v8724_v20 = vld [vmem:[#allocation7 + $0x194] ss:$40 sps:$4 sm:$0xff]  }
 0x114   :  { %3323 = vmatpush1.bf16.msra.mxu1 %v8705_v7  ;;  %3201 = vmatprep.subr.bf16.mxu0 %v8706_v8  ;;  %v8723_v19 = vld [vmem:[#allocation7 + $0x148] ss:$40 sps:$4 sm:$0xff]   ;;  %v8726_v21 = vld [vmem:[#allocation7 + $0x19c] ss:$40 sps:$4 sm:$0xff]   ;;  %v8729_v23 = vld [vmem:[#allocation7 + $0x198] ss:$40 sps:$4 sm:$0xff]  }
 0x115   :  { %3324 = vmatprep.subr.bf16.mxu1 %v8708_v9  ;;  %v8728_v22 = vld [vmem:[#allocation7 + $0x190] ss:$40 sps:$4 sm:$0xff]   ;;  %v8730_v24 = vld [vmem:[#allocation7 + $0x1e4] ss:$40 sps:$4 sm:$0xff]   ;;  %v8734_v26 = vld [vmem:[#allocation7 + $0x1e0] ss:$40 sps:$4 sm:$0xff]  }
 0x116   :  { %v8732_v25 = vld [vmem:[#allocation7 + $0x1ec] ss:$40 sps:$4 sm:$0xff]   ;;  %v8735_v27 = vld [vmem:[#allocation7 + $0x1e8] ss:$40 sps:$4 sm:$0xff]   ;;  %v8738_v29 = vld [vmem:[#allocation7 + $0x23c] ss:$40 sps:$4 sm:$0xff]  }
 0x117   :  { %3202 = vmatpush1.bf16.msra.mxu0 %v8710_v10  ;;  %v8736_v28 = vld [vmem:[#allocation7 + $0x234] ss:$40 sps:$4 sm:$0xff]   ;;  %v8740_v30 = vld [vmem:[#allocation7 + $0x230] ss:$40 sps:$4 sm:$0xff]   ;;  %v8742_v32 = vld [vmem:[#allocation7 + $0x284] ss:$40 sps:$4 sm:$0xff]  }
 0x118   :  { %3325 = vmatpush1.bf16.msra.mxu1 %v8711_v11  ;;  %3203 = vmatprep.subr.bf16.mxu0 %v8712_v12  ;;  %v8741_v31 = vld [vmem:[#allocation7 + $0x238] ss:$40 sps:$4 sm:$0xff]   ;;  %v8744_v33 = vld [vmem:[#allocation7 + $0x28c] ss:$40 sps:$4 sm:$0xff]   ;;  %v8747_v35 = vld [vmem:[#allocation7 + $0x288] ss:$40 sps:$4 sm:$0xff]  }
 0x119   :  { %3326 = vmatprep.subr.bf16.mxu1 %v8714_v13  ;;  %v8746_v34 = vld [vmem:[#allocation7 + $0x280] ss:$40 sps:$4 sm:$0xff]   ;;  %v8748_v36 = vld [vmem:[#allocation7 + $0x2d4] ss:$40 sps:$4 sm:$0xff]   ;;  %v8752_v38 = vld [vmem:[#allocation7 + $0x2d0] ss:$40 sps:$4 sm:$0xff]  }
 0x11a   :  { %v8750_v37 = vld [vmem:[#allocation7 + $0x2dc] ss:$40 sps:$4 sm:$0xff]   ;;  %v8753_v39 = vld [vmem:[#allocation7 + $0x2d8] ss:$40 sps:$4 sm:$0xff]   ;;  %v8756_v41 = vld [vmem:[#allocation7 + $0x32c] ss:$40 sps:$4 sm:$0xff]  }
 0x11b   :  { %3204 = vmatpush1.bf16.msra.mxu0 %v8716_v14  ;;  %v8754_v40 = vld [vmem:[#allocation7 + $0x324] ss:$40 sps:$4 sm:$0xff]   ;;  %v8758_v42 = vld [vmem:[#allocation7 + $0x320] ss:$40 sps:$4 sm:$0xff]   ;;  %v8760_v44 = vld [vmem:[#allocation7 + $0x374] ss:$40 sps:$4 sm:$0xff]  }
 0x11c   :  { %3327 = vmatpush1.bf16.msra.mxu1 %v8717_v15  ;;  %3205 = vmatprep.subr.bf16.mxu0 %v8718_v16  ;;  %v8759_v43 = vld [vmem:[#allocation7 + $0x328] ss:$40 sps:$4 sm:$0xff]   ;;  %v8762_v45 = vld [vmem:[#allocation7 + $0x37c] ss:$40 sps:$4 sm:$0xff]   ;;  %v8765_v49 = vld [vmem:[#allocation7 + $0x378] ss:$40 sps:$4 sm:$0xff]  }
 0x11d   :  { %3328 = vmatprep.subr.bf16.mxu1 %v8720_v17  ;;  %v239_v46 = vld [vmem:[#allocation2] sm:$0xff]  ;;  %v8764_v47 = vld [vmem:[#allocation7 + $0x370] ss:$40 sps:$4 sm:$0xff]   ;;  %v8768_v51 = vld [vmem:[#allocation7 + $0x3cc] ss:$40 sps:$4 sm:$0xff]   ;;  %s10495_s14 = smov [#allocation26]  }
 0x11e   :  { %v10774_v48 = vcombine.high %v239_v46, %v239_v46  ;;  %v8766_v50 = vld [vmem:[#allocation7 + $0x3c4] ss:$40 sps:$4 sm:$0xff]   ;;  %v8770_v52 = vld [vmem:[#allocation7 + $0x3c0] ss:$40 sps:$4 sm:$0xff]   ;;  %v8772_v54 = vld [vmem:[#allocation7 + $0x414] ss:$40 sps:$4 sm:$0xff]   ;;  %v10778_v5 = vcombine.low %v239_v46, %v239_v46 }
 0x11f   :  { %3206 = vmatpush1.bf16.msra.mxu0 %v8722_v18  ;;  %v8771_v53 = vld [vmem:[#allocation7 + $0x3c8] ss:$40 sps:$4 sm:$0xff]   ;;  %v8774_v55 = vld [vmem:[#allocation7 + $0x41c] ss:$40 sps:$4 sm:$0xff]   ;;  %v8777_v57 = vld [vmem:[#allocation7 + $0x418] ss:$40 sps:$4 sm:$0xff]  }
 0x120   :  { %3329 = vmatpush1.bf16.msra.mxu1 %v8723_v19  ;;  %3207 = vmatprep.subr.bf16.mxu0 %v8724_v20  ;;  %v8776_v56 = vld [vmem:[#allocation7 + $0x410] ss:$40 sps:$4 sm:$0xff]   ;;  %v8778_v58 = vld [vmem:[#allocation7 + $0x464] ss:$40 sps:$4 sm:$0xff]   ;;  %v8782_v60 = vld [vmem:[#allocation7 + $0x460] ss:$40 sps:$4 sm:$0xff]  }
 0x121   :  { %3330 = vmatprep.subr.bf16.mxu1 %v8726_v21  ;;  %3229 = vmatprep.mubr.bf16.mxu0 %v10774_v48  ;;  %v8780_v59 = vld [vmem:[#allocation7 + $0x46c] ss:$40 sps:$4 sm:$0xff]   ;;  %v8783_v61 = vld [vmem:[#allocation7 + $0x468] ss:$40 sps:$4 sm:$0xff]   ;;  %v8786_v63 = vld [vmem:[#allocation7 + $0x4bc] ss:$40 sps:$4 sm:$0xff]  }
 0x122   :  { %3352 = vmatprep.mubr.bf16.mxu1 %v10774_v48  ;;  %v8784_v62 = vld [vmem:[#allocation7 + $0x4b4] ss:$40 sps:$4 sm:$0xff]   ;;  %v8788_v0 = vld [vmem:[#allocation7 + $0x4b0] ss:$40 sps:$4 sm:$0xff]   ;;  %v8793_v2 = vld [vmem:[#allocation7 + $0x504] ss:$40 sps:$4 sm:$0xff]  }
 0x123   :  { %3208 = vmatpush1.bf16.msra.mxu0 %v8728_v22  ;;  %v8789_v1 = vld [vmem:[#allocation7 + $0x4b8] ss:$40 sps:$4 sm:$0xff]   ;;  %v8796_v3 = vld [vmem:[#allocation7 + $0x50c] ss:$40 sps:$4 sm:$0xff]   ;;  %v8794_v6 = vld [vmem:[#allocation7 + $0x508] ss:$40 sps:$4 sm:$0xff]  }
 0x124   :  { %3331 = vmatpush1.bf16.msra.mxu1 %v8729_v23  ;;  %3209 = vmatprep.subr.bf16.mxu0 %v8730_v24  ;;  %v8791_v4 = vld [vmem:[#allocation7 + $0x500] ss:$40 sps:$4 sm:$0xff]   ;;  %v8800_v7 = vld [vmem:[#allocation7 + $0x554] ss:$40 sps:$4 sm:$0xff]   ;;  %v8798_v9 = vld [vmem:[#allocation7 + $0x550] ss:$40 sps:$4 sm:$0xff]  }
 0x125   :  { %3332 = vmatprep.subr.bf16.mxu1 %v8732_v25  ;;  %v8803_v8 = vld [vmem:[#allocation7 + $0x55c] ss:$40 sps:$4 sm:$0xff]   ;;  %v8801_v10 = vld [vmem:[#allocation7 + $0x558] ss:$40 sps:$4 sm:$0xff]   ;;  %v8809_v12 = vld [vmem:[#allocation7 + $0x5ac] ss:$40 sps:$4 sm:$0xff]  }
 0x126   :  { %v8806_v11 = vld [vmem:[#allocation7 + $0x5a4] ss:$40 sps:$4 sm:$0xff]   ;;  %v8804_v13 = vld [vmem:[#allocation7 + $0x5a0] ss:$40 sps:$4 sm:$0xff]   ;;  %v8812_v15 = vld [vmem:[#allocation7 + $0x5f4] ss:$40 sps:$4 sm:$0xff]  }
 0x127   :  { %3210 = vmatpush1.bf16.msra.mxu0 %v8734_v26  ;;  %v8807_v14 = vld [vmem:[#allocation7 + $0x5a8] ss:$40 sps:$4 sm:$0xff]   ;;  %v8815_v16 = vld [vmem:[#allocation7 + $0x5fc] ss:$40 sps:$4 sm:$0xff]   ;;  %v8813_v18 = vld [vmem:[#allocation7 + $0x5f8] ss:$40 sps:$4 sm:$0xff]  }
 0x128   :  { %3333 = vmatpush1.bf16.msra.mxu1 %v8735_v27  ;;  %3211 = vmatprep.subr.bf16.mxu0 %v8736_v28  ;;  %v8810_v17 = vld [vmem:[#allocation7 + $0x5f0] ss:$40 sps:$4 sm:$0xff]   ;;  %v8818_v19 = vld [vmem:[#allocation7 + $0x644] ss:$40 sps:$4 sm:$0xff]   ;;  %v8816_v21 = vld [vmem:[#allocation7 + $0x640] ss:$40 sps:$4 sm:$0xff]  }
 0x129   :  { %3334 = vmatprep.subr.bf16.mxu1 %v8738_v29  ;;  %v8821_v20 = vld [vmem:[#allocation7 + $0x64c] ss:$40 sps:$4 sm:$0xff]   ;;  %v8819_v22 = vld [vmem:[#allocation7 + $0x648] ss:$40 sps:$4 sm:$0xff]   ;;  %v8827_v24 = vld [vmem:[#allocation7 + $0x69c] ss:$40 sps:$4 sm:$0xff]  }
 0x12a   :  { %v8824_v23 = vld [vmem:[#allocation7 + $0x694] ss:$40 sps:$4 sm:$0xff]   ;;  %v8822_v25 = vld [vmem:[#allocation7 + $0x690] ss:$40 sps:$4 sm:$0xff]   ;;  %v8830_v27 = vld [vmem:[#allocation7 + $0x6e4] ss:$40 sps:$4 sm:$0xff]  }
 0x12b   :  { %3212 = vmatpush1.bf16.msra.mxu0 %v8740_v30  ;;  %v8825_v26 = vld [vmem:[#allocation7 + $0x698] ss:$40 sps:$4 sm:$0xff]   ;;  %v8833_v28 = vld [vmem:[#allocation7 + $0x6ec] ss:$40 sps:$4 sm:$0xff]   ;;  %s7533_s5 = sshll.u32 %s10495_s14, 4  ;;  %s7534_s5 = int_to_ptr.vmem [resolvable:$true] %s7533_s5 }
 0x12c   :  { %3335 = vmatpush1.bf16.msra.mxu1 %v8741_v31  ;;  %3213 = vmatprep.subr.bf16.mxu0 %v8742_v32  ;;  %v10782_v29 = vld [vmem:[#allocation2 + $0x8] sm:$0xff]  ;;  %v8828_v31 = vld [vmem:[#allocation7 + $0x6e0] ss:$40 sps:$4 sm:$0xff]   ;;  %s10431_s13 = scalar_lea.vmem %s7534_s5, 256  ;;  %p10436_p9 = scmp.lt.s32.totalorder %s7534_s5, %s7534_s5 }
 0x12d   :  { %3336 = vmatprep.subr.bf16.mxu1 %v8744_v33  ;;  %v10786_v30 = vcombine.high %v10782_v29, %v10782_v29  ;;  %v8831_v32 = vld [vmem:[#allocation7 + $0x6e8] ss:$40 sps:$4 sm:$0xff]   ;;  %v8836_v33 = vld [vmem:[#allocation7 + $0x734] ss:$40 sps:$4 sm:$0xff]   ;;  %p10432_p8 = scmp.ne.s32.totalorder %s7534_s5, %s10431_s13  ;;  %p10437_p10 = scmp.lt.s32.totalorder %s10431_s13, %s10431_s13 }
 0x12e   :  { %v8857_v46 = vld [vmem:[#allocation7 + $0x82c] ss:$40 sps:$4 sm:$0xff]  }
 0x12f   :  { %3214 = vmatpush1.bf16.msra.mxu0 %v8746_v34  ;;  %v8839_v34 = vld [vmem:[#allocation7 + $0x73c] ss:$40 sps:$4 sm:$0xff]   ;;  %p10438_p11 = por %p10437_p10, %p10436_p9 }
 0x130   :  { %3337 = vmatpush1.bf16.msra.mxu1 %v8747_v35  ;;  %3215 = vmatprep.subr.bf16.mxu0 %v8748_v36  ;;  %v8834_v35 = vld [vmem:[#allocation7 + $0x730] ss:$40 sps:$4 sm:$0xff]  }
 0x131   :  { %3338 = vmatprep.subr.bf16.mxu1 %v8750_v37  ;;  %v8837_v36 = vld [vmem:[#allocation7 + $0x738] ss:$40 sps:$4 sm:$0xff]   ;;  %v8842_v37 = vld [vmem:[#allocation7 + $0x784] ss:$40 sps:$4 sm:$0xff]   ;;  %p10439_p12 = pnand %p10438_p11, %p10432_p8 }
 0x133   :  { %3216 = vmatpush1.bf16.msra.mxu0 %v8752_v38  ;;  %v8845_v38 = vld [vmem:[#allocation7 + $0x78c] ss:$40 sps:$4 sm:$0xff]  }
 0x134   :  { %3339 = vmatpush1.bf16.msra.mxu1 %v8753_v39  ;;  %3217 = vmatprep.subr.bf16.mxu0 %v8754_v40  ;;  %v8840_v39 = vld [vmem:[#allocation7 + $0x780] ss:$40 sps:$4 sm:$0xff]  }
 0x135   :  { %3340 = vmatprep.subr.bf16.mxu1 %v8756_v41  ;;  %v8843_v40 = vld [vmem:[#allocation7 + $0x788] ss:$40 sps:$4 sm:$0xff]   ;;  %v8848_v41 = vld [vmem:[#allocation7 + $0x7d4] ss:$40 sps:$4 sm:$0xff]  }
 0x137   :  { %3218 = vmatpush1.bf16.msra.mxu0 %v8758_v42  ;;  %v8851_v42 = vld [vmem:[#allocation7 + $0x7dc] ss:$40 sps:$4 sm:$0xff]  }
 0x138   :  { %3341 = vmatpush1.bf16.msra.mxu1 %v8759_v43  ;;  %3219 = vmatprep.subr.bf16.mxu0 %v8760_v44  ;;  %v8846_v43 = vld [vmem:[#allocation7 + $0x7d0] ss:$40 sps:$4 sm:$0xff]  }
 0x139   :  { %3342 = vmatprep.subr.bf16.mxu1 %v8762_v45  ;;  %v8849_v44 = vld [vmem:[#allocation7 + $0x7d8] ss:$40 sps:$4 sm:$0xff]   ;;  %v8854_v45 = vld [vmem:[#allocation7 + $0x824] ss:$40 sps:$4 sm:$0xff]  }
 0x13b   :  { %3220 = vmatpush1.bf16.msra.mxu0 %v8764_v47  ;;  %v8852_v47 = vld [vmem:[#allocation7 + $0x820] ss:$40 sps:$4 sm:$0xff]  }
 0x13c   :  { %3343 = vmatpush1.bf16.msra.mxu1 %v8765_v49  ;;  %3221 = vmatprep.subr.bf16.mxu0 %v8766_v50  ;;  %v8855_v49 = vld [vmem:[#allocation7 + $0x828] ss:$40 sps:$4 sm:$0xff]   ;;  %v8860_v50 = vld [vmem:[#allocation7 + $0x874] ss:$40 sps:$4 sm:$0xff]  }
 0x13d   :  { %3344 = vmatprep.subr.bf16.mxu1 %v8768_v51  ;;  %v8863_v51 = vld [vmem:[#allocation7 + $0x87c] ss:$40 sps:$4 sm:$0xff]  }
 0x13f   :  { %3222 = vmatpush1.bf16.msra.mxu0 %v8770_v52  ;;  %v8858_v52 = vld [vmem:[#allocation7 + $0x870] ss:$40 sps:$4 sm:$0xff]  }
 0x140   :  { %3345 = vmatpush1.bf16.msra.mxu1 %v8771_v53  ;;  %3223 = vmatprep.subr.bf16.mxu0 %v8772_v54  ;;  %v8861_v53 = vld [vmem:[#allocation7 + $0x878] ss:$40 sps:$4 sm:$0xff]   ;;  %v8866_v54 = vld [vmem:[#allocation7 + $0x8c4] ss:$40 sps:$4 sm:$0xff]  }
 0x141   :  { %3346 = vmatprep.subr.bf16.mxu1 %v8774_v55  ;;  %v8869_v55 = vld [vmem:[#allocation7 + $0x8cc] ss:$40 sps:$4 sm:$0xff]  }
 0x143   :  { %3224 = vmatpush1.bf16.msra.mxu0 %v8776_v56  ;;  %v8864_v56 = vld [vmem:[#allocation7 + $0x8c0] ss:$40 sps:$4 sm:$0xff]  }
 0x144   :  { %3347 = vmatpush1.bf16.msra.mxu1 %v8777_v57  ;;  %3225 = vmatprep.subr.bf16.mxu0 %v8778_v58  ;;  %v8867_v57 = vld [vmem:[#allocation7 + $0x8c8] ss:$40 sps:$4 sm:$0xff]   ;;  %v8872_v58 = vld [vmem:[#allocation7 + $0x914] ss:$40 sps:$4 sm:$0xff]  }
 0x145   :  { %3348 = vmatprep.subr.bf16.mxu1 %v8780_v59  ;;  %v8875_v59 = vld [vmem:[#allocation7 + $0x91c] ss:$40 sps:$4 sm:$0xff]  }
 0x147   :  { %3226 = vmatpush1.bf16.msra.mxu0 %v8782_v60  ;;  %v8870_v60 = vld [vmem:[#allocation7 + $0x910] ss:$40 sps:$4 sm:$0xff]  }
 0x148   :  { %3349 = vmatpush1.bf16.msra.mxu1 %v8783_v61  ;;  %3227 = vmatprep.subr.bf16.mxu0 %v8784_v62  ;;  %v8873_v61 = vld [vmem:[#allocation7 + $0x918] ss:$40 sps:$4 sm:$0xff]   ;;  %v8878_v62 = vld [vmem:[#allocation7 + $0x964] ss:$40 sps:$4 sm:$0xff]  }
 0x149   :  { %3350 = vmatprep.subr.bf16.mxu1 %v8786_v63  ;;  %v8881_v63 = vld [vmem:[#allocation7 + $0x96c] ss:$40 sps:$4 sm:$0xff]  }
 0x14b   :  { %3228 = vmatpush1.bf16.msra.mxu0 %v8788_v0  ;;  %v8876_v0 = vld [vmem:[#allocation7 + $0x960] ss:$40 sps:$4 sm:$0xff]  }
 0x14c   :  { %3351 = vmatpush1.bf16.msra.mxu1 %v8789_v1  ;;  %3238 = vmatprep.subr.bf16.mxu0 %v8793_v2  ;;  %v8879_v1 = vld [vmem:[#allocation7 + $0x968] ss:$40 sps:$4 sm:$0xff]   ;;  %v8884_v2 = vld [vmem:[#allocation7 + $0x9b4] ss:$40 sps:$4 sm:$0xff]  }
 0x14d   :  { %3361 = vmatprep.subr.bf16.mxu1 %v8796_v3  ;;  %v8887_v3 = vld [vmem:[#allocation7 + $0x9bc] ss:$40 sps:$4 sm:$0xff]  }
 0x14e   :  { %3230 = vmatmul.mubr.bf16.vlgmr.msra.gmra.mrb[0].mxu0 %v10778_v5 }
 0x14f   :  { %3353 = vmatmul.mubr.bf16.vlgmr.msra.gmra.mrb[0].mxu1 %v10778_v5  ;;  %3239 = vmatpush1.bf16.msra.mxu0 %v8791_v4  ;;  %v8882_v4 = vld [vmem:[#allocation7 + $0x9b0] ss:$40 sps:$4 sm:$0xff]  }
 0x150   :  { %3362 = vmatpush1.bf16.msra.mxu1 %v8794_v6  ;;  %3240 = vmatprep.subr.bf16.mxu0 %v8800_v7  ;;  %v8885_v6 = vld [vmem:[#allocation7 + $0x9b8] ss:$40 sps:$4 sm:$0xff]   ;;  %v8891_v7 = vld [vmem:[#allocation7 + $0xa04] ss:$40 sps:$4 sm:$0xff]  }
 0x151   :  { %3363 = vmatprep.subr.bf16.mxu1 %v8803_v8  ;;  %3270 = vmatprep.mubr.bf16.mxu0 %v10786_v30  ;;  %v8894_v8 = vld [vmem:[#allocation7 + $0xa0c] ss:$40 sps:$4 sm:$0xff]  }
 0x152   :  { %3393 = vmatprep.mubr.bf16.mxu1 %v10786_v30 }
 0x153   :  { %3241 = vmatpush1.bf16.msra.mxu0 %v8798_v9  ;;  %v8889_v9 = vld [vmem:[#allocation7 + $0xa00] ss:$40 sps:$4 sm:$0xff]  }
 0x154   :  { %3364 = vmatpush1.bf16.msra.mxu1 %v8801_v10  ;;  %3242 = vmatprep.subr.bf16.mxu0 %v8806_v11  ;;  %v10792_v10 = vcombine.low %v10782_v29, %v10782_v29  ;;  %v8892_v11 = vld [vmem:[#allocation7 + $0xa08] ss:$40 sps:$4 sm:$0xff]  }
 0x155   :  { %3365 = vmatprep.subr.bf16.mxu1 %v8809_v12  ;;  %v8898_v12 = vld [vmem:[#allocation7 + $0xa54] ss:$40 sps:$4 sm:$0xff]   ;;  %v8917_v29 = vld [vmem:[#allocation7 + $0xb48] ss:$40 sps:$4 sm:$0xff]  }
 0x157   :  { %3243 = vmatpush1.bf16.msra.mxu0 %v8804_v13  ;;  %v10794_v13 = vld [vmem:[#allocation2 + $0x10] sm:$0xff] }
 0x158   :  { %3366 = vmatpush1.bf16.msra.mxu1 %v8807_v14  ;;  %3244 = vmatprep.subr.bf16.mxu0 %v8812_v15  ;;  %v8901_v14 = vld [vmem:[#allocation7 + $0xa5c] ss:$40 sps:$4 sm:$0xff]   ;;  %v10798_v15 = vcombine.high %v10794_v13, %v10794_v13 }
 0x159   :  { %3367 = vmatprep.subr.bf16.mxu1 %v8815_v16  ;;  %v8896_v16 = vld [vmem:[#allocation7 + $0xa50] ss:$40 sps:$4 sm:$0xff]  }
 0x15b   :  { %3245 = vmatpush1.bf16.msra.mxu0 %v8810_v17  ;;  %v8899_v17 = vld [vmem:[#allocation7 + $0xa58] ss:$40 sps:$4 sm:$0xff]  }
 0x15c   :  { %3368 = vmatpush1.bf16.msra.mxu1 %v8813_v18  ;;  %3246 = vmatprep.subr.bf16.mxu0 %v8818_v19  ;;  %v8904_v18 = vld [vmem:[#allocation7 + $0xaa4] ss:$40 sps:$4 sm:$0xff]  }
 0x15d   :  { %3369 = vmatprep.subr.bf16.mxu1 %v8821_v20  ;;  %v8907_v19 = vld [vmem:[#allocation7 + $0xaac] ss:$40 sps:$4 sm:$0xff]   ;;  %v8902_v20 = vld [vmem:[#allocation7 + $0xaa0] ss:$40 sps:$4 sm:$0xff]  }
 0x15f   :  { %3247 = vmatpush1.bf16.msra.mxu0 %v8816_v21  ;;  %v8905_v21 = vld [vmem:[#allocation7 + $0xaa8] ss:$40 sps:$4 sm:$0xff]  }
 0x160   :  { %3370 = vmatpush1.bf16.msra.mxu1 %v8819_v22  ;;  %3248 = vmatprep.subr.bf16.mxu0 %v8824_v23  ;;  %v8910_v22 = vld [vmem:[#allocation7 + $0xaf4] ss:$40 sps:$4 sm:$0xff]  }
 0x161   :  { %3371 = vmatprep.subr.bf16.mxu1 %v8827_v24  ;;  %v8913_v23 = vld [vmem:[#allocation7 + $0xafc] ss:$40 sps:$4 sm:$0xff]   ;;  %v8908_v24 = vld [vmem:[#allocation7 + $0xaf0] ss:$40 sps:$4 sm:$0xff]  }
 0x163   :  { %3249 = vmatpush1.bf16.msra.mxu0 %v8822_v25  ;;  %v8911_v25 = vld [vmem:[#allocation7 + $0xaf8] ss:$40 sps:$4 sm:$0xff]  }
 0x164   :  { %3372 = vmatpush1.bf16.msra.mxu1 %v8825_v26  ;;  %3250 = vmatprep.subr.bf16.mxu0 %v8830_v27  ;;  %v8916_v26 = vld [vmem:[#allocation7 + $0xb44] ss:$40 sps:$4 sm:$0xff]  }
 0x165   :  { %3373 = vmatprep.subr.bf16.mxu1 %v8833_v28  ;;  %v8919_v27 = vld [vmem:[#allocation7 + $0xb4c] ss:$40 sps:$4 sm:$0xff]   ;;  %v8914_v28 = vld [vmem:[#allocation7 + $0xb40] ss:$40 sps:$4 sm:$0xff]  }
 0x167   :  { %3251 = vmatpush1.bf16.msra.mxu0 %v8828_v31  ;;  %v8922_v31 = vld [vmem:[#allocation7 + $0xb94] ss:$40 sps:$4 sm:$0xff]  }
 0x168   :  { %3374 = vmatpush1.bf16.msra.mxu1 %v8831_v32  ;;  %3252 = vmatprep.subr.bf16.mxu0 %v8836_v33  ;;  %v8925_v32 = vld [vmem:[#allocation7 + $0xb9c] ss:$40 sps:$4 sm:$0xff]   ;;  %v8920_v33 = vld [vmem:[#allocation7 + $0xb90] ss:$40 sps:$4 sm:$0xff]  }
 0x169   :  { %3375 = vmatprep.subr.bf16.mxu1 %v8839_v34  ;;  %v8923_v34 = vld [vmem:[#allocation7 + $0xb98] ss:$40 sps:$4 sm:$0xff]  }
 0x16b   :  { %3253 = vmatpush1.bf16.msra.mxu0 %v8834_v35  ;;  %v8928_v35 = vld [vmem:[#allocation7 + $0xbe4] ss:$40 sps:$4 sm:$0xff]  }
 0x16c   :  { %3376 = vmatpush1.bf16.msra.mxu1 %v8837_v36  ;;  %3254 = vmatprep.subr.bf16.mxu0 %v8842_v37  ;;  %v8931_v36 = vld [vmem:[#allocation7 + $0xbec] ss:$40 sps:$4 sm:$0xff]   ;;  %v8926_v37 = vld [vmem:[#allocation7 + $0xbe0] ss:$40 sps:$4 sm:$0xff]  }
 0x16d   :  { %3377 = vmatprep.subr.bf16.mxu1 %v8845_v38  ;;  %v8929_v38 = vld [vmem:[#allocation7 + $0xbe8] ss:$40 sps:$4 sm:$0xff]  }
 0x16f   :  { %3255 = vmatpush1.bf16.msra.mxu0 %v8840_v39  ;;  %v8934_v39 = vld [vmem:[#allocation7 + $0xc34] ss:$40 sps:$4 sm:$0xff]  }
 0x170   :  { %3378 = vmatpush1.bf16.msra.mxu1 %v8843_v40  ;;  %3256 = vmatprep.subr.bf16.mxu0 %v8848_v41  ;;  %v8937_v40 = vld [vmem:[#allocation7 + $0xc3c] ss:$40 sps:$4 sm:$0xff]   ;;  %v8932_v41 = vld [vmem:[#allocation7 + $0xc30] ss:$40 sps:$4 sm:$0xff]  }
 0x171   :  { %3379 = vmatprep.subr.bf16.mxu1 %v8851_v42  ;;  %v8935_v42 = vld [vmem:[#allocation7 + $0xc38] ss:$40 sps:$4 sm:$0xff]  }
 0x173   :  { %3257 = vmatpush1.bf16.msra.mxu0 %v8846_v43  ;;  %v8940_v43 = vld [vmem:[#allocation7 + $0xc84] ss:$40 sps:$4 sm:$0xff]  }
 0x174   :  { %3380 = vmatpush1.bf16.msra.mxu1 %v8849_v44  ;;  %3258 = vmatprep.subr.bf16.mxu0 %v8854_v45  ;;  %v8943_v44 = vld [vmem:[#allocation7 + $0xc8c] ss:$40 sps:$4 sm:$0xff]   ;;  %v8938_v45 = vld [vmem:[#allocation7 + $0xc80] ss:$40 sps:$4 sm:$0xff]  }
 0x175   :  { %3381 = vmatprep.subr.bf16.mxu1 %v8857_v46  ;;  %v8941_v46 = vld [vmem:[#allocation7 + $0xc88] ss:$40 sps:$4 sm:$0xff]  }
 0x177   :  { %3259 = vmatpush1.bf16.msra.mxu0 %v8852_v47  ;;  %v8946_v47 = vld [vmem:[#allocation7 + $0xcd4] ss:$40 sps:$4 sm:$0xff]  }
 0x178   :  { %3382 = vmatpush1.bf16.msra.mxu1 %v8855_v49  ;;  %3260 = vmatprep.subr.bf16.mxu0 %v8860_v50  ;;  %v8949_v49 = vld [vmem:[#allocation7 + $0xcdc] ss:$40 sps:$4 sm:$0xff]   ;;  %v8944_v50 = vld [vmem:[#allocation7 + $0xcd0] ss:$40 sps:$4 sm:$0xff]  }
 0x179   :  { %3383 = vmatprep.subr.bf16.mxu1 %v8863_v51  ;;  %v8947_v51 = vld [vmem:[#allocation7 + $0xcd8] ss:$40 sps:$4 sm:$0xff]  }
 0x17b   :  { %3261 = vmatpush1.bf16.msra.mxu0 %v8858_v52  ;;  %v8952_v52 = vld [vmem:[#allocation7 + $0xd24] ss:$40 sps:$4 sm:$0xff]  }
 0x17c   :  { %3384 = vmatpush1.bf16.msra.mxu1 %v8861_v53  ;;  %3262 = vmatprep.subr.bf16.mxu0 %v8866_v54  ;;  %v8955_v53 = vld [vmem:[#allocation7 + $0xd2c] ss:$40 sps:$4 sm:$0xff]   ;;  %v8950_v54 = vld [vmem:[#allocation7 + $0xd20] ss:$40 sps:$4 sm:$0xff]  }
 0x17d   :  { %3385 = vmatprep.subr.bf16.mxu1 %v8869_v55  ;;  %v8953_v55 = vld [vmem:[#allocation7 + $0xd28] ss:$40 sps:$4 sm:$0xff]  }
 0x17f   :  { %3263 = vmatpush1.bf16.msra.mxu0 %v8864_v56  ;;  %v8958_v56 = vld [vmem:[#allocation7 + $0xd74] ss:$40 sps:$4 sm:$0xff]  }
 0x180   :  { %3386 = vmatpush1.bf16.msra.mxu1 %v8867_v57  ;;  %3264 = vmatprep.subr.bf16.mxu0 %v8872_v58  ;;  %v8961_v57 = vld [vmem:[#allocation7 + $0xd7c] ss:$40 sps:$4 sm:$0xff]   ;;  %v8956_v58 = vld [vmem:[#allocation7 + $0xd70] ss:$40 sps:$4 sm:$0xff]  }
 0x181   :  { %3387 = vmatprep.subr.bf16.mxu1 %v8875_v59  ;;  %v8959_v59 = vld [vmem:[#allocation7 + $0xd78] ss:$40 sps:$4 sm:$0xff]  }
 0x183   :  { %3265 = vmatpush1.bf16.msra.mxu0 %v8870_v60  ;;  %v8964_v60 = vld [vmem:[#allocation7 + $0xdc4] ss:$40 sps:$4 sm:$0xff]  }
 0x184   :  { %3388 = vmatpush1.bf16.msra.mxu1 %v8873_v61  ;;  %3266 = vmatprep.subr.bf16.mxu0 %v8878_v62  ;;  %v8967_v61 = vld [vmem:[#allocation7 + $0xdcc] ss:$40 sps:$4 sm:$0xff]   ;;  %v8962_v62 = vld [vmem:[#allocation7 + $0xdc0] ss:$40 sps:$4 sm:$0xff]  }
 0x185   :  { %3389 = vmatprep.subr.bf16.mxu1 %v8881_v63  ;;  %v8965_v63 = vld [vmem:[#allocation7 + $0xdc8] ss:$40 sps:$4 sm:$0xff]  }
 0x187   :  { %3267 = vmatpush1.bf16.msra.mxu0 %v8876_v0  ;;  %v8970_v0 = vld [vmem:[#allocation7 + $0xe14] ss:$40 sps:$4 sm:$0xff]  }
 0x188   :  { %3390 = vmatpush1.bf16.msra.mxu1 %v8879_v1  ;;  %3268 = vmatprep.subr.bf16.mxu0 %v8884_v2  ;;  %v8973_v1 = vld [vmem:[#allocation7 + $0xe1c] ss:$40 sps:$4 sm:$0xff]   ;;  %v8968_v2 = vld [vmem:[#allocation7 + $0xe10] ss:$40 sps:$4 sm:$0xff]  }
 0x189   :  { %3391 = vmatprep.subr.bf16.mxu1 %v8887_v3  ;;  %v8971_v3 = vld [vmem:[#allocation7 + $0xe18] ss:$40 sps:$4 sm:$0xff]  }
 0x18b   :  { %3269 = vmatpush1.bf16.msra.mxu0 %v8882_v4  ;;  %v8976_v4 = vld [vmem:[#allocation7 + $0xe64] ss:$40 sps:$4 sm:$0xff]  }
 0x18c   :  { %3392 = vmatpush1.bf16.msra.mxu1 %v8885_v6  ;;  %3279 = vmatprep.subr.bf16.mxu0 %v8891_v7  ;;  %v8979_v6 = vld [vmem:[#allocation7 + $0xe6c] ss:$40 sps:$4 sm:$0xff]   ;;  %v8974_v7 = vld [vmem:[#allocation7 + $0xe60] ss:$40 sps:$4 sm:$0xff]  }
 0x18d   :  { %3402 = vmatprep.subr.bf16.mxu1 %v8894_v8  ;;  %v8977_v8 = vld [vmem:[#allocation7 + $0xe68] ss:$40 sps:$4 sm:$0xff]  }
 0x18e   :  { %3271 = vmatmul.mubr.bf16.vlgmr.msra.gmra.mrb[0].mxu0 %v10792_v10 }
 0x18f   :  { %3394 = vmatmul.mubr.bf16.vlgmr.msra.gmra.mrb[0].mxu1 %v10792_v10  ;;  %3280 = vmatpush1.bf16.msra.mxu0 %v8889_v9  ;;  %v8982_v9 = vld [vmem:[#allocation7 + $0xeb4] ss:$40 sps:$4 sm:$0xff]  }
 0x190   :  { %3403 = vmatpush1.bf16.msra.mxu1 %v8892_v11  ;;  %3281 = vmatprep.subr.bf16.mxu0 %v8898_v12  ;;  %v8985_v11 = vld [vmem:[#allocation7 + $0xebc] ss:$40 sps:$4 sm:$0xff]   ;;  %v8980_v12 = vld [vmem:[#allocation7 + $0xeb0] ss:$40 sps:$4 sm:$0xff]  }
 0x191   :  { %3404 = vmatprep.subr.bf16.mxu1 %v8901_v14  ;;  %3311 = vmatprep.mubr.bf16.mxu0 %v10798_v15  ;;  %v8983_v14 = vld [vmem:[#allocation7 + $0xeb8] ss:$40 sps:$4 sm:$0xff]  }
 0x192   :  { %3434 = vmatprep.mubr.bf16.mxu1 %v10798_v15 }
 0x193   :  { %3282 = vmatpush1.bf16.msra.mxu0 %v8896_v16  ;;  %v8990_v16 = vld [vmem:[#allocation7 + $0x14] ss:$40 sps:$4 sm:$0xff]  }
 0x194   :  { %3405 = vmatpush1.bf16.msra.mxu1 %v8899_v17  ;;  %3283 = vmatprep.subr.bf16.mxu0 %v8904_v18  ;;  %v8993_v17 = vld [vmem:[#allocation7 + $0x1c] ss:$40 sps:$4 sm:$0xff]   ;;  %v10806_v18 = vcombine.low %v10794_v13, %v10794_v13 }
 0x195   :  { %3406 = vmatprep.subr.bf16.mxu1 %v8907_v19  ;;  %v8988_v19 = vld [vmem:[#allocation7 + $0x10] ss:$40 sps:$4 sm:$0xff]   ;;  %v9005_v13 = vld [vmem:[#allocation7 + $0xbc] ss:$40 sps:$4 sm:$0xff]  }
 0x197   :  { %3284 = vmatpush1.bf16.msra.mxu0 %v8902_v20  ;;  %v8991_v20 = vld [vmem:[#allocation7 + $0x18] ss:$40 sps:$4 sm:$0xff]  }
 0x198   :  { %3407 = vmatpush1.bf16.msra.mxu1 %v8905_v21  ;;  %3285 = vmatprep.subr.bf16.mxu0 %v8910_v22  ;;  %v8996_v21 = vld [vmem:[#allocation7 + $0x64] ss:$40 sps:$4 sm:$0xff]  }
 0x199   :  { %3408 = vmatprep.subr.bf16.mxu1 %v8913_v23  ;;  %v8999_v22 = vld [vmem:[#allocation7 + $0x6c] ss:$40 sps:$4 sm:$0xff]   ;;  %v8994_v23 = vld [vmem:[#allocation7 + $0x60] ss:$40 sps:$4 sm:$0xff]  }
 0x19b   :  { %3286 = vmatpush1.bf16.msra.mxu0 %v8908_v24  ;;  %v8997_v24 = vld [vmem:[#allocation7 + $0x68] ss:$40 sps:$4 sm:$0xff]  }
 0x19c   :  { %3409 = vmatpush1.bf16.msra.mxu1 %v8911_v25  ;;  %3287 = vmatprep.subr.bf16.mxu0 %v8916_v26  ;;  %v9002_v25 = vld [vmem:[#allocation7 + $0xb4] ss:$40 sps:$4 sm:$0xff]   ;;  %v9000_v26 = vld [vmem:[#allocation7 + $0xb0] ss:$40 sps:$4 sm:$0xff]  }
 0x19d   :  { %3410 = vmatprep.subr.bf16.mxu1 %v8919_v27  ;;  %v9003_v27 = vld [vmem:[#allocation7 + $0xb8] ss:$40 sps:$4 sm:$0xff]  }
 0x19f   :  { %3288 = vmatpush1.bf16.msra.mxu0 %v8914_v28  ;;  %v9008_v28 = vld [vmem:[#allocation7 + $0x104] ss:$40 sps:$4 sm:$0xff]  }
 0x1a0   :  { %3411 = vmatpush1.bf16.msra.mxu1 %v8917_v29  ;;  %3289 = vmatprep.subr.bf16.mxu0 %v8922_v31  ;;  %v9011_v29 = vld [vmem:[#allocation7 + $0x10c] ss:$40 sps:$4 sm:$0xff]   ;;  %v9006_v31 = vld [vmem:[#allocation7 + $0x100] ss:$40 sps:$4 sm:$0xff]  }
 0x1a1   :  { %3412 = vmatprep.subr.bf16.mxu1 %v8925_v32  ;;  %v9009_v32 = vld [vmem:[#allocation7 + $0x108] ss:$40 sps:$4 sm:$0xff]  }
 0x1a3   :  { %3290 = vmatpush1.bf16.msra.mxu0 %v8920_v33  ;;  %v9014_v33 = vld [vmem:[#allocation7 + $0x154] ss:$40 sps:$4 sm:$0xff]  }
 0x1a4   :  { %3413 = vmatpush1.bf16.msra.mxu1 %v8923_v34  ;;  %3291 = vmatprep.subr.bf16.mxu0 %v8928_v35  ;;  %v9017_v34 = vld [vmem:[#allocation7 + $0x15c] ss:$40 sps:$4 sm:$0xff]   ;;  %v9012_v35 = vld [vmem:[#allocation7 + $0x150] ss:$40 sps:$4 sm:$0xff]  }
 0x1a5   :  { %3414 = vmatprep.subr.bf16.mxu1 %v8931_v36  ;;  %v9015_v36 = vld [vmem:[#allocation7 + $0x158] ss:$40 sps:$4 sm:$0xff]  }
 0x1a7   :  { %3292 = vmatpush1.bf16.msra.mxu0 %v8926_v37  ;;  %v9020_v37 = vld [vmem:[#allocation7 + $0x1a4] ss:$40 sps:$4 sm:$0xff]  }
 0x1a8   :  { %3415 = vmatpush1.bf16.msra.mxu1 %v8929_v38  ;;  %3293 = vmatprep.subr.bf16.mxu0 %v8934_v39  ;;  %v9023_v38 = vld [vmem:[#allocation7 + $0x1ac] ss:$40 sps:$4 sm:$0xff]   ;;  %v9018_v39 = vld [vmem:[#allocation7 + $0x1a0] ss:$40 sps:$4 sm:$0xff]  }
 0x1a9   :  { %3416 = vmatprep.subr.bf16.mxu1 %v8937_v40  ;;  %v9021_v40 = vld [vmem:[#allocation7 + $0x1a8] ss:$40 sps:$4 sm:$0xff]  }
 0x1ab   :  { %3294 = vmatpush1.bf16.msra.mxu0 %v8932_v41  ;;  %v9026_v41 = vld [vmem:[#allocation7 + $0x1f4] ss:$40 sps:$4 sm:$0xff]  }
 0x1ac   :  { %3417 = vmatpush1.bf16.msra.mxu1 %v8935_v42  ;;  %3295 = vmatprep.subr.bf16.mxu0 %v8940_v43  ;;  %v9029_v42 = vld [vmem:[#allocation7 + $0x1fc] ss:$40 sps:$4 sm:$0xff]   ;;  %v9024_v43 = vld [vmem:[#allocation7 + $0x1f0] ss:$40 sps:$4 sm:$0xff]  }
 0x1ad   :  { %3418 = vmatprep.subr.bf16.mxu1 %v8943_v44  ;;  %v9027_v44 = vld [vmem:[#allocation7 + $0x1f8] ss:$40 sps:$4 sm:$0xff]  }
 0x1af   :  { %3296 = vmatpush1.bf16.msra.mxu0 %v8938_v45  ;;  %v9032_v45 = vld [vmem:[#allocation7 + $0x244] ss:$40 sps:$4 sm:$0xff]  }
 0x1b0   :  { %3419 = vmatpush1.bf16.msra.mxu1 %v8941_v46  ;;  %3297 = vmatprep.subr.bf16.mxu0 %v8946_v47  ;;  %v9035_v46 = vld [vmem:[#allocation7 + $0x24c] ss:$40 sps:$4 sm:$0xff]   ;;  %v9030_v47 = vld [vmem:[#allocation7 + $0x240] ss:$40 sps:$4 sm:$0xff]  }
 0x1b1   :  { %3420 = vmatprep.subr.bf16.mxu1 %v8949_v49  ;;  %v9033_v49 = vld [vmem:[#allocation7 + $0x248] ss:$40 sps:$4 sm:$0xff]  }
 0x1b3   :  { %3298 = vmatpush1.bf16.msra.mxu0 %v8944_v50  ;;  %v9038_v50 = vld [vmem:[#allocation7 + $0x294] ss:$40 sps:$4 sm:$0xff]  }
 0x1b4   :  { %3421 = vmatpush1.bf16.msra.mxu1 %v8947_v51  ;;  %3299 = vmatprep.subr.bf16.mxu0 %v8952_v52  ;;  %v9041_v51 = vld [vmem:[#allocation7 + $0x29c] ss:$40 sps:$4 sm:$0xff]   ;;  %v9036_v52 = vld [vmem:[#allocation7 + $0x290] ss:$40 sps:$4 sm:$0xff]  }
 0x1b5   :  { %3422 = vmatprep.subr.bf16.mxu1 %v8955_v53  ;;  %v9039_v53 = vld [vmem:[#allocation7 + $0x298] ss:$40 sps:$4 sm:$0xff]  }
 0x1b7   :  { %3300 = vmatpush1.bf16.msra.mxu0 %v8950_v54  ;;  %v9044_v54 = vld [vmem:[#allocation7 + $0x2e4] ss:$40 sps:$4 sm:$0xff]  }
 0x1b8   :  { %3423 = vmatpush1.bf16.msra.mxu1 %v8953_v55  ;;  %3301 = vmatprep.subr.bf16.mxu0 %v8958_v56  ;;  %v9047_v55 = vld [vmem:[#allocation7 + $0x2ec] ss:$40 sps:$4 sm:$0xff]   ;;  %v9042_v56 = vld [vmem:[#allocation7 + $0x2e0] ss:$40 sps:$4 sm:$0xff]  }
 0x1b9   :  { %3424 = vmatprep.subr.bf16.mxu1 %v8961_v57  ;;  %v9045_v57 = vld [vmem:[#allocation7 + $0x2e8] ss:$40 sps:$4 sm:$0xff]  }
 0x1bb   :  { %3302 = vmatpush1.bf16.msra.mxu0 %v8956_v58  ;;  %v9050_v58 = vld [vmem:[#allocation7 + $0x334] ss:$40 sps:$4 sm:$0xff]  }
 0x1bc   :  { %3425 = vmatpush1.bf16.msra.mxu1 %v8959_v59  ;;  %3303 = vmatprep.subr.bf16.mxu0 %v8964_v60  ;;  %v9053_v59 = vld [vmem:[#allocation7 + $0x33c] ss:$40 sps:$4 sm:$0xff]   ;;  %v9048_v60 = vld [vmem:[#allocation7 + $0x330] ss:$40 sps:$4 sm:$0xff]  }
 0x1bd   :  { %3426 = vmatprep.subr.bf16.mxu1 %v8967_v61  ;;  %v9051_v61 = vld [vmem:[#allocation7 + $0x338] ss:$40 sps:$4 sm:$0xff]  }
 0x1bf   :  { %3304 = vmatpush1.bf16.msra.mxu0 %v8962_v62  ;;  %v9056_v62 = vld [vmem:[#allocation7 + $0x384] ss:$40 sps:$4 sm:$0xff]  }
 0x1c0   :  { %3427 = vmatpush1.bf16.msra.mxu1 %v8965_v63  ;;  %3305 = vmatprep.subr.bf16.mxu0 %v8970_v0  ;;  %v9059_v63 = vld [vmem:[#allocation7 + $0x38c] ss:$40 sps:$4 sm:$0xff]   ;;  %v9054_v0 = vld [vmem:[#allocation7 + $0x380] ss:$40 sps:$4 sm:$0xff]  }
 0x1c1   :  { %3428 = vmatprep.subr.bf16.mxu1 %v8973_v1  ;;  %v9057_v1 = vld [vmem:[#allocation7 + $0x388] ss:$40 sps:$4 sm:$0xff]  }
 0x1c3   :  { %3306 = vmatpush1.bf16.msra.mxu0 %v8968_v2  ;;  %v9062_v2 = vld [vmem:[#allocation7 + $0x3d4] ss:$40 sps:$4 sm:$0xff]  }
 0x1c4   :  { %3429 = vmatpush1.bf16.msra.mxu1 %v8971_v3  ;;  %3307 = vmatprep.subr.bf16.mxu0 %v8976_v4  ;;  %v9065_v3 = vld [vmem:[#allocation7 + $0x3dc] ss:$40 sps:$4 sm:$0xff]   ;;  %v9060_v4 = vld [vmem:[#allocation7 + $0x3d0] ss:$40 sps:$4 sm:$0xff]  }
 0x1c5   :  { %3430 = vmatprep.subr.bf16.mxu1 %v8979_v6  ;;  %v9063_v6 = vld [vmem:[#allocation7 + $0x3d8] ss:$40 sps:$4 sm:$0xff]  }
 0x1c7   :  { %3308 = vmatpush1.bf16.msra.mxu0 %v8974_v7  ;;  %v9068_v7 = vld [vmem:[#allocation7 + $0x424] ss:$40 sps:$4 sm:$0xff]  }
 0x1c8   :  { %3431 = vmatpush1.bf16.msra.mxu1 %v8977_v8  ;;  %3309 = vmatprep.subr.bf16.mxu0 %v8982_v9  ;;  %v9071_v8 = vld [vmem:[#allocation7 + $0x42c] ss:$40 sps:$4 sm:$0xff]   ;;  %v9066_v9 = vld [vmem:[#allocation7 + $0x420] ss:$40 sps:$4 sm:$0xff]  }
 0x1c9   :  { %3432 = vmatprep.subr.bf16.mxu1 %v8985_v11  ;;  %v9069_v11 = vld [vmem:[#allocation7 + $0x428] ss:$40 sps:$4 sm:$0xff]  }
 0x1cb   :  { %3310 = vmatpush1.bf16.msra.mxu0 %v8980_v12  ;;  %v9074_v12 = vld [vmem:[#allocation7 + $0x474] ss:$40 sps:$4 sm:$0xff]  }
 0x1cc   :  { %3433 = vmatpush1.bf16.msra.mxu1 %v8983_v14  ;;  %3443 = vmatprep.subr.bf16.mxu0 %v8990_v16  ;;  %v9077_v14 = vld [vmem:[#allocation7 + $0x47c] ss:$40 sps:$4 sm:$0xff]   ;;  %v9072_v16 = vld [vmem:[#allocation7 + $0x470] ss:$40 sps:$4 sm:$0xff]  }
 0x1cd   :  { %3566 = vmatprep.subr.bf16.mxu1 %v8993_v17  ;;  %v9075_v17 = vld [vmem:[#allocation7 + $0x478] ss:$40 sps:$4 sm:$0xff]  }
 0x1ce   :  { %3312 = vmatmul.mubr.bf16.vlgmr.msra.gmra.mrb[0].mxu0 %v10806_v18 }
 0x1cf   :  { %3435 = vmatmul.mubr.bf16.vlgmr.msra.gmra.mrb[0].mxu1 %v10806_v18  ;;  %3444 = vmatpush1.bf16.msra.mxu0 %v8988_v19  ;;  %v9080_v19 = vld [vmem:[#allocation7 + $0x4c4] ss:$40 sps:$4 sm:$0xff]  }
 0x1d0   :  { %3567 = vmatpush1.bf16.msra.mxu1 %v8991_v20  ;;  %3445 = vmatprep.subr.bf16.mxu0 %v8996_v21  ;;  %v9083_v20 = vld [vmem:[#allocation7 + $0x4cc] ss:$40 sps:$4 sm:$0xff]   ;;  %v9078_v21 = vld [vmem:[#allocation7 + $0x4c0] ss:$40 sps:$4 sm:$0xff]  }
 0x1d1   :  { %3568 = vmatprep.subr.bf16.mxu1 %v8999_v22  ;;  %3475 = vmatprep.mubr.bf16.mxu0 %v10774_v48  ;;  %v9081_v22 = vld [vmem:[#allocation7 + $0x4c8] ss:$40 sps:$4 sm:$0xff]  }
 0x1d2   :  { %3598 = vmatprep.mubr.bf16.mxu1 %v10774_v48 }
 0x1d3   :  { %3446 = vmatpush1.bf16.msra.mxu0 %v8994_v23  ;;  %v9086_v23 = vld [vmem:[#allocation7 + $0x514] ss:$40 sps:$4 sm:$0xff]  }
 0x1d4   :  { %3569 = vmatpush1.bf16.msra.mxu1 %v8997_v24  ;;  %3447 = vmatprep.subr.bf16.mxu0 %v9002_v25  ;;  %v9089_v24 = vld [vmem:[#allocation7 + $0x51c] ss:$40 sps:$4 sm:$0xff]   ;;  %v9084_v25 = vld [vmem:[#allocation7 + $0x510] ss:$40 sps:$4 sm:$0xff]  }
 0x1d5   :  { %3570 = vmatprep.subr.bf16.mxu1 %v9005_v13  ;;  %v9087_v13 = vld [vmem:[#allocation7 + $0x518] ss:$40 sps:$4 sm:$0xff]  }
 0x1d7   :  { %3448 = vmatpush1.bf16.msra.mxu0 %v9000_v26  ;;  %v9092_v26 = vld [vmem:[#allocation7 + $0x564] ss:$40 sps:$4 sm:$0xff]  }
 0x1d8   :  { %3571 = vmatpush1.bf16.msra.mxu1 %v9003_v27  ;;  %3449 = vmatprep.subr.bf16.mxu0 %v9008_v28  ;;  %v9095_v27 = vld [vmem:[#allocation7 + $0x56c] ss:$40 sps:$4 sm:$0xff]   ;;  %v9090_v28 = vld [vmem:[#allocation7 + $0x560] ss:$40 sps:$4 sm:$0xff]  }
 0x1d9   :  { %3572 = vmatprep.subr.bf16.mxu1 %v9011_v29  ;;  %v9093_v29 = vld [vmem:[#allocation7 + $0x568] ss:$40 sps:$4 sm:$0xff]  }
 0x1db   :  { %3450 = vmatpush1.bf16.msra.mxu0 %v9006_v31  ;;  %v9098_v31 = vld [vmem:[#allocation7 + $0x5b4] ss:$40 sps:$4 sm:$0xff]  }
 0x1dc   :  { %3573 = vmatpush1.bf16.msra.mxu1 %v9009_v32  ;;  %3451 = vmatprep.subr.bf16.mxu0 %v9014_v33  ;;  %v9101_v32 = vld [vmem:[#allocation7 + $0x5bc] ss:$40 sps:$4 sm:$0xff]   ;;  %v9096_v33 = vld [vmem:[#allocation7 + $0x5b0] ss:$40 sps:$4 sm:$0xff]  }
 0x1dd   :  { %3574 = vmatprep.subr.bf16.mxu1 %v9017_v34  ;;  %v9099_v34 = vld [vmem:[#allocation7 + $0x5b8] ss:$40 sps:$4 sm:$0xff]  }
 0x1df   :  { %3452 = vmatpush1.bf16.msra.mxu0 %v9012_v35  ;;  %v9104_v35 = vld [vmem:[#allocation7 + $0x604] ss:$40 sps:$4 sm:$0xff]  }
 0x1e0   :  { %3575 = vmatpush1.bf16.msra.mxu1 %v9015_v36  ;;  %3453 = vmatprep.subr.bf16.mxu0 %v9020_v37  ;;  %v9107_v36 = vld [vmem:[#allocation7 + $0x60c] ss:$40 sps:$4 sm:$0xff]   ;;  %v9102_v37 = vld [vmem:[#allocation7 + $0x600] ss:$40 sps:$4 sm:$0xff]  }
 0x1e1   :  { %3576 = vmatprep.subr.bf16.mxu1 %v9023_v38  ;;  %v9105_v38 = vld [vmem:[#allocation7 + $0x608] ss:$40 sps:$4 sm:$0xff]  }
 0x1e3   :  { %3454 = vmatpush1.bf16.msra.mxu0 %v9018_v39  ;;  %v9110_v39 = vld [vmem:[#allocation7 + $0x654] ss:$40 sps:$4 sm:$0xff]  }
 0x1e4   :  { %3577 = vmatpush1.bf16.msra.mxu1 %v9021_v40  ;;  %3455 = vmatprep.subr.bf16.mxu0 %v9026_v41  ;;  %v9113_v40 = vld [vmem:[#allocation7 + $0x65c] ss:$40 sps:$4 sm:$0xff]   ;;  %v9108_v41 = vld [vmem:[#allocation7 + $0x650] ss:$40 sps:$4 sm:$0xff]  }
 0x1e5   :  { %3578 = vmatprep.subr.bf16.mxu1 %v9029_v42  ;;  %v9111_v42 = vld [vmem:[#allocation7 + $0x658] ss:$40 sps:$4 sm:$0xff]  }
 0x1e7   :  { %3456 = vmatpush1.bf16.msra.mxu0 %v9024_v43  ;;  %v9116_v43 = vld [vmem:[#allocation7 + $0x6a4] ss:$40 sps:$4 sm:$0xff]  }
 0x1e8   :  { %3579 = vmatpush1.bf16.msra.mxu1 %v9027_v44  ;;  %3457 = vmatprep.subr.bf16.mxu0 %v9032_v45  ;;  %v9119_v44 = vld [vmem:[#allocation7 + $0x6ac] ss:$40 sps:$4 sm:$0xff]   ;;  %v9114_v45 = vld [vmem:[#allocation7 + $0x6a0] ss:$40 sps:$4 sm:$0xff]  }
 0x1e9   :  { %3580 = vmatprep.subr.bf16.mxu1 %v9035_v46  ;;  %v9117_v46 = vld [vmem:[#allocation7 + $0x6a8] ss:$40 sps:$4 sm:$0xff]  }
 0x1eb   :  { %3458 = vmatpush1.bf16.msra.mxu0 %v9030_v47  ;;  %v9122_v47 = vld [vmem:[#allocation7 + $0x6f4] ss:$40 sps:$4 sm:$0xff]  }
 0x1ec   :  { %3581 = vmatpush1.bf16.msra.mxu1 %v9033_v49  ;;  %3459 = vmatprep.subr.bf16.mxu0 %v9038_v50  ;;  %v9125_v49 = vld [vmem:[#allocation7 + $0x6fc] ss:$40 sps:$4 sm:$0xff]   ;;  %v9120_v50 = vld [vmem:[#allocation7 + $0x6f0] ss:$40 sps:$4 sm:$0xff]  }
 0x1ed   :  { %3582 = vmatprep.subr.bf16.mxu1 %v9041_v51  ;;  %v9123_v51 = vld [vmem:[#allocation7 + $0x6f8] ss:$40 sps:$4 sm:$0xff]  }
 0x1ef   :  { %3460 = vmatpush1.bf16.msra.mxu0 %v9036_v52  ;;  %v9128_v52 = vld [vmem:[#allocation7 + $0x744] ss:$40 sps:$4 sm:$0xff]  }
 0x1f0   :  { %3583 = vmatpush1.bf16.msra.mxu1 %v9039_v53  ;;  %3461 = vmatprep.subr.bf16.mxu0 %v9044_v54  ;;  %v9131_v53 = vld [vmem:[#allocation7 + $0x74c] ss:$40 sps:$4 sm:$0xff]   ;;  %v9126_v54 = vld [vmem:[#allocation7 + $0x740] ss:$40 sps:$4 sm:$0xff]  }
 0x1f1   :  { %3584 = vmatprep.subr.bf16.mxu1 %v9047_v55  ;;  %v9129_v55 = vld [vmem:[#allocation7 + $0x748] ss:$40 sps:$4 sm:$0xff]  }
 0x1f3   :  { %3462 = vmatpush1.bf16.msra.mxu0 %v9042_v56  ;;  %v9134_v56 = vld [vmem:[#allocation7 + $0x794] ss:$40 sps:$4 sm:$0xff]  }
 0x1f4   :  { %3585 = vmatpush1.bf16.msra.mxu1 %v9045_v57  ;;  %3463 = vmatprep.subr.bf16.mxu0 %v9050_v58  ;;  %v9137_v57 = vld [vmem:[#allocation7 + $0x79c] ss:$40 sps:$4 sm:$0xff]   ;;  %v9132_v58 = vld [vmem:[#allocation7 + $0x790] ss:$40 sps:$4 sm:$0xff]  }
 0x1f5   :  { %3586 = vmatprep.subr.bf16.mxu1 %v9053_v59  ;;  %v9135_v59 = vld [vmem:[#allocation7 + $0x798] ss:$40 sps:$4 sm:$0xff]  }
 0x1f7   :  { %3464 = vmatpush1.bf16.msra.mxu0 %v9048_v60  ;;  %v9140_v60 = vld [vmem:[#allocation7 + $0x7e4] ss:$40 sps:$4 sm:$0xff]  }
 0x1f8   :  { %3587 = vmatpush1.bf16.msra.mxu1 %v9051_v61  ;;  %3465 = vmatprep.subr.bf16.mxu0 %v9056_v62  ;;  %v9143_v61 = vld [vmem:[#allocation7 + $0x7ec] ss:$40 sps:$4 sm:$0xff]   ;;  %v9138_v62 = vld [vmem:[#allocation7 + $0x7e0] ss:$40 sps:$4 sm:$0xff]  }
 0x1f9   :  { %3588 = vmatprep.subr.bf16.mxu1 %v9059_v63  ;;  %v9141_v63 = vld [vmem:[#allocation7 + $0x7e8] ss:$40 sps:$4 sm:$0xff]  }
 0x1fb   :  { %3466 = vmatpush1.bf16.msra.mxu0 %v9054_v0  ;;  %v9146_v0 = vld [vmem:[#allocation7 + $0x834] ss:$40 sps:$4 sm:$0xff]  }
 0x1fc   :  { %3589 = vmatpush1.bf16.msra.mxu1 %v9057_v1  ;;  %3467 = vmatprep.subr.bf16.mxu0 %v9062_v2  ;;  %v9149_v1 = vld [vmem:[#allocation7 + $0x83c] ss:$40 sps:$4 sm:$0xff]   ;;  %v9144_v2 = vld [vmem:[#allocation7 + $0x830] ss:$40 sps:$4 sm:$0xff]  }
 0x1fd   :  { %3590 = vmatprep.subr.bf16.mxu1 %v9065_v3  ;;  %v9147_v3 = vld [vmem:[#allocation7 + $0x838] ss:$40 sps:$4 sm:$0xff]  }
 0x1ff   :  { %3468 = vmatpush1.bf16.msra.mxu0 %v9060_v4  ;;  %v9152_v4 = vld [vmem:[#allocation7 + $0x884] ss:$40 sps:$4 sm:$0xff]  }
 0x200   :  { %3591 = vmatpush1.bf16.msra.mxu1 %v9063_v6  ;;  %3469 = vmatprep.subr.bf16.mxu0 %v9068_v7  ;;  %v9155_v6 = vld [vmem:[#allocation7 + $0x88c] ss:$40 sps:$4 sm:$0xff]   ;;  %v9150_v7 = vld [vmem:[#allocation7 + $0x880] ss:$40 sps:$4 sm:$0xff]  }
 0x201   :  { %3592 = vmatprep.subr.bf16.mxu1 %v9071_v8  ;;  %v9153_v8 = vld [vmem:[#allocation7 + $0x888] ss:$40 sps:$4 sm:$0xff]  }
 0x203   :  { %3470 = vmatpush1.bf16.msra.mxu0 %v9066_v9  ;;  %v9158_v9 = vld [vmem:[#allocation7 + $0x8d4] ss:$40 sps:$4 sm:$0xff]  }
 0x204   :  { %3593 = vmatpush1.bf16.msra.mxu1 %v9069_v11  ;;  %3471 = vmatprep.subr.bf16.mxu0 %v9074_v12  ;;  %v9161_v11 = vld [vmem:[#allocation7 + $0x8dc] ss:$40 sps:$4 sm:$0xff]   ;;  %v9156_v12 = vld [vmem:[#allocation7 + $0x8d0] ss:$40 sps:$4 sm:$0xff]  }
 0x205   :  { %3594 = vmatprep.subr.bf16.mxu1 %v9077_v14  ;;  %v9159_v14 = vld [vmem:[#allocation7 + $0x8d8] ss:$40 sps:$4 sm:$0xff]  }
 0x207   :  { %3472 = vmatpush1.bf16.msra.mxu0 %v9072_v16  ;;  %v9164_v16 = vld [vmem:[#allocation7 + $0x924] ss:$40 sps:$4 sm:$0xff]  }
 0x208   :  { %3595 = vmatpush1.bf16.msra.mxu1 %v9075_v17  ;;  %3473 = vmatprep.subr.bf16.mxu0 %v9080_v19  ;;  %v9167_v17 = vld [vmem:[#allocation7 + $0x92c] ss:$40 sps:$4 sm:$0xff]   ;;  %v9162_v19 = vld [vmem:[#allocation7 + $0x920] ss:$40 sps:$4 sm:$0xff]  }
 0x209   :  { %3596 = vmatprep.subr.bf16.mxu1 %v9083_v20  ;;  %v9165_v20 = vld [vmem:[#allocation7 + $0x928] ss:$40 sps:$4 sm:$0xff]  }
 0x20b   :  { %3474 = vmatpush1.bf16.msra.mxu0 %v9078_v21  ;;  %v9170_v21 = vld [vmem:[#allocation7 + $0x974] ss:$40 sps:$4 sm:$0xff]  }
 0x20c   :  { %3597 = vmatpush1.bf16.msra.mxu1 %v9081_v22  ;;  %3484 = vmatprep.subr.bf16.mxu0 %v9086_v23  ;;  %v9173_v22 = vld [vmem:[#allocation7 + $0x97c] ss:$40 sps:$4 sm:$0xff]   ;;  %v9168_v23 = vld [vmem:[#allocation7 + $0x970] ss:$40 sps:$4 sm:$0xff]  }
 0x20d   :  { %3607 = vmatprep.subr.bf16.mxu1 %v9089_v24  ;;  %v9171_v24 = vld [vmem:[#allocation7 + $0x978] ss:$40 sps:$4 sm:$0xff]  }
 0x20e   :  { %3476 = vmatmul.mubr.bf16.vlgmr.msra.gmra.mrb[4].mxu0 %v10778_v5 }
 0x20f   :  { %3599 = vmatmul.mubr.bf16.vlgmr.msra.gmra.mrb[4].mxu1 %v10778_v5  ;;  %3485 = vmatpush1.bf16.msra.mxu0 %v9084_v25  ;;  %v9176_v25 = vld [vmem:[#allocation7 + $0x9c4] ss:$40 sps:$4 sm:$0xff]  }
 0x210   :  { %3608 = vmatpush1.bf16.msra.mxu1 %v9087_v13  ;;  %3486 = vmatprep.subr.bf16.mxu0 %v9092_v26  ;;  %v9179_v13 = vld [vmem:[#allocation7 + $0x9cc] ss:$40 sps:$4 sm:$0xff]   ;;  %v9174_v26 = vld [vmem:[#allocation7 + $0x9c0] ss:$40 sps:$4 sm:$0xff]  }
 0x211   :  { %3609 = vmatprep.subr.bf16.mxu1 %v9095_v27  ;;  %3516 = vmatprep.mubr.bf16.mxu0 %v10786_v30  ;;  %v9177_v27 = vld [vmem:[#allocation7 + $0x9c8] ss:$40 sps:$4 sm:$0xff]  }
 0x212   :  { %3639 = vmatprep.mubr.bf16.mxu1 %v10786_v30 }
 0x213   :  { %3487 = vmatpush1.bf16.msra.mxu0 %v9090_v28  ;;  %v9182_v28 = vld [vmem:[#allocation7 + $0xa14] ss:$40 sps:$4 sm:$0xff]  }
 0x214   :  { %3610 = vmatpush1.bf16.msra.mxu1 %v9093_v29  ;;  %3488 = vmatprep.subr.bf16.mxu0 %v9098_v31  ;;  %v9185_v29 = vld [vmem:[#allocation7 + $0xa1c] ss:$40 sps:$4 sm:$0xff]   ;;  %v9180_v31 = vld [vmem:[#allocation7 + $0xa10] ss:$40 sps:$4 sm:$0xff]  }
 0x215   :  { %3611 = vmatprep.subr.bf16.mxu1 %v9101_v32  ;;  %v9183_v32 = vld [vmem:[#allocation7 + $0xa18] ss:$40 sps:$4 sm:$0xff]  }
 0x217   :  { %3489 = vmatpush1.bf16.msra.mxu0 %v9096_v33  ;;  %v9188_v33 = vld [vmem:[#allocation7 + $0xa64] ss:$40 sps:$4 sm:$0xff]  }
 0x218   :  { %3612 = vmatpush1.bf16.msra.mxu1 %v9099_v34  ;;  %3490 = vmatprep.subr.bf16.mxu0 %v9104_v35  ;;  %v9191_v34 = vld [vmem:[#allocation7 + $0xa6c] ss:$40 sps:$4 sm:$0xff]   ;;  %v9186_v35 = vld [vmem:[#allocation7 + $0xa60] ss:$40 sps:$4 sm:$0xff]  }
 0x219   :  { %3613 = vmatprep.subr.bf16.mxu1 %v9107_v36  ;;  %v9189_v36 = vld [vmem:[#allocation7 + $0xa68] ss:$40 sps:$4 sm:$0xff]  }
 0x21b   :  { %3491 = vmatpush1.bf16.msra.mxu0 %v9102_v37  ;;  %v9194_v37 = vld [vmem:[#allocation7 + $0xab4] ss:$40 sps:$4 sm:$0xff]  }
 0x21c   :  { %3614 = vmatpush1.bf16.msra.mxu1 %v9105_v38  ;;  %3492 = vmatprep.subr.bf16.mxu0 %v9110_v39  ;;  %v9197_v38 = vld [vmem:[#allocation7 + $0xabc] ss:$40 sps:$4 sm:$0xff]   ;;  %v9192_v39 = vld [vmem:[#allocation7 + $0xab0] ss:$40 sps:$4 sm:$0xff]  }
 0x21d   :  { %3615 = vmatprep.subr.bf16.mxu1 %v9113_v40  ;;  %v9195_v40 = vld [vmem:[#allocation7 + $0xab8] ss:$40 sps:$4 sm:$0xff]  }
 0x21f   :  { %3493 = vmatpush1.bf16.msra.mxu0 %v9108_v41  ;;  %v9200_v41 = vld [vmem:[#allocation7 + $0xb04] ss:$40 sps:$4 sm:$0xff]  }
 0x220   :  { %3616 = vmatpush1.bf16.msra.mxu1 %v9111_v42  ;;  %3494 = vmatprep.subr.bf16.mxu0 %v9116_v43  ;;  %v9203_v42 = vld [vmem:[#allocation7 + $0xb0c] ss:$40 sps:$4 sm:$0xff]   ;;  %v9198_v43 = vld [vmem:[#allocation7 + $0xb00] ss:$40 sps:$4 sm:$0xff]  }
 0x221   :  { %3617 = vmatprep.subr.bf16.mxu1 %v9119_v44  ;;  %v9201_v44 = vld [vmem:[#allocation7 + $0xb08] ss:$40 sps:$4 sm:$0xff]  }
 0x223   :  { %3495 = vmatpush1.bf16.msra.mxu0 %v9114_v45  ;;  %v9206_v45 = vld [vmem:[#allocation7 + $0xb54] ss:$40 sps:$4 sm:$0xff]  }
 0x224   :  { %3618 = vmatpush1.bf16.msra.mxu1 %v9117_v46  ;;  %3496 = vmatprep.subr.bf16.mxu0 %v9122_v47  ;;  %v9209_v46 = vld [vmem:[#allocation7 + $0xb5c] ss:$40 sps:$4 sm:$0xff]   ;;  %v9204_v47 = vld [vmem:[#allocation7 + $0xb50] ss:$40 sps:$4 sm:$0xff]  }
 0x225   :  { %3619 = vmatprep.subr.bf16.mxu1 %v9125_v49  ;;  %v9207_v49 = vld [vmem:[#allocation7 + $0xb58] ss:$40 sps:$4 sm:$0xff]  }
 0x227   :  { %3497 = vmatpush1.bf16.msra.mxu0 %v9120_v50  ;;  %v9212_v50 = vld [vmem:[#allocation7 + $0xba4] ss:$40 sps:$4 sm:$0xff]  }
 0x228   :  { %3620 = vmatpush1.bf16.msra.mxu1 %v9123_v51  ;;  %3498 = vmatprep.subr.bf16.mxu0 %v9128_v52  ;;  %v9215_v51 = vld [vmem:[#allocation7 + $0xbac] ss:$40 sps:$4 sm:$0xff]   ;;  %v9210_v52 = vld [vmem:[#allocation7 + $0xba0] ss:$40 sps:$4 sm:$0xff]  }
 0x229   :  { %3621 = vmatprep.subr.bf16.mxu1 %v9131_v53  ;;  %v9213_v53 = vld [vmem:[#allocation7 + $0xba8] ss:$40 sps:$4 sm:$0xff]  }
 0x22b   :  { %3499 = vmatpush1.bf16.msra.mxu0 %v9126_v54  ;;  %v9218_v54 = vld [vmem:[#allocation7 + $0xbf4] ss:$40 sps:$4 sm:$0xff]  }
 0x22c   :  { %3622 = vmatpush1.bf16.msra.mxu1 %v9129_v55  ;;  %3500 = vmatprep.subr.bf16.mxu0 %v9134_v56  ;;  %v9221_v55 = vld [vmem:[#allocation7 + $0xbfc] ss:$40 sps:$4 sm:$0xff]   ;;  %v9216_v56 = vld [vmem:[#allocation7 + $0xbf0] ss:$40 sps:$4 sm:$0xff]  }
 0x22d   :  { %3623 = vmatprep.subr.bf16.mxu1 %v9137_v57  ;;  %v9219_v57 = vld [vmem:[#allocation7 + $0xbf8] ss:$40 sps:$4 sm:$0xff]  }
 0x22f   :  { %3501 = vmatpush1.bf16.msra.mxu0 %v9132_v58  ;;  %v9224_v58 = vld [vmem:[#allocation7 + $0xc44] ss:$40 sps:$4 sm:$0xff]  }
 0x230   :  { %3624 = vmatpush1.bf16.msra.mxu1 %v9135_v59  ;;  %3502 = vmatprep.subr.bf16.mxu0 %v9140_v60  ;;  %v9227_v59 = vld [vmem:[#allocation7 + $0xc4c] ss:$40 sps:$4 sm:$0xff]   ;;  %v9222_v60 = vld [vmem:[#allocation7 + $0xc40] ss:$40 sps:$4 sm:$0xff]  }
 0x231   :  { %3625 = vmatprep.subr.bf16.mxu1 %v9143_v61  ;;  %v9225_v61 = vld [vmem:[#allocation7 + $0xc48] ss:$40 sps:$4 sm:$0xff]  }
 0x233   :  { %3503 = vmatpush1.bf16.msra.mxu0 %v9138_v62  ;;  %v9230_v62 = vld [vmem:[#allocation7 + $0xc94] ss:$40 sps:$4 sm:$0xff]  }
 0x234   :  { %3626 = vmatpush1.bf16.msra.mxu1 %v9141_v63  ;;  %3504 = vmatprep.subr.bf16.mxu0 %v9146_v0  ;;  %v9233_v63 = vld [vmem:[#allocation7 + $0xc9c] ss:$40 sps:$4 sm:$0xff]   ;;  %v9228_v0 = vld [vmem:[#allocation7 + $0xc90] ss:$40 sps:$4 sm:$0xff]  }
 0x235   :  { %3627 = vmatprep.subr.bf16.mxu1 %v9149_v1  ;;  %v9231_v1 = vld [vmem:[#allocation7 + $0xc98] ss:$40 sps:$4 sm:$0xff]  }
 0x237   :  { %3505 = vmatpush1.bf16.msra.mxu0 %v9144_v2  ;;  %v9236_v2 = vld [vmem:[#allocation7 + $0xce4] ss:$40 sps:$4 sm:$0xff]  }
 0x238   :  { %3628 = vmatpush1.bf16.msra.mxu1 %v9147_v3  ;;  %3506 = vmatprep.subr.bf16.mxu0 %v9152_v4  ;;  %v9239_v3 = vld [vmem:[#allocation7 + $0xcec] ss:$40 sps:$4 sm:$0xff]   ;;  %v9234_v4 = vld [vmem:[#allocation7 + $0xce0] ss:$40 sps:$4 sm:$0xff]  }
 0x239   :  { %3629 = vmatprep.subr.bf16.mxu1 %v9155_v6  ;;  %v9237_v6 = vld [vmem:[#allocation7 + $0xce8] ss:$40 sps:$4 sm:$0xff]  }
 0x23b   :  { %3507 = vmatpush1.bf16.msra.mxu0 %v9150_v7  ;;  %v9242_v7 = vld [vmem:[#allocation7 + $0xd34] ss:$40 sps:$4 sm:$0xff]  }
 0x23c   :  { %3630 = vmatpush1.bf16.msra.mxu1 %v9153_v8  ;;  %3508 = vmatprep.subr.bf16.mxu0 %v9158_v9  ;;  %v9245_v8 = vld [vmem:[#allocation7 + $0xd3c] ss:$40 sps:$4 sm:$0xff]   ;;  %v9240_v9 = vld [vmem:[#allocation7 + $0xd30] ss:$40 sps:$4 sm:$0xff]  }
 0x23d   :  { %3631 = vmatprep.subr.bf16.mxu1 %v9161_v11  ;;  %v9243_v11 = vld [vmem:[#allocation7 + $0xd38] ss:$40 sps:$4 sm:$0xff]  }
 0x23f   :  { %3509 = vmatpush1.bf16.msra.mxu0 %v9156_v12  ;;  %v9248_v12 = vld [vmem:[#allocation7 + $0xd84] ss:$40 sps:$4 sm:$0xff]  }
 0x240   :  { %3632 = vmatpush1.bf16.msra.mxu1 %v9159_v14  ;;  %3510 = vmatprep.subr.bf16.mxu0 %v9164_v16  ;;  %v9251_v14 = vld [vmem:[#allocation7 + $0xd8c] ss:$40 sps:$4 sm:$0xff]   ;;  %v9246_v16 = vld [vmem:[#allocation7 + $0xd80] ss:$40 sps:$4 sm:$0xff]  }
 0x241   :  { %3633 = vmatprep.subr.bf16.mxu1 %v9167_v17  ;;  %v9249_v17 = vld [vmem:[#allocation7 + $0xd88] ss:$40 sps:$4 sm:$0xff]  }
 0x243   :  { %3511 = vmatpush1.bf16.msra.mxu0 %v9162_v19  ;;  %v9254_v19 = vld [vmem:[#allocation7 + $0xdd4] ss:$40 sps:$4 sm:$0xff]  }
 0x244   :  { %3634 = vmatpush1.bf16.msra.mxu1 %v9165_v20  ;;  %3512 = vmatprep.subr.bf16.mxu0 %v9170_v21  ;;  %v9257_v20 = vld [vmem:[#allocation7 + $0xddc] ss:$40 sps:$4 sm:$0xff]   ;;  %v9252_v21 = vld [vmem:[#allocation7 + $0xdd0] ss:$40 sps:$4 sm:$0xff]  }
 0x245   :  { %3635 = vmatprep.subr.bf16.mxu1 %v9173_v22  ;;  %v9255_v22 = vld [vmem:[#allocation7 + $0xdd8] ss:$40 sps:$4 sm:$0xff]  }
 0x247   :  { %3513 = vmatpush1.bf16.msra.mxu0 %v9168_v23  ;;  %v9260_v23 = vld [vmem:[#allocation7 + $0xe24] ss:$40 sps:$4 sm:$0xff]  }
 0x248   :  { %3636 = vmatpush1.bf16.msra.mxu1 %v9171_v24  ;;  %3514 = vmatprep.subr.bf16.mxu0 %v9176_v25  ;;  %v9263_v24 = vld [vmem:[#allocation7 + $0xe2c] ss:$40 sps:$4 sm:$0xff]   ;;  %v9258_v25 = vld [vmem:[#allocation7 + $0xe20] ss:$40 sps:$4 sm:$0xff]  }
 0x249   :  { %3637 = vmatprep.subr.bf16.mxu1 %v9179_v13  ;;  %v9261_v13 = vld [vmem:[#allocation7 + $0xe28] ss:$40 sps:$4 sm:$0xff]  }
 0x24b   :  { %3515 = vmatpush1.bf16.msra.mxu0 %v9174_v26  ;;  %v9266_v26 = vld [vmem:[#allocation7 + $0xe74] ss:$40 sps:$4 sm:$0xff]  }
 0x24c   :  { %3638 = vmatpush1.bf16.msra.mxu1 %v9177_v27  ;;  %3525 = vmatprep.subr.bf16.mxu0 %v9182_v28  ;;  %v9269_v27 = vld [vmem:[#allocation7 + $0xe7c] ss:$40 sps:$4 sm:$0xff]   ;;  %v9264_v28 = vld [vmem:[#allocation7 + $0xe70] ss:$40 sps:$4 sm:$0xff]  }
 0x24d   :  { %3648 = vmatprep.subr.bf16.mxu1 %v9185_v29  ;;  %v9267_v29 = vld [vmem:[#allocation7 + $0xe78] ss:$40 sps:$4 sm:$0xff]  }
 0x24e   :  { %3517 = vmatmul.mubr.bf16.vlgmr.msra.gmra.mrb[4].mxu0 %v10792_v10 }
 0x24f   :  { %3640 = vmatmul.mubr.bf16.vlgmr.msra.gmra.mrb[4].mxu1 %v10792_v10  ;;  %3526 = vmatpush1.bf16.msra.mxu0 %v9180_v31  ;;  %v9272_v31 = vld [vmem:[#allocation7 + $0xec4] ss:$40 sps:$4 sm:$0xff]  }
 0x250   :  { %3649 = vmatpush1.bf16.msra.mxu1 %v9183_v32  ;;  %3527 = vmatprep.subr.bf16.mxu0 %v9188_v33  ;;  %v9275_v32 = vld [vmem:[#allocation7 + $0xecc] ss:$40 sps:$4 sm:$0xff]   ;;  %v9270_v33 = vld [vmem:[#allocation7 + $0xec0] ss:$40 sps:$4 sm:$0xff]  }
 0x251   :  { %3650 = vmatprep.subr.bf16.mxu1 %v9191_v34  ;;  %3557 = vmatprep.mubr.bf16.mxu0 %v10798_v15  ;;  %v9273_v34 = vld [vmem:[#allocation7 + $0xec8] ss:$40 sps:$4 sm:$0xff]  }
 0x252   :  { %3680 = vmatprep.mubr.bf16.mxu1 %v10798_v15 }
 0x253   :  { %3528 = vmatpush1.bf16.msra.mxu0 %v9186_v35  ;;  %v9278_v35 = vld [vmem:[#allocation7 + $0x24] ss:$40 sps:$4 sm:$0xff]  }
 0x254   :  { %3651 = vmatpush1.bf16.msra.mxu1 %v9189_v36  ;;  %3529 = vmatprep.subr.bf16.mxu0 %v9194_v37  ;;  %v9281_v36 = vld [vmem:[#allocation10 + $0x4] ss:$16 sps:$4 sm:$0xff]  }
 0x255   :  { %3652 = vmatprep.subr.bf16.mxu1 %v9197_v38  ;;  %v9276_v37 = vld [vmem:[#allocation7 + $0x20] ss:$40 sps:$4 sm:$0xff]  }
 0x256   :  { %v9279_v38 = vld [vmem:[#allocation10] ss:$16 sps:$4 sm:$0xff]  }
 0x257   :  { %3530 = vmatpush1.bf16.msra.mxu0 %v9192_v39  ;;  %v9284_v39 = vld [vmem:[#allocation7 + $0x74] ss:$40 sps:$4 sm:$0xff]  }
 0x258   :  { %3653 = vmatpush1.bf16.msra.mxu1 %v9195_v40  ;;  %3531 = vmatprep.subr.bf16.mxu0 %v9200_v41  ;;  %v9287_v40 = vld [vmem:[#allocation10 + $0x24] ss:$16 sps:$4 sm:$0xff]  }
 0x259   :  { %3654 = vmatprep.subr.bf16.mxu1 %v9203_v42  ;;  %v9282_v41 = vld [vmem:[#allocation7 + $0x70] ss:$40 sps:$4 sm:$0xff]  }
 0x25a   :  { %v9285_v42 = vld [vmem:[#allocation10 + $0x20] ss:$16 sps:$4 sm:$0xff]  }
 0x25b   :  { %3532 = vmatpush1.bf16.msra.mxu0 %v9198_v43  ;;  %v9290_v43 = vld [vmem:[#allocation7 + $0xc4] ss:$40 sps:$4 sm:$0xff]  }
 0x25c   :  { %3655 = vmatpush1.bf16.msra.mxu1 %v9201_v44  ;;  %3533 = vmatprep.subr.bf16.mxu0 %v9206_v45  ;;  %v9293_v44 = vld [vmem:[#allocation10 + $0x44] ss:$16 sps:$4 sm:$0xff]  }
 0x25d   :  { %3656 = vmatprep.subr.bf16.mxu1 %v9209_v46  ;;  %v9288_v45 = vld [vmem:[#allocation7 + $0xc0] ss:$40 sps:$4 sm:$0xff]  }
 0x25e   :  { %v9291_v46 = vld [vmem:[#allocation10 + $0x40] ss:$16 sps:$4 sm:$0xff]  }
 0x25f   :  { %3534 = vmatpush1.bf16.msra.mxu0 %v9204_v47  ;;  %v9296_v47 = vld [vmem:[#allocation7 + $0x114] ss:$40 sps:$4 sm:$0xff]  }
 0x260   :  { %3657 = vmatpush1.bf16.msra.mxu1 %v9207_v49  ;;  %3535 = vmatprep.subr.bf16.mxu0 %v9212_v50  ;;  %v9299_v49 = vld [vmem:[#allocation10 + $0x64] ss:$16 sps:$4 sm:$0xff]   ;;  %v726_v50 = vlaneseq }
 0x261   :  { %3658 = vmatprep.subr.bf16.mxu1 %v9215_v51  ;;  %v9294_v51 = vld [vmem:[#allocation7 + $0x110] ss:$40 sps:$4 sm:$0xff]  }
 0x263   :  { %3536 = vmatpush1.bf16.msra.mxu0 %v9210_v52  ;;  %v9297_v52 = vld [vmem:[#allocation10 + $0x60] ss:$16 sps:$4 sm:$0xff]  }
 0x264   :  { %3659 = vmatpush1.bf16.msra.mxu1 %v9213_v53  ;;  %3537 = vmatprep.subr.bf16.mxu0 %v9218_v54  ;;  %v9302_v53 = vld [vmem:[#allocation7 + $0x164] ss:$40 sps:$4 sm:$0xff]  }
 0x265   :  { %3660 = vmatprep.subr.bf16.mxu1 %v9221_v55  ;;  %v9305_v54 = vld [vmem:[#allocation10 + $0x84] ss:$16 sps:$4 sm:$0xff]   ;;  %v10823_v55 = vshrl.u32 %v726_v50, 7 }
 0x267   :  { %3538 = vmatpush1.bf16.msra.mxu0 %v9216_v56  ;;  %v9300_v56 = vld [vmem:[#allocation7 + $0x160] ss:$40 sps:$4 sm:$0xff]   ;;  %v10842_v50 = vsub.s32 0, %v10823_v55 }
 0x268   :  { %3661 = vmatpush1.bf16.msra.mxu1 %v9219_v57  ;;  %3539 = vmatprep.subr.bf16.mxu0 %v9224_v58  ;;  %v9303_v57 = vld [vmem:[#allocation10 + $0x80] ss:$16 sps:$4 sm:$0xff]   ;;  %v10828_v58 = vsub.s32 1, %v10823_v55 }
 0x269   :  { %3662 = vmatprep.subr.bf16.mxu1 %v9227_v59  ;;  %v9308_v59 = vld [vmem:[#allocation7 + $0x1b4] ss:$40 sps:$4 sm:$0xff]  }
 0x26b   :  { %3540 = vmatpush1.bf16.msra.mxu0 %v9222_v60  ;;  %v9311_v60 = vld [vmem:[#allocation10 + $0xa4] ss:$16 sps:$4 sm:$0xff]  }
 0x26c   :  { %3663 = vmatpush1.bf16.msra.mxu1 %v9225_v61  ;;  %3541 = vmatprep.subr.bf16.mxu0 %v9230_v62  ;;  %v9306_v61 = vld [vmem:[#allocation7 + $0x1b0] ss:$40 sps:$4 sm:$0xff]  }
 0x26d   :  { %3664 = vmatprep.subr.bf16.mxu1 %v9233_v63  ;;  %v9309_v62 = vld [vmem:[#allocation10 + $0xa0] ss:$16 sps:$4 sm:$0xff]  }
 0x26f   :  { %3542 = vmatpush1.bf16.msra.mxu0 %v9228_v0  ;;  %v9314_v0 = vld [vmem:[#allocation7 + $0x204] ss:$40 sps:$4 sm:$0xff]  }
 0x270   :  { %3665 = vmatpush1.bf16.msra.mxu1 %v9231_v1  ;;  %3543 = vmatprep.subr.bf16.mxu0 %v9236_v2  ;;  %v9317_v1 = vld [vmem:[#allocation10 + $0xc4] ss:$16 sps:$4 sm:$0xff]  }
 0x271   :  { %3666 = vmatprep.subr.bf16.mxu1 %v9239_v3  ;;  %v9312_v3 = vld [vmem:[#allocation7 + $0x200] ss:$40 sps:$4 sm:$0xff]  }
 0x273   :  { %3544 = vmatpush1.bf16.msra.mxu0 %v9234_v4  ;;  %v9315_v4 = vld [vmem:[#allocation10 + $0xc0] ss:$16 sps:$4 sm:$0xff]  }
 0x274   :  { %3667 = vmatpush1.bf16.msra.mxu1 %v9237_v6  ;;  %3545 = vmatprep.subr.bf16.mxu0 %v9242_v7 }
 0x275   :  { %3668 = vmatprep.subr.bf16.mxu1 %v9245_v8 }
 0x277   :  { %3546 = vmatpush1.bf16.msra.mxu0 %v9240_v9 }
 0x278   :  { %3669 = vmatpush1.bf16.msra.mxu1 %v9243_v11  ;;  %3547 = vmatprep.subr.bf16.mxu0 %v9248_v12  ;;  %v9320_v12 = vld [vmem:[#allocation7 + $0x254] ss:$40 sps:$4 sm:$0xff]  }
 0x279   :  { %3670 = vmatprep.subr.bf16.mxu1 %v9251_v14  ;;  %v9323_v14 = vld [vmem:[#allocation10 + $0xe4] ss:$16 sps:$4 sm:$0xff]  }
 0x27b   :  { %3548 = vmatpush1.bf16.msra.mxu0 %v9246_v16 }
 0x27c   :  { %3671 = vmatpush1.bf16.msra.mxu1 %v9249_v17  ;;  %3549 = vmatprep.subr.bf16.mxu0 %v9254_v19 }
 0x27d   :  { %3672 = vmatprep.subr.bf16.mxu1 %v9257_v20 }
 0x27f   :  { %3550 = vmatpush1.bf16.msra.mxu0 %v9252_v21  ;;  %v9318_v21 = vld [vmem:[#allocation7 + $0x250] ss:$40 sps:$4 sm:$0xff]  }
 0x280   :  { %3673 = vmatpush1.bf16.msra.mxu1 %v9255_v22  ;;  %3551 = vmatprep.subr.bf16.mxu0 %v9260_v23  ;;  %v9321_v22 = vld [vmem:[#allocation10 + $0xe0] ss:$16 sps:$4 sm:$0xff]  }
 0x281   :  { %3674 = vmatprep.subr.bf16.mxu1 %v9263_v24  ;;  %v9326_v23 = vld [vmem:[#allocation7 + $0x2a4] ss:$40 sps:$4 sm:$0xff]  }
 0x282   :  { %v9329_v24 = vld [vmem:[#allocation10 + $0x104] ss:$16 sps:$4 sm:$0xff]  }
 0x283   :  { %3552 = vmatpush1.bf16.msra.mxu0 %v9258_v25  ;;  %v9324_v25 = vld [vmem:[#allocation7 + $0x2a0] ss:$40 sps:$4 sm:$0xff]  }
 0x284   :  { %3675 = vmatpush1.bf16.msra.mxu1 %v9261_v13  ;;  %3553 = vmatprep.subr.bf16.mxu0 %v9266_v26  ;;  %v9327_v13 = vld [vmem:[#allocation10 + $0x100] ss:$16 sps:$4 sm:$0xff]  }
 0x285   :  { %3676 = vmatprep.subr.bf16.mxu1 %v9269_v27  ;;  %v9332_v26 = vld [vmem:[#allocation7 + $0x2f4] ss:$40 sps:$4 sm:$0xff]  }
 0x286   :  { %v9335_v27 = vld [vmem:[#allocation10 + $0x124] ss:$16 sps:$4 sm:$0xff]  }
 0x287   :  { %3554 = vmatpush1.bf16.msra.mxu0 %v9264_v28  ;;  %v9330_v28 = vld [vmem:[#allocation7 + $0x2f0] ss:$40 sps:$4 sm:$0xff]  }
 0x288   :  { %3677 = vmatpush1.bf16.msra.mxu1 %v9267_v29  ;;  %3555 = vmatprep.subr.bf16.mxu0 %v9272_v31  ;;  %v9333_v29 = vld [vmem:[#allocation10 + $0x120] ss:$16 sps:$4 sm:$0xff]  }
 0x289   :  { %3678 = vmatprep.subr.bf16.mxu1 %v9275_v32  ;;  %v9338_v31 = vld [vmem:[#allocation7 + $0x344] ss:$40 sps:$4 sm:$0xff]  }
 0x28a   :  { %v9341_v32 = vld [vmem:[#allocation10 + $0x144] ss:$16 sps:$4 sm:$0xff]  }
 0x28b   :  { %3556 = vmatpush1.bf16.msra.mxu0 %v9270_v33  ;;  %v9336_v33 = vld [vmem:[#allocation7 + $0x340] ss:$40 sps:$4 sm:$0xff]  }
 0x28c   :  { %3679 = vmatpush1.bf16.msra.mxu1 %v9273_v34  ;;  %3689 = vmatprep.subr.bf16.mxu0 %v9278_v35  ;;  %v9339_v34 = vld [vmem:[#allocation10 + $0x140] ss:$16 sps:$4 sm:$0xff]  }
 0x28d   :  { %5764 = vmatprep.subr.bf16.mxu1 %v9281_v36  ;;  %v9344_v35 = vld [vmem:[#allocation7 + $0x394] ss:$40 sps:$4 sm:$0xff]  }
 0x28e   :  { %3558 = vmatmul.mubr.bf16.vlgmr.msra.gmra.mrb[4].mxu0 %v10806_v18  ;;  %v9347_v36 = vld [vmem:[#allocation10 + $0x164] ss:$16 sps:$4 sm:$0xff]  }
 0x28f   :  { %3681 = vmatmul.mubr.bf16.vlgmr.msra.gmra.mrb[4].mxu1 %v10806_v18  ;;  %3690 = vmatpush1.bf16.msra.mxu0 %v9276_v37  ;;  %v9342_v37 = vld [vmem:[#allocation7 + $0x390] ss:$40 sps:$4 sm:$0xff]  }
 0x290   :  { %5765 = vmatpush1.bf16.msra.mxu1 %v9279_v38  ;;  %3691 = vmatprep.subr.bf16.mxu0 %v9284_v39  ;;  %v9345_v38 = vld [vmem:[#allocation10 + $0x160] ss:$16 sps:$4 sm:$0xff]  }
 0x291   :  { %5766 = vmatprep.subr.bf16.mxu1 %v9287_v40  ;;  %3721 = vmatprep.mubr.bf16.mxu0 %v10774_v48  ;;  %v10825_v48 = vld [vmem:[#allocation8] sm:$0xff] }
 0x292   :  { %v733_v63 = vrot.slane %v10825_v48, %v10828_v58  ;;  %v9350_v39 = vld [vmem:[#allocation7 + $0x3e4] ss:$40 sps:$4 sm:$0xff]  }
 0x293   :  { %3692 = vmatpush1.bf16.msra.mxu0 %v9282_v41  ;;  %v9353_v40 = vld [vmem:[#allocation10 + $0x184] ss:$16 sps:$4 sm:$0xff]  }
 0x294   :  { %5767 = vmatpush1.bf16.msra.mxu1 %v9285_v42  ;;  %3693 = vmatprep.subr.bf16.mxu0 %v9290_v43  ;;  %v9348_v41 = vld [vmem:[#allocation7 + $0x3e0] ss:$40 sps:$4 sm:$0xff]   ;;  %v9356_v43 = vld [vmem:[#allocation7 + $0x434] ss:$40 sps:$4 sm:$0xff]  }
 0x295   :  { %5768 = vmatprep.subr.bf16.mxu1 %v9293_v44  ;;  %v9351_v42 = vld [vmem:[#allocation10 + $0x180] ss:$16 sps:$4 sm:$0xff]   ;;  %v9359_v44 = vld [vmem:[#allocation10 + $0x1a4] ss:$16 sps:$4 sm:$0xff]  }
 0x297   :  { %3694 = vmatpush1.bf16.msra.mxu0 %v9288_v45  ;;  %v9354_v45 = vld [vmem:[#allocation7 + $0x430] ss:$40 sps:$4 sm:$0xff]  }
 0x298   :  { %5769 = vmatpush1.bf16.msra.mxu1 %v9291_v46  ;;  %3695 = vmatprep.subr.bf16.mxu0 %v9296_v47  ;;  %v9357_v46 = vld [vmem:[#allocation10 + $0x1a0] ss:$16 sps:$4 sm:$0xff]  }
 0x299   :  { %5770 = vmatprep.subr.bf16.mxu1 %v9299_v49  ;;  %v9362_v47 = vld [vmem:[#allocation7 + $0x484] ss:$40 sps:$4 sm:$0xff]  }
 0x29a   :  { %v9365_v49 = vld [vmem:[#allocation10 + $0x1c4] ss:$16 sps:$4 sm:$0xff]  }
 0x29b   :  { %3696 = vmatpush1.bf16.msra.mxu0 %v9294_v51  ;;  %v10845_v51 = vsub.s32 3, %v10823_v55 }
 0x29c   :  { %5771 = vmatpush1.bf16.msra.mxu1 %v9297_v52  ;;  %3697 = vmatprep.subr.bf16.mxu0 %v9302_v53  ;;  %v9360_v52 = vld [vmem:[#allocation7 + $0x480] ss:$40 sps:$4 sm:$0xff]  }
 0x29d   :  { %5772 = vmatprep.subr.bf16.mxu1 %v9305_v54  ;;  %v9363_v53 = vld [vmem:[#allocation10 + $0x1c0] ss:$16 sps:$4 sm:$0xff]  }
 0x29e   :  { %v9368_v54 = vld [vmem:[#allocation7 + $0x4d4] ss:$40 sps:$4 sm:$0xff]  }
 0x29f   :  { %3698 = vmatpush1.bf16.msra.mxu0 %v9300_v56  ;;  %v9371_v56 = vld [vmem:[#allocation10 + $0x1e4] ss:$16 sps:$4 sm:$0xff]  }
 0x2a0   :  { %5773 = vmatpush1.bf16.msra.mxu1 %v9303_v57  ;;  %3699 = vmatprep.subr.bf16.mxu0 %v9308_v59  ;;  %v729_v57 = vrot.slane %v10825_v48, %v10842_v50  ;;  %v741_v59 = vrot.slane %v10825_v48, %v10845_v51 }
 0x2a1   :  { %5774 = vmatprep.subr.bf16.mxu1 %v9311_v60  ;;  %v10832_v2 = vpop.f32.mrb[0].mxu0  ;;  %v9366_v60 = vld [vmem:[#allocation7 + $0x4d0] ss:$40 sps:$4 sm:$0xff]  }
 0x2a2   :  { %v10834_v6 = vpop.f32.mrb[0].mxu1  ;;  %v3315_v7 = vpop.f32.mrb[1].mxu0 }
 0x2a3   :  { %v10836_v8 = vpop.f32.mrb[1].mxu1  ;;  %v8584_v9 = vadd.f32 %v3315_v7, %v733_v63  ;;  %v3317_v11 = vpop.f32.mrb[2].mxu0  ;;  %3700 = vmatpush1.bf16.msra.mxu0 %v9306_v61  ;;  %v9369_v61 = vld [vmem:[#allocation10 + $0x1e0] ss:$16 sps:$4 sm:$0xff]   ;;  %v9377_v63 = vld [vmem:[#allocation10 + $0x204] ss:$16 sps:$4 sm:$0xff]  }
 0x2a4   :  { %5775 = vmatpush1.bf16.msra.mxu1 %v9309_v62  ;;  %v3440_v16 = vpop.f32.mrb[2].mxu1  ;;  %v3318_v17 = vpop.f32.mrb[3].mxu0  ;;  %3701 = vmatprep.subr.bf16.mxu0 %v9314_v0  ;;  %v9374_v62 = vld [vmem:[#allocation7 + $0x524] ss:$40 sps:$4 sm:$0xff]   ;;  %v8583_v0 = vadd.f32 %v10832_v2, %v729_v57  ;;  %v9380_v7 = vld [vmem:[#allocation7 + $0x574] ss:$40 sps:$4 sm:$0xff]  }
 0x2a5   :  { %5776 = vmatprep.subr.bf16.mxu1 %v9317_v1  ;;  %v3441_v19 = vpop.f32.mrb[3].mxu1  ;;  %v10838_v20 = vpack.c.bf16 %v8584_v9, %v8584_v9  ;;  %v9372_v1 = vld [vmem:[#allocation7 + $0x520] ss:$40 sps:$4 sm:$0xff]   ;;  %v9378_v2 = vld [vmem:[#allocation7 + $0x570] ss:$40 sps:$4 sm:$0xff]  }
 0x2a6   :  { %v10853_v9 = vpack.c.bf16 %v8583_v0, %v8583_v0  ;;  %v9383_v11 = vld [vmem:[#allocation10 + $0x224] ss:$16 sps:$4 sm:$0xff]   ;;  %v9387_v19 = vld [vmem:[#allocation10 + $0x240] ss:$16 sps:$4 sm:$0xff]  }
 0x2a7   :  { %3702 = vmatpush1.bf16.msra.mxu0 %v9312_v3  ;;  %5796 = vmatprep.mubr.bf16.mxu1 %v10838_v20  ;;  %v8586_v3 = vadd.f32 %v10836_v8, %v741_v59  ;;  %v9386_v8 = vld [vmem:[#allocation7 + $0x5c4] ss:$40 sps:$4 sm:$0xff]   ;;  %v9384_v17 = vld [vmem:[#allocation7 + $0x5c0] ss:$40 sps:$4 sm:$0xff]   ;;  %v9438_v57 = vld [vmem:[#allocation7 + $0x890] ss:$40 sps:$4 sm:$0xff]  }
 0x2a8   :  { %5777 = vmatpush1.bf16.msra.mxu1 %v9315_v4  ;;  %3703 = vmatprep.subr.bf16.mxu0 %v9320_v12  ;;  %v9375_v4 = vld [vmem:[#allocation10 + $0x200] ss:$16 sps:$4 sm:$0xff]   ;;  %v9389_v16 = vld [vmem:[#allocation10 + $0x244] ss:$16 sps:$4 sm:$0xff]  }
 0x2a9   :  { %5778 = vmatprep.subr.bf16.mxu1 %v9323_v14  ;;  %v10855_v12 = vpack.c.bf16 %v8586_v3, %v8586_v3  ;;  %v9381_v14 = vld [vmem:[#allocation10 + $0x220] ss:$16 sps:$4 sm:$0xff]  }
 0x2aa   :  { %v9441_v59 = vld [vmem:[#allocation10 + $0x360] ss:$16 sps:$4 sm:$0xff]  }
 0x2ab   :  { %3704 = vmatpush1.bf16.msra.mxu0 %v9318_v21  ;;  %v9392_v21 = vld [vmem:[#allocation7 + $0x614] ss:$40 sps:$4 sm:$0xff]   ;;  %v9450_v3 = vld [vmem:[#allocation7 + $0x930] ss:$40 sps:$4 sm:$0xff]  }
 0x2ac   :  { %5779 = vmatpush1.bf16.msra.mxu1 %v9321_v22  ;;  %3705 = vmatprep.subr.bf16.mxu0 %v9326_v23  ;;  %v9390_v22 = vld [vmem:[#allocation7 + $0x610] ss:$40 sps:$4 sm:$0xff]   ;;  %v9452_v0 = vld [vmem:[#allocation7 + $0x934] ss:$40 sps:$4 sm:$0xff]  }
 0x2ad   :  { %5780 = vmatprep.subr.bf16.mxu1 %v9329_v24  ;;  %v9393_v23 = vld [vmem:[#allocation10 + $0x260] ss:$16 sps:$4 sm:$0xff]  }
 0x2ae   :  { %v9398_v24 = vld [vmem:[#allocation7 + $0x664] ss:$40 sps:$4 sm:$0xff]  }
 0x2af   :  { %3706 = vmatpush1.bf16.msra.mxu0 %v9324_v25  ;;  %v9401_v25 = vld [vmem:[#allocation10 + $0x284] ss:$16 sps:$4 sm:$0xff]  }
 0x2b0   :  { %5781 = vmatpush1.bf16.msra.mxu1 %v9327_v13  ;;  %3707 = vmatprep.subr.bf16.mxu0 %v9332_v26  ;;  %v9396_v13 = vld [vmem:[#allocation7 + $0x660] ss:$40 sps:$4 sm:$0xff]   ;;  %v9404_v26 = vld [vmem:[#allocation7 + $0x6b4] ss:$40 sps:$4 sm:$0xff]  }
 0x2b1   :  { %5782 = vmatprep.subr.bf16.mxu1 %v9335_v27  ;;  %v9407_v27 = vld [vmem:[#allocation10 + $0x2a4] ss:$16 sps:$4 sm:$0xff]  }
 0x2b3   :  { %3708 = vmatpush1.bf16.msra.mxu0 %v9330_v28  ;;  %v9402_v28 = vld [vmem:[#allocation7 + $0x6b0] ss:$40 sps:$4 sm:$0xff]  }
 0x2b4   :  { %5783 = vmatpush1.bf16.msra.mxu1 %v9333_v29  ;;  %3709 = vmatprep.subr.bf16.mxu0 %v9338_v31  ;;  %v9405_v29 = vld [vmem:[#allocation10 + $0x2a0] ss:$16 sps:$4 sm:$0xff]  }
 0x2b5   :  { %5784 = vmatprep.subr.bf16.mxu1 %v9341_v32  ;;  %v9410_v31 = vld [vmem:[#allocation7 + $0x704] ss:$40 sps:$4 sm:$0xff]  }
 0x2b6   :  { %v9413_v32 = vld [vmem:[#allocation10 + $0x2c4] ss:$16 sps:$4 sm:$0xff]  }
 0x2b7   :  { %3710 = vmatpush1.bf16.msra.mxu0 %v9336_v33  ;;  %v9408_v33 = vld [vmem:[#allocation7 + $0x700] ss:$40 sps:$4 sm:$0xff]  }
 0x2b8   :  { %5785 = vmatpush1.bf16.msra.mxu1 %v9339_v34  ;;  %3711 = vmatprep.subr.bf16.mxu0 %v9344_v35  ;;  %v9411_v34 = vld [vmem:[#allocation10 + $0x2c0] ss:$16 sps:$4 sm:$0xff]  }
 0x2b9   :  { %5786 = vmatprep.subr.bf16.mxu1 %v9347_v36  ;;  %v9416_v35 = vld [vmem:[#allocation7 + $0x754] ss:$40 sps:$4 sm:$0xff]  }
 0x2ba   :  { %v9419_v36 = vld [vmem:[#allocation10 + $0x2e4] ss:$16 sps:$4 sm:$0xff]  }
 0x2bb   :  { %3712 = vmatpush1.bf16.msra.mxu0 %v9342_v37  ;;  %v9414_v37 = vld [vmem:[#allocation7 + $0x750] ss:$40 sps:$4 sm:$0xff]  }
 0x2bc   :  { %5787 = vmatpush1.bf16.msra.mxu1 %v9345_v38  ;;  %3713 = vmatprep.subr.bf16.mxu0 %v9350_v39  ;;  %v9417_v38 = vld [vmem:[#allocation10 + $0x2e0] ss:$16 sps:$4 sm:$0xff]  }
 0x2bd   :  { %5788 = vmatprep.subr.bf16.mxu1 %v9353_v40  ;;  %v9422_v39 = vld [vmem:[#allocation7 + $0x7a4] ss:$40 sps:$4 sm:$0xff]  }
 0x2be   :  { %v9425_v40 = vld [vmem:[#allocation10 + $0x304] ss:$16 sps:$4 sm:$0xff]  }
 0x2bf   :  { %3714 = vmatpush1.bf16.msra.mxu0 %v9348_v41  ;;  %v9420_v41 = vld [vmem:[#allocation7 + $0x7a0] ss:$40 sps:$4 sm:$0xff]  }
 0x2c0   :  { %5789 = vmatpush1.bf16.msra.mxu1 %v9351_v42  ;;  %3715 = vmatprep.subr.bf16.mxu0 %v9356_v43  ;;  %v9423_v42 = vld [vmem:[#allocation10 + $0x300] ss:$16 sps:$4 sm:$0xff]  }
 0x2c1   :  { %5790 = vmatprep.subr.bf16.mxu1 %v9359_v44  ;;  %v9428_v43 = vld [vmem:[#allocation7 + $0x7f4] ss:$40 sps:$4 sm:$0xff]  }
 0x2c2   :  { %v9431_v44 = vld [vmem:[#allocation10 + $0x324] ss:$16 sps:$4 sm:$0xff]  }
 0x2c3   :  { %3716 = vmatpush1.bf16.msra.mxu0 %v9354_v45  ;;  %v9426_v45 = vld [vmem:[#allocation7 + $0x7f0] ss:$40 sps:$4 sm:$0xff]  }
 0x2c4   :  { %5791 = vmatpush1.bf16.msra.mxu1 %v9357_v46  ;;  %3717 = vmatprep.subr.bf16.mxu0 %v9362_v47  ;;  %v9429_v46 = vld [vmem:[#allocation10 + $0x320] ss:$16 sps:$4 sm:$0xff]  }
 0x2c5   :  { %5792 = vmatprep.subr.bf16.mxu1 %v9365_v49  ;;  %v9434_v47 = vld [vmem:[#allocation7 + $0x844] ss:$40 sps:$4 sm:$0xff]  }
 0x2c6   :  { %v9437_v49 = vld [vmem:[#allocation10 + $0x344] ss:$16 sps:$4 sm:$0xff]  }
 0x2c7   :  { %3718 = vmatpush1.bf16.msra.mxu0 %v9360_v52  ;;  %v9432_v52 = vld [vmem:[#allocation7 + $0x840] ss:$40 sps:$4 sm:$0xff]  }
 0x2c8   :  { %5793 = vmatpush1.bf16.msra.mxu1 %v9363_v53  ;;  %3719 = vmatprep.subr.bf16.mxu0 %v9368_v54  ;;  %v9435_v53 = vld [vmem:[#allocation10 + $0x340] ss:$16 sps:$4 sm:$0xff]  }
 0x2c9   :  { %5794 = vmatprep.subr.bf16.mxu1 %v9371_v56  ;;  %v9440_v54 = vld [vmem:[#allocation7 + $0x894] ss:$40 sps:$4 sm:$0xff]  }
 0x2ca   :  { %v9443_v56 = vld [vmem:[#allocation10 + $0x364] ss:$16 sps:$4 sm:$0xff]  }
 0x2cb   :  { %3720 = vmatpush1.bf16.msra.mxu0 %v9366_v60  ;;  %v9446_v60 = vld [vmem:[#allocation7 + $0x8e4] ss:$40 sps:$4 sm:$0xff]  }
 0x2cc   :  { %5795 = vmatpush1.bf16.msra.mxu1 %v9369_v61  ;;  %3730 = vmatprep.subr.bf16.mxu0 %v9374_v62  ;;  %v9449_v61 = vld [vmem:[#allocation10 + $0x384] ss:$16 sps:$4 sm:$0xff]  }
 0x2cd   :  { %5805 = vmatprep.subr.bf16.mxu1 %v9377_v63  ;;  %v9444_v62 = vld [vmem:[#allocation7 + $0x8e0] ss:$40 sps:$4 sm:$0xff]  }
 0x2ce   :  { %3722 = vmatmul.mubr.bf16.vlgmr.msra.gmra.mrb[8].mxu0 %v10778_v5  ;;  %v9395_v5 = vld [vmem:[#allocation10 + $0x264] ss:$16 sps:$4 sm:$0xff]   ;;  %v9447_v63 = vld [vmem:[#allocation10 + $0x380] ss:$16 sps:$4 sm:$0xff]  }
 0x2cf   :  { %5797 = vmatmul.mubr.bf16.vlgmr.msra.gmra.mrb[8].mxu1 %v10853_v9  ;;  %3731 = vmatpush1.bf16.msra.mxu0 %v9372_v1  ;;  %v9455_v1 = vld [vmem:[#allocation10 + $0x3a4] ss:$16 sps:$4 sm:$0xff]  }
 0x2d0   :  { %5806 = vmatpush1.bf16.msra.mxu1 %v9375_v4  ;;  %5837 = vmatprep.mubr.bf16.mxu1 %v10855_v12  ;;  %v9453_v4 = vld [vmem:[#allocation10 + $0x3a0] ss:$16 sps:$4 sm:$0xff]  }
 0x2d1   :  { %3732 = vmatprep.subr.bf16.mxu0 %v9380_v7  ;;  %5807 = vmatprep.subr.bf16.mxu1 %v9383_v11  ;;  %v9458_v7 = vld [vmem:[#allocation7 + $0x984] ss:$40 sps:$4 sm:$0xff]  }
 0x2d2   :  { %3762 = vmatprep.mubr.bf16.mxu0 %v10786_v30  ;;  %v9399_v30 = vld [vmem:[#allocation10 + $0x280] ss:$16 sps:$4 sm:$0xff]   ;;  %v9461_v11 = vld [vmem:[#allocation10 + $0x3c4] ss:$16 sps:$4 sm:$0xff]  }
 0x2d3   :  { %3733 = vmatpush1.bf16.msra.mxu0 %v9378_v2  ;;  %v10862_v2 = vsub.s32 2, %v10823_v55 }
 0x2d4   :  { %5808 = vmatpush1.bf16.msra.mxu1 %v9381_v14  ;;  %3734 = vmatprep.subr.bf16.mxu0 %v9386_v8  ;;  %v9456_v14 = vld [vmem:[#allocation7 + $0x980] ss:$40 sps:$4 sm:$0xff]  }
 0x2d5   :  { %5809 = vmatprep.subr.bf16.mxu1 %v9389_v16  ;;  %v9459_v8 = vld [vmem:[#allocation10 + $0x3c0] ss:$16 sps:$4 sm:$0xff]  }
 0x2d6   :  { %v9464_v16 = vld [vmem:[#allocation7 + $0x9d4] ss:$40 sps:$4 sm:$0xff]  }
 0x2d7   :  { %3735 = vmatpush1.bf16.msra.mxu0 %v9384_v17  ;;  %v9467_v17 = vld [vmem:[#allocation10 + $0x3e4] ss:$16 sps:$4 sm:$0xff]  }
 0x2d8   :  { %5810 = vmatpush1.bf16.msra.mxu1 %v9387_v19  ;;  %3736 = vmatprep.subr.bf16.mxu0 %v9392_v21  ;;  %v737_v19 = vrot.slane %v10825_v48, %v10862_v2  ;;  %v9462_v21 = vld [vmem:[#allocation7 + $0x9d0] ss:$40 sps:$4 sm:$0xff]  }
 0x2d9   :  { %5811 = vmatprep.subr.bf16.mxu1 %v9395_v5  ;;  %v9465_v5 = vld [vmem:[#allocation10 + $0x3e0] ss:$16 sps:$4 sm:$0xff]  }
 0x2da   :  { %v9471_v48 = vld [vmem:[#allocation7 + $0xa70] ss:$40 sps:$4 sm:$0xff]  }
 0x2db   :  { %3737 = vmatpush1.bf16.msra.mxu0 %v9390_v22  ;;  %v9470_v22 = vld [vmem:[#allocation7 + $0xa24] ss:$40 sps:$4 sm:$0xff]  }
 0x2dc   :  { %5812 = vmatpush1.bf16.msra.mxu1 %v9393_v23  ;;  %3738 = vmatprep.subr.bf16.mxu0 %v9398_v24  ;;  %v9491_v23 = vld [vmem:[#allocation10 + $0x404] ss:$16 sps:$4 sm:$0xff]   ;;  %v8585_v24 = vadd.f32 %v10834_v6, %v737_v19 }
 0x2dd   :  { %5813 = vmatprep.subr.bf16.mxu1 %v9401_v25  ;;  %v9468_v25 = vld [vmem:[#allocation7 + $0xa20] ss:$40 sps:$4 sm:$0xff]  }
 0x2de   :  { %v9503_v6 = vld [vmem:[#allocation10 + $0x444] ss:$16 sps:$4 sm:$0xff]  }
 0x2df   :  { %3739 = vmatpush1.bf16.msra.mxu0 %v9396_v13  ;;  %v9489_v13 = vld [vmem:[#allocation10 + $0x400] ss:$16 sps:$4 sm:$0xff]  }
 0x2e0   :  { %5814 = vmatpush1.bf16.msra.mxu1 %v9399_v30  ;;  %3740 = vmatprep.subr.bf16.mxu0 %v9404_v26  ;;  %v9473_v30 = vld [vmem:[#allocation7 + $0xa74] ss:$40 sps:$4 sm:$0xff]   ;;  %v9522_v19 = vld [vmem:[#allocation7 + $0xde0] ss:$40 sps:$4 sm:$0xff]  }
 0x2e1   :  { %5815 = vmatprep.subr.bf16.mxu1 %v9407_v27  ;;  %v9497_v26 = vld [vmem:[#allocation10 + $0x424] ss:$16 sps:$4 sm:$0xff]   ;;  %v10867_v27 = vpack.c.bf16 %v8585_v24, %v8585_v24  ;;  %v9567_v24 = vld [vmem:[#allocation10 + $0x5a0] ss:$16 sps:$4 sm:$0xff]  }
 0x2e3   :  { %3741 = vmatpush1.bf16.msra.mxu0 %v9402_v28  ;;  %v9476_v28 = vld [vmem:[#allocation7 + $0xac4] ss:$40 sps:$4 sm:$0xff]  }
 0x2e4   :  { %5816 = vmatpush1.bf16.msra.mxu1 %v9405_v29  ;;  %3742 = vmatprep.subr.bf16.mxu0 %v9410_v31  ;;  %v9495_v29 = vld [vmem:[#allocation10 + $0x420] ss:$16 sps:$4 sm:$0xff]  }
 0x2e5   :  { %5817 = vmatprep.subr.bf16.mxu1 %v9413_v32  ;;  %v9474_v31 = vld [vmem:[#allocation7 + $0xac0] ss:$40 sps:$4 sm:$0xff]  }
 0x2e6   :  { %v9501_v32 = vld [vmem:[#allocation10 + $0x440] ss:$16 sps:$4 sm:$0xff]  }
 0x2e7   :  { %3743 = vmatpush1.bf16.msra.mxu0 %v9408_v33  ;;  %v9479_v33 = vld [vmem:[#allocation7 + $0xb14] ss:$40 sps:$4 sm:$0xff]  }
 0x2e8   :  { %5818 = vmatpush1.bf16.msra.mxu1 %v9411_v34  ;;  %3744 = vmatprep.subr.bf16.mxu0 %v9416_v35  ;;  %v9509_v34 = vld [vmem:[#allocation10 + $0x464] ss:$16 sps:$4 sm:$0xff]  }
 0x2e9   :  { %5819 = vmatprep.subr.bf16.mxu1 %v9419_v36  ;;  %v9477_v35 = vld [vmem:[#allocation7 + $0xb10] ss:$40 sps:$4 sm:$0xff]  }
 0x2ea   :  { %v9507_v36 = vld [vmem:[#allocation10 + $0x460] ss:$16 sps:$4 sm:$0xff]  }
 0x2eb   :  { %3745 = vmatpush1.bf16.msra.mxu0 %v9414_v37  ;;  %v9515_v37 = vld [vmem:[#allocation10 + $0x484] ss:$16 sps:$4 sm:$0xff]  }
 0x2ec   :  { %5820 = vmatpush1.bf16.msra.mxu1 %v9417_v38  ;;  %3746 = vmatprep.subr.bf16.mxu0 %v9422_v39  ;;  %v9480_v38 = vld [vmem:[#allocation7 + $0xb60] ss:$40 sps:$4 sm:$0xff]  }
 0x2ed   :  { %5821 = vmatprep.subr.bf16.mxu1 %v9425_v40  ;;  %v9513_v39 = vld [vmem:[#allocation10 + $0x480] ss:$16 sps:$4 sm:$0xff]  }
 0x2ee   :  { %v9485_v40 = vld [vmem:[#allocation7 + $0xbb4] ss:$40 sps:$4 sm:$0xff]  }
 0x2ef   :  { %3747 = vmatpush1.bf16.msra.mxu0 %v9420_v41  ;;  %v9521_v41 = vld [vmem:[#allocation10 + $0x4a4] ss:$16 sps:$4 sm:$0xff]  }
 0x2f0   :  { %5822 = vmatpush1.bf16.msra.mxu1 %v9423_v42  ;;  %3748 = vmatprep.subr.bf16.mxu0 %v9428_v43  ;;  %v9519_v42 = vld [vmem:[#allocation10 + $0x4a0] ss:$16 sps:$4 sm:$0xff]  }
 0x2f1   :  { %5823 = vmatprep.subr.bf16.mxu1 %v9431_v44  ;;  %v9488_v43 = vld [vmem:[#allocation7 + $0xc04] ss:$40 sps:$4 sm:$0xff]  }
 0x2f2   :  { %v9527_v44 = vld [vmem:[#allocation10 + $0x4c4] ss:$16 sps:$4 sm:$0xff]  }
 0x2f3   :  { %3749 = vmatpush1.bf16.msra.mxu0 %v9426_v45  ;;  %v9486_v45 = vld [vmem:[#allocation7 + $0xc00] ss:$40 sps:$4 sm:$0xff]  }
 0x2f4   :  { %5824 = vmatpush1.bf16.msra.mxu1 %v9429_v46  ;;  %3750 = vmatprep.subr.bf16.mxu0 %v9434_v47  ;;  %v9525_v46 = vld [vmem:[#allocation10 + $0x4c0] ss:$16 sps:$4 sm:$0xff]  }
 0x2f5   :  { %5825 = vmatprep.subr.bf16.mxu1 %v9437_v49  ;;  %v9494_v47 = vld [vmem:[#allocation7 + $0xc54] ss:$40 sps:$4 sm:$0xff]  }
 0x2f6   :  { %v9533_v49 = vld [vmem:[#allocation10 + $0x4e4] ss:$16 sps:$4 sm:$0xff]  }
 0x2f7   :  { %3751 = vmatpush1.bf16.msra.mxu0 %v9432_v52  ;;  %v9492_v52 = vld [vmem:[#allocation7 + $0xc50] ss:$40 sps:$4 sm:$0xff]  }
 0x2f8   :  { %5826 = vmatpush1.bf16.msra.mxu1 %v9435_v53  ;;  %3752 = vmatprep.subr.bf16.mxu0 %v9440_v54  ;;  %v9531_v53 = vld [vmem:[#allocation10 + $0x4e0] ss:$16 sps:$4 sm:$0xff]  }
 0x2f9   :  { %5827 = vmatprep.subr.bf16.mxu1 %v9443_v56  ;;  %v9500_v54 = vld [vmem:[#allocation7 + $0xca4] ss:$40 sps:$4 sm:$0xff]  }
 0x2fa   :  { %v9539_v56 = vld [vmem:[#allocation10 + $0x504] ss:$16 sps:$4 sm:$0xff]  }
 0x2fb   :  { %3753 = vmatpush1.bf16.msra.mxu0 %v9438_v57  ;;  %v9498_v57 = vld [vmem:[#allocation7 + $0xca0] ss:$40 sps:$4 sm:$0xff]  }
 0x2fc   :  { %5828 = vmatpush1.bf16.msra.mxu1 %v9441_v59  ;;  %3754 = vmatprep.subr.bf16.mxu0 %v9446_v60  ;;  %v9506_v59 = vld [vmem:[#allocation7 + $0xcf4] ss:$40 sps:$4 sm:$0xff]  }
 0x2fd   :  { %5829 = vmatprep.subr.bf16.mxu1 %v9449_v61  ;;  %v9537_v60 = vld [vmem:[#allocation10 + $0x500] ss:$16 sps:$4 sm:$0xff]   ;;  %v9545_v61 = vld [vmem:[#allocation10 + $0x524] ss:$16 sps:$4 sm:$0xff]  }
 0x2ff   :  { %3755 = vmatpush1.bf16.msra.mxu0 %v9444_v62  ;;  %v9504_v62 = vld [vmem:[#allocation7 + $0xcf0] ss:$40 sps:$4 sm:$0xff]  }
 0x300   :  { %5830 = vmatpush1.bf16.msra.mxu1 %v9447_v63  ;;  %3756 = vmatprep.subr.bf16.mxu0 %v9452_v0  ;;  %v9512_v63 = vld [vmem:[#allocation7 + $0xd44] ss:$40 sps:$4 sm:$0xff]  }
 0x301   :  { %5831 = vmatprep.subr.bf16.mxu1 %v9455_v1  ;;  %v9543_v0 = vld [vmem:[#allocation10 + $0x520] ss:$16 sps:$4 sm:$0xff]   ;;  %v9551_v1 = vld [vmem:[#allocation10 + $0x544] ss:$16 sps:$4 sm:$0xff]  }
 0x303   :  { %3757 = vmatpush1.bf16.msra.mxu0 %v9450_v3  ;;  %v9510_v3 = vld [vmem:[#allocation7 + $0xd40] ss:$40 sps:$4 sm:$0xff]  }
 0x304   :  { %5832 = vmatpush1.bf16.msra.mxu1 %v9453_v4  ;;  %3758 = vmatprep.subr.bf16.mxu0 %v9458_v7  ;;  %v9549_v4 = vld [vmem:[#allocation10 + $0x540] ss:$16 sps:$4 sm:$0xff]  }
 0x305   :  { %5833 = vmatprep.subr.bf16.mxu1 %v9461_v11  ;;  %v9518_v7 = vld [vmem:[#allocation7 + $0xd94] ss:$40 sps:$4 sm:$0xff]  }
 0x306   :  { %v9557_v11 = vld [vmem:[#allocation10 + $0x564] ss:$16 sps:$4 sm:$0xff]  }
 0x307   :  { %3759 = vmatpush1.bf16.msra.mxu0 %v9456_v14  ;;  %v9516_v14 = vld [vmem:[#allocation7 + $0xd90] ss:$40 sps:$4 sm:$0xff]  }
 0x308   :  { %5834 = vmatpush1.bf16.msra.mxu1 %v9459_v8  ;;  %3760 = vmatprep.subr.bf16.mxu0 %v9464_v16  ;;  %v9555_v8 = vld [vmem:[#allocation10 + $0x560] ss:$16 sps:$4 sm:$0xff]  }
 0x309   :  { %5835 = vmatprep.subr.bf16.mxu1 %v9467_v17  ;;  %v9524_v16 = vld [vmem:[#allocation7 + $0xde4] ss:$40 sps:$4 sm:$0xff]  }
 0x30a   :  { %v9563_v17 = vld [vmem:[#allocation10 + $0x584] ss:$16 sps:$4 sm:$0xff]  }
 0x30b   :  { %3761 = vmatpush1.bf16.msra.mxu0 %v9462_v21  ;;  %v9561_v21 = vld [vmem:[#allocation10 + $0x580] ss:$16 sps:$4 sm:$0xff]  }
 0x30c   :  { %5836 = vmatpush1.bf16.msra.mxu1 %v9465_v5  ;;  %3771 = vmatprep.subr.bf16.mxu0 %v9470_v22  ;;  %v9530_v5 = vld [vmem:[#allocation7 + $0xe34] ss:$40 sps:$4 sm:$0xff]  }
 0x30d   :  { %5846 = vmatprep.subr.bf16.mxu1 %v9491_v23  ;;  %v9569_v22 = vld [vmem:[#allocation10 + $0x5a4] ss:$16 sps:$4 sm:$0xff]  }
 0x30e   :  { %3763 = vmatmul.mubr.bf16.vlgmr.msra.gmra.mrb[8].mxu0 %v10792_v10  ;;  %v9482_v10 = vld [vmem:[#allocation7 + $0xb64] ss:$40 sps:$4 sm:$0xff]   ;;  %v9528_v23 = vld [vmem:[#allocation7 + $0xe30] ss:$40 sps:$4 sm:$0xff]  }
 0x30f   :  { %5838 = vmatmul.mubr.bf16.vlgmr.msra.gmra.mrb[8].mxu1 %v10867_v27  ;;  %3772 = vmatpush1.bf16.msra.mxu0 %v9468_v25  ;;  %v9536_v25 = vld [vmem:[#allocation7 + $0xe84] ss:$40 sps:$4 sm:$0xff]  }
 0x310   :  { %5847 = vmatpush1.bf16.msra.mxu1 %v9489_v13  ;;  %3773 = vmatprep.subr.bf16.mxu0 %v9473_v30  ;;  %v9575_v13 = vld [vmem:[#allocation10 + $0x5c4] ss:$16 sps:$4 sm:$0xff]  }
 0x311   :  { %5848 = vmatprep.subr.bf16.mxu1 %v9497_v26  ;;  %3803 = vmatprep.mubr.bf16.mxu0 %v10798_v15  ;;  %v9483_v15 = vld [vmem:[#allocation7 + $0xbb0] ss:$40 sps:$4 sm:$0xff]   ;;  %v9534_v30 = vld [vmem:[#allocation7 + $0xe80] ss:$40 sps:$4 sm:$0xff]  }
 0x312   :  { %v9573_v26 = vld [vmem:[#allocation10 + $0x5c0] ss:$16 sps:$4 sm:$0xff]  }
 0x313   :  { %3774 = vmatpush1.bf16.msra.mxu0 %v9471_v48  ;;  %v9542_v48 = vld [vmem:[#allocation7 + $0xed4] ss:$40 sps:$4 sm:$0xff]  }
 0x314   :  { %5849 = vmatpush1.bf16.msra.mxu1 %v9495_v29  ;;  %3775 = vmatprep.subr.bf16.mxu0 %v9476_v28  ;;  %v9581_v28 = vld [vmem:[#allocation10 + $0x5e4] ss:$16 sps:$4 sm:$0xff]  }
 0x315   :  { %5850 = vmatprep.subr.bf16.mxu1 %v9503_v6  ;;  %v9540_v29 = vld [vmem:[#allocation7 + $0xed0] ss:$40 sps:$4 sm:$0xff]  }
 0x316   :  { %v9579_v6 = vld [vmem:[#allocation10 + $0x5e0] ss:$16 sps:$4 sm:$0xff]  }
 0x317   :  { %3776 = vmatpush1.bf16.msra.mxu0 %v9474_v31  ;;  %v9548_v31 = vld [vmem:[#allocation10 + $0xc] ss:$16 sps:$4 sm:$0xff]  }
 0x318   :  { %5851 = vmatpush1.bf16.msra.mxu1 %v9501_v32  ;;  %3777 = vmatprep.subr.bf16.mxu0 %v9479_v33  ;;  %v9587_v32 = vld [vmem:[#allocation10 + $0x604] ss:$16 sps:$4 sm:$0xff]   ;;  %v9546_v33 = vld [vmem:[#allocation10 + $0x8] ss:$16 sps:$4 sm:$0xff]  }
 0x319   :  { %5852 = vmatprep.subr.bf16.mxu1 %v9509_v34  ;;  %v9554_v34 = vld [vmem:[#allocation10 + $0x2c] ss:$16 sps:$4 sm:$0xff]  }
 0x31b   :  { %3778 = vmatpush1.bf16.msra.mxu0 %v9477_v35  ;;  %v9552_v35 = vld [vmem:[#allocation10 + $0x28] ss:$16 sps:$4 sm:$0xff]  }
 0x31c   :  { %5853 = vmatpush1.bf16.msra.mxu1 %v9507_v36  ;;  %3779 = vmatprep.subr.bf16.mxu0 %v9482_v10  ;;  %v9560_v36 = vld [vmem:[#allocation10 + $0x4c] ss:$16 sps:$4 sm:$0xff]   ;;  %v9558_v10 = vld [vmem:[#allocation10 + $0x48] ss:$16 sps:$4 sm:$0xff]  }
 0x31d   :  { %5854 = vmatprep.subr.bf16.mxu1 %v9515_v37  ;;  %v9566_v37 = vld [vmem:[#allocation10 + $0x6c] ss:$16 sps:$4 sm:$0xff]  }
 0x31f   :  { %3780 = vmatpush1.bf16.msra.mxu0 %v9480_v38  ;;  %v9564_v38 = vld [vmem:[#allocation10 + $0x68] ss:$16 sps:$4 sm:$0xff]  }
 0x320   :  { %5855 = vmatpush1.bf16.msra.mxu1 %v9513_v39  ;;  %3781 = vmatprep.subr.bf16.mxu0 %v9485_v40  ;;  %v9572_v39 = vld [vmem:[#allocation10 + $0x8c] ss:$16 sps:$4 sm:$0xff]   ;;  %v744_v40 = vsub.s32 4, %v10823_v55 }
 0x321   :  { %5856 = vmatprep.subr.bf16.mxu1 %v9521_v41  ;;  %v9570_v41 = vld [vmem:[#allocation10 + $0x88] ss:$16 sps:$4 sm:$0xff]  }
 0x323   :  { %3782 = vmatpush1.bf16.msra.mxu0 %v9483_v15  ;;  %v756_v15 = vsub.s32 7, %v10823_v55 }
 0x324   :  { %5857 = vmatpush1.bf16.msra.mxu1 %v9519_v42  ;;  %3783 = vmatprep.subr.bf16.mxu0 %v9488_v43  ;;  %v10877_v42 = vld [vmem:[#allocation8] sm:$0xff] }
 0x325   :  { %5858 = vmatprep.subr.bf16.mxu1 %v9527_v44  ;;  %v745_v43 = vrot.slane %v10877_v42, %v744_v40  ;;  %v9635_v40 = vld [vmem:[#allocation10 + $0x704] ss:$16 sps:$4 sm:$0xff]  }
 0x327   :  { %3784 = vmatpush1.bf16.msra.mxu0 %v9486_v45  ;;  %v9576_v45 = vld [vmem:[#allocation10 + $0xa8] ss:$16 sps:$4 sm:$0xff]  }
 0x328   :  { %5859 = vmatpush1.bf16.msra.mxu1 %v9525_v46  ;;  %3785 = vmatprep.subr.bf16.mxu0 %v9494_v47  ;;  %v757_v46 = vrot.slane %v10877_v42, %v756_v15  ;;  %v9584_v47 = vld [vmem:[#allocation10 + $0xcc] ss:$16 sps:$4 sm:$0xff]   ;;  %v9633_v15 = vld [vmem:[#allocation10 + $0x700] ss:$16 sps:$4 sm:$0xff]  }
 0x329   :  { %5860 = vmatprep.subr.bf16.mxu1 %v9533_v49 }
 0x32b   :  { %3786 = vmatpush1.bf16.msra.mxu0 %v9492_v52 }
 0x32c   :  { %5861 = vmatpush1.bf16.msra.mxu1 %v9531_v53  ;;  %3787 = vmatprep.subr.bf16.mxu0 %v9500_v54 }
 0x32d   :  { %5862 = vmatprep.subr.bf16.mxu1 %v9539_v56 }
 0x32f   :  { %3788 = vmatpush1.bf16.msra.mxu0 %v9498_v57 }
 0x330   :  { %5863 = vmatpush1.bf16.msra.mxu1 %v9537_v60  ;;  %3789 = vmatprep.subr.bf16.mxu0 %v9506_v59  ;;  %v9582_v60 = vld [vmem:[#allocation10 + $0xc8] ss:$16 sps:$4 sm:$0xff]  }
 0x331   :  { %5864 = vmatprep.subr.bf16.mxu1 %v9545_v61 }
 0x333   :  { %3790 = vmatpush1.bf16.msra.mxu0 %v9504_v62 }
 0x334   :  { %5865 = vmatpush1.bf16.msra.mxu1 %v9543_v0  ;;  %3791 = vmatprep.subr.bf16.mxu0 %v9512_v63  ;;  %v9590_v0 = vld [vmem:[#allocation10 + $0xec] ss:$16 sps:$4 sm:$0xff]  }
 0x335   :  { %5866 = vmatprep.subr.bf16.mxu1 %v9551_v1 }
 0x337   :  { %3792 = vmatpush1.bf16.msra.mxu0 %v9510_v3 }
 0x338   :  { %5867 = vmatpush1.bf16.msra.mxu1 %v9549_v4  ;;  %3793 = vmatprep.subr.bf16.mxu0 %v9518_v7  ;;  %v9585_v4 = vld [vmem:[#allocation10 + $0x600] ss:$16 sps:$4 sm:$0xff]  }
 0x339   :  { %5868 = vmatprep.subr.bf16.mxu1 %v9557_v11 }
 0x33b   :  { %3794 = vmatpush1.bf16.msra.mxu0 %v9516_v14  ;;  %v9593_v14 = vld [vmem:[#allocation10 + $0x624] ss:$16 sps:$4 sm:$0xff]  }
 0x33c   :  { %5869 = vmatpush1.bf16.msra.mxu1 %v9555_v8  ;;  %3795 = vmatprep.subr.bf16.mxu0 %v9524_v16  ;;  %v9588_v8 = vld [vmem:[#allocation10 + $0xe8] ss:$16 sps:$4 sm:$0xff]   ;;  %v9596_v16 = vld [vmem:[#allocation10 + $0x10c] ss:$16 sps:$4 sm:$0xff]  }
 0x33d   :  { %5870 = vmatprep.subr.bf16.mxu1 %v9563_v17  ;;  %v9591_v17 = vld [vmem:[#allocation10 + $0x620] ss:$16 sps:$4 sm:$0xff]  }
 0x33f   :  { %3796 = vmatpush1.bf16.msra.mxu0 %v9522_v19  ;;  %v9599_v19 = vld [vmem:[#allocation10 + $0x644] ss:$16 sps:$4 sm:$0xff]  }
 0x340   :  { %5871 = vmatpush1.bf16.msra.mxu1 %v9561_v21  ;;  %3797 = vmatprep.subr.bf16.mxu0 %v9530_v5  ;;  %v9594_v21 = vld [vmem:[#allocation10 + $0x108] ss:$16 sps:$4 sm:$0xff]   ;;  %v9602_v5 = vld [vmem:[#allocation10 + $0x12c] ss:$16 sps:$4 sm:$0xff]  }
 0x341   :  { %5872 = vmatprep.subr.bf16.mxu1 %v9569_v22  ;;  %v9597_v22 = vld [vmem:[#allocation10 + $0x640] ss:$16 sps:$4 sm:$0xff]  }
 0x343   :  { %3798 = vmatpush1.bf16.msra.mxu0 %v9528_v23  ;;  %v9605_v23 = vld [vmem:[#allocation10 + $0x664] ss:$16 sps:$4 sm:$0xff]  }
 0x344   :  { %5873 = vmatpush1.bf16.msra.mxu1 %v9567_v24  ;;  %3799 = vmatprep.subr.bf16.mxu0 %v9536_v25  ;;  %v9600_v24 = vld [vmem:[#allocation10 + $0x128] ss:$16 sps:$4 sm:$0xff]   ;;  %v9608_v25 = vld [vmem:[#allocation10 + $0x14c] ss:$16 sps:$4 sm:$0xff]  }
 0x345   :  { %5874 = vmatprep.subr.bf16.mxu1 %v9575_v13  ;;  %v9603_v13 = vld [vmem:[#allocation10 + $0x660] ss:$16 sps:$4 sm:$0xff]  }
 0x347   :  { %3800 = vmatpush1.bf16.msra.mxu0 %v9534_v30  ;;  %v9611_v30 = vld [vmem:[#allocation10 + $0x684] ss:$16 sps:$4 sm:$0xff]  }
 0x348   :  { %5875 = vmatpush1.bf16.msra.mxu1 %v9573_v26  ;;  %3801 = vmatprep.subr.bf16.mxu0 %v9542_v48  ;;  %v9606_v26 = vld [vmem:[#allocation10 + $0x148] ss:$16 sps:$4 sm:$0xff]   ;;  %v9614_v48 = vld [vmem:[#allocation10 + $0x16c] ss:$16 sps:$4 sm:$0xff]  }
 0x349   :  { %5876 = vmatprep.subr.bf16.mxu1 %v9581_v28  ;;  %v9609_v28 = vld [vmem:[#allocation10 + $0x680] ss:$16 sps:$4 sm:$0xff]  }
 0x34b   :  { %3802 = vmatpush1.bf16.msra.mxu0 %v9540_v29  ;;  %v9617_v29 = vld [vmem:[#allocation10 + $0x6a4] ss:$16 sps:$4 sm:$0xff]  }
 0x34c   :  { %5877 = vmatpush1.bf16.msra.mxu1 %v9579_v6  ;;  %5969 = vmatprep.subr.bf16.mxu0 %v9548_v31  ;;  %v9612_v6 = vld [vmem:[#allocation10 + $0x168] ss:$16 sps:$4 sm:$0xff]   ;;  %v9620_v31 = vld [vmem:[#allocation10 + $0x18c] ss:$16 sps:$4 sm:$0xff]  }
 0x34d   :  { %5887 = vmatprep.subr.bf16.mxu1 %v9587_v32  ;;  %v9615_v32 = vld [vmem:[#allocation10 + $0x6a0] ss:$16 sps:$4 sm:$0xff]  }
 0x34e   :  { %3804 = vmatmul.mubr.bf16.vlgmr.msra.gmra.mrb[8].mxu0 %v10806_v18  ;;  %v748_v18 = vsub.s32 5, %v10823_v55 }
 0x34f   :  { %5970 = vmatpush1.bf16.msra.mxu0 %v9546_v33  ;;  %6001 = vmatprep.mubr.bf16.mxu0 %v10838_v20  ;;  %v9578_v20 = vld [vmem:[#allocation10 + $0xac] ss:$16 sps:$4 sm:$0xff]   ;;  %v9623_v33 = vld [vmem:[#allocation10 + $0x6c4] ss:$16 sps:$4 sm:$0xff]  }
 0x350   :  { %5971 = vmatprep.subr.bf16.mxu0 %v9554_v34  ;;  %v749_v44 = vrot.slane %v10877_v42, %v748_v18  ;;  %v9618_v34 = vld [vmem:[#allocation10 + $0x188] ss:$16 sps:$4 sm:$0xff]   ;;  %v9638_v18 = vld [vmem:[#allocation10 + $0x1ec] ss:$16 sps:$4 sm:$0xff]  }
 0x353   :  { %5972 = vmatpush1.bf16.msra.mxu0 %v9552_v35  ;;  %v9626_v35 = vld [vmem:[#allocation10 + $0x1ac] ss:$16 sps:$4 sm:$0xff]  }
 0x354   :  { %5973 = vmatprep.subr.bf16.mxu0 %v9560_v36  ;;  %v9621_v36 = vld [vmem:[#allocation10 + $0x6c0] ss:$16 sps:$4 sm:$0xff]  }
 0x357   :  { %5974 = vmatpush1.bf16.msra.mxu0 %v9558_v10  ;;  %v9629_v10 = vld [vmem:[#allocation10 + $0x6e4] ss:$16 sps:$4 sm:$0xff]  }
 0x358   :  { %5975 = vmatprep.subr.bf16.mxu0 %v9566_v37  ;;  %v9624_v37 = vld [vmem:[#allocation10 + $0x1a8] ss:$16 sps:$4 sm:$0xff]  }
 0x35b   :  { %5976 = vmatpush1.bf16.msra.mxu0 %v9564_v38  ;;  %v9632_v38 = vld [vmem:[#allocation10 + $0x1cc] ss:$16 sps:$4 sm:$0xff]  }
 0x35c   :  { %5977 = vmatprep.subr.bf16.mxu0 %v9572_v39  ;;  %v9627_v39 = vld [vmem:[#allocation10 + $0x6e0] ss:$16 sps:$4 sm:$0xff]  }
 0x35f   :  { %5978 = vmatpush1.bf16.msra.mxu0 %v9570_v41  ;;  %v9630_v41 = vld [vmem:[#allocation10 + $0x1c8] ss:$16 sps:$4 sm:$0xff]  }
 0x360   :  { %5979 = vmatprep.subr.bf16.mxu0 %v9578_v20  ;;  %v9641_v20 = vld [vmem:[#allocation10 + $0x724] ss:$16 sps:$4 sm:$0xff]  }
 0x361   :  { %v3559_v49 = vpop.f32.mrb[4].mxu0 }
 0x362   :  { %v10882_v52 = vpop.f32.mrb[4].mxu1  ;;  %v8587_v53 = vadd.f32 %v3559_v49, %v745_v43  ;;  %v3561_v54 = vpop.f32.mrb[5].mxu0  ;;  %v9636_v43 = vld [vmem:[#allocation10 + $0x1e8] ss:$16 sps:$4 sm:$0xff]   ;;  %v9650_v49 = vld [vmem:[#allocation10 + $0x22c] ss:$16 sps:$4 sm:$0xff]  }
 0x363   :  { %v3684_v56 = vpop.f32.mrb[5].mxu1  ;;  %v8588_v57 = vadd.f32 %v3561_v54, %v749_v44  ;;  %v3563_v59 = vpop.f32.mrb[6].mxu0  ;;  %5980 = vmatpush1.bf16.msra.mxu0 %v9576_v45  ;;  %v9644_v44 = vld [vmem:[#allocation10 + $0x20c] ss:$16 sps:$4 sm:$0xff]   ;;  %v9639_v45 = vld [vmem:[#allocation10 + $0x720] ss:$16 sps:$4 sm:$0xff]  }
 0x364   :  { %v8590_v61 = vadd.f32 %v3684_v56, %v757_v46  ;;  %v3686_v62 = vpop.f32.mrb[6].mxu1  ;;  %v3564_v63 = vpop.f32.mrb[7].mxu0  ;;  %5981 = vmatprep.subr.bf16.mxu0 %v9584_v47  ;;  %v10888_v11 = vpack.c.bf16 %v8587_v53, %v8587_v53  ;;  %v9647_v46 = vld [vmem:[#allocation10 + $0x744] ss:$16 sps:$4 sm:$0xff]   ;;  %v9642_v47 = vld [vmem:[#allocation10 + $0x208] ss:$16 sps:$4 sm:$0xff]  }
 0x365   :  { %v3687_v1 = vpop.f32.mrb[7].mxu1  ;;  %v10884_v3 = vpack.c.bf16 %v8588_v57, %v8588_v57  ;;  %v9645_v53 = vld [vmem:[#allocation10 + $0x740] ss:$16 sps:$4 sm:$0xff]   ;;  %v9653_v54 = vld [vmem:[#allocation10 + $0x764] ss:$16 sps:$4 sm:$0xff]  }
 0x366   :  { %v10886_v7 = vpack.c.bf16 %v8590_v61, %v8590_v61  ;;  %v9648_v56 = vld [vmem:[#allocation10 + $0x228] ss:$16 sps:$4 sm:$0xff]   ;;  %v9656_v57 = vld [vmem:[#allocation10 + $0x24c] ss:$16 sps:$4 sm:$0xff]   ;;  %v9651_v59 = vld [vmem:[#allocation10 + $0x760] ss:$16 sps:$4 sm:$0xff]  }
 0x367   :  { %5878 = vmatprep.mubr.bf16.mxu1 %v10884_v3  ;;  %5982 = vmatpush1.bf16.msra.mxu0 %v9582_v60  ;;  %v9659_v60 = vld [vmem:[#allocation10 + $0x784] ss:$16 sps:$4 sm:$0xff]   ;;  %v9654_v61 = vld [vmem:[#allocation10 + $0x248] ss:$16 sps:$4 sm:$0xff]   ;;  %v9662_v62 = vld [vmem:[#allocation10 + $0x26c] ss:$16 sps:$4 sm:$0xff]  }
 0x368   :  { %5879 = vmatmul.mubr.bf16.vlgmr.msra.gmra.mrb[8].mxu1 %v10888_v11  ;;  %5983 = vmatprep.subr.bf16.mxu0 %v9590_v0  ;;  %v9657_v63 = vld [vmem:[#allocation10 + $0x780] ss:$16 sps:$4 sm:$0xff]   ;;  %v9660_v0 = vld [vmem:[#allocation10 + $0x268] ss:$16 sps:$4 sm:$0xff]   ;;  %v9668_v1 = vld [vmem:[#allocation10 + $0x28c] ss:$16 sps:$4 sm:$0xff]  }
 0x369   :  { %5888 = vmatpush1.bf16.msra.mxu1 %v9585_v4  ;;  %5919 = vmatprep.mubr.bf16.mxu1 %v10886_v7  ;;  %v752_v4 = vsub.s32 6, %v10823_v55 }
 0x36a   :  { %5889 = vmatprep.subr.bf16.mxu1 %v9593_v14  ;;  %v9671_v14 = vld [vmem:[#allocation10 + $0x7c4] ss:$16 sps:$4 sm:$0xff]  }
 0x36b   :  { %5984 = vmatpush1.bf16.msra.mxu0 %v9588_v8  ;;  %v9666_v8 = vld [vmem:[#allocation10 + $0x288] ss:$16 sps:$4 sm:$0xff]  }
 0x36c   :  { %5985 = vmatprep.subr.bf16.mxu0 %v9596_v16  ;;  %v9674_v16 = vld [vmem:[#allocation10 + $0x2ac] ss:$16 sps:$4 sm:$0xff]  }
 0x36d   :  { %5890 = vmatpush1.bf16.msra.mxu1 %v9591_v17  ;;  %v9669_v17 = vld [vmem:[#allocation10 + $0x7c0] ss:$16 sps:$4 sm:$0xff]  }
 0x36e   :  { %5891 = vmatprep.subr.bf16.mxu1 %v9599_v19  ;;  %v753_v19 = vrot.slane %v10877_v42, %v752_v4  ;;  %v9737_v42 = vld [vmem:[#allocation10 + $0x824] ss:$16 sps:$4 sm:$0xff]  }
 0x36f   :  { %5986 = vmatpush1.bf16.msra.mxu0 %v9594_v21  ;;  %v9677_v21 = vld [vmem:[#allocation10 + $0x7e4] ss:$16 sps:$4 sm:$0xff]  }
 0x370   :  { %5987 = vmatprep.subr.bf16.mxu0 %v9602_v5  ;;  %v9672_v5 = vld [vmem:[#allocation10 + $0x2a8] ss:$16 sps:$4 sm:$0xff]   ;;  %v8589_v55 = vadd.f32 %v10882_v52, %v753_v19  ;;  %v9735_v52 = vld [vmem:[#allocation10 + $0x820] ss:$16 sps:$4 sm:$0xff]   ;;  %v9797_v4 = vld [vmem:[#allocation10 + $0x964] ss:$16 sps:$4 sm:$0xff]  }
 0x371   :  { %5892 = vmatpush1.bf16.msra.mxu1 %v9597_v22  ;;  %v9680_v22 = vld [vmem:[#allocation10 + $0x2cc] ss:$16 sps:$4 sm:$0xff]   ;;  %v9714_v19 = vld [vmem:[#allocation10 + $0x448] ss:$16 sps:$4 sm:$0xff]  }
 0x372   :  { %5893 = vmatprep.subr.bf16.mxu1 %v9605_v23  ;;  %v9675_v23 = vld [vmem:[#allocation10 + $0x7e0] ss:$16 sps:$4 sm:$0xff]  }
 0x373   :  { %5988 = vmatpush1.bf16.msra.mxu0 %v9600_v24  ;;  %v9731_v24 = vld [vmem:[#allocation10 + $0x804] ss:$16 sps:$4 sm:$0xff]  }
 0x374   :  { %5989 = vmatprep.subr.bf16.mxu0 %v9608_v25  ;;  %v9678_v25 = vld [vmem:[#allocation10 + $0x2c8] ss:$16 sps:$4 sm:$0xff]  }
 0x375   :  { %5894 = vmatpush1.bf16.msra.mxu1 %v9603_v13  ;;  %v9683_v13 = vld [vmem:[#allocation10 + $0x2ec] ss:$16 sps:$4 sm:$0xff]  }
 0x376   :  { %5895 = vmatprep.subr.bf16.mxu1 %v9611_v30  ;;  %v9729_v30 = vld [vmem:[#allocation10 + $0x800] ss:$16 sps:$4 sm:$0xff]  }
 0x377   :  { %5990 = vmatpush1.bf16.msra.mxu0 %v9606_v26  ;;  %v10898_v26 = vpack.c.bf16 %v8589_v55, %v8589_v55  ;;  %v9815_v55 = vld [vmem:[#allocation10 + $0x9c4] ss:$16 sps:$4 sm:$0xff]  }
 0x378   :  { %5991 = vmatprep.subr.bf16.mxu0 %v9614_v48  ;;  %v9681_v48 = vld [vmem:[#allocation10 + $0x2e8] ss:$16 sps:$4 sm:$0xff]  }
 0x379   :  { %5896 = vmatpush1.bf16.msra.mxu1 %v9609_v28  ;;  %v9686_v28 = vld [vmem:[#allocation10 + $0x30c] ss:$16 sps:$4 sm:$0xff]  }
 0x37a   :  { %5897 = vmatprep.subr.bf16.mxu1 %v9617_v29  ;;  %v9743_v29 = vld [vmem:[#allocation10 + $0x844] ss:$16 sps:$4 sm:$0xff]  }
 0x37b   :  { %5992 = vmatpush1.bf16.msra.mxu0 %v9612_v6  ;;  %v9684_v6 = vld [vmem:[#allocation10 + $0x308] ss:$16 sps:$4 sm:$0xff]  }
 0x37c   :  { %5993 = vmatprep.subr.bf16.mxu0 %v9620_v31  ;;  %v9689_v31 = vld [vmem:[#allocation10 + $0x32c] ss:$16 sps:$4 sm:$0xff]  }
 0x37d   :  { %5898 = vmatpush1.bf16.msra.mxu1 %v9615_v32  ;;  %v9741_v32 = vld [vmem:[#allocation10 + $0x840] ss:$16 sps:$4 sm:$0xff]  }
 0x37e   :  { %5899 = vmatprep.subr.bf16.mxu1 %v9623_v33  ;;  %v9749_v33 = vld [vmem:[#allocation10 + $0x864] ss:$16 sps:$4 sm:$0xff]  }
 0x37f   :  { %5994 = vmatpush1.bf16.msra.mxu0 %v9618_v34  ;;  %v9687_v34 = vld [vmem:[#allocation10 + $0x328] ss:$16 sps:$4 sm:$0xff]  }
 0x380   :  { %5995 = vmatprep.subr.bf16.mxu0 %v9626_v35  ;;  %v9692_v35 = vld [vmem:[#allocation10 + $0x34c] ss:$16 sps:$4 sm:$0xff]  }
 0x381   :  { %5900 = vmatpush1.bf16.msra.mxu1 %v9621_v36  ;;  %v9747_v36 = vld [vmem:[#allocation10 + $0x860] ss:$16 sps:$4 sm:$0xff]  }
 0x382   :  { %5901 = vmatprep.subr.bf16.mxu1 %v9629_v10  ;;  %v9755_v10 = vld [vmem:[#allocation10 + $0x884] ss:$16 sps:$4 sm:$0xff]  }
 0x383   :  { %5996 = vmatpush1.bf16.msra.mxu0 %v9624_v37  ;;  %v9690_v37 = vld [vmem:[#allocation10 + $0x348] ss:$16 sps:$4 sm:$0xff]  }
 0x384   :  { %5997 = vmatprep.subr.bf16.mxu0 %v9632_v38  ;;  %v9695_v38 = vld [vmem:[#allocation10 + $0x36c] ss:$16 sps:$4 sm:$0xff]  }
 0x385   :  { %5902 = vmatpush1.bf16.msra.mxu1 %v9627_v39  ;;  %v9753_v39 = vld [vmem:[#allocation10 + $0x880] ss:$16 sps:$4 sm:$0xff]  }
 0x386   :  { %5903 = vmatprep.subr.bf16.mxu1 %v9635_v40  ;;  %v9761_v40 = vld [vmem:[#allocation10 + $0x8a4] ss:$16 sps:$4 sm:$0xff]  }
 0x387   :  { %5998 = vmatpush1.bf16.msra.mxu0 %v9630_v41  ;;  %v9693_v41 = vld [vmem:[#allocation10 + $0x368] ss:$16 sps:$4 sm:$0xff]  }
 0x388   :  { %5999 = vmatprep.subr.bf16.mxu0 %v9638_v18  ;;  %v9698_v18 = vld [vmem:[#allocation10 + $0x38c] ss:$16 sps:$4 sm:$0xff]  }
 0x389   :  { %5904 = vmatpush1.bf16.msra.mxu1 %v9633_v15  ;;  %v9759_v15 = vld [vmem:[#allocation10 + $0x8a0] ss:$16 sps:$4 sm:$0xff]  }
 0x38a   :  { %5905 = vmatprep.subr.bf16.mxu1 %v9641_v20  ;;  %v9767_v20 = vld [vmem:[#allocation10 + $0x8c4] ss:$16 sps:$4 sm:$0xff]  }
 0x38b   :  { %6000 = vmatpush1.bf16.msra.mxu0 %v9636_v43  ;;  %v9696_v43 = vld [vmem:[#allocation10 + $0x388] ss:$16 sps:$4 sm:$0xff]  }
 0x38c   :  { %6010 = vmatprep.subr.bf16.mxu0 %v9644_v44  ;;  %v9701_v44 = vld [vmem:[#allocation10 + $0x3ac] ss:$16 sps:$4 sm:$0xff]  }
 0x38d   :  { %5906 = vmatpush1.bf16.msra.mxu1 %v9639_v45  ;;  %v9765_v45 = vld [vmem:[#allocation10 + $0x8c0] ss:$16 sps:$4 sm:$0xff]  }
 0x38e   :  { %6002 = vmatmul.mubr.bf16.vlgmr.msra.gmra.mrb[12].mxu0 %v10853_v9  ;;  %5907 = vmatprep.subr.bf16.mxu1 %v9647_v46  ;;  %v9665_v9 = vld [vmem:[#allocation10 + $0x7a4] ss:$16 sps:$4 sm:$0xff]  }
 0x38f   :  { %6011 = vmatpush1.bf16.msra.mxu0 %v9642_v47  ;;  %6042 = vmatprep.mubr.bf16.mxu0 %v10855_v12  ;;  %v9663_v12 = vld [vmem:[#allocation10 + $0x7a0] ss:$16 sps:$4 sm:$0xff]   ;;  %v9773_v46 = vld [vmem:[#allocation10 + $0x8e4] ss:$16 sps:$4 sm:$0xff]   ;;  %v9699_v47 = vld [vmem:[#allocation10 + $0x3a8] ss:$16 sps:$4 sm:$0xff]  }
 0x390   :  { %6012 = vmatprep.subr.bf16.mxu0 %v9650_v49  ;;  %v9704_v49 = vld [vmem:[#allocation10 + $0x3cc] ss:$16 sps:$4 sm:$0xff]  }
 0x391   :  { %5908 = vmatpush1.bf16.msra.mxu1 %v9645_v53  ;;  %v9771_v53 = vld [vmem:[#allocation10 + $0x8e0] ss:$16 sps:$4 sm:$0xff]  }
 0x392   :  { %5909 = vmatprep.subr.bf16.mxu1 %v9653_v54  ;;  %v9779_v54 = vld [vmem:[#allocation10 + $0x904] ss:$16 sps:$4 sm:$0xff]  }
 0x393   :  { %6013 = vmatpush1.bf16.msra.mxu0 %v9648_v56  ;;  %v9702_v56 = vld [vmem:[#allocation10 + $0x3c8] ss:$16 sps:$4 sm:$0xff]  }
 0x394   :  { %6014 = vmatprep.subr.bf16.mxu0 %v9656_v57  ;;  %v9707_v57 = vld [vmem:[#allocation10 + $0x3ec] ss:$16 sps:$4 sm:$0xff]  }
 0x395   :  { %5910 = vmatpush1.bf16.msra.mxu1 %v9651_v59  ;;  %v9777_v59 = vld [vmem:[#allocation10 + $0x900] ss:$16 sps:$4 sm:$0xff]  }
 0x396   :  { %5911 = vmatprep.subr.bf16.mxu1 %v9659_v60  ;;  %v9785_v60 = vld [vmem:[#allocation10 + $0x924] ss:$16 sps:$4 sm:$0xff]  }
 0x397   :  { %6015 = vmatpush1.bf16.msra.mxu0 %v9654_v61  ;;  %v9705_v61 = vld [vmem:[#allocation10 + $0x3e8] ss:$16 sps:$4 sm:$0xff]  }
 0x398   :  { %6016 = vmatprep.subr.bf16.mxu0 %v9662_v62  ;;  %v9710_v62 = vld [vmem:[#allocation10 + $0x40c] ss:$16 sps:$4 sm:$0xff]  }
 0x399   :  { %5912 = vmatpush1.bf16.msra.mxu1 %v9657_v63  ;;  %v9783_v63 = vld [vmem:[#allocation10 + $0x920] ss:$16 sps:$4 sm:$0xff]  }
 0x39a   :  { %5913 = vmatprep.subr.bf16.mxu1 %v9665_v9  ;;  %v9791_v9 = vld [vmem:[#allocation10 + $0x944] ss:$16 sps:$4 sm:$0xff]  }
 0x39b   :  { %6017 = vmatpush1.bf16.msra.mxu0 %v9660_v0  ;;  %v9708_v0 = vld [vmem:[#allocation10 + $0x408] ss:$16 sps:$4 sm:$0xff]  }
 0x39c   :  { %6018 = vmatprep.subr.bf16.mxu0 %v9668_v1  ;;  %v9713_v1 = vld [vmem:[#allocation10 + $0x42c] ss:$16 sps:$4 sm:$0xff]  }
 0x39d   :  { %5914 = vmatpush1.bf16.msra.mxu1 %v9663_v12  ;;  %v9789_v12 = vld [vmem:[#allocation10 + $0x940] ss:$16 sps:$4 sm:$0xff]  }
 0x39e   :  { %5915 = vmatprep.subr.bf16.mxu1 %v9671_v14  ;;  %v9711_v14 = vld [vmem:[#allocation10 + $0x428] ss:$16 sps:$4 sm:$0xff]  }
 0x39f   :  { %6019 = vmatpush1.bf16.msra.mxu0 %v9666_v8  ;;  %v9716_v8 = vld [vmem:[#allocation10 + $0x44c] ss:$16 sps:$4 sm:$0xff]  }
 0x3a0   :  { %6020 = vmatprep.subr.bf16.mxu0 %v9674_v16  ;;  %v9795_v16 = vld [vmem:[#allocation10 + $0x960] ss:$16 sps:$4 sm:$0xff]  }
 0x3a1   :  { %5916 = vmatpush1.bf16.msra.mxu1 %v9669_v17  ;;  %v9803_v17 = vld [vmem:[#allocation10 + $0x984] ss:$16 sps:$4 sm:$0xff]  }
 0x3a2   :  { %5917 = vmatprep.subr.bf16.mxu1 %v9677_v21  ;;  %v9719_v21 = vld [vmem:[#allocation10 + $0x46c] ss:$16 sps:$4 sm:$0xff]  }
 0x3a3   :  { %6021 = vmatpush1.bf16.msra.mxu0 %v9672_v5  ;;  %v9801_v5 = vld [vmem:[#allocation10 + $0x980] ss:$16 sps:$4 sm:$0xff]  }
 0x3a4   :  { %6022 = vmatprep.subr.bf16.mxu0 %v9680_v22  ;;  %v9717_v22 = vld [vmem:[#allocation10 + $0x468] ss:$16 sps:$4 sm:$0xff]  }
 0x3a5   :  { %5918 = vmatpush1.bf16.msra.mxu1 %v9675_v23  ;;  %v9722_v23 = vld [vmem:[#allocation10 + $0x48c] ss:$16 sps:$4 sm:$0xff]  }
 0x3a6   :  { %5928 = vmatprep.subr.bf16.mxu1 %v9731_v24  ;;  %v9720_v24 = vld [vmem:[#allocation10 + $0x488] ss:$16 sps:$4 sm:$0xff]  }
 0x3a7   :  { %6023 = vmatpush1.bf16.msra.mxu0 %v9678_v25  ;;  %v9725_v25 = vld [vmem:[#allocation10 + $0x4ac] ss:$16 sps:$4 sm:$0xff]  }
 0x3a8   :  { %5920 = vmatmul.mubr.bf16.vlgmr.msra.gmra.mrb[8].mxu1 %v10898_v26  ;;  %6024 = vmatprep.subr.bf16.mxu0 %v9683_v13  ;;  %v9813_v13 = vld [vmem:[#allocation10 + $0x9c0] ss:$16 sps:$4 sm:$0xff]  }
 0x3a9   :  { %5929 = vmatpush1.bf16.msra.mxu1 %v9729_v30  ;;  %v9821_v30 = vld [vmem:[#allocation10 + $0x9e4] ss:$16 sps:$4 sm:$0xff]  }
 0x3aa   :  { %5930 = vmatprep.subr.bf16.mxu1 %v9737_v42  ;;  %v9723_v42 = vld [vmem:[#allocation10 + $0x4a8] ss:$16 sps:$4 sm:$0xff]  }
 0x3ab   :  { %6025 = vmatpush1.bf16.msra.mxu0 %v9681_v48  ;;  %v9728_v48 = vld [vmem:[#allocation10 + $0x4cc] ss:$16 sps:$4 sm:$0xff]  }
 0x3ac   :  { %6026 = vmatprep.subr.bf16.mxu0 %v9686_v28  ;;  %v9819_v28 = vld [vmem:[#allocation10 + $0x9e0] ss:$16 sps:$4 sm:$0xff]  }
 0x3ad   :  { %5931 = vmatpush1.bf16.msra.mxu1 %v9735_v52  ;;  %v9726_v52 = vld [vmem:[#allocation10 + $0x4c8] ss:$16 sps:$4 sm:$0xff]  }
 0x3ae   :  { %5932 = vmatprep.subr.bf16.mxu1 %v9743_v29  ;;  %v9734_v29 = vld [vmem:[#allocation10 + $0x4ec] ss:$16 sps:$4 sm:$0xff]  }
 0x3af   :  { %6027 = vmatpush1.bf16.msra.mxu0 %v9684_v6  ;;  %v9732_v6 = vld [vmem:[#allocation10 + $0x4e8] ss:$16 sps:$4 sm:$0xff]  }
 0x3b0   :  { %6028 = vmatprep.subr.bf16.mxu0 %v9689_v31  ;;  %v9740_v31 = vld [vmem:[#allocation10 + $0x50c] ss:$16 sps:$4 sm:$0xff]  }
 0x3b1   :  { %5933 = vmatpush1.bf16.msra.mxu1 %v9741_v32  ;;  %v9738_v32 = vld [vmem:[#allocation10 + $0x508] ss:$16 sps:$4 sm:$0xff]  }
 0x3b2   :  { %5934 = vmatprep.subr.bf16.mxu1 %v9749_v33  ;;  %v9746_v33 = vld [vmem:[#allocation10 + $0x52c] ss:$16 sps:$4 sm:$0xff]  }
 0x3b3   :  { %6029 = vmatpush1.bf16.msra.mxu0 %v9687_v34  ;;  %v9744_v34 = vld [vmem:[#allocation10 + $0x528] ss:$16 sps:$4 sm:$0xff]  }
 0x3b4   :  { %6030 = vmatprep.subr.bf16.mxu0 %v9692_v35  ;;  %v9752_v35 = vld [vmem:[#allocation10 + $0x54c] ss:$16 sps:$4 sm:$0xff]  }
 0x3b5   :  { %5935 = vmatpush1.bf16.msra.mxu1 %v9747_v36  ;;  %v9750_v36 = vld [vmem:[#allocation10 + $0x548] ss:$16 sps:$4 sm:$0xff]  }
 0x3b6   :  { %5936 = vmatprep.subr.bf16.mxu1 %v9755_v10  ;;  %v9758_v10 = vld [vmem:[#allocation10 + $0x56c] ss:$16 sps:$4 sm:$0xff]  }
 0x3b7   :  { %6031 = vmatpush1.bf16.msra.mxu0 %v9690_v37  ;;  %v9756_v37 = vld [vmem:[#allocation10 + $0x568] ss:$16 sps:$4 sm:$0xff]  }
 0x3b8   :  { %6032 = vmatprep.subr.bf16.mxu0 %v9695_v38  ;;  %v9764_v38 = vld [vmem:[#allocation10 + $0x58c] ss:$16 sps:$4 sm:$0xff]  }
 0x3b9   :  { %5937 = vmatpush1.bf16.msra.mxu1 %v9753_v39  ;;  %v9762_v39 = vld [vmem:[#allocation10 + $0x588] ss:$16 sps:$4 sm:$0xff]  }
 0x3ba   :  { %5938 = vmatprep.subr.bf16.mxu1 %v9761_v40  ;;  %v9770_v40 = vld [vmem:[#allocation10 + $0x5ac] ss:$16 sps:$4 sm:$0xff]  }
 0x3bb   :  { %6033 = vmatpush1.bf16.msra.mxu0 %v9693_v41  ;;  %v9768_v41 = vld [vmem:[#allocation10 + $0x5a8] ss:$16 sps:$4 sm:$0xff]  }
 0x3bc   :  { %6034 = vmatprep.subr.bf16.mxu0 %v9698_v18  ;;  %v9776_v18 = vld [vmem:[#allocation10 + $0x5cc] ss:$16 sps:$4 sm:$0xff]  }
 0x3bd   :  { %5939 = vmatpush1.bf16.msra.mxu1 %v9759_v15  ;;  %v9774_v15 = vld [vmem:[#allocation10 + $0x5c8] ss:$16 sps:$4 sm:$0xff]  }
 0x3be   :  { %5940 = vmatprep.subr.bf16.mxu1 %v9767_v20  ;;  %v9782_v20 = vld [vmem:[#allocation10 + $0x5ec] ss:$16 sps:$4 sm:$0xff]  }
 0x3bf   :  { %6035 = vmatpush1.bf16.msra.mxu0 %v9696_v43  ;;  %v9780_v43 = vld [vmem:[#allocation10 + $0x5e8] ss:$16 sps:$4 sm:$0xff]  }
 0x3c0   :  { %6036 = vmatprep.subr.bf16.mxu0 %v9701_v44  ;;  %v9788_v44 = vld [vmem:[#allocation10 + $0x60c] ss:$16 sps:$4 sm:$0xff]  }
 0x3c1   :  { %5941 = vmatpush1.bf16.msra.mxu1 %v9765_v45  ;;  %v9786_v45 = vld [vmem:[#allocation10 + $0x608] ss:$16 sps:$4 sm:$0xff]  }
 0x3c2   :  { %5942 = vmatprep.subr.bf16.mxu1 %v9773_v46  ;;  %v9794_v46 = vld [vmem:[#allocation10 + $0x62c] ss:$16 sps:$4 sm:$0xff]  }
 0x3c3   :  { %6037 = vmatpush1.bf16.msra.mxu0 %v9699_v47  ;;  %v9792_v47 = vld [vmem:[#allocation10 + $0x628] ss:$16 sps:$4 sm:$0xff]  }
 0x3c4   :  { %6038 = vmatprep.subr.bf16.mxu0 %v9704_v49  ;;  %v9800_v49 = vld [vmem:[#allocation10 + $0x64c] ss:$16 sps:$4 sm:$0xff]  }
 0x3c5   :  { %5943 = vmatpush1.bf16.msra.mxu1 %v9771_v53  ;;  %v9798_v53 = vld [vmem:[#allocation10 + $0x648] ss:$16 sps:$4 sm:$0xff]  }
 0x3c6   :  { %5944 = vmatprep.subr.bf16.mxu1 %v9779_v54  ;;  %v9806_v54 = vld [vmem:[#allocation10 + $0x66c] ss:$16 sps:$4 sm:$0xff]  }
 0x3c7   :  { %6039 = vmatpush1.bf16.msra.mxu0 %v9702_v56  ;;  %v9804_v56 = vld [vmem:[#allocation10 + $0x668] ss:$16 sps:$4 sm:$0xff]  }
 0x3c8   :  { %6040 = vmatprep.subr.bf16.mxu0 %v9707_v57  ;;  %v9812_v57 = vld [vmem:[#allocation10 + $0x68c] ss:$16 sps:$4 sm:$0xff]  }
 0x3c9   :  { %5945 = vmatpush1.bf16.msra.mxu1 %v9777_v59  ;;  %v9810_v59 = vld [vmem:[#allocation10 + $0x688] ss:$16 sps:$4 sm:$0xff]  }
 0x3ca   :  { %5946 = vmatprep.subr.bf16.mxu1 %v9785_v60  ;;  %v723_v60 = vld [vmem:[#allocation8 + $0x8] sm:$0x3] }
 0x3cb   :  { %6041 = vmatpush1.bf16.msra.mxu0 %v9705_v61  ;;  %v9818_v61 = vld [vmem:[#allocation10 + $0x6ac] ss:$16 sps:$4 sm:$0xff]  }
 0x3cc   :  { %6051 = vmatprep.subr.bf16.mxu0 %v9710_v62  ;;  %v9816_v62 = vld [vmem:[#allocation10 + $0x6a8] ss:$16 sps:$4 sm:$0xff]  }
 0x3cd   :  { %5947 = vmatpush1.bf16.msra.mxu1 %v9783_v63  ;;  %v9824_v63 = vld [vmem:[#allocation10 + $0x6cc] ss:$16 sps:$4 sm:$0xff]  }
 0x3ce   :  { %6043 = vmatmul.mubr.bf16.vlgmr.msra.gmra.mrb[12].mxu0 %v10867_v27  ;;  %5948 = vmatprep.subr.bf16.mxu1 %v9791_v9  ;;  %v9809_v27 = vld [vmem:[#allocation10 + $0x9a4] ss:$16 sps:$4 sm:$0xff]  }
 0x3cf   :  { %6052 = vmatpush1.bf16.msra.mxu0 %v9708_v0  ;;  %6083 = vmatprep.mubr.bf16.mxu0 %v10884_v3  ;;  %v9807_v3 = vld [vmem:[#allocation10 + $0x9a0] ss:$16 sps:$4 sm:$0xff]  }
 0x3d0   :  { %6053 = vmatprep.subr.bf16.mxu0 %v9713_v1 }
 0x3d1   :  { %5949 = vmatpush1.bf16.msra.mxu1 %v9789_v12 }
 0x3d2   :  { %5950 = vmatprep.subr.bf16.mxu1 %v9797_v4 }
 0x3d3   :  { %6054 = vmatpush1.bf16.msra.mxu0 %v9711_v14  ;;  %v9822_v14 = vld [vmem:[#allocation10 + $0x6c8] ss:$16 sps:$4 sm:$0xff]  }
 0x3d4   :  { %6055 = vmatprep.subr.bf16.mxu0 %v9716_v8 }
 0x3d5   :  { %5951 = vmatpush1.bf16.msra.mxu1 %v9795_v16  ;;  %v9827_v16 = vld [vmem:[#allocation10 + $0x6ec] ss:$16 sps:$4 sm:$0xff]  }
 0x3d6   :  { %5952 = vmatprep.subr.bf16.mxu1 %v9803_v17 }
 0x3d7   :  { %6056 = vmatpush1.bf16.msra.mxu0 %v9714_v19 }
 0x3d8   :  { %6057 = vmatprep.subr.bf16.mxu0 %v9719_v21  ;;  %v9825_v21 = vld [vmem:[#allocation10 + $0x6e8] ss:$16 sps:$4 sm:$0xff]  }
 0x3d9   :  { %5953 = vmatpush1.bf16.msra.mxu1 %v9801_v5  ;;  %v9830_v5 = vld [vmem:[#allocation10 + $0x70c] ss:$16 sps:$4 sm:$0xff]  }
 0x3da   :  { %5954 = vmatprep.subr.bf16.mxu1 %v9809_v27  ;;  %v9828_v27 = vld [vmem:[#allocation10 + $0x708] ss:$16 sps:$4 sm:$0xff]  }
 0x3db   :  { %6058 = vmatpush1.bf16.msra.mxu0 %v9717_v22  ;;  %v9833_v22 = vld [vmem:[#allocation10 + $0x72c] ss:$16 sps:$4 sm:$0xff]  }
 0x3dc   :  { %6059 = vmatprep.subr.bf16.mxu0 %v9722_v23  ;;  %v9831_v23 = vld [vmem:[#allocation10 + $0x728] ss:$16 sps:$4 sm:$0xff]  }
 0x3dd   :  { %5955 = vmatpush1.bf16.msra.mxu1 %v9807_v3  ;;  %v9836_v3 = vld [vmem:[#allocation10 + $0x74c] ss:$16 sps:$4 sm:$0xff]  }
 0x3de   :  { %5956 = vmatprep.subr.bf16.mxu1 %v9815_v55  ;;  %v9834_v55 = vld [vmem:[#allocation10 + $0x748] ss:$16 sps:$4 sm:$0xff]  }
 0x3df   :  { %6060 = vmatpush1.bf16.msra.mxu0 %v9720_v24  ;;  %v9839_v24 = vld [vmem:[#allocation10 + $0x76c] ss:$16 sps:$4 sm:$0xff]  }
 0x3e0   :  { %6061 = vmatprep.subr.bf16.mxu0 %v9725_v25  ;;  %v9837_v25 = vld [vmem:[#allocation10 + $0x768] ss:$16 sps:$4 sm:$0xff]  }
 0x3e1   :  { %5957 = vmatpush1.bf16.msra.mxu1 %v9813_v13  ;;  %v9842_v13 = vld [vmem:[#allocation10 + $0x78c] ss:$16 sps:$4 sm:$0xff]  }
 0x3e2   :  { %5958 = vmatprep.subr.bf16.mxu1 %v9821_v30  ;;  %v9840_v30 = vld [vmem:[#allocation10 + $0x788] ss:$16 sps:$4 sm:$0xff]  }
 0x3e3   :  { %6062 = vmatpush1.bf16.msra.mxu0 %v9723_v42  ;;  %v9845_v42 = vld [vmem:[#allocation10 + $0x7ac] ss:$16 sps:$4 sm:$0xff]  }
 0x3e4   :  { %6063 = vmatprep.subr.bf16.mxu0 %v9728_v48  ;;  %v9843_v48 = vld [vmem:[#allocation10 + $0x7a8] ss:$16 sps:$4 sm:$0xff]  }
 0x3e5   :  { %5959 = vmatpush1.bf16.msra.mxu1 %v9819_v28  ;;  %v9848_v28 = vld [vmem:[#allocation10 + $0x7cc] ss:$16 sps:$4 sm:$0xff]  }
 0x3e7   :  { %6064 = vmatpush1.bf16.msra.mxu0 %v9726_v52  ;;  %v9846_v52 = vld [vmem:[#allocation10 + $0x7c8] ss:$16 sps:$4 sm:$0xff]  }
 0x3e8   :  { %6065 = vmatprep.subr.bf16.mxu0 %v9734_v29  ;;  %v9851_v29 = vld [vmem:[#allocation10 + $0x7ec] ss:$16 sps:$4 sm:$0xff]  }
 0x3eb   :  { %6066 = vmatpush1.bf16.msra.mxu0 %v9732_v6  ;;  %v9849_v6 = vld [vmem:[#allocation10 + $0x7e8] ss:$16 sps:$4 sm:$0xff]  }
 0x3ec   :  { %6067 = vmatprep.subr.bf16.mxu0 %v9740_v31  ;;  %v9854_v31 = vld [vmem:[#allocation10 + $0x80c] ss:$16 sps:$4 sm:$0xff]  }
 0x3ef   :  { %6068 = vmatpush1.bf16.msra.mxu0 %v9738_v32  ;;  %v9852_v32 = vld [vmem:[#allocation10 + $0x808] ss:$16 sps:$4 sm:$0xff]  }
 0x3f0   :  { %6069 = vmatprep.subr.bf16.mxu0 %v9746_v33  ;;  %v9857_v33 = vld [vmem:[#allocation10 + $0x82c] ss:$16 sps:$4 sm:$0xff]  }
 0x3f3   :  { %6070 = vmatpush1.bf16.msra.mxu0 %v9744_v34  ;;  %v9855_v34 = vld [vmem:[#allocation10 + $0x828] ss:$16 sps:$4 sm:$0xff]  }
 0x3f4   :  { %6071 = vmatprep.subr.bf16.mxu0 %v9752_v35  ;;  %v9860_v35 = vld [vmem:[#allocation10 + $0x84c] ss:$16 sps:$4 sm:$0xff]  }
 0x3f7   :  { %6072 = vmatpush1.bf16.msra.mxu0 %v9750_v36  ;;  %v9858_v36 = vld [vmem:[#allocation10 + $0x848] ss:$16 sps:$4 sm:$0xff]  }
 0x3f8   :  { %6073 = vmatprep.subr.bf16.mxu0 %v9758_v10  ;;  %v9863_v10 = vld [vmem:[#allocation10 + $0x86c] ss:$16 sps:$4 sm:$0xff]  }
 0x3fb   :  { %6074 = vmatpush1.bf16.msra.mxu0 %v9756_v37  ;;  %v9861_v37 = vld [vmem:[#allocation10 + $0x868] ss:$16 sps:$4 sm:$0xff]  }
 0x3fc   :  { %6075 = vmatprep.subr.bf16.mxu0 %v9764_v38  ;;  %v9866_v38 = vld [vmem:[#allocation10 + $0x88c] ss:$16 sps:$4 sm:$0xff]  }
 0x3ff   :  { %6076 = vmatpush1.bf16.msra.mxu0 %v9762_v39  ;;  %v9864_v39 = vld [vmem:[#allocation10 + $0x888] ss:$16 sps:$4 sm:$0xff]  }
 0x400   :  { %6077 = vmatprep.subr.bf16.mxu0 %v9770_v40  ;;  %v9869_v40 = vld [vmem:[#allocation10 + $0x8ac] ss:$16 sps:$4 sm:$0xff]  }
 0x403   :  { %6078 = vmatpush1.bf16.msra.mxu0 %v9768_v41  ;;  %v9867_v41 = vld [vmem:[#allocation10 + $0x8a8] ss:$16 sps:$4 sm:$0xff]  }
 0x404   :  { %6079 = vmatprep.subr.bf16.mxu0 %v9776_v18  ;;  %v9870_v18 = vld [vmem:[#allocation10 + $0x8c8] ss:$16 sps:$4 sm:$0xff]  }
 0x407   :  { %6080 = vmatpush1.bf16.msra.mxu0 %v9774_v15  ;;  %v9875_v15 = vld [vmem:[#allocation10 + $0x8ec] ss:$16 sps:$4 sm:$0xff]  }
 0x408   :  { %6081 = vmatprep.subr.bf16.mxu0 %v9782_v20  ;;  %v9873_v20 = vld [vmem:[#allocation10 + $0x8e8] ss:$16 sps:$4 sm:$0xff]  }
 0x40b   :  { %6082 = vmatpush1.bf16.msra.mxu0 %v9780_v43  ;;  %v9878_v43 = vld [vmem:[#allocation10 + $0x90c] ss:$16 sps:$4 sm:$0xff]  }
 0x40c   :  { %6092 = vmatprep.subr.bf16.mxu0 %v9788_v44  ;;  %v9876_v44 = vld [vmem:[#allocation10 + $0x908] ss:$16 sps:$4 sm:$0xff]  }
 0x40e   :  { %6084 = vmatmul.mubr.bf16.vlgmr.msra.gmra.mrb[12].mxu0 %v10888_v11  ;;  %v761_v11 = vrot.slane %v723_v60, %v10842_v50 }
 0x40f   :  { %6093 = vmatpush1.bf16.msra.mxu0 %v9786_v45  ;;  %6124 = vmatprep.mubr.bf16.mxu0 %v10886_v7  ;;  %v765_v7 = vrot.slane %v723_v60, %v10828_v58  ;;  %v9881_v45 = vld [vmem:[#allocation10 + $0x92c] ss:$16 sps:$4 sm:$0xff]   ;;  %v9900_v60 = vld [vmem:[#allocation13 + $0x40] sm:$0xff]  }
 0x410   :  { %6094 = vmatprep.subr.bf16.mxu0 %v9794_v46  ;;  %v9879_v46 = vld [vmem:[#allocation10 + $0x928] ss:$16 sps:$4 sm:$0xff]   ;;  %8495 = vmatprep.subr.bf16.mxu1 %v9900_v60 }
 0x413   :  { %6095 = vmatpush1.bf16.msra.mxu0 %v9792_v47  ;;  %v9884_v47 = vld [vmem:[#allocation10 + $0x94c] ss:$16 sps:$4 sm:$0xff]  }
 0x414   :  { %6096 = vmatprep.subr.bf16.mxu0 %v9800_v49  ;;  %v9882_v49 = vld [vmem:[#allocation10 + $0x948] ss:$16 sps:$4 sm:$0xff]  }
 0x417   :  { %6097 = vmatpush1.bf16.msra.mxu0 %v9798_v53  ;;  %v9887_v53 = vld [vmem:[#allocation10 + $0x96c] ss:$16 sps:$4 sm:$0xff]  }
 0x418   :  { %6098 = vmatprep.subr.bf16.mxu0 %v9806_v54  ;;  %v9885_v54 = vld [vmem:[#allocation10 + $0x968] ss:$16 sps:$4 sm:$0xff]  }
 0x41b   :  { %6099 = vmatpush1.bf16.msra.mxu0 %v9804_v56  ;;  %v9890_v56 = vld [vmem:[#allocation10 + $0x98c] ss:$16 sps:$4 sm:$0xff]  }
 0x41c   :  { %6100 = vmatprep.subr.bf16.mxu0 %v9812_v57  ;;  %v9888_v57 = vld [vmem:[#allocation10 + $0x988] ss:$16 sps:$4 sm:$0xff]  }
 0x41f   :  { %6101 = vmatpush1.bf16.msra.mxu0 %v9810_v59  ;;  %v9893_v59 = vld [vmem:[#allocation10 + $0x9ac] ss:$16 sps:$4 sm:$0xff]  }
 0x420   :  { %6102 = vmatprep.subr.bf16.mxu0 %v9818_v61  ;;  %v9901_v61 = vld [vmem:[#allocation13] sm:$0xff]  }
 0x421   :  { %v3805_v9 = vpop.f32.mrb[8].mxu0 }
 0x422   :  { %v8591_v0 = vadd.f32 %v3805_v9, %v761_v11  ;;  %v3807_v1 = vpop.f32.mrb[9].mxu0  ;;  %v9891_v11 = vld [vmem:[#allocation10 + $0x9a8] ss:$16 sps:$4 sm:$0xff]  }
 0x423   :  { %v8592_v12 = vadd.f32 %v3807_v1, %v765_v7  ;;  %v3809_v4 = vpop.f32.mrb[10].mxu0  ;;  %6103 = vmatpush1.bf16.msra.mxu0 %v9816_v62  ;;  %v9896_v7 = vld [vmem:[#allocation10 + $0x9cc] ss:$16 sps:$4 sm:$0xff]   ;;  %v9894_v9 = vld [vmem:[#allocation10 + $0x9c8] ss:$16 sps:$4 sm:$0xff]  }
 0x424   :  { %v3810_v8 = vpop.f32.mrb[11].mxu0  ;;  %6104 = vmatprep.subr.bf16.mxu0 %v9824_v63  ;;  %v10907_v19 = vpack.c.bf16 %v8591_v0, %v8591_v0  ;;  %v9902_v62 = vld [vmem:[#allocation13 + $0x48] sm:$0xff]   ;;  %v9904_v1 = vld [vmem:[#allocation13 + $0x50] sm:$0xff]  }
 0x425   :  { %v3821_v17 = vpack.c.bf16 %v8592_v12, %v8592_v12  ;;  %v9903_v63 = vld [vmem:[#allocation13 + $0x8] sm:$0xff]   ;;  %v9905_v12 = vld [vmem:[#allocation13 + $0x10] sm:$0xff]   ;;  %v9907_v8 = vld [vmem:[#allocation13 + $0x18] sm:$0xff]  }
 0x426   :  { %v9899_v0 = vld [vmem:[#allocation10 + $0x9ec] ss:$16 sps:$4 sm:$0xff]   ;;  %v9897_v4 = vld [vmem:[#allocation10 + $0x9e8] ss:$16 sps:$4 sm:$0xff]  }
 0x427   :  { %5960 = vmatprep.mubr.bf16.mxu1 %v3821_v17  ;;  %6105 = vmatpush1.bf16.msra.mxu0 %v9822_v14  ;;  %v9906_v14 = vld [vmem:[#allocation13 + $0x58] sm:$0xff]  }
 0x428   :  { %5961 = vmatmul.mubr.bf16.vlgmr.msra.gmra.mrb[8].mxu1 %v10907_v19  ;;  %6106 = vmatprep.subr.bf16.mxu0 %v9827_v16  ;;  %v9908_v16 = vld [vmem:[#allocation13 + $0x60] sm:$0xff]  }
 0x429   :  { %8496 = vmatpush3.bf16.msra.mxu1 %v9901_v61 }
 0x42a   :  { %8497 = vmatprep.subr.bf16.mxu1 %v9902_v62 }
 0x42b   :  { %6107 = vmatpush1.bf16.msra.mxu0 %v9825_v21  ;;  %v9910_v21 = vld [vmem:[#allocation13 + $0x68] sm:$0xff]  }
 0x42c   :  { %6108 = vmatprep.subr.bf16.mxu0 %v9830_v5  ;;  %v9911_v5 = vld [vmem:[#allocation13 + $0x28] sm:$0xff]  }
 0x42d   :  { %8498 = vmatpush3.bf16.msra.mxu1 %v9903_v63 }
 0x42e   :  { %8499 = vmatprep.subr.bf16.mxu1 %v9904_v1 }
 0x42f   :  { %6109 = vmatpush1.bf16.msra.mxu0 %v9828_v27  ;;  %v9912_v27 = vld [vmem:[#allocation13 + $0x70] sm:$0xff]  }
 0x430   :  { %6110 = vmatprep.subr.bf16.mxu0 %v9833_v22  ;;  %v9913_v22 = vld [vmem:[#allocation13 + $0x30] sm:$0xff]  }
 0x431   :  { %8500 = vmatpush3.bf16.msra.mxu1 %v9905_v12 }
 0x432   :  { %8501 = vmatprep.subr.bf16.mxu1 %v9906_v14 }
 0x433   :  { %6111 = vmatpush1.bf16.msra.mxu0 %v9831_v23  ;;  %v9914_v23 = vld [vmem:[#allocation13 + $0x78] sm:$0xff]  }
 0x434   :  { %6112 = vmatprep.subr.bf16.mxu0 %v9836_v3  ;;  %v9915_v3 = vld [vmem:[#allocation13 + $0x38] sm:$0xff]  }
 0x435   :  { %8502 = vmatpush3.bf16.msra.mxu1 %v9907_v8 }
 0x436   :  { %8503 = vmatprep.subr.bf16.mxu1 %v9908_v16 }
 0x437   :  { %6113 = vmatpush1.bf16.msra.mxu0 %v9834_v55  ;;  %v9916_v55 = vld [vmem:[#allocation13 + $0xc0] sm:$0xff]  }
 0x438   :  { %6114 = vmatprep.subr.bf16.mxu0 %v9839_v24  ;;  %v10912_v24 = vld [vmem:[#allocation11] sm:$0xf] }
 0x439   :  { %v4155_v60 = vrot.slane %v10912_v24, %v10862_v2  ;;  %v4159_v61 = vrot.slane %v10912_v24, %v10845_v51 }
 0x43b   :  { %6115 = vmatpush1.bf16.msra.mxu0 %v9837_v25  ;;  %v4151_v25 = vrot.slane %v10912_v24, %v10828_v58 }
 0x43c   :  { %6116 = vmatprep.subr.bf16.mxu0 %v9842_v13 }
 0x43f   :  { %6117 = vmatpush1.bf16.msra.mxu0 %v9840_v30 }
 0x440   :  { %6118 = vmatprep.subr.bf16.mxu0 %v9845_v42 }
 0x443   :  { %6119 = vmatpush1.bf16.msra.mxu0 %v9843_v48 }
 0x444   :  { %6120 = vmatprep.subr.bf16.mxu0 %v9848_v28 }
 0x447   :  { %6121 = vmatpush1.bf16.msra.mxu0 %v9846_v52 }
 0x448   :  { %6122 = vmatprep.subr.bf16.mxu0 %v9851_v29 }
 0x44b   :  { %6123 = vmatpush1.bf16.msra.mxu0 %v9849_v6 }
 0x44c   :  { %6133 = vmatprep.subr.bf16.mxu0 %v9854_v31 }
 0x44e   :  { %6125 = vmatmul.mubr.bf16.vlgmr.msra.gmra.mrb[12].mxu0 %v10898_v26  ;;  %v9872_v26 = vld [vmem:[#allocation10 + $0x8cc] ss:$16 sps:$4 sm:$0xff]  }
 0x44f   :  { %6134 = vmatpush1.bf16.msra.mxu0 %v9852_v32  ;;  %6165 = vmatprep.mubr.bf16.mxu0 %v3821_v17  ;;  %v9909_v17 = vld [vmem:[#allocation13 + $0x20] sm:$0xff]  }
 0x450   :  { %6135 = vmatprep.subr.bf16.mxu0 %v9857_v33  ;;  %8504 = vmatpush3.bf16.msra.mxu1 %v9909_v17 }
 0x451   :  { %8505 = vmatprep.subr.bf16.mxu1 %v9910_v21 }
 0x453   :  { %6136 = vmatpush1.bf16.msra.mxu0 %v9855_v34 }
 0x454   :  { %6137 = vmatprep.subr.bf16.mxu0 %v9860_v35  ;;  %8506 = vmatpush3.bf16.msra.mxu1 %v9911_v5 }
 0x455   :  { %8507 = vmatprep.subr.bf16.mxu1 %v9912_v27 }
 0x457   :  { %6138 = vmatpush1.bf16.msra.mxu0 %v9858_v36 }
 0x458   :  { %6139 = vmatprep.subr.bf16.mxu0 %v9863_v10  ;;  %8508 = vmatpush3.bf16.msra.mxu1 %v9913_v22 }
 0x459   :  { %8509 = vmatprep.subr.bf16.mxu1 %v9914_v23  ;;  %v9932_v23 = vld [vmem:[#allocation16] ss:$16 sps:$4 sm:$0xff]  }
 0x45b   :  { %6140 = vmatpush1.bf16.msra.mxu0 %v9861_v37 }
 0x45c   :  { %6141 = vmatprep.subr.bf16.mxu0 %v9866_v38  ;;  %8510 = vmatpush3.bf16.msra.mxu1 %v9915_v3 }
 0x45d   :  { %8517 = vmatprep.subr.bf16.mxu1 %v9916_v55  ;;  %v9937_v55 = vld [vmem:[#allocation16 + $0x24] ss:$16 sps:$4 sm:$0xff]  }
 0x45f   :  { %6142 = vmatpush1.bf16.msra.mxu0 %v9864_v39  ;;  %v9917_v39 = vld [vmem:[#allocation13 + $0x80] sm:$0xff]  }
 0x460   :  { %6143 = vmatprep.subr.bf16.mxu0 %v9869_v40 }
 0x463   :  { %6144 = vmatpush1.bf16.msra.mxu0 %v9867_v41  ;;  %v9918_v41 = vld [vmem:[#allocation13 + $0xc8] sm:$0xff]  }
 0x464   :  { %6145 = vmatprep.subr.bf16.mxu0 %v9872_v26  ;;  %v9919_v26 = vld [vmem:[#allocation13 + $0x88] sm:$0xff]  }
 0x467   :  { %6146 = vmatpush1.bf16.msra.mxu0 %v9870_v18  ;;  %v9920_v18 = vld [vmem:[#allocation13 + $0xd0] sm:$0xff]  }
 0x468   :  { %6147 = vmatprep.subr.bf16.mxu0 %v9875_v15  ;;  %v10494_v15 = vmov 0  }
 0x46b   :  { %6148 = vmatpush1.bf16.msra.mxu0 %v9873_v20  ;;  %v9921_v20 = vld [vmem:[#allocation13 + $0x90] sm:$0xff]  }
 0x46c   :  { %6149 = vmatprep.subr.bf16.mxu0 %v9878_v43  ;;  %v9922_v43 = vld [vmem:[#allocation13 + $0xd8] sm:$0xff]  }
 0x46f   :  { %6150 = vmatpush1.bf16.msra.mxu0 %v9876_v44  ;;  %v9923_v44 = vld [vmem:[#allocation13 + $0x98] sm:$0xff]  }
 0x470   :  { %6151 = vmatprep.subr.bf16.mxu0 %v9881_v45  ;;  %v9924_v45 = vld [vmem:[#allocation13 + $0xe0] sm:$0xff]  }
 0x473   :  { %6152 = vmatpush1.bf16.msra.mxu0 %v9879_v46  ;;  %v9925_v46 = vld [vmem:[#allocation13 + $0xa0] sm:$0xff]  }
 0x474   :  { %6153 = vmatprep.subr.bf16.mxu0 %v9884_v47  ;;  %v9926_v47 = vld [vmem:[#allocation13 + $0xe8] sm:$0xff]  }
 0x477   :  { %6154 = vmatpush1.bf16.msra.mxu0 %v9882_v49  ;;  %v9927_v49 = vld [vmem:[#allocation13 + $0xa8] sm:$0xff]  }
 0x478   :  { %6155 = vmatprep.subr.bf16.mxu0 %v9887_v53  ;;  %v9928_v53 = vld [vmem:[#allocation13 + $0xf0] sm:$0xff]  }
 0x47b   :  { %6156 = vmatpush1.bf16.msra.mxu0 %v9885_v54  ;;  %v9929_v54 = vld [vmem:[#allocation13 + $0xb0] sm:$0xff]  }
 0x47c   :  { %6157 = vmatprep.subr.bf16.mxu0 %v9890_v56  ;;  %v9930_v56 = vld [vmem:[#allocation13 + $0xf8] sm:$0xff]  }
 0x47f   :  { %6158 = vmatpush1.bf16.msra.mxu0 %v9888_v57  ;;  %v9931_v57 = vld [vmem:[#allocation13 + $0xb8] sm:$0xff]  }
 0x480   :  { %6159 = vmatprep.subr.bf16.mxu0 %v9893_v59  ;;  %v9934_v59 = vld [vmem:[#allocation16 + $0x4] ss:$16 sps:$4 sm:$0xff]  }
 0x483   :  { %6160 = vmatpush1.bf16.msra.mxu0 %v9891_v11 }
 0x484   :  { %6161 = vmatprep.subr.bf16.mxu0 %v9896_v7 }
 0x487   :  { %6162 = vmatpush1.bf16.msra.mxu0 %v9894_v9 }
 0x488   :  { %6163 = vmatprep.subr.bf16.mxu0 %v9899_v0 }
 0x48b   :  { %6164 = vmatpush1.bf16.msra.mxu0 %v9897_v4 }
 0x48e   :  { %6166 = vmatmul.mubr.bf16.vlgmr.msra.gmra.mrb[12].mxu0 %v10907_v19  ;;  %v4147_v19 = vrot.slane %v10912_v24, %v10842_v50  ;;  %v9935_v24 = vld [vmem:[#allocation16 + $0x20] ss:$16 sps:$4 sm:$0xff]  }
 0x48f   :  { %7381 = vmatprep.mubr.bf16.mxu0 %v10494_v15 }
 0x4fb   :  { %v5962_v13 = vpop.f32.mrb[8].mxu1 }
 0x4fc   :  { %v8593_v30 = vadd.f32 %v5962_v13, %v4147_v19  ;;  %v5964_v42 = vpop.f32.mrb[9].mxu1  ;;  %v9940_v19 = vld [vmem:[#allocation16 + $0x44] ss:$16 sps:$4 sm:$0xff]  }
 0x4fd   :  { %v8594_v48 = vadd.f32 %v5964_v42, %v4151_v25  ;;  %v5966_v28 = vpop.f32.mrb[10].mxu1  ;;  %v9938_v25 = vld [vmem:[#allocation16 + $0x40] ss:$16 sps:$4 sm:$0xff]   ;;  %v9943_v13 = vld [vmem:[#allocation16 + $0x64] ss:$16 sps:$4 sm:$0xff]  }
 0x4fe   :  { %v8355_v52 = vmul.f32 -1.442695, %v8593_v30  ;;  %v5967_v29 = vpop.f32.mrb[11].mxu1  ;;  %v9946_v42 = vld [vmem:[#allocation16 + $0x84] ss:$16 sps:$4 sm:$0xff]  }
 0x4ff   :  { %v8356_v6 = vmul.f32 -1.442695, %v8594_v48  ;;  %v9949_v28 = vld [vmem:[#allocation16 + $0xa4] ss:$16 sps:$4 sm:$0xff]  }
 0x500   :  { %10060 = vpow2.f32 %v8355_v52  ;;  %v9947_v52 = vld [vmem:[#allocation16 + $0xa0] ss:$16 sps:$4 sm:$0xff]   ;;  %v9952_v29 = vld [vmem:[#allocation16 + $0xc4] ss:$16 sps:$4 sm:$0xff]  }
 0x501   :  { %10062 = vpow2.f32 %v8356_v6  ;;  %v9950_v6 = vld [vmem:[#allocation16 + $0xc0] ss:$16 sps:$4 sm:$0xff]  }
 0x50a   :  { %v10061_v31 = vpop.eup %10060 }
 0x50b   :  { %v10063_v32 = vpop.eup %10062  ;;  %v6186_v33 = vadd.f32 1.0, %v10061_v31  ;;  %v9955_v31 = vld [vmem:[#allocation16 + $0xe4] ss:$16 sps:$4 sm:$0xff]  }
 0x50c   :  { %v6187_v34 = vadd.f32 1.0, %v10063_v32  ;;  %v9953_v32 = vld [vmem:[#allocation16 + $0xe0] ss:$16 sps:$4 sm:$0xff]  }
 0x50d   :  { %10064 = vrcp.f32 %v6186_v33  ;;  %v9958_v33 = vld [vmem:[#allocation16 + $0xc] ss:$16 sps:$4 sm:$0xff]  }
 0x50e   :  { %10066 = vrcp.f32 %v6187_v34  ;;  %v6556_v34 = vld [vmem:[#allocation5] sm:$0xf] }
 0x517   :  { %v10065_v35 = vpop.eup %10064 }
 0x518   :  { %v10067_v36 = vpop.eup %10066  ;;  %v6198_v10 = vmul.f32 %v10065_v35, %v8593_v30  ;;  %v9941_v30 = vld [vmem:[#allocation16 + $0x60] ss:$16 sps:$4 sm:$0xff]   ;;  %v9956_v35 = vld [vmem:[#allocation16 + $0x8] ss:$16 sps:$4 sm:$0xff]  }
 0x519   :  { %v6199_v37 = vmul.f32 %v10067_v36, %v8594_v48  ;;  %v9944_v48 = vld [vmem:[#allocation16 + $0x80] ss:$16 sps:$4 sm:$0xff]   ;;  %v9961_v36 = vld [vmem:[#allocation16 + $0x2c] ss:$16 sps:$4 sm:$0xff]  }
 0x51a   :  { %v6202_v40 = vpack.c.bf16 %v6198_v10, %v6198_v10  ;;  %v9959_v10 = vld [vmem:[#allocation16 + $0x28] ss:$16 sps:$4 sm:$0xff]  }
 0x51b   :  { %v6203_v38 = vpack.c.bf16 %v6199_v37, %v6199_v37  ;;  %v9964_v37 = vld [vmem:[#allocation16 + $0x4c] ss:$16 sps:$4 sm:$0xff]  }
 0x51d   :  { %6501 = vmatprep.mubr.bf16.mxu1 %v6203_v38  ;;  %v9962_v38 = vld [vmem:[#allocation16 + $0x48] ss:$16 sps:$4 sm:$0xff]  }
 0x51e   :  { %6502 = vmatmul.mubr.bf16.vlgmr.msra.gmra.mrb[12].mxu1 %v6202_v40  ;;  %v9965_v40 = vld [vmem:[#allocation16 + $0x68] ss:$16 sps:$4 sm:$0xff]  }
 0x51f   :  { %8518 = vmatpush3.bf16.msra.mxu1 %v9917_v39  ;;  %v9967_v39 = vld [vmem:[#allocation16 + $0x6c] ss:$16 sps:$4 sm:$0xff]  }
 0x520   :  { %8519 = vmatprep.subr.bf16.mxu1 %v9918_v41  ;;  %v9970_v41 = vld [vmem:[#allocation16 + $0x8c] ss:$16 sps:$4 sm:$0xff]  }
 0x523   :  { %8520 = vmatpush3.bf16.msra.mxu1 %v9919_v26  ;;  %v9968_v26 = vld [vmem:[#allocation16 + $0x88] ss:$16 sps:$4 sm:$0xff]  }
 0x524   :  { %8521 = vmatprep.subr.bf16.mxu1 %v9920_v18  ;;  %v9973_v18 = vld [vmem:[#allocation16 + $0xac] ss:$16 sps:$4 sm:$0xff]  }
 0x527   :  { %8522 = vmatpush3.bf16.msra.mxu1 %v9921_v20  ;;  %v9971_v20 = vld [vmem:[#allocation16 + $0xa8] ss:$16 sps:$4 sm:$0xff]  }
 0x528   :  { %8523 = vmatprep.subr.bf16.mxu1 %v9922_v43  ;;  %v9976_v43 = vld [vmem:[#allocation16 + $0xcc] ss:$16 sps:$4 sm:$0xff]  }
 0x52b   :  { %8524 = vmatpush3.bf16.msra.mxu1 %v9923_v44  ;;  %v9974_v44 = vld [vmem:[#allocation16 + $0xc8] ss:$16 sps:$4 sm:$0xff]  }
 0x52c   :  { %8525 = vmatprep.subr.bf16.mxu1 %v9924_v45  ;;  %v9979_v45 = vld [vmem:[#allocation16 + $0xec] ss:$16 sps:$4 sm:$0xff]  }
 0x52f   :  { %8526 = vmatpush3.bf16.msra.mxu1 %v9925_v46  ;;  %v9977_v46 = vld [vmem:[#allocation16 + $0xe8] ss:$16 sps:$4 sm:$0xff]  }
 0x530   :  { %8527 = vmatprep.subr.bf16.mxu1 %v9926_v47 }
 0x533   :  { %8528 = vmatpush3.bf16.msra.mxu1 %v9927_v49 }
 0x534   :  { %8529 = vmatprep.subr.bf16.mxu1 %v9928_v53 }
 0x537   :  { %8530 = vmatpush3.bf16.msra.mxu1 %v9929_v54 }
 0x538   :  { %8531 = vmatprep.subr.bf16.mxu1 %v9930_v56 }
 0x53b   :  { %8532 = vmatpush3.bf16.msra.mxu1 %v9931_v57  ;;  %v9980_v57 = vld [vmem:[#allocation19 + $0x40] sm:$0xff]  }
 0x53c   :  { %6771 = vmatprep.subr.bf16.mxu1 %v9934_v59  ;;  %v9981_v59 = vld [vmem:[#allocation19] sm:$0xff]  }
 0x561   :  { %v6167_v11 = vpop.f32.mrb[12].mxu0 }
 0x562   :  { %v8595_v7 = vadd.f32 %v6167_v11, %v4155_v60  ;;  %v6169_v62 = vpop.f32.mrb[13].mxu0  ;;  %v9982_v60 = vld [vmem:[#allocation19 + $0x48] sm:$0xff]   ;;  %v9984_v11 = vld [vmem:[#allocation19 + $0x50] sm:$0xff]  }
 0x563   :  { %v8596_v63 = vadd.f32 %v6169_v62, %v4159_v61  ;;  %v6171_v9 = vpop.f32.mrb[14].mxu0  ;;  %v9983_v61 = vld [vmem:[#allocation19 + $0x8] sm:$0xff]   ;;  %v9986_v62 = vld [vmem:[#allocation19 + $0x58] sm:$0xff]  }
 0x564   :  { %v8357_v0 = vmul.f32 -1.442695, %v8595_v7  ;;  %v6172_v1 = vpop.f32.mrb[15].mxu0  ;;  %v9988_v9 = vld [vmem:[#allocation19 + $0x60] sm:$0xff]  }
 0x565   :  { %v8358_v12 = vmul.f32 -1.442695, %v8596_v63  ;;  %v9990_v1 = vld [vmem:[#allocation19 + $0x68] sm:$0xff]  }
 0x566   :  { %10068 = vpow2.f32 %v8357_v0  ;;  %v9989_v0 = vld [vmem:[#allocation19 + $0x20] sm:$0xff]  }
 0x567   :  { %10070 = vpow2.f32 %v8358_v12  ;;  %v9991_v12 = vld [vmem:[#allocation19 + $0x28] sm:$0xff]  }
 0x570   :  { %v10069_v4 = vpop.eup %10068 }
 0x571   :  { %v10071_v14 = vpop.eup %10070  ;;  %v6188_v8 = vadd.f32 1.0, %v10069_v4  ;;  %v9992_v4 = vld [vmem:[#allocation19 + $0x70] sm:$0xff]  }
 0x572   :  { %v6189_v16 = vadd.f32 1.0, %v10071_v14  ;;  %v9993_v14 = vld [vmem:[#allocation19 + $0x30] sm:$0xff]  }
 0x573   :  { %10072 = vrcp.f32 %v6188_v8  ;;  %v9994_v8 = vld [vmem:[#allocation19 + $0x78] sm:$0xff]  }
 0x574   :  { %10074 = vrcp.f32 %v6189_v16  ;;  %v9995_v16 = vld [vmem:[#allocation19 + $0x38] sm:$0xff]  }
 0x57d   :  { %v10073_v17 = vpop.eup %10072 }
 0x57e   :  { %v10075_v21 = vpop.eup %10074  ;;  %v6200_v5 = vmul.f32 %v10073_v17, %v8595_v7  ;;  %v9985_v7 = vld [vmem:[#allocation19 + $0x10] sm:$0xff]   ;;  %v9996_v17 = vld [vmem:[#allocation19 + $0xc0] sm:$0xff]  }
 0x57f   :  { %v6201_v27 = vmul.f32 %v10075_v21, %v8596_v63  ;;  %v9987_v63 = vld [vmem:[#allocation19 + $0x18] sm:$0xff]  }
 0x580   :  { %v6204_v3 = vpack.c.bf16 %v6200_v5, %v6200_v5  ;;  %v8359_v21 = vld [vmem:[#allocation14] ss:$0 sm:$0xff] }
 0x581   :  { %v6205_v22 = vpack.c.bf16 %v6201_v27, %v6201_v27 }
 0x583   :  { %6541 = vmatprep.mubr.bf16.mxu1 %v6205_v22 }
 0x584   :  { %6542 = vmatmul.mubr.bf16.vlgmr.msra.gmra.mrb[16].mxu1 %v6204_v3 }
 0x585   :  { %6772 = vmatpush1.bf16.msra.mxu1 %v9932_v23  ;;  %6803 = vmatprep.mubr.bf16.mxu1 %v10494_v15 }
 0x586   :  { %6773 = vmatprep.subr.bf16.mxu1 %v9937_v55 }
 0x589   :  { %6774 = vmatpush1.bf16.msra.mxu1 %v9935_v24 }
 0x58a   :  { %6775 = vmatprep.subr.bf16.mxu1 %v9940_v19  ;;  %v6589_v19 = vld [vmem:[#allocation17] sm:$0xf] }
 0x58d   :  { %6776 = vmatpush1.bf16.msra.mxu1 %v9938_v25  ;;  %v6594_v25 = vrot.slane %v6589_v19, %v10842_v50 }
 0x58e   :  { %6777 = vmatprep.subr.bf16.mxu1 %v9943_v13  ;;  %v6598_v13 = vrot.slane %v6589_v19, %v10828_v58 }
 0x591   :  { %6778 = vmatpush1.bf16.msra.mxu1 %v9941_v30 }
 0x592   :  { %6779 = vmatprep.subr.bf16.mxu1 %v9946_v42 }
 0x595   :  { %6780 = vmatpush1.bf16.msra.mxu1 %v9944_v48 }
 0x596   :  { %6781 = vmatprep.subr.bf16.mxu1 %v9949_v28 }
 0x599   :  { %6782 = vmatpush1.bf16.msra.mxu1 %v9947_v52 }
 0x59a   :  { %6783 = vmatprep.subr.bf16.mxu1 %v9952_v29 }
 0x59d   :  { %6784 = vmatpush1.bf16.msra.mxu1 %v9950_v6 }
 0x59e   :  { %6785 = vmatprep.subr.bf16.mxu1 %v9955_v31 }
 0x5a1   :  { %6786 = vmatpush1.bf16.msra.mxu1 %v9953_v32 }
 0x5a2   :  { %6812 = vmatprep.subr.bf16.mxu1 %v9958_v33 }
 0x5a4   :  { %6804 = vmatmul.mubr.bf16.vlgmr.msra.gmra.mrb[20].mxu1 %v6556_v34 }
 0x5a5   :  { %6813 = vmatpush1.bf16.msra.mxu1 %v9956_v35  ;;  %6844 = vmatprep.mubr.bf16.mxu1 %v10494_v15 }
 0x5a6   :  { %6814 = vmatprep.subr.bf16.mxu1 %v9961_v36 }
 0x5a9   :  { %6815 = vmatpush1.bf16.msra.mxu1 %v9959_v10 }
 0x5aa   :  { %6816 = vmatprep.subr.bf16.mxu1 %v9964_v37 }
 0x5ad   :  { %6817 = vmatpush1.bf16.msra.mxu1 %v9962_v38  ;;  %v6602_v38 = vrot.slane %v6589_v19, %v10862_v2  ;;  %v10000_v2 = vld [vmem:[#allocation19 + $0xd0] sm:$0xff]  }
 0x5ae   :  { %6818 = vmatprep.subr.bf16.mxu1 %v9967_v39 }
 0x5b1   :  { %6819 = vmatpush1.bf16.msra.mxu1 %v9965_v40  ;;  %v6606_v40 = vrot.slane %v6589_v19, %v10845_v51  ;;  %v10001_v51 = vld [vmem:[#allocation19 + $0x90] sm:$0xff]  }
 0x5b2   :  { %6820 = vmatprep.subr.bf16.mxu1 %v9970_v41  ;;  %v10015_v19 = vld [vmem:[#allocation22 + $0x10] ss:$8 sps:$4 sm:$0xff]  }
 0x5b5   :  { %6821 = vmatpush1.bf16.msra.mxu1 %v9968_v26 }
 0x5b6   :  { %6822 = vmatprep.subr.bf16.mxu1 %v9973_v18  ;;  %v9997_v18 = vld [vmem:[#allocation19 + $0x80] sm:$0xff]  }
 0x5b9   :  { %6823 = vmatpush1.bf16.msra.mxu1 %v9971_v20 }
 0x5ba   :  { %6824 = vmatprep.subr.bf16.mxu1 %v9976_v43 }
 0x5bd   :  { %6825 = vmatpush1.bf16.msra.mxu1 %v9974_v44 }
 0x5be   :  { %6826 = vmatprep.subr.bf16.mxu1 %v9979_v45  ;;  %v9998_v45 = vld [vmem:[#allocation19 + $0xc8] sm:$0xff]  }
 0x5c1   :  { %6827 = vmatpush1.bf16.msra.mxu1 %v9977_v46 }
 0x5c2   :  { %8539 = vmatprep.subr.bf16.mxu1 %v9980_v57  ;;  %v10002_v57 = vld [vmem:[#allocation19 + $0xd8] sm:$0xff]  }
 0x5c4   :  { %6845 = vmatmul.mubr.bf16.vlgmr.msra.gmra.mrb[24].mxu1 %v6556_v34 }
 0x5c5   :  { %8540 = vmatpush3.bf16.msra.mxu1 %v9981_v59  ;;  %v10003_v59 = vld [vmem:[#allocation19 + $0x98] sm:$0xff]  }
 0x5c6   :  { %8541 = vmatprep.subr.bf16.mxu1 %v9982_v60  ;;  %v10004_v60 = vld [vmem:[#allocation19 + $0xe0] sm:$0xff]  }
 0x5c9   :  { %8542 = vmatpush3.bf16.msra.mxu1 %v9983_v61 }
 0x5ca   :  { %8543 = vmatprep.subr.bf16.mxu1 %v9984_v11 }
 0x5cd   :  { %8544 = vmatpush3.bf16.msra.mxu1 %v9985_v7 }
 0x5ce   :  { %8545 = vmatprep.subr.bf16.mxu1 %v9986_v62  ;;  %v10005_v62 = vld [vmem:[#allocation19 + $0xa0] sm:$0xff]  }
 0x5d1   :  { %8546 = vmatpush3.bf16.msra.mxu1 %v9987_v63 }
 0x5d2   :  { %8547 = vmatprep.subr.bf16.mxu1 %v9988_v9  ;;  %v10006_v9 = vld [vmem:[#allocation19 + $0xe8] sm:$0xff]  }
 0x5d5   :  { %8548 = vmatpush3.bf16.msra.mxu1 %v9989_v0  ;;  %v10007_v0 = vld [vmem:[#allocation19 + $0xa8] sm:$0xff]  }
 0x5d6   :  { %8549 = vmatprep.subr.bf16.mxu1 %v9990_v1  ;;  %v10008_v1 = vld [vmem:[#allocation19 + $0xf0] sm:$0xff]  }
 0x5d9   :  { %8550 = vmatpush3.bf16.msra.mxu1 %v9991_v12  ;;  %v10009_v12 = vld [vmem:[#allocation19 + $0xb0] sm:$0xff]  }
 0x5da   :  { %8551 = vmatprep.subr.bf16.mxu1 %v9992_v4  ;;  %v10010_v4 = vld [vmem:[#allocation19 + $0xf8] sm:$0xff]  }
 0x5dd   :  { %8552 = vmatpush3.bf16.msra.mxu1 %v9993_v14 }
 0x5de   :  { %8553 = vmatprep.subr.bf16.mxu1 %v9994_v8 }
 0x5e1   :  { %8554 = vmatpush3.bf16.msra.mxu1 %v9995_v16  ;;  %v10011_v16 = vld [vmem:[#allocation19 + $0xb8] sm:$0xff]  }
 0x5e2   :  { %8561 = vmatprep.subr.bf16.mxu1 %v9996_v17 }
 0x5f1   :  { %v8511_v47 = vpop.f32.mrb[12].mxu1 }
 0x5f2   :  { %v8512_v49 = vpop.f32.mrb[13].mxu1 }
 0x5f3   :  { %v8513_v53 = vadd.f32 %v8512_v49, %v8511_v47  ;;  %v8514_v54 = vpop.f32.mrb[14].mxu1 }
 0x5f4   :  { %v8515_v56 = vpop.f32.mrb[15].mxu1 }
 0x5f5   :  { %v6504_v22 = vadd.f32 %v8513_v53, %v8359_v21  ;;  %v9999_v56 = vld [vmem:[#allocation19 + $0x88] sm:$0xff]  }
 0x657   :  { %v8533_v5 = vpop.f32.mrb[16].mxu1 }
 0x658   :  { %v8534_v27 = vpop.f32.mrb[17].mxu1 }
 0x659   :  { %v8535_v23 = vadd.f32 %v8534_v27, %v8533_v5  ;;  %v8536_v3 = vpop.f32.mrb[18].mxu1  ;;  %v10014_v5 = vld [vmem:[#allocation22 + $0x4] ss:$8 sps:$4 sm:$0xff]  }
 0x65a   :  { %v8537_v55 = vpop.f32.mrb[19].mxu1 }
 0x65b   :  { %v10925_v24 = vadd.f32 %v8535_v23, %v6504_v22  ;;  %v10012_v23 = vld [vmem:[#allocation22] ss:$8 sps:$4 sm:$0xff]   ;;  %v10017_v55 = vld [vmem:[#allocation22 + $0x14] ss:$8 sps:$4 sm:$0xff]  }
 0x65d   :  { %v8392_v14 = vmul.f32 -1.442695, %v10925_v24 }
 0x677   :  { %v6805_v30 = vpop.f32.mrb[20].mxu1 }
 0x678   :  { %v6806_v42 = vadd.f32 %v6805_v30, %v6594_v25  ;;  %v6807_v48 = vpop.f32.mrb[21].mxu1  ;;  %v10020_v25 = vld [vmem:[#allocation22 + $0x24] ss:$8 sps:$4 sm:$0xff]  }
 0x679   :  { %v6808_v28 = vadd.f32 %v6807_v48, %v6598_v13  ;;  %v6809_v52 = vpop.f32.mrb[22].mxu1  ;;  %v10018_v13 = vld [vmem:[#allocation22 + $0x20] ss:$8 sps:$4 sm:$0xff]  }
 0x67a   :  { %v8425_v29 = vmul.f32 -1.442695, %v6806_v42  ;;  %v6810_v6 = vpop.f32.mrb[23].mxu1  ;;  %v10026_v52 = vld [vmem:[#allocation22 + $0x44] ss:$8 sps:$4 sm:$0xff]  }
 0x67b   :  { %v8426_v31 = vmul.f32 -1.442695, %v6808_v28  ;;  %v10029_v6 = vld [vmem:[#allocation22 + $0x54] ss:$8 sps:$4 sm:$0xff]  }
 0x67c   :  { %10076 = vpow2.f32 %v8425_v29  ;;  %v10024_v29 = vld [vmem:[#allocation22 + $0x40] ss:$8 sps:$4 sm:$0xff]  }
 0x67d   :  { %10078 = vpow2.f32 %v8426_v31  ;;  %v10027_v31 = vld [vmem:[#allocation22 + $0x50] ss:$8 sps:$4 sm:$0xff]  }
 0x686   :  { %v10077_v32 = vpop.eup %10076 }
 0x687   :  { %v10079_v33 = vpop.eup %10078  ;;  %v6865_v34 = vadd.f32 1.0, %v10077_v32  ;;  %v10030_v32 = vld [vmem:[#allocation22 + $0x60] ss:$8 sps:$4 sm:$0xff]  }
 0x688   :  { %v6866_v35 = vadd.f32 1.0, %v10079_v33  ;;  %v10035_v33 = vld [vmem:[#allocation22 + $0x74] ss:$8 sps:$4 sm:$0xff]  }
 0x689   :  { %10080 = vrcp.f32 %v6865_v34 }
 0x68a   :  { %10082 = vrcp.f32 %v6866_v35  ;;  %v10033_v35 = vld [vmem:[#allocation22 + $0x70] ss:$8 sps:$4 sm:$0xff]  }
 0x693   :  { %v10081_v36 = vpop.eup %10080 }
 0x694   :  { %v10083_v10 = vpop.eup %10082  ;;  %v6877_v37 = vmul.f32 %v10081_v36, %v6806_v42  ;;  %v10023_v42 = vld [vmem:[#allocation22 + $0x34] ss:$8 sps:$4 sm:$0xff]  }
 0x695   :  { %v6878_v39 = vmul.f32 %v10083_v10, %v6808_v28  ;;  %v10021_v28 = vld [vmem:[#allocation22 + $0x30] ss:$8 sps:$4 sm:$0xff]  }
 0x696   :  { %v6881_v20 = vpack.c.bf16 %v6877_v37, %v6877_v37  ;;  %v10038_v37 = vld [vmem:[#allocation23 + $0x4] ss:$8 sps:$4 sm:$0xff]  }
 0x697   :  { %v6882_v41 = vpack.c.bf16 %v6878_v39, %v6878_v39  ;;  %v6846_v26 = vpop.f32.mrb[24].mxu1  ;;  %7349 = vmatprep.subr.bf16.mxu0 %v10038_v37  ;;  %v10041_v39 = vld [vmem:[#allocation23 + $0x14] ss:$8 sps:$4 sm:$0xff]  }
 0x698   :  { %v6847_v43 = vadd.f32 %v6846_v26, %v6602_v38  ;;  %v6848_v44 = vpop.f32.mrb[25].mxu1  ;;  %v10036_v38 = vld [vmem:[#allocation23] ss:$8 sps:$4 sm:$0xff]  }
 0x699   :  { %v6849_v46 = vadd.f32 %v6848_v44, %v6606_v40  ;;  %v6850_v47 = vpop.f32.mrb[26].mxu1  ;;  %7180 = vmatprep.mubr.bf16.mxu1 %v6882_v41  ;;  %7350 = vmatpush1.bf16.msra.mxu0 %v10036_v38  ;;  %v10039_v40 = vld [vmem:[#allocation23 + $0x10] ss:$8 sps:$4 sm:$0xff]   ;;  %v10044_v41 = vld [vmem:[#allocation23 + $0x24] ss:$8 sps:$4 sm:$0xff]  }
 0x69a   :  { %v8427_v49 = vmul.f32 -1.442695, %v6847_v43  ;;  %v6851_v53 = vpop.f32.mrb[27].mxu1  ;;  %7181 = vmatmul.mubr.bf16.vlgmr.msra.gmra.mrb[28].mxu1 %v6881_v20  ;;  %7351 = vmatprep.subr.bf16.mxu0 %v10041_v39  ;;  %v10042_v26 = vld [vmem:[#allocation23 + $0x20] ss:$8 sps:$4 sm:$0xff]  }
 0x69b   :  { %v8428_v54 = vmul.f32 -1.442695, %v6849_v46  ;;  %8562 = vmatpush3.bf16.msra.mxu1 %v9997_v18  ;;  %v10047_v18 = vld [vmem:[#allocation23 + $0x34] ss:$8 sps:$4 sm:$0xff]   ;;  %v10045_v20 = vld [vmem:[#allocation23 + $0x30] ss:$8 sps:$4 sm:$0xff]  }
 0x69c   :  { %10084 = vpow2.f32 %v8427_v49  ;;  %8563 = vmatprep.subr.bf16.mxu1 %v9998_v45  ;;  %v10053_v44 = vld [vmem:[#allocation23 + $0x54] ss:$8 sps:$4 sm:$0xff]   ;;  %v10051_v45 = vld [vmem:[#allocation23 + $0x50] ss:$8 sps:$4 sm:$0xff]   ;;  %v10054_v47 = vld [vmem:[#allocation23 + $0x60] ss:$8 sps:$4 sm:$0xff]  }
 0x69d   :  { %10086 = vpow2.f32 %v8428_v54  ;;  %7352 = vmatpush1.bf16.msra.mxu0 %v10039_v40  ;;  %v10059_v49 = vld [vmem:[#allocation23 + $0x74] ss:$8 sps:$4 sm:$0xff]   ;;  %v10057_v53 = vld [vmem:[#allocation23 + $0x70] ss:$8 sps:$4 sm:$0xff]  }
 0x69e   :  { %7353 = vmatprep.subr.bf16.mxu0 %v10044_v41 }
 0x69f   :  { %8564 = vmatpush3.bf16.msra.mxu1 %v9999_v56 }
 0x6a0   :  { %8565 = vmatprep.subr.bf16.mxu1 %v10000_v2 }
 0x6a1   :  { %7354 = vmatpush1.bf16.msra.mxu0 %v10042_v26 }
 0x6a2   :  { %7355 = vmatprep.subr.bf16.mxu0 %v10047_v18 }
 0x6a3   :  { %8566 = vmatpush3.bf16.msra.mxu1 %v10001_v51 }
 0x6a4   :  { %8567 = vmatprep.subr.bf16.mxu1 %v10002_v57 }
 0x6a5   :  { %7356 = vmatpush1.bf16.msra.mxu0 %v10045_v20 }
 0x6a6   :  { %v10085_v61 = vpop.eup %10084 }
 0x6a7   :  { %v10087_v11 = vpop.eup %10086  ;;  %v6867_v7 = vadd.f32 1.0, %v10085_v61  ;;  %8568 = vmatpush3.bf16.msra.mxu1 %v10003_v59  ;;  %v8429_v59 = vld [vmem:[#allocation20] ss:$0 sm:$0xff] }
 0x6a8   :  { %v6868_v63 = vadd.f32 1.0, %v10087_v11  ;;  %8569 = vmatprep.subr.bf16.mxu1 %v10004_v60 }
 0x6a9   :  { %10088 = vrcp.f32 %v6867_v7 }
 0x6aa   :  { %10090 = vrcp.f32 %v6868_v63 }
 0x6ab   :  { %8570 = vmatpush3.bf16.msra.mxu1 %v10005_v62  ;;  %10092 = vpow2.f32 %v8392_v14 }
 0x6ac   :  { %8571 = vmatprep.subr.bf16.mxu1 %v10006_v9 }
 0x6af   :  { %8572 = vmatpush3.bf16.msra.mxu1 %v10007_v0 }
 0x6b0   :  { %8573 = vmatprep.subr.bf16.mxu1 %v10008_v1 }
 0x6b3   :  { %v10089_v8 = vpop.eup %10088  ;;  %8574 = vmatpush3.bf16.msra.mxu1 %v10009_v12 }
 0x6b4   :  { %v10091_v17 = vpop.eup %10090  ;;  %v6879_v21 = vmul.f32 %v10089_v8, %v6847_v43  ;;  %8575 = vmatprep.subr.bf16.mxu1 %v10010_v4  ;;  %v10048_v43 = vld [vmem:[#allocation23 + $0x40] ss:$8 sps:$4 sm:$0xff]  }
 0x6b5   :  { %v6880_v27 = vmul.f32 %v10091_v17, %v6849_v46  ;;  %v10093_v30 = vpop.eup %10092  ;;  %v10056_v46 = vld [vmem:[#allocation23 + $0x64] ss:$8 sps:$4 sm:$0xff]  }
 0x6b6   :  { %v6883_v3 = vpack.c.bf16 %v6879_v21, %v6879_v21  ;;  %v6552_v48 = vadd.f32 1.0, %v10093_v30 }
 0x6b7   :  { %v6884_v22 = vpack.c.bf16 %v6880_v27, %v6880_v27  ;;  %8576 = vmatpush3.bf16.msra.mxu1 %v10011_v16  ;;  %v7511_v27 = vld [vmem:[#allocation25] sm:$0x3] }
 0x6b8   :  { %7470 = vmatprep.subr.bf16.mxu1 %v10014_v5  ;;  %10094 = vrcp.f32 %v6552_v48 }
 0x6b9   :  { %7220 = vmatprep.mubr.bf16.mxu1 %v6884_v22  ;;  %v7516_v22 = vrot.slane %v7511_v27, %v10842_v50 }
 0x6ba   :  { %7221 = vmatmul.mubr.bf16.vlgmr.msra.gmra.mrb[32].mxu1 %v6883_v3  ;;  %v7520_v3 = vrot.slane %v7511_v27, %v10828_v58 }
 0x6bb   :  { %7471 = vmatpush1.bf16.msra.mxu1 %v10012_v23  ;;  %7502 = vmatprep.mubr.bf16.mxu1 %v10494_v15  ;;  %v10032_v15 = vld [vmem:[#allocation22 + $0x64] ss:$8 sps:$4 sm:$0xff]  }
 0x6bc   :  { %7472 = vmatprep.subr.bf16.mxu1 %v10017_v55 }
 0x6bf   :  { %7473 = vmatpush1.bf16.msra.mxu1 %v10015_v19 }
 0x6c0   :  { %7474 = vmatprep.subr.bf16.mxu1 %v10020_v25 }
 0x6c2   :  { %v10095_v34 = vpop.eup %10094 }
 0x6c3   :  { %7475 = vmatpush1.bf16.msra.mxu1 %v10018_v13  ;;  %v6555_v36 = vmul.f32 %v10095_v34, %v10925_v24  ;;  %v10050_v24 = vld [vmem:[#allocation23 + $0x44] ss:$8 sps:$4 sm:$0xff]  }
 0x6c4   :  { %7476 = vmatprep.subr.bf16.mxu1 %v10023_v42  ;;  %7357 = vmatprep.subr.bf16.mxu0 %v10050_v24 }
 0x6c5   :  { %v7235_v10 = vpack.c.bf16 %v6555_v36, %v6555_v36  ;;  %7358 = vmatpush1.bf16.msra.mxu0 %v10048_v43 }
 0x6c6   :  { %7359 = vmatprep.subr.bf16.mxu0 %v10053_v44 }
 0x6c7   :  { %7477 = vmatpush1.bf16.msra.mxu1 %v10021_v28 }
 0x6c8   :  { %7478 = vmatprep.subr.bf16.mxu1 %v10026_v52 }
 0x6c9   :  { %7360 = vmatpush1.bf16.msra.mxu0 %v10051_v45 }
 0x6ca   :  { %7361 = vmatprep.subr.bf16.mxu0 %v10056_v46 }
 0x6cb   :  { %7479 = vmatpush1.bf16.msra.mxu1 %v10024_v29 }
 0x6cc   :  { %7480 = vmatprep.subr.bf16.mxu1 %v10029_v6 }
 0x6cd   :  { %7362 = vmatpush1.bf16.msra.mxu0 %v10054_v47 }
 0x6ce   :  { %7363 = vmatprep.subr.bf16.mxu0 %v10059_v49 }
 0x6cf   :  { %7481 = vmatpush1.bf16.msra.mxu1 %v10027_v31 }
 0x6d0   :  { %7482 = vmatprep.subr.bf16.mxu1 %v10032_v15 }
 0x6d1   :  { %7364 = vmatpush1.bf16.msra.mxu0 %v10057_v53 }
 0x6d3   :  { %7483 = vmatpush1.bf16.msra.mxu1 %v10030_v32 }
 0x6d4   :  { %7484 = vmatprep.subr.bf16.mxu1 %v10035_v33 }
 0x6d7   :  { %7485 = vmatpush1.bf16.msra.mxu1 %v10033_v35 }
 0x6da   :  { %7503 = vmatmul.mubr.bf16.vlgmr.msra.gmra.mrb[36].mxu1 %v7235_v10 }
 0x76d   :  { %v8555_v54 = vpop.f32.mrb[28].mxu1 }
 0x76e   :  { %v8556_v56 = vpop.f32.mrb[29].mxu1 }
 0x76f   :  { %v8557_v2 = vadd.f32 %v8556_v56, %v8555_v54  ;;  %v8558_v51 = vpop.f32.mrb[30].mxu1 }
 0x770   :  { %v8559_v57 = vpop.f32.mrb[31].mxu1 }
 0x771   :  { %v7183_v11 = vadd.f32 %v8557_v2, %v8429_v59 }
 0x78d   :  { %v8577_v60 = vpop.f32.mrb[32].mxu1 }
 0x78e   :  { %v8578_v61 = vpop.f32.mrb[33].mxu1 }
 0x78f   :  { %v8579_v7 = vadd.f32 %v8578_v61, %v8577_v60  ;;  %v8580_v62 = vpop.f32.mrb[34].mxu1 }
 0x790   :  { %v8581_v63 = vpop.f32.mrb[35].mxu1 }
 0x791   :  { %v7223_v9 = vadd.f32 %v8579_v7, %v7183_v11 }
 0x793   :  { %v8462_v0 = vmul.f32 -1.442695, %v7223_v9 }
 0x795   :  { %10096 = vpow2.f32 %v8462_v0 }
 0x79f   :  { %v10097_v1 = vpop.eup %10096 }
 0x7a0   :  { %v7231_v12 = vadd.f32 1.0, %v10097_v1 }
 0x7a2   :  { %10098 = vrcp.f32 %v7231_v12 }
 0x7ac   :  { %v10099_v4 = vpop.eup %10098 }
 0x7ad   :  { %v7234_v14 = vmul.f32 %v10099_v4, %v7223_v9  ;;  %v7504_v8 = vpop.f32.mrb[36].mxu1 }
 0x7ae   :  { %v7506_v16 = vpop.f32.mrb[37].mxu1 }
 0x7af   :  { %v7252_v17 = vpack.c.bf16 %v7234_v14, %v7234_v14  ;;  %v7508_v21 = vpop.f32.mrb[38].mxu1 }
 0x7b0   :  { %v7509_v5 = vpop.f32.mrb[39].mxu1 }
 0x7b1   :  { %7382 = vmatmul.mubr.bf16.vlgmr.msra.gmra.mrb[16].mxu0 %v7252_v17 }
 0x884   :  { %v7383_v23 = vpop.f32.mrb[16].mxu0 }
 0x885   :  { %v7505_v55 = vadd.f32 %v7504_v8, %v7383_v23  ;;  %v7385_v19 = vpop.f32.mrb[17].mxu0 }
 0x886   :  { %v7507_v25 = vadd.f32 %v7506_v16, %v7385_v19  ;;  %v7387_v13 = vpop.f32.mrb[18].mxu0 }
 0x887   :  { %v7523_v30 = vadd.f32 %v7516_v22, %v7505_v55  ;;  %v7388_v42 = vpop.f32.mrb[19].mxu0 }
 0x888   :  { %v7524_v48 = vadd.f32 %v7520_v3, %v7507_v25 }
 0x889   :  { %7525 = vst [vmem:[#allocation26] sm:$0xff] %v7523_v30 }
 0x88a   :  { %7526 = vst [vmem:[#allocation26 + $0x8] sm:$0xff] %v7524_v48 }
 0x88b   :  { %10442 = shalt.err (!%p10439_p12)
}
 0x88c   :  { %s10443_s2 = scalar_lea.hbm %s10963_s15, 256 }
 0x88d   :  { %p10444_p13 = scmp.ne.s32.totalorder %s10963_s15, %s10443_s2  ;;  %p10447_p0 = scmp.lt.u32.totalorder %s10443_s2, %s10963_s15 }
 0x88f   :  { %p10449_p1 = pnand %p10447_p0, %p10444_p13 }
 0x891   :  { %10452 = shalt.err (!%p10449_p1)
}
 0x892   :  { %7536 = dma.vmem_to_hbm [thread:$0]  %s7534_s5, 256, %s10963_s15, [#allocation4]  }
 0x893   :  { %10469 = dma.done.wait [#allocation4], 256  }
 0x894   :  { %10470 = vsyncadd [#allocation4], 4294967040 }
 0x895   :  { %7540 = vsyncpa [#allocation3], 1 }
 0x896   :  { %7541 = vsyncpa [#allocation6], 1 }
 0x897   :  { %7542 = vsyncpa [#allocation9], 1 }
 0x898   :  { %7543 = vsyncpa [#allocation12], 1 }
 0x899   :  { %7544 = vsyncpa [#allocation15], 1 }
 0x89a   :  { %7545 = vsyncpa [#allocation18], 1 }
 0x89b   :  { %7546 = vsyncpa [#allocation21], 1 }
 0x89c   :  { %7547 = vsyncpa [#allocation24], 1 }
 0x89d   :  { %7548 = vsyncpa [#allocation4], 1 }

</bundles_post_ra>
